<compile_context>
chip_gen: v7x
topology: tpu7x:2x2x1
jax: 0.10.0
libtpu: 0.0.40
codegen_flags: <defaults>
</compile_context>

<pallas_src>
import functools

import jax
import jax.numpy as jnp
from jax import lax
from jax.experimental import pallas as pl
from jax.experimental.pallas import tpu as pltpu

_BN_EPS = 1e-5


def _upblock_kernel(base_w, pad, x1_ref, x2_ref, wup_ref, bup_ref, w1s_ref,
                    w1u_ref, b1_ref, w2_ref, b2_ref, o_ref, up_ref, mid_ref):
    """One batch sample per grid step, everything in parity (sub-pixel) space.

    x1_ref : (1, R, Cin)            R = H1*W1 rows, channels on lanes
    x2_ref : (1, 4, R + 2*pad, Cskip)  row-padded parity slabs of the skip input
    wup_ref: (4, Cin, Cup)          one transposed-conv matrix per parity
    w1s_ref/w1u_ref: (3, 3, Cskip|Cup, Cout)  folded conv1 weights (split)
    w2_ref : (3, 3, Cout, Cout)     folded conv2 weights
    o_ref  : (1, 4, R, Cout)        output parity slabs
    up_ref : (4, R + 2*pad, Cup)    VMEM scratch, upsample result (halo-padded)
    mid_ref: (4, R + 2*pad, Cout)   VMEM scratch, conv1 output (halo-padded)
    """
    f32 = jnp.float32
    rows = x1_ref.shape[1]
    c_up = up_ref.shape[2]
    c_out = o_ref.shape[3]

    # Per-row column index (b = row % W1) for the +-1 column-shift border masks.
    col = lax.broadcasted_iota(jnp.int32, (rows, 1), 0) % base_w
    mask_l = (col >= 1).astype(f32)             # valid when reading column b-1
    mask_r = (col <= base_w - 2).astype(f32)    # valid when reading column b+1

    def window(win, qx):
        if qx == 1:
            return win * mask_r
        if qx == -1:
            return win * mask_l
        return win

    # ---- ConvTranspose2d(k=2, s=2): one MXU matmul per output parity. ----
    x1v = x1_ref[0]                             # (R, Cin)
    bup = bup_ref[...]                          # (1, Cup)
    for r in range(4):
        # Zero only the halo bands; the interiors are fully overwritten.
        up_ref[r, 0:pad, :] = jnp.zeros((pad, c_up), f32)
        up_ref[r, pad + rows:rows + 2 * pad, :] = jnp.zeros((pad, c_up), f32)
        mid_ref[r, 0:pad, :] = jnp.zeros((pad, c_out), f32)
        mid_ref[r, pad + rows:rows + 2 * pad, :] = jnp.zeros((pad, c_out), f32)
        up_ref[r, pad:pad + rows, :] = (
            jnp.dot(x1v, wup_ref[r], preferred_element_type=f32) + bup)

    # ---- DoubleConv stage 1: Conv3x3(pad=1) + folded BN + ReLU. ----
    b1 = b1_ref[...]
    for py in range(2):
        for px in range(2):
            acc = jnp.zeros((rows, c_out), f32) + b1
            for dy in (-1, 0, 1):
                qy, ry = divmod(py + dy, 2)
                for dx in (-1, 0, 1):
                    qx, rx = divmod(px + dx, 2)
                    r_in = ry * 2 + rx
                    a0 = pad + qy * base_w + qx
                    skip_win = window(x2_ref[0, r_in, a0:a0 + rows, :], qx)
                    up_win = window(up_ref[r_in, a0:a0 + rows, :], qx)
                    acc = acc + jnp.dot(skip_win, w1s_ref[dy + 1, dx + 1],
                                        preferred_element_type=f32)
                    acc = acc + jnp.dot(up_win, w1u_ref[dy + 1, dx + 1],
                                        preferred_element_type=f32)
            mid_ref[py * 2 + px, pad:pad + rows, :] = jnp.maximum(acc, 0.0)

    # ---- DoubleConv stage 2: Conv3x3(pad=1) + folded BN + ReLU. ----
    b2 = b2_ref[...]
    for py in range(2):
        for px in range(2):
            acc = jnp.zeros((rows, c_out), f32) + b2
            for dy in (-1, 0, 1):
                qy, ry = divmod(py + dy, 2)
                for dx in (-1, 0, 1):
                    qx, rx = divmod(px + dx, 2)
                    r_in = ry * 2 + rx
                    a0 = pad + qy * base_w + qx
                    win = window(mid_ref[r_in, a0:a0 + rows, :], qx)
                    acc = acc + jnp.dot(win, w2_ref[dy + 1, dx + 1],
                                        preferred_element_type=f32)
            o_ref[0, py * 2 + px, :, :] = jnp.maximum(acc, 0.0).astype(o_ref.dtype)


def _fold_bn(w, b, gamma, beta, mean, var, eps=_BN_EPS):
    """Fold eval-mode BatchNorm2d into the preceding conv's weight/bias."""
    scale = gamma / jnp.sqrt(var + eps)
    return w * scale[:, None, None, None], (b - mean) * scale + beta


@jax.jit
def upblock_forward(x1, x2, params):
    """UpBlock forward. x1: (N, Cin, H1, W1), x2: (N, Cskip, 2*H1, 2*W1)."""
    n, c_in, hh, ww = x1.shape
    n2, c_skip, h2, w2 = x2.shape
    assert n == n2 and h2 == 2 * hh and w2 == 2 * ww

    c_up = params["w_up"].shape[1]
    c_out = params["w1"].shape[0]
    c_cat = c_skip + c_up
    assert params["w1"].shape[1] == c_cat and c_up == c_out

    rows = hh * ww
    pad = -(-(ww + 1) // 8) * 8          # halo rows, rounded up so stores align

    # ---- parameter prep (plain XLA, outside the kernel) ----
    w1f, b1f = _fold_bn(params["w1"], params["b1"], params["g1"],
                        params["beta1"], params["m1"], params["v1"])
    w2f, b2f = _fold_bn(params["w2"], params["b2"], params["g2"],
                        params["beta2"], params["m2"], params["v2"])
    # ConvTranspose weight (Cin, Cup, 2, 2) -> one (Cin, Cup) matrix per parity.
    wup = jnp.transpose(params["w_up"], (2, 3, 0, 1)).reshape(4, c_in, c_up)
    # Conv weights (Cout, Cin, 3, 3) -> channels-last per-tap (3, 3, Cin, Cout);
    # conv1 split into the skip-channel part and the upsampled-channel part so
    # the skip tensor is never concatenated or copied into scratch.
    w1t = jnp.transpose(w1f, (2, 3, 1, 0))
    w1s, w1u = w1t[:, :, :c_skip, :], w1t[:, :, c_skip:, :]
    w2t = jnp.transpose(w2f, (2, 3, 1, 0))
    bup = params["b_up"].reshape(1, c_up)
    b1v = b1f.reshape(1, c_out)
    b2v = b2f.reshape(1, c_out)

    # ---- activation layout plumbing (XLA): channels-last, parity split ----
    x1_cl = jnp.transpose(x1, (0, 2, 3, 1)).reshape(n, rows, c_in)
    x2_par = jnp.transpose(x2.reshape(n, c_skip, hh, 2, ww, 2),
                           (0, 3, 5, 2, 4, 1)).reshape(n, 4, rows, c_skip)
    x2_par = jnp.pad(x2_par, ((0, 0), (0, 0), (pad, pad), (0, 0)))

    flops = n * 2 * rows * (4 * c_in * c_up
                            + 36 * c_cat * c_out + 36 * c_out * c_out)
    bytes_accessed = 4 * (x1_cl.size + x2_par.size + n * 4 * rows * c_out
                          + wup.size + w1t.size + w2t.size)

    y_par = pl.pallas_call(
        functools.partial(_upblock_kernel, ww, pad),
        out_shape=jax.ShapeDtypeStruct((n, 4, rows, c_out), x1.dtype),
        grid_spec=pltpu.PrefetchScalarGridSpec(
            num_scalar_prefetch=0,
            grid=(n,),
            in_specs=[
                pl.BlockSpec((1, rows, c_in), lambda i: (i, 0, 0)),
                pl.BlockSpec((1, 4, rows + 2 * pad, c_skip),
                             lambda i: (i, 0, 0, 0)),
                pl.BlockSpec((4, c_in, c_up), lambda i: (0, 0, 0)),
                pl.BlockSpec((1, c_up), lambda i: (0, 0)),
                pl.BlockSpec((3, 3, c_skip, c_out), lambda i: (0, 0, 0, 0)),
                pl.BlockSpec((3, 3, c_up, c_out), lambda i: (0, 0, 0, 0)),
                pl.BlockSpec((1, c_out), lambda i: (0, 0)),
                pl.BlockSpec((3, 3, c_out, c_out), lambda i: (0, 0, 0, 0)),
                pl.BlockSpec((1, c_out), lambda i: (0, 0)),
            ],
            out_specs=pl.BlockSpec((1, 4, rows, c_out), lambda i: (i, 0, 0, 0)),
            scratch_shapes=[
                pltpu.VMEM((4, rows + 2 * pad, c_up), jnp.float32),
                pltpu.VMEM((4, rows + 2 * pad, c_out), jnp.float32),
            ],
        ),
        compiler_params=pltpu.CompilerParams(
            dimension_semantics=("parallel",),
            vmem_limit_bytes=32 * 1024 * 1024,
        ),
        cost_estimate=pl.CostEstimate(flops=flops, transcendentals=0,
                                      bytes_accessed=bytes_accessed),
    )(x1_cl, x2_par, wup, bup, w1s, w1u, b1v, w2t, b2v)

    # Parity slabs -> NCHW (pure XLA layout plumbing).
    y = y_par.reshape(n, 2, 2, hh, ww, c_out)
    return jnp.transpose(y, (0, 5, 3, 1, 4, 2)).reshape(n, c_out, 2 * hh, 2 * ww)


def _reference_upblock(x1, x2, params):
    """Pure-JAX (XLA) reference of the same eval-mode UpBlock forward."""
    n, c_in, h1, w1 = x1.shape
    c_up = params["w_up"].shape[1]
    up = jnp.einsum("nihw,iokl->nohkwl", x1, params["w_up"],
                    precision=lax.Precision.HIGHEST)
    up = up.reshape(n, c_up, 2 * h1, 2 * w1) + params["b_up"][None, :, None, None]

    x = jnp.concatenate([x2, up], axis=1)

    def conv3x3(v, w, b):
        y = lax.conv_general_dilated(v, w, (1, 1), ((1, 1), (1, 1)),
                                     dimension_numbers=("NCHW", "OIHW", "NCHW"),
                                     precision=lax.Precision.HIGHEST)
        return y + b[None, :, None, None]

    def bn(v, g, beta, mean, var):
        inv = g / jnp.sqrt(var + _BN_EPS)
        return ((v - mean[None, :, None, None]) * inv[None, :, None, None]
                + beta[None, :, None, None])

    h = jax.nn.relu(bn(conv3x3(x, params["w1"], params["b1"]),
                       params["g1"], params["beta1"], params["m1"], params["v1"]))
    y = jax.nn.relu(bn(conv3x3(h, params["w2"], params["b2"]),
                       params["g2"], params["beta2"], params["m2"], params["v2"]))
    return y


if __name__ == "__main__":
    key = jax.random.PRNGKey(0)
    keys = jax.random.split(key, 16)

    # UpBlock(in_channels=8, out_channels=4): x1 is the 8x8 decoder feature,
    # x2 the 16x16 encoder skip with in_channels - out_channels = 4 channels.
    N, IN_CH, OUT_CH = 2, 8, 4
    H1 = W1 = 8
    H2, W2 = 2 * H1, 2 * W1
    C_SKIP = IN_CH - OUT_CH

    x1 = jax.random.normal(keys[0], (N, IN_CH, H1, W1), jnp.float32)
    x2 = jax.random.normal(keys[1], (N, C_SKIP, H2, W2), jnp.float32)

    def u(k, shape, bound):
        return jax.random.uniform(k, shape, jnp.float32, -bound, bound)

    b_up = 1.0 / (IN_CH * 2 * 2) ** 0.5
    b_c1 = 1.0 / (IN_CH * 9) ** 0.5
    b_c2 = 1.0 / (OUT_CH * 9) ** 0.5
    params = dict(
        w_up=u(keys[2], (IN_CH, OUT_CH, 2, 2), b_up),        # ConvTranspose2d layout
        b_up=u(keys[3], (OUT_CH,), b_up),
        w1=u(keys[4], (OUT_CH, IN_CH, 3, 3), b_c1),          # Conv2d(IN_CH -> OUT_CH)
        b1=u(keys[5], (OUT_CH,), b_c1),
        g1=jax.random.uniform(keys[6], (OUT_CH,), jnp.float32, 0.5, 1.5),
        beta1=0.1 * jax.random.normal(keys[7], (OUT_CH,), jnp.float32),
        m1=0.1 * jax.random.normal(keys[8], (OUT_CH,), jnp.float32),
        v1=jax.random.uniform(keys[9], (OUT_CH,), jnp.float32, 0.5, 1.5),
        w2=u(keys[10], (OUT_CH, OUT_CH, 3, 3), b_c2),        # Conv2d(OUT_CH -> OUT_CH)
        b2=u(keys[11], (OUT_CH,), b_c2),
        g2=jax.random.uniform(keys[12], (OUT_CH,), jnp.float32, 0.5, 1.5),
        beta2=0.1 * jax.random.normal(keys[13], (OUT_CH,), jnp.float32),
        m2=0.1 * jax.random.normal(keys[14], (OUT_CH,), jnp.float32),
        v2=jax.random.uniform(keys[15], (OUT_CH,), jnp.float32, 0.5, 1.5),
    )

    y = upblock_forward(x1, x2, params)
    y = jax.block_until_ready(y)

    y_ref = _reference_upblock(x1, x2, params)
    assert y.shape == (N, OUT_CH, H2, W2)
    assert jnp.allclose(y, y_ref, atol=1e-3, rtol=1e-3), \
        float(jnp.max(jnp.abs(y - y_ref)))

    print("KERNEL_OK")
</pallas_src>

<mosaic_0001>
module attributes {stable_mosaic.version = 11 : i64} {
  func.func @_upblock_kernel(%arg0: i32, %arg1: memref<1x64x8xf32, #tpu.memory_space<vmem>>, %arg2: memref<1x4x96x4xf32, #tpu.memory_space<vmem>>, %arg3: memref<4x8x4xf32, #tpu.memory_space<vmem>>, %arg4: memref<1x4xf32, #tpu.memory_space<vmem>>, %arg5: memref<3x3x4x4xf32, #tpu.memory_space<vmem>>, %arg6: memref<3x3x4x4xf32, #tpu.memory_space<vmem>>, %arg7: memref<1x4xf32, #tpu.memory_space<vmem>>, %arg8: memref<3x3x4x4xf32, #tpu.memory_space<vmem>>, %arg9: memref<1x4xf32, #tpu.memory_space<vmem>>, %arg10: memref<1x4x64x4xf32, #tpu.memory_space<vmem>>, %arg11: memref<4x96x4xf32, #tpu.memory_space<vmem>>, %arg12: memref<4x96x4xf32, #tpu.memory_space<vmem>>) attributes {dimension_semantics = [#tpu.dimension_semantics<parallel>], iteration_bounds = array<i64: 2>, scalar_prefetch = 0 : i64, scratch_operands = 2 : i64, tpu.core_type = #tpu.core_type<tc>, window_params = [{transform_indices = @transform_0, window_bounds = array<i64: 1, 64, 8>}, {transform_indices = @transform_1, window_bounds = array<i64: 1, 4, 96, 4>}, {pipeline_mode = #tpu.pipeline_mode<synchronous>, transform_indices = @transform_2, window_bounds = array<i64: 4, 8, 4>}, {pipeline_mode = #tpu.pipeline_mode<synchronous>, transform_indices = @transform_3, window_bounds = array<i64: 1, 4>}, {pipeline_mode = #tpu.pipeline_mode<synchronous>, transform_indices = @transform_4, window_bounds = array<i64: 3, 3, 4, 4>}, {pipeline_mode = #tpu.pipeline_mode<synchronous>, transform_indices = @transform_5, window_bounds = array<i64: 3, 3, 4, 4>}, {pipeline_mode = #tpu.pipeline_mode<synchronous>, transform_indices = @transform_6, window_bounds = array<i64: 1, 4>}, {pipeline_mode = #tpu.pipeline_mode<synchronous>, transform_indices = @transform_7, window_bounds = array<i64: 3, 3, 4, 4>}, {pipeline_mode = #tpu.pipeline_mode<synchronous>, transform_indices = @transform_8, window_bounds = array<i64: 1, 4>}, {transform_indices = @transform_9, window_bounds = array<i64: 1, 4, 64, 4>}]} {
    %0 = tpu.iota {dimensions = array<i32: 0>} : vector<64x1xi32>
    %c8_i32 = arith.constant 8 : i32
    %c0_i32 = arith.constant 0 : i32
    %1 = arith.cmpi eq, %c8_i32, %c0_i32 : i32
    %c1_i32 = arith.constant 1 : i32
    %2 = arith.select %1, %c1_i32, %c8_i32 : i32
    %3 = vector.broadcast %2 : i32 to vector<64x1xi32>
    %4 = arith.remsi %0, %3 : vector<64x1xi32>
    %c0_i32_0 = arith.constant 0 : i32
    %5 = vector.broadcast %c0_i32_0 : i32 to vector<64x1xi32>
    %6 = arith.cmpi ne, %4, %5 : vector<64x1xi32>
    %c0_i32_1 = arith.constant 0 : i32
    %7 = vector.broadcast %c0_i32_1 : i32 to vector<64x1xi32>
    %8 = arith.cmpi slt, %4, %7 : vector<64x1xi32>
    %c0_i32_2 = arith.constant 0 : i32
    %9 = arith.cmpi slt, %2, %c0_i32_2 : i32
    %10 = vector.broadcast %9 : i1 to vector<64x1xi1>
    %11 = vector.broadcast %10 : vector<64x1xi1> to vector<64x1xi1>
    %12 = arith.xori %8, %11 : vector<64x1xi1>
    %13 = arith.andi %12, %6 : vector<64x1xi1>
    %14 = vector.broadcast %2 : i32 to vector<64x1xi32>
    %15 = arith.addi %4, %14 : vector<64x1xi32>
    %16 = arith.select %13, %15, %4 : vector<64x1xi1>, vector<64x1xi32>
    %c1_i32_3 = arith.constant 1 : i32
    %17 = vector.broadcast %c1_i32_3 : i32 to vector<64x1xi32>
    %18 = arith.cmpi sge, %16, %17 : vector<64x1xi32>
    %19 = arith.extui %18 : vector<64x1xi1> to vector<64x1xi32>
    %20 = arith.sitofp %19 : vector<64x1xi32> to vector<64x1xf32>
    %c6_i32 = arith.constant 6 : i32
    %21 = vector.broadcast %c6_i32 : i32 to vector<64x1xi32>
    %22 = arith.cmpi sle, %16, %21 : vector<64x1xi32>
    %23 = arith.extui %22 : vector<64x1xi1> to vector<64x1xi32>
    %24 = arith.sitofp %23 : vector<64x1xi32> to vector<64x1xf32>
    %c0 = arith.constant 0 : index
    %c0_4 = arith.constant 0 : index
    %c0_5 = arith.constant 0 : index
    %25 = vector.load %arg1[%c0, %c0_4, %c0_5] : memref<1x64x8xf32, #tpu.memory_space<vmem>>, vector<1x64x8xf32>
    %26 = vector.shape_cast %25 : vector<1x64x8xf32> to vector<64x8xf32>
    %c0_6 = arith.constant 0 : index
    %c0_7 = arith.constant 0 : index
    %27 = vector.load %arg4[%c0_6, %c0_7] : memref<1x4xf32, #tpu.memory_space<vmem>>, vector<1x4xf32>
    %cst = arith.constant 0.000000e+00 : f32
    %28 = vector.broadcast %cst : f32 to vector<16x4xf32>
    %c0_8 = arith.constant 0 : index
    %c0_9 = arith.constant 0 : index
    %c0_10 = arith.constant 0 : index
    %29 = vector.load %arg11[%c0_8, %c0_9, %c0_10] : memref<4x96x4xf32, #tpu.memory_space<vmem>>, vector<1x16x4xf32>
    %30 = vector.shape_cast %29 : vector<1x16x4xf32> to vector<16x4xf32>
    %31 = vector.shape_cast %28 : vector<16x4xf32> to vector<1x16x4xf32>
    tpu.vector_store %arg11[%c0_8, %c0_9, %c0_10], %31 {strides = array<i32>} : memref<4x96x4xf32, #tpu.memory_space<vmem>>, vector<1x16x4xf32>,
    %cst_11 = arith.constant 0.000000e+00 : f32
    %32 = vector.broadcast %cst_11 : f32 to vector<16x4xf32>
    %c0_12 = arith.constant 0 : index
    %c80 = arith.constant 80 : index
    %c0_13 = arith.constant 0 : index
    %33 = vector.load %arg11[%c0_12, %c80, %c0_13] : memref<4x96x4xf32, #tpu.memory_space<vmem>>, vector<1x16x4xf32>
    %34 = vector.shape_cast %33 : vector<1x16x4xf32> to vector<16x4xf32>
    %35 = vector.shape_cast %32 : vector<16x4xf32> to vector<1x16x4xf32>
    tpu.vector_store %arg11[%c0_12, %c80, %c0_13], %35 {strides = array<i32>} : memref<4x96x4xf32, #tpu.memory_space<vmem>>, vector<1x16x4xf32>,
    %cst_14 = arith.constant 0.000000e+00 : f32
    %36 = vector.broadcast %cst_14 : f32 to vector<16x4xf32>
    %c0_15 = arith.constant 0 : index
    %c0_16 = arith.constant 0 : index
    %c0_17 = arith.constant 0 : index
    %37 = vector.load %arg12[%c0_15, %c0_16, %c0_17] : memref<4x96x4xf32, #tpu.memory_space<vmem>>, vector<1x16x4xf32>
    %38 = vector.shape_cast %37 : vector<1x16x4xf32> to vector<16x4xf32>
    %39 = vector.shape_cast %36 : vector<16x4xf32> to vector<1x16x4xf32>
    tpu.vector_store %arg12[%c0_15, %c0_16, %c0_17], %39 {strides = array<i32>} : memref<4x96x4xf32, #tpu.memory_space<vmem>>, vector<1x16x4xf32>,
    %cst_18 = arith.constant 0.000000e+00 : f32
    %40 = vector.broadcast %cst_18 : f32 to vector<16x4xf32>
    %c0_19 = arith.constant 0 : index
    %c80_20 = arith.constant 80 : index
    %c0_21 = arith.constant 0 : index
    %41 = vector.load %arg12[%c0_19, %c80_20, %c0_21] : memref<4x96x4xf32, #tpu.memory_space<vmem>>, vector<1x16x4xf32>
    %42 = vector.shape_cast %41 : vector<1x16x4xf32> to vector<16x4xf32>
    %43 = vector.shape_cast %40 : vector<16x4xf32> to vector<1x16x4xf32>
    tpu.vector_store %arg12[%c0_19, %c80_20, %c0_21], %43 {strides = array<i32>} : memref<4x96x4xf32, #tpu.memory_space<vmem>>, vector<1x16x4xf32>,
    %c0_22 = arith.constant 0 : index
    %c0_23 = arith.constant 0 : index
    %c0_24 = arith.constant 0 : index
    %44 = vector.load %arg3[%c0_22, %c0_23, %c0_24] : memref<4x8x4xf32, #tpu.memory_space<vmem>>, vector<1x8x4xf32>
    %45 = vector.shape_cast %44 : vector<1x8x4xf32> to vector<8x4xf32>
    %cst_25 = arith.constant dense<0.000000e+00> : vector<64x4xf32>
    %46 = tpu.matmul %26, %45, %cst_25 {dimension_numbers = #tpu.dot_dimension_numbers<[1], [0], [0], [1], [0, 0, 1, 1], [], []>} : vector<64x8xf32>, vector<8x4xf32>, vector<64x4xf32> -> vector<64x4xf32>
    %47 = vector.broadcast %27 : vector<1x4xf32> to vector<64x4xf32>
    %48 = arith.addf %46, %47 : vector<64x4xf32>
    %c0_26 = arith.constant 0 : index
    %c16 = arith.constant 16 : index
    %c0_27 = arith.constant 0 : index
    %49 = vector.load %arg11[%c0_26, %c16, %c0_27] : memref<4x96x4xf32, #tpu.memory_space<vmem>>, vector<1x64x4xf32>
    %50 = vector.shape_cast %49 : vector<1x64x4xf32> to vector<64x4xf32>
    %51 = vector.shape_cast %48 : vector<64x4xf32> to vector<1x64x4xf32>
    tpu.vector_store %arg11[%c0_26, %c16, %c0_27], %51 {strides = array<i32>} : memref<4x96x4xf32, #tpu.memory_space<vmem>>, vector<1x64x4xf32>,
    %cst_28 = arith.constant 0.000000e+00 : f32
    %52 = vector.broadcast %cst_28 : f32 to vector<16x4xf32>
    %c1 = arith.constant 1 : index
    %c0_29 = arith.constant 0 : index
    %c0_30 = arith.constant 0 : index
    %53 = vector.load %arg11[%c1, %c0_29, %c0_30] : memref<4x96x4xf32, #tpu.memory_space<vmem>>, vector<1x16x4xf32>
    %54 = vector.shape_cast %53 : vector<1x16x4xf32> to vector<16x4xf32>
    %55 = vector.shape_cast %52 : vector<16x4xf32> to vector<1x16x4xf32>
    tpu.vector_store %arg11[%c1, %c0_29, %c0_30], %55 {strides = array<i32>} : memref<4x96x4xf32, #tpu.memory_space<vmem>>, vector<1x16x4xf32>,
    %cst_31 = arith.constant 0.000000e+00 : f32
    %56 = vector.broadcast %cst_31 : f32 to vector<16x4xf32>
    %c1_32 = arith.constant 1 : index
    %c80_33 = arith.constant 80 : index
    %c0_34 = arith.constant 0 : index
    %57 = vector.load %arg11[%c1_32, %c80_33, %c0_34] : memref<4x96x4xf32, #tpu.memory_space<vmem>>, vector<1x16x4xf32>
    %58 = vector.shape_cast %57 : vector<1x16x4xf32> to vector<16x4xf32>
    %59 = vector.shape_cast %56 : vector<16x4xf32> to vector<1x16x4xf32>
    tpu.vector_store %arg11[%c1_32, %c80_33, %c0_34], %59 {strides = array<i32>} : memref<4x96x4xf32, #tpu.memory_space<vmem>>, vector<1x16x4xf32>,
    %cst_35 = arith.constant 0.000000e+00 : f32
    %60 = vector.broadcast %cst_35 : f32 to vector<16x4xf32>
    %c1_36 = arith.constant 1 : index
    %c0_37 = arith.constant 0 : index
    %c0_38 = arith.constant 0 : index
    %61 = vector.load %arg12[%c1_36, %c0_37, %c0_38] : memref<4x96x4xf32, #tpu.memory_space<vmem>>, vector<1x16x4xf32>
    %62 = vector.shape_cast %61 : vector<1x16x4xf32> to vector<16x4xf32>
    %63 = vector.shape_cast %60 : vector<16x4xf32> to vector<1x16x4xf32>
    tpu.vector_store %arg12[%c1_36, %c0_37, %c0_38], %63 {strides = array<i32>} : memref<4x96x4xf32, #tpu.memory_space<vmem>>, vector<1x16x4xf32>,
    %cst_39 = arith.constant 0.000000e+00 : f32
    %64 = vector.broadcast %cst_39 : f32 to vector<16x4xf32>
    %c1_40 = arith.constant 1 : index
    %c80_41 = arith.constant 80 : index
    %c0_42 = arith.constant 0 : index
    %65 = vector.load %arg12[%c1_40, %c80_41, %c0_42] : memref<4x96x4xf32, #tpu.memory_space<vmem>>, vector<1x16x4xf32>
    %66 = vector.shape_cast %65 : vector<1x16x4xf32> to vector<16x4xf32>
    %67 = vector.shape_cast %64 : vector<16x4xf32> to vector<1x16x4xf32>
    tpu.vector_store %arg12[%c1_40, %c80_41, %c0_42], %67 {strides = array<i32>} : memref<4x96x4xf32, #tpu.memory_space<vmem>>, vector<1x16x4xf32>,
    %c1_43 = arith.constant 1 : index
    %c0_44 = arith.constant 0 : index
    %c0_45 = arith.constant 0 : index
    %68 = vector.load %arg3[%c1_43, %c0_44, %c0_45] : memref<4x8x4xf32, #tpu.memory_space<vmem>>, vector<1x8x4xf32>
    %69 = vector.shape_cast %68 : vector<1x8x4xf32> to vector<8x4xf32>
    %cst_46 = arith.constant dense<0.000000e+00> : vector<64x4xf32>
    %70 = tpu.matmul %26, %69, %cst_46 {dimension_numbers = #tpu.dot_dimension_numbers<[1], [0], [0], [1], [0, 0, 1, 1], [], []>} : vector<64x8xf32>, vector<8x4xf32>, vector<64x4xf32> -> vector<64x4xf32>
    %71 = vector.broadcast %27 : vector<1x4xf32> to vector<64x4xf32>
    %72 = arith.addf %70, %71 : vector<64x4xf32>
    %c1_47 = arith.constant 1 : index
    %c16_48 = arith.constant 16 : index
    %c0_49 = arith.constant 0 : index
    %73 = vector.load %arg11[%c1_47, %c16_48, %c0_49] : memref<4x96x4xf32, #tpu.memory_space<vmem>>, vector<1x64x4xf32>
    %74 = vector.shape_cast %73 : vector<1x64x4xf32> to vector<64x4xf32>
    %75 = vector.shape_cast %72 : vector<64x4xf32> to vector<1x64x4xf32>
    tpu.vector_store %arg11[%c1_47, %c16_48, %c0_49], %75 {strides = array<i32>} : memref<4x96x4xf32, #tpu.memory_space<vmem>>, vector<1x64x4xf32>,
    %cst_50 = arith.constant 0.000000e+00 : f32
    %76 = vector.broadcast %cst_50 : f32 to vector<16x4xf32>
    %c2 = arith.constant 2 : index
    %c0_51 = arith.constant 0 : index
    %c0_52 = arith.constant 0 : index
    %77 = vector.load %arg11[%c2, %c0_51, %c0_52] : memref<4x96x4xf32, #tpu.memory_space<vmem>>, vector<1x16x4xf32>
    %78 = vector.shape_cast %77 : vector<1x16x4xf32> to vector<16x4xf32>
    %79 = vector.shape_cast %76 : vector<16x4xf32> to vector<1x16x4xf32>
    tpu.vector_store %arg11[%c2, %c0_51, %c0_52], %79 {strides = array<i32>} : memref<4x96x4xf32, #tpu.memory_space<vmem>>, vector<1x16x4xf32>,
    %cst_53 = arith.constant 0.000000e+00 : f32
    %80 = vector.broadcast %cst_53 : f32 to vector<16x4xf32>
    %c2_54 = arith.constant 2 : index
    %c80_55 = arith.constant 80 : index
    %c0_56 = arith.constant 0 : index
    %81 = vector.load %arg11[%c2_54, %c80_55, %c0_56] : memref<4x96x4xf32, #tpu.memory_space<vmem>>, vector<1x16x4xf32>
    %82 = vector.shape_cast %81 : vector<1x16x4xf32> to vector<16x4xf32>
    %83 = vector.shape_cast %80 : vector<16x4xf32> to vector<1x16x4xf32>
    tpu.vector_store %arg11[%c2_54, %c80_55, %c0_56], %83 {strides = array<i32>} : memref<4x96x4xf32, #tpu.memory_space<vmem>>, vector<1x16x4xf32>,
    %cst_57 = arith.constant 0.000000e+00 : f32
    %84 = vector.broadcast %cst_57 : f32 to vector<16x4xf32>
    %c2_58 = arith.constant 2 : index
    %c0_59 = arith.constant 0 : index
    %c0_60 = arith.constant 0 : index
    %85 = vector.load %arg12[%c2_58, %c0_59, %c0_60] : memref<4x96x4xf32, #tpu.memory_space<vmem>>, vector<1x16x4xf32>
    %86 = vector.shape_cast %85 : vector<1x16x4xf32> to vector<16x4xf32>
    %87 = vector.shape_cast %84 : vector<16x4xf32> to vector<1x16x4xf32>
    tpu.vector_store %arg12[%c2_58, %c0_59, %c0_60], %87 {strides = array<i32>} : memref<4x96x4xf32, #tpu.memory_space<vmem>>, vector<1x16x4xf32>,
    %cst_61 = arith.constant 0.000000e+00 : f32
    %88 = vector.broadcast %cst_61 : f32 to vector<16x4xf32>
    %c2_62 = arith.constant 2 : index
    %c80_63 = arith.constant 80 : index
    %c0_64 = arith.constant 0 : index
    %89 = vector.load %arg12[%c2_62, %c80_63, %c0_64] : memref<4x96x4xf32, #tpu.memory_space<vmem>>, vector<1x16x4xf32>
    %90 = vector.shape_cast %89 : vector<1x16x4xf32> to vector<16x4xf32>
    %91 = vector.shape_cast %88 : vector<16x4xf32> to vector<1x16x4xf32>
    tpu.vector_store %arg12[%c2_62, %c80_63, %c0_64], %91 {strides = array<i32>} : memref<4x96x4xf32, #tpu.memory_space<vmem>>, vector<1x16x4xf32>,
    %c2_65 = arith.constant 2 : index
    %c0_66 = arith.constant 0 : index
    %c0_67 = arith.constant 0 : index
    %92 = vector.load %arg3[%c2_65, %c0_66, %c0_67] : memref<4x8x4xf32, #tpu.memory_space<vmem>>, vector<1x8x4xf32>
    %93 = vector.shape_cast %92 : vector<1x8x4xf32> to vector<8x4xf32>
    %cst_68 = arith.constant dense<0.000000e+00> : vector<64x4xf32>
    %94 = tpu.matmul %26, %93, %cst_68 {dimension_numbers = #tpu.dot_dimension_numbers<[1], [0], [0], [1], [0, 0, 1, 1], [], []>} : vector<64x8xf32>, vector<8x4xf32>, vector<64x4xf32> -> vector<64x4xf32>
    %95 = vector.broadcast %27 : vector<1x4xf32> to vector<64x4xf32>
    %96 = arith.addf %94, %95 : vector<64x4xf32>
    %c2_69 = arith.constant 2 : index
    %c16_70 = arith.constant 16 : index
    %c0_71 = arith.constant 0 : index
    %97 = vector.load %arg11[%c2_69, %c16_70, %c0_71] : memref<4x96x4xf32, #tpu.memory_space<vmem>>, vector<1x64x4xf32>
    %98 = vector.shape_cast %97 : vector<1x64x4xf32> to vector<64x4xf32>
    %99 = vector.shape_cast %96 : vector<64x4xf32> to vector<1x64x4xf32>
    tpu.vector_store %arg11[%c2_69, %c16_70, %c0_71], %99 {strides = array<i32>} : memref<4x96x4xf32, #tpu.memory_space<vmem>>, vector<1x64x4xf32>,
    %cst_72 = arith.constant 0.000000e+00 : f32
    %100 = vector.broadcast %cst_72 : f32 to vector<16x4xf32>
    %c3 = arith.constant 3 : index
    %c0_73 = arith.constant 0 : index
    %c0_74 = arith.constant 0 : index
    %101 = vector.load %arg11[%c3, %c0_73, %c0_74] : memref<4x96x4xf32, #tpu.memory_space<vmem>>, vector<1x16x4xf32>
    %102 = vector.shape_cast %101 : vector<1x16x4xf32> to vector<16x4xf32>
    %103 = vector.shape_cast %100 : vector<16x4xf32> to vector<1x16x4xf32>
    tpu.vector_store %arg11[%c3, %c0_73, %c0_74], %103 {strides = array<i32>} : memref<4x96x4xf32, #tpu.memory_space<vmem>>, vector<1x16x4xf32>,
    %cst_75 = arith.constant 0.000000e+00 : f32
    %104 = vector.broadcast %cst_75 : f32 to vector<16x4xf32>
    %c3_76 = arith.constant 3 : index
    %c80_77 = arith.constant 80 : index
    %c0_78 = arith.constant 0 : index
    %105 = vector.load %arg11[%c3_76, %c80_77, %c0_78] : memref<4x96x4xf32, #tpu.memory_space<vmem>>, vector<1x16x4xf32>
    %106 = vector.shape_cast %105 : vector<1x16x4xf32> to vector<16x4xf32>
    %107 = vector.shape_cast %104 : vector<16x4xf32> to vector<1x16x4xf32>
    tpu.vector_store %arg11[%c3_76, %c80_77, %c0_78], %107 {strides = array<i32>} : memref<4x96x4xf32, #tpu.memory_space<vmem>>, vector<1x16x4xf32>,
    %cst_79 = arith.constant 0.000000e+00 : f32
    %108 = vector.broadcast %cst_79 : f32 to vector<16x4xf32>
    %c3_80 = arith.constant 3 : index
    %c0_81 = arith.constant 0 : index
    %c0_82 = arith.constant 0 : index
    %109 = vector.load %arg12[%c3_80, %c0_81, %c0_82] : memref<4x96x4xf32, #tpu.memory_space<vmem>>, vector<1x16x4xf32>
    %110 = vector.shape_cast %109 : vector<1x16x4xf32> to vector<16x4xf32>
    %111 = vector.shape_cast %108 : vector<16x4xf32> to vector<1x16x4xf32>
    tpu.vector_store %arg12[%c3_80, %c0_81, %c0_82], %111 {strides = array<i32>} : memref<4x96x4xf32, #tpu.memory_space<vmem>>, vector<1x16x4xf32>,
    %cst_83 = arith.constant 0.000000e+00 : f32
    %112 = vector.broadcast %cst_83 : f32 to vector<16x4xf32>
    %c3_84 = arith.constant 3 : index
    %c80_85 = arith.constant 80 : index
    %c0_86 = arith.constant 0 : index
    %113 = vector.load %arg12[%c3_84, %c80_85, %c0_86] : memref<4x96x4xf32, #tpu.memory_space<vmem>>, vector<1x16x4xf32>
    %114 = vector.shape_cast %113 : vector<1x16x4xf32> to vector<16x4xf32>
    %115 = vector.shape_cast %112 : vector<16x4xf32> to vector<1x16x4xf32>
    tpu.vector_store %arg12[%c3_84, %c80_85, %c0_86], %115 {strides = array<i32>} : memref<4x96x4xf32, #tpu.memory_space<vmem>>, vector<1x16x4xf32>,
    %c3_87 = arith.constant 3 : index
    %c0_88 = arith.constant 0 : index
    %c0_89 = arith.constant 0 : index
    %116 = vector.load %arg3[%c3_87, %c0_88, %c0_89] : memref<4x8x4xf32, #tpu.memory_space<vmem>>, vector<1x8x4xf32>
    %117 = vector.shape_cast %116 : vector<1x8x4xf32> to vector<8x4xf32>
    %cst_90 = arith.constant dense<0.000000e+00> : vector<64x4xf32>
    %118 = tpu.matmul %26, %117, %cst_90 {dimension_numbers = #tpu.dot_dimension_numbers<[1], [0], [0], [1], [0, 0, 1, 1], [], []>} : vector<64x8xf32>, vector<8x4xf32>, vector<64x4xf32> -> vector<64x4xf32>
    %119 = vector.broadcast %27 : vector<1x4xf32> to vector<64x4xf32>
    %120 = arith.addf %118, %119 : vector<64x4xf32>
    %c3_91 = arith.constant 3 : index
    %c16_92 = arith.constant 16 : index
    %c0_93 = arith.constant 0 : index
    %121 = vector.load %arg11[%c3_91, %c16_92, %c0_93] : memref<4x96x4xf32, #tpu.memory_space<vmem>>, vector<1x64x4xf32>
    %122 = vector.shape_cast %121 : vector<1x64x4xf32> to vector<64x4xf32>
    %123 = vector.shape_cast %120 : vector<64x4xf32> to vector<1x64x4xf32>
    tpu.vector_store %arg11[%c3_91, %c16_92, %c0_93], %123 {strides = array<i32>} : memref<4x96x4xf32, #tpu.memory_space<vmem>>, vector<1x64x4xf32>,
    %c0_94 = arith.constant 0 : index
    %c0_95 = arith.constant 0 : index
    %124 = vector.load %arg7[%c0_94, %c0_95] : memref<1x4xf32, #tpu.memory_space<vmem>>, vector<1x4xf32>
    %cst_96 = arith.constant 0.000000e+00 : f32
    %125 = vector.broadcast %cst_96 : f32 to vector<64x4xf32>
    %126 = vector.broadcast %124 : vector<1x4xf32> to vector<64x4xf32>
    %127 = arith.addf %125, %126 : vector<64x4xf32>
    %c0_97 = arith.constant 0 : index
    %c3_98 = arith.constant 3 : index
    %c7 = arith.constant 7 : index
    %c0_99 = arith.constant 0 : index
    %128 = vector.load %arg2[%c0_97, %c3_98, %c7, %c0_99] : memref<1x4x96x4xf32, #tpu.memory_space<vmem>>, vector<1x1x64x4xf32>
    %129 = vector.shape_cast %128 : vector<1x1x64x4xf32> to vector<64x4xf32>
    %130 = vector.broadcast %20 : vector<64x1xf32> to vector<64x4xf32>
    %131 = arith.mulf %129, %130 : vector<64x4xf32>
    %c3_100 = arith.constant 3 : index
    %c7_101 = arith.constant 7 : index
    %c0_102 = arith.constant 0 : index
    %132 = vector.load %arg11[%c3_100, %c7_101, %c0_102] : memref<4x96x4xf32, #tpu.memory_space<vmem>>, vector<1x64x4xf32>
    %133 = vector.shape_cast %132 : vector<1x64x4xf32> to vector<64x4xf32>
    %134 = vector.broadcast %20 : vector<64x1xf32> to vector<64x4xf32>
    %135 = arith.mulf %133, %134 : vector<64x4xf32>
    %c0_103 = arith.constant 0 : index
    %c0_104 = arith.constant 0 : index
    %c0_105 = arith.constant 0 : index
    %c0_106 = arith.constant 0 : index
    %136 = vector.load %arg5[%c0_103, %c0_104, %c0_105, %c0_106] : memref<3x3x4x4xf32, #tpu.memory_space<vmem>>, vector<1x1x4x4xf32>
    %137 = vector.shape_cast %136 : vector<1x1x4x4xf32> to vector<4x4xf32>
    %cst_107 = arith.constant dense<0.000000e+00> : vector<64x4xf32>
    %138 = tpu.matmul %131, %137, %cst_107 {dimension_numbers = #tpu.dot_dimension_numbers<[1], [0], [0], [1], [0, 0, 1, 1], [], []>} : vector<64x4xf32>, vector<4x4xf32>, vector<64x4xf32> -> vector<64x4xf32>
    %139 = arith.addf %127, %138 : vector<64x4xf32>
    %c0_108 = arith.constant 0 : index
    %c0_109 = arith.constant 0 : index
    %c0_110 = arith.constant 0 : index
    %c0_111 = arith.constant 0 : index
    %140 = vector.load %arg6[%c0_108, %c0_109, %c0_110, %c0_111] : memref<3x3x4x4xf32, #tpu.memory_space<vmem>>, vector<1x1x4x4xf32>
    %141 = vector.shape_cast %140 : vector<1x1x4x4xf32> to vector<4x4xf32>
    %cst_112 = arith.constant dense<0.000000e+00> : vector<64x4xf32>
    %142 = tpu.matmul %135, %141, %cst_112 {dimension_numbers = #tpu.dot_dimension_numbers<[1], [0], [0], [1], [0, 0, 1, 1], [], []>} : vector<64x4xf32>, vector<4x4xf32>, vector<64x4xf32> -> vector<64x4xf32>
    %143 = arith.addf %139, %142 : vector<64x4xf32>
    %c0_113 = arith.constant 0 : index
    %c2_114 = arith.constant 2 : index
    %c8 = arith.constant 8 : index
    %c0_115 = arith.constant 0 : index
    %144 = vector.load %arg2[%c0_113, %c2_114, %c8, %c0_115] : memref<1x4x96x4xf32, #tpu.memory_space<vmem>>, vector<1x1x64x4xf32>
    %145 = vector.shape_cast %144 : vector<1x1x64x4xf32> to vector<64x4xf32>
    %c2_116 = arith.constant 2 : index
    %c8_117 = arith.constant 8 : index
    %c0_118 = arith.constant 0 : index
    %146 = vector.load %arg11[%c2_116, %c8_117, %c0_118] : memref<4x96x4xf32, #tpu.memory_space<vmem>>, vector<1x64x4xf32>
    %147 = vector.shape_cast %146 : vector<1x64x4xf32> to vector<64x4xf32>
    %c0_119 = arith.constant 0 : index
    %c1_120 = arith.constant 1 : index
    %c0_121 = arith.constant 0 : index
    %c0_122 = arith.constant 0 : index
    %148 = vector.load %arg5[%c0_119, %c1_120, %c0_121, %c0_122] : memref<3x3x4x4xf32, #tpu.memory_space<vmem>>, vector<1x1x4x4xf32>
    %149 = vector.shape_cast %148 : vector<1x1x4x4xf32> to vector<4x4xf32>
    %cst_123 = arith.constant dense<0.000000e+00> : vector<64x4xf32>
    %150 = tpu.matmul %145, %149, %cst_123 {dimension_numbers = #tpu.dot_dimension_numbers<[1], [0], [0], [1], [0, 0, 1, 1], [], []>} : vector<64x4xf32>, vector<4x4xf32>, vector<64x4xf32> -> vector<64x4xf32>
    %151 = arith.addf %143, %150 : vector<64x4xf32>
    %c0_124 = arith.constant 0 : index
    %c1_125 = arith.constant 1 : index
    %c0_126 = arith.constant 0 : index
    %c0_127 = arith.constant 0 : index
    %152 = vector.load %arg6[%c0_124, %c1_125, %c0_126, %c0_127] : memref<3x3x4x4xf32, #tpu.memory_space<vmem>>, vector<1x1x4x4xf32>
    %153 = vector.shape_cast %152 : vector<1x1x4x4xf32> to vector<4x4xf32>
    %cst_128 = arith.constant dense<0.000000e+00> : vector<64x4xf32>
    %154 = tpu.matmul %147, %153, %cst_128 {dimension_numbers = #tpu.dot_dimension_numbers<[1], [0], [0], [1], [0, 0, 1, 1], [], []>} : vector<64x4xf32>, vector<4x4xf32>, vector<64x4xf32> -> vector<64x4xf32>
    %155 = arith.addf %151, %154 : vector<64x4xf32>
    %c0_129 = arith.constant 0 : index
    %c3_130 = arith.constant 3 : index
    %c8_131 = arith.constant 8 : index
    %c0_132 = arith.constant 0 : index
    %156 = vector.load %arg2[%c0_129, %c3_130, %c8_131, %c0_132] : memref<1x4x96x4xf32, #tpu.memory_space<vmem>>, vector<1x1x64x4xf32>
    %157 = vector.shape_cast %156 : vector<1x1x64x4xf32> to vector<64x4xf32>
    %c3_133 = arith.constant 3 : index
    %c8_134 = arith.constant 8 : index
    %c0_135 = arith.constant 0 : index
    %158 = vector.load %arg11[%c3_133, %c8_134, %c0_135] : memref<4x96x4xf32, #tpu.memory_space<vmem>>, vector<1x64x4xf32>
    %159 = vector.shape_cast %158 : vector<1x64x4xf32> to vector<64x4xf32>
    %c0_136 = arith.constant 0 : index
    %c2_137 = arith.constant 2 : index
    %c0_138 = arith.constant 0 : index
    %c0_139 = arith.constant 0 : index
    %160 = vector.load %arg5[%c0_136, %c2_137, %c0_138, %c0_139] : memref<3x3x4x4xf32, #tpu.memory_space<vmem>>, vector<1x1x4x4xf32>
    %161 = vector.shape_cast %160 : vector<1x1x4x4xf32> to vector<4x4xf32>
    %cst_140 = arith.constant dense<0.000000e+00> : vector<64x4xf32>
    %162 = tpu.matmul %157, %161, %cst_140 {dimension_numbers = #tpu.dot_dimension_numbers<[1], [0], [0], [1], [0, 0, 1, 1], [], []>} : vector<64x4xf32>, vector<4x4xf32>, vector<64x4xf32> -> vector<64x4xf32>
    %163 = arith.addf %155, %162 : vector<64x4xf32>
    %c0_141 = arith.constant 0 : index
    %c2_142 = arith.constant 2 : index
    %c0_143 = arith.constant 0 : index
    %c0_144 = arith.constant 0 : index
    %164 = vector.load %arg6[%c0_141, %c2_142, %c0_143, %c0_144] : memref<3x3x4x4xf32, #tpu.memory_space<vmem>>, vector<1x1x4x4xf32>
    %165 = vector.shape_cast %164 : vector<1x1x4x4xf32> to vector<4x4xf32>
    %cst_145 = arith.constant dense<0.000000e+00> : vector<64x4xf32>
    %166 = tpu.matmul %159, %165, %cst_145 {dimension_numbers = #tpu.dot_dimension_numbers<[1], [0], [0], [1], [0, 0, 1, 1], [], []>} : vector<64x4xf32>, vector<4x4xf32>, vector<64x4xf32> -> vector<64x4xf32>
    %167 = arith.addf %163, %166 : vector<64x4xf32>
    %c0_146 = arith.constant 0 : index
    %c1_147 = arith.constant 1 : index
    %c15 = arith.constant 15 : index
    %c0_148 = arith.constant 0 : index
    %168 = vector.load %arg2[%c0_146, %c1_147, %c15, %c0_148] : memref<1x4x96x4xf32, #tpu.memory_space<vmem>>, vector<1x1x64x4xf32>
    %169 = vector.shape_cast %168 : vector<1x1x64x4xf32> to vector<64x4xf32>
    %170 = vector.broadcast %20 : vector<64x1xf32> to vector<64x4xf32>
    %171 = arith.mulf %169, %170 : vector<64x4xf32>
    %c1_149 = arith.constant 1 : index
    %c15_150 = arith.constant 15 : index
    %c0_151 = arith.constant 0 : index
    %172 = vector.load %arg11[%c1_149, %c15_150, %c0_151] : memref<4x96x4xf32, #tpu.memory_space<vmem>>, vector<1x64x4xf32>
    %173 = vector.shape_cast %172 : vector<1x64x4xf32> to vector<64x4xf32>
    %174 = vector.broadcast %20 : vector<64x1xf32> to vector<64x4xf32>
    %175 = arith.mulf %173, %174 : vector<64x4xf32>
    %c1_152 = arith.constant 1 : index
    %c0_153 = arith.constant 0 : index
    %c0_154 = arith.constant 0 : index
    %c0_155 = arith.constant 0 : index
    %176 = vector.load %arg5[%c1_152, %c0_153, %c0_154, %c0_155] : memref<3x3x4x4xf32, #tpu.memory_space<vmem>>, vector<1x1x4x4xf32>
    %177 = vector.shape_cast %176 : vector<1x1x4x4xf32> to vector<4x4xf32>
    %cst_156 = arith.constant dense<0.000000e+00> : vector<64x4xf32>
    %178 = tpu.matmul %171, %177, %cst_156 {dimension_numbers = #tpu.dot_dimension_numbers<[1], [0], [0], [1], [0, 0, 1, 1], [], []>} : vector<64x4xf32>, vector<4x4xf32>, vector<64x4xf32> -> vector<64x4xf32>
    %179 = arith.addf %167, %178 : vector<64x4xf32>
    %c1_157 = arith.constant 1 : index
    %c0_158 = arith.constant 0 : index
    %c0_159 = arith.constant 0 : index
    %c0_160 = arith.constant 0 : index
    %180 = vector.load %arg6[%c1_157, %c0_158, %c0_159, %c0_160] : memref<3x3x4x4xf32, #tpu.memory_space<vmem>>, vector<1x1x4x4xf32>
    %181 = vector.shape_cast %180 : vector<1x1x4x4xf32> to vector<4x4xf32>
    %cst_161 = arith.constant dense<0.000000e+00> : vector<64x4xf32>
    %182 = tpu.matmul %175, %181, %cst_161 {dimension_numbers = #tpu.dot_dimension_numbers<[1], [0], [0], [1], [0, 0, 1, 1], [], []>} : vector<64x4xf32>, vector<4x4xf32>, vector<64x4xf32> -> vector<64x4xf32>
    %183 = arith.addf %179, %182 : vector<64x4xf32>
    %c0_162 = arith.constant 0 : index
    %c0_163 = arith.constant 0 : index
    %c16_164 = arith.constant 16 : index
    %c0_165 = arith.constant 0 : index
    %184 = vector.load %arg2[%c0_162, %c0_163, %c16_164, %c0_165] : memref<1x4x96x4xf32, #tpu.memory_space<vmem>>, vector<1x1x64x4xf32>
    %185 = vector.shape_cast %184 : vector<1x1x64x4xf32> to vector<64x4xf32>
    %c0_166 = arith.constant 0 : index
    %c16_167 = arith.constant 16 : index
    %c0_168 = arith.constant 0 : index
    %186 = vector.load %arg11[%c0_166, %c16_167, %c0_168] : memref<4x96x4xf32, #tpu.memory_space<vmem>>, vector<1x64x4xf32>
    %187 = vector.shape_cast %186 : vector<1x64x4xf32> to vector<64x4xf32>
    %c1_169 = arith.constant 1 : index
    %c1_170 = arith.constant 1 : index
    %c0_171 = arith.constant 0 : index
    %c0_172 = arith.constant 0 : index
    %188 = vector.load %arg5[%c1_169, %c1_170, %c0_171, %c0_172] : memref<3x3x4x4xf32, #tpu.memory_space<vmem>>, vector<1x1x4x4xf32>
    %189 = vector.shape_cast %188 : vector<1x1x4x4xf32> to vector<4x4xf32>
    %cst_173 = arith.constant dense<0.000000e+00> : vector<64x4xf32>
    %190 = tpu.matmul %185, %189, %cst_173 {dimension_numbers = #tpu.dot_dimension_numbers<[1], [0], [0], [1], [0, 0, 1, 1], [], []>} : vector<64x4xf32>, vector<4x4xf32>, vector<64x4xf32> -> vector<64x4xf32>
    %191 = arith.addf %183, %190 : vector<64x4xf32>
    %c1_174 = arith.constant 1 : index
    %c1_175 = arith.constant 1 : index
    %c0_176 = arith.constant 0 : index
    %c0_177 = arith.constant 0 : index
    %192 = vector.load %arg6[%c1_174, %c1_175, %c0_176, %c0_177] : memref<3x3x4x4xf32, #tpu.memory_space<vmem>>, vector<1x1x4x4xf32>
    %193 = vector.shape_cast %192 : vector<1x1x4x4xf32> to vector<4x4xf32>
    %cst_178 = arith.constant dense<0.000000e+00> : vector<64x4xf32>
    %194 = tpu.matmul %187, %193, %cst_178 {dimension_numbers = #tpu.dot_dimension_numbers<[1], [0], [0], [1], [0, 0, 1, 1], [], []>} : vector<64x4xf32>, vector<4x4xf32>, vector<64x4xf32> -> vector<64x4xf32>
    %195 = arith.addf %191, %194 : vector<64x4xf32>
    %c0_179 = arith.constant 0 : index
    %c1_180 = arith.constant 1 : index
    %c16_181 = arith.constant 16 : index
    %c0_182 = arith.constant 0 : index
    %196 = vector.load %arg2[%c0_179, %c1_180, %c16_181, %c0_182] : memref<1x4x96x4xf32, #tpu.memory_space<vmem>>, vector<1x1x64x4xf32>
    %197 = vector.shape_cast %196 : vector<1x1x64x4xf32> to vector<64x4xf32>
    %c1_183 = arith.constant 1 : index
    %c16_184 = arith.constant 16 : index
    %c0_185 = arith.constant 0 : index
    %198 = vector.load %arg11[%c1_183, %c16_184, %c0_185] : memref<4x96x4xf32, #tpu.memory_space<vmem>>, vector<1x64x4xf32>
    %199 = vector.shape_cast %198 : vector<1x64x4xf32> to vector<64x4xf32>
    %c1_186 = arith.constant 1 : index
    %c2_187 = arith.constant 2 : index
    %c0_188 = arith.constant 0 : index
    %c0_189 = arith.constant 0 : index
    %200 = vector.load %arg5[%c1_186, %c2_187, %c0_188, %c0_189] : memref<3x3x4x4xf32, #tpu.memory_space<vmem>>, vector<1x1x4x4xf32>
    %201 = vector.shape_cast %200 : vector<1x1x4x4xf32> to vector<4x4xf32>
    %cst_190 = arith.constant dense<0.000000e+00> : vector<64x4xf32>
    %202 = tpu.matmul %197, %201, %cst_190 {dimension_numbers = #tpu.dot_dimension_numbers<[1], [0], [0], [1], [0, 0, 1, 1], [], []>} : vector<64x4xf32>, vector<4x4xf32>, vector<64x4xf32> -> vector<64x4xf32>
    %203 = arith.addf %195, %202 : vector<64x4xf32>
    %c1_191 = arith.constant 1 : index
    %c2_192 = arith.constant 2 : index
    %c0_193 = arith.constant 0 : index
    %c0_194 = arith.constant 0 : index
    %204 = vector.load %arg6[%c1_191, %c2_192, %c0_193, %c0_194] : memref<3x3x4x4xf32, #tpu.memory_space<vmem>>, vector<1x1x4x4xf32>
    %205 = vector.shape_cast %204 : vector<1x1x4x4xf32> to vector<4x4xf32>
    %cst_195 = arith.constant dense<0.000000e+00> : vector<64x4xf32>
    %206 = tpu.matmul %199, %205, %cst_195 {dimension_numbers = #tpu.dot_dimension_numbers<[1], [0], [0], [1], [0, 0, 1, 1], [], []>} : vector<64x4xf32>, vector<4x4xf32>, vector<64x4xf32> -> vector<64x4xf32>
    %207 = arith.addf %203, %206 : vector<64x4xf32>
    %c0_196 = arith.constant 0 : index
    %c3_197 = arith.constant 3 : index
    %c15_198 = arith.constant 15 : index
    %c0_199 = arith.constant 0 : index
    %208 = vector.load %arg2[%c0_196, %c3_197, %c15_198, %c0_199] : memref<1x4x96x4xf32, #tpu.memory_space<vmem>>, vector<1x1x64x4xf32>
    %209 = vector.shape_cast %208 : vector<1x1x64x4xf32> to vector<64x4xf32>
    %210 = vector.broadcast %20 : vector<64x1xf32> to vector<64x4xf32>
    %211 = arith.mulf %209, %210 : vector<64x4xf32>
    %c3_200 = arith.constant 3 : index
    %c15_201 = arith.constant 15 : index
    %c0_202 = arith.constant 0 : index
    %212 = vector.load %arg11[%c3_200, %c15_201, %c0_202] : memref<4x96x4xf32, #tpu.memory_space<vmem>>, vector<1x64x4xf32>
    %213 = vector.shape_cast %212 : vector<1x64x4xf32> to vector<64x4xf32>
    %214 = vector.broadcast %20 : vector<64x1xf32> to vector<64x4xf32>
    %215 = arith.mulf %213, %214 : vector<64x4xf32>
    %c2_203 = arith.constant 2 : index
    %c0_204 = arith.constant 0 : index
    %c0_205 = arith.constant 0 : index
    %c0_206 = arith.constant 0 : index
    %216 = vector.load %arg5[%c2_203, %c0_204, %c0_205, %c0_206] : memref<3x3x4x4xf32, #tpu.memory_space<vmem>>, vector<1x1x4x4xf32>
    %217 = vector.shape_cast %216 : vector<1x1x4x4xf32> to vector<4x4xf32>
    %cst_207 = arith.constant dense<0.000000e+00> : vector<64x4xf32>
    %218 = tpu.matmul %211, %217, %cst_207 {dimension_numbers = #tpu.dot_dimension_numbers<[1], [0], [0], [1], [0, 0, 1, 1], [], []>} : vector<64x4xf32>, vector<4x4xf32>, vector<64x4xf32> -> vector<64x4xf32>
    %219 = arith.addf %207, %218 : vector<64x4xf32>
    %c2_208 = arith.constant 2 : index
    %c0_209 = arith.constant 0 : index
    %c0_210 = arith.constant 0 : index
    %c0_211 = arith.constant 0 : index
    %220 = vector.load %arg6[%c2_208, %c0_209, %c0_210, %c0_211] : memref<3x3x4x4xf32, #tpu.memory_space<vmem>>, vector<1x1x4x4xf32>
    %221 = vector.shape_cast %220 : vector<1x1x4x4xf32> to vector<4x4xf32>
    %cst_212 = arith.constant dense<0.000000e+00> : vector<64x4xf32>
    %222 = tpu.matmul %215, %221, %cst_212 {dimension_numbers = #tpu.dot_dimension_numbers<[1], [0], [0], [1], [0, 0, 1, 1], [], []>} : vector<64x4xf32>, vector<4x4xf32>, vector<64x4xf32> -> vector<64x4xf32>
    %223 = arith.addf %219, %222 : vector<64x4xf32>
    %c0_213 = arith.constant 0 : index
    %c2_214 = arith.constant 2 : index
    %c16_215 = arith.constant 16 : index
    %c0_216 = arith.constant 0 : index
    %224 = vector.load %arg2[%c0_213, %c2_214, %c16_215, %c0_216] : memref<1x4x96x4xf32, #tpu.memory_space<vmem>>, vector<1x1x64x4xf32>
    %225 = vector.shape_cast %224 : vector<1x1x64x4xf32> to vector<64x4xf32>
    %c2_217 = arith.constant 2 : index
    %c16_218 = arith.constant 16 : index
    %c0_219 = arith.constant 0 : index
    %226 = vector.load %arg11[%c2_217, %c16_218, %c0_219] : memref<4x96x4xf32, #tpu.memory_space<vmem>>, vector<1x64x4xf32>
    %227 = vector.shape_cast %226 : vector<1x64x4xf32> to vector<64x4xf32>
    %c2_220 = arith.constant 2 : index
    %c1_221 = arith.constant 1 : index
    %c0_222 = arith.constant 0 : index
    %c0_223 = arith.constant 0 : index
    %228 = vector.load %arg5[%c2_220, %c1_221, %c0_222, %c0_223] : memref<3x3x4x4xf32, #tpu.memory_space<vmem>>, vector<1x1x4x4xf32>
    %229 = vector.shape_cast %228 : vector<1x1x4x4xf32> to vector<4x4xf32>
    %cst_224 = arith.constant dense<0.000000e+00> : vector<64x4xf32>
    %230 = tpu.matmul %225, %229, %cst_224 {dimension_numbers = #tpu.dot_dimension_numbers<[1], [0], [0], [1], [0, 0, 1, 1], [], []>} : vector<64x4xf32>, vector<4x4xf32>, vector<64x4xf32> -> vector<64x4xf32>
    %231 = arith.addf %223, %230 : vector<64x4xf32>
    %c2_225 = arith.constant 2 : index
    %c1_226 = arith.constant 1 : index
    %c0_227 = arith.constant 0 : index
    %c0_228 = arith.constant 0 : index
    %232 = vector.load %arg6[%c2_225, %c1_226, %c0_227, %c0_228] : memref<3x3x4x4xf32, #tpu.memory_space<vmem>>, vector<1x1x4x4xf32>
    %233 = vector.shape_cast %232 : vector<1x1x4x4xf32> to vector<4x4xf32>
    %cst_229 = arith.constant dense<0.000000e+00> : vector<64x4xf32>
    %234 = tpu.matmul %227, %233, %cst_229 {dimension_numbers = #tpu.dot_dimension_numbers<[1], [0], [0], [1], [0, 0, 1, 1], [], []>} : vector<64x4xf32>, vector<4x4xf32>, vector<64x4xf32> -> vector<64x4xf32>
    %235 = arith.addf %231, %234 : vector<64x4xf32>
    %c0_230 = arith.constant 0 : index
    %c3_231 = arith.constant 3 : index
    %c16_232 = arith.constant 16 : index
    %c0_233 = arith.constant 0 : index
    %236 = vector.load %arg2[%c0_230, %c3_231, %c16_232, %c0_233] : memref<1x4x96x4xf32, #tpu.memory_space<vmem>>, vector<1x1x64x4xf32>
    %237 = vector.shape_cast %236 : vector<1x1x64x4xf32> to vector<64x4xf32>
    %c3_234 = arith.constant 3 : index
    %c16_235 = arith.constant 16 : index
    %c0_236 = arith.constant 0 : index
    %238 = vector.load %arg11[%c3_234, %c16_235, %c0_236] : memref<4x96x4xf32, #tpu.memory_space<vmem>>, vector<1x64x4xf32>
    %239 = vector.shape_cast %238 : vector<1x64x4xf32> to vector<64x4xf32>
    %c2_237 = arith.constant 2 : index
    %c2_238 = arith.constant 2 : index
    %c0_239 = arith.constant 0 : index
    %c0_240 = arith.constant 0 : index
    %240 = vector.load %arg5[%c2_237, %c2_238, %c0_239, %c0_240] : memref<3x3x4x4xf32, #tpu.memory_space<vmem>>, vector<1x1x4x4xf32>
    %241 = vector.shape_cast %240 : vector<1x1x4x4xf32> to vector<4x4xf32>
    %cst_241 = arith.constant dense<0.000000e+00> : vector<64x4xf32>
    %242 = tpu.matmul %237, %241, %cst_241 {dimension_numbers = #tpu.dot_dimension_numbers<[1], [0], [0], [1], [0, 0, 1, 1], [], []>} : vector<64x4xf32>, vector<4x4xf32>, vector<64x4xf32> -> vector<64x4xf32>
    %243 = arith.addf %235, %242 : vector<64x4xf32>
    %c2_242 = arith.constant 2 : index
    %c2_243 = arith.constant 2 : index
    %c0_244 = arith.constant 0 : index
    %c0_245 = arith.constant 0 : index
    %244 = vector.load %arg6[%c2_242, %c2_243, %c0_244, %c0_245] : memref<3x3x4x4xf32, #tpu.memory_space<vmem>>, vector<1x1x4x4xf32>
    %245 = vector.shape_cast %244 : vector<1x1x4x4xf32> to vector<4x4xf32>
    %cst_246 = arith.constant dense<0.000000e+00> : vector<64x4xf32>
    %246 = tpu.matmul %239, %245, %cst_246 {dimension_numbers = #tpu.dot_dimension_numbers<[1], [0], [0], [1], [0, 0, 1, 1], [], []>} : vector<64x4xf32>, vector<4x4xf32>, vector<64x4xf32> -> vector<64x4xf32>
    %247 = arith.addf %243, %246 : vector<64x4xf32>
    %cst_247 = arith.constant 0.000000e+00 : f32
    %248 = vector.broadcast %cst_247 : f32 to vector<64x4xf32>
    %249 = arith.maximumf %247, %248 : vector<64x4xf32>
    %c0_248 = arith.constant 0 : index
    %c16_249 = arith.constant 16 : index
    %c0_250 = arith.constant 0 : index
    %250 = vector.load %arg12[%c0_248, %c16_249, %c0_250] : memref<4x96x4xf32, #tpu.memory_space<vmem>>, vector<1x64x4xf32>
    %251 = vector.shape_cast %250 : vector<1x64x4xf32> to vector<64x4xf32>
    %252 = vector.shape_cast %249 : vector<64x4xf32> to vector<1x64x4xf32>
    tpu.vector_store %arg12[%c0_248, %c16_249, %c0_250], %252 {strides = array<i32>} : memref<4x96x4xf32, #tpu.memory_space<vmem>>, vector<1x64x4xf32>,
    %cst_251 = arith.constant 0.000000e+00 : f32
    %253 = vector.broadcast %cst_251 : f32 to vector<64x4xf32>
    %254 = vector.broadcast %124 : vector<1x4xf32> to vector<64x4xf32>
    %255 = arith.addf %253, %254 : vector<64x4xf32>
    %c0_252 = arith.constant 0 : index
    %c2_253 = arith.constant 2 : index
    %c8_254 = arith.constant 8 : index
    %c0_255 = arith.constant 0 : index
    %256 = vector.load %arg2[%c0_252, %c2_253, %c8_254, %c0_255] : memref<1x4x96x4xf32, #tpu.memory_space<vmem>>, vector<1x1x64x4xf32>
    %257 = vector.shape_cast %256 : vector<1x1x64x4xf32> to vector<64x4xf32>
    %c2_256 = arith.constant 2 : index
    %c8_257 = arith.constant 8 : index
    %c0_258 = arith.constant 0 : index
    %258 = vector.load %arg11[%c2_256, %c8_257, %c0_258] : memref<4x96x4xf32, #tpu.memory_space<vmem>>, vector<1x64x4xf32>
    %259 = vector.shape_cast %258 : vector<1x64x4xf32> to vector<64x4xf32>
    %c0_259 = arith.constant 0 : index
    %c0_260 = arith.constant 0 : index
    %c0_261 = arith.constant 0 : index
    %c0_262 = arith.constant 0 : index
    %260 = vector.load %arg5[%c0_259, %c0_260, %c0_261, %c0_262] : memref<3x3x4x4xf32, #tpu.memory_space<vmem>>, vector<1x1x4x4xf32>
    %261 = vector.shape_cast %260 : vector<1x1x4x4xf32> to vector<4x4xf32>
    %cst_263 = arith.constant dense<0.000000e+00> : vector<64x4xf32>
    %262 = tpu.matmul %257, %261, %cst_263 {dimension_numbers = #tpu.dot_dimension_numbers<[1], [0], [0], [1], [0, 0, 1, 1], [], []>} : vector<64x4xf32>, vector<4x4xf32>, vector<64x4xf32> -> vector<64x4xf32>
    %263 = arith.addf %255, %262 : vector<64x4xf32>
    %c0_264 = arith.constant 0 : index
    %c0_265 = arith.constant 0 : index
    %c0_266 = arith.constant 0 : index
    %c0_267 = arith.constant 0 : index
    %264 = vector.load %arg6[%c0_264, %c0_265, %c0_266, %c0_267] : memref<3x3x4x4xf32, #tpu.memory_space<vmem>>, vector<1x1x4x4xf32>
    %265 = vector.shape_cast %264 : vector<1x1x4x4xf32> to vector<4x4xf32>
    %cst_268 = arith.constant dense<0.000000e+00> : vector<64x4xf32>
    %266 = tpu.matmul %259, %265, %cst_268 {dimension_numbers = #tpu.dot_dimension_numbers<[1], [0], [0], [1], [0, 0, 1, 1], [], []>} : vector<64x4xf32>, vector<4x4xf32>, vector<64x4xf32> -> vector<64x4xf32>
    %267 = arith.addf %263, %266 : vector<64x4xf32>
    %c0_269 = arith.constant 0 : index
    %c3_270 = arith.constant 3 : index
    %c8_271 = arith.constant 8 : index
    %c0_272 = arith.constant 0 : index
    %268 = vector.load %arg2[%c0_269, %c3_270, %c8_271, %c0_272] : memref<1x4x96x4xf32, #tpu.memory_space<vmem>>, vector<1x1x64x4xf32>
    %269 = vector.shape_cast %268 : vector<1x1x64x4xf32> to vector<64x4xf32>
    %c3_273 = arith.constant 3 : index
    %c8_274 = arith.constant 8 : index
    %c0_275 = arith.constant 0 : index
    %270 = vector.load %arg11[%c3_273, %c8_274, %c0_275] : memref<4x96x4xf32, #tpu.memory_space<vmem>>, vector<1x64x4xf32>
    %271 = vector.shape_cast %270 : vector<1x64x4xf32> to vector<64x4xf32>
    %c0_276 = arith.constant 0 : index
    %c1_277 = arith.constant 1 : index
    %c0_278 = arith.constant 0 : index
    %c0_279 = arith.constant 0 : index
    %272 = vector.load %arg5[%c0_276, %c1_277, %c0_278, %c0_279] : memref<3x3x4x4xf32, #tpu.memory_space<vmem>>, vector<1x1x4x4xf32>
    %273 = vector.shape_cast %272 : vector<1x1x4x4xf32> to vector<4x4xf32>
    %cst_280 = arith.constant dense<0.000000e+00> : vector<64x4xf32>
    %274 = tpu.matmul %269, %273, %cst_280 {dimension_numbers = #tpu.dot_dimension_numbers<[1], [0], [0], [1], [0, 0, 1, 1], [], []>} : vector<64x4xf32>, vector<4x4xf32>, vector<64x4xf32> -> vector<64x4xf32>
    %275 = arith.addf %267, %274 : vector<64x4xf32>
    %c0_281 = arith.constant 0 : index
    %c1_282 = arith.constant 1 : index
    %c0_283 = arith.constant 0 : index
    %c0_284 = arith.constant 0 : index
    %276 = vector.load %arg6[%c0_281, %c1_282, %c0_283, %c0_284] : memref<3x3x4x4xf32, #tpu.memory_space<vmem>>, vector<1x1x4x4xf32>
    %277 = vector.shape_cast %276 : vector<1x1x4x4xf32> to vector<4x4xf32>
    %cst_285 = arith.constant dense<0.000000e+00> : vector<64x4xf32>
    %278 = tpu.matmul %271, %277, %cst_285 {dimension_numbers = #tpu.dot_dimension_numbers<[1], [0], [0], [1], [0, 0, 1, 1], [], []>} : vector<64x4xf32>, vector<4x4xf32>, vector<64x4xf32> -> vector<64x4xf32>
    %279 = arith.addf %275, %278 : vector<64x4xf32>
    %c0_286 = arith.constant 0 : index
    %c2_287 = arith.constant 2 : index
    %c9 = arith.constant 9 : index
    %c0_288 = arith.constant 0 : index
    %280 = vector.load %arg2[%c0_286, %c2_287, %c9, %c0_288] : memref<1x4x96x4xf32, #tpu.memory_space<vmem>>, vector<1x1x64x4xf32>
    %281 = vector.shape_cast %280 : vector<1x1x64x4xf32> to vector<64x4xf32>
    %282 = vector.broadcast %24 : vector<64x1xf32> to vector<64x4xf32>
    %283 = arith.mulf %281, %282 : vector<64x4xf32>
    %c2_289 = arith.constant 2 : index
    %c9_290 = arith.constant 9 : index
    %c0_291 = arith.constant 0 : index
    %284 = vector.load %arg11[%c2_289, %c9_290, %c0_291] : memref<4x96x4xf32, #tpu.memory_space<vmem>>, vector<1x64x4xf32>
    %285 = vector.shape_cast %284 : vector<1x64x4xf32> to vector<64x4xf32>
    %286 = vector.broadcast %24 : vector<64x1xf32> to vector<64x4xf32>
    %287 = arith.mulf %285, %286 : vector<64x4xf32>
    %c0_292 = arith.constant 0 : index
    %c2_293 = arith.constant 2 : index
    %c0_294 = arith.constant 0 : index
    %c0_295 = arith.constant 0 : index
    %288 = vector.load %arg5[%c0_292, %c2_293, %c0_294, %c0_295] : memref<3x3x4x4xf32, #tpu.memory_space<vmem>>, vector<1x1x4x4xf32>
    %289 = vector.shape_cast %288 : vector<1x1x4x4xf32> to vector<4x4xf32>
    %cst_296 = arith.constant dense<0.000000e+00> : vector<64x4xf32>
    %290 = tpu.matmul %283, %289, %cst_296 {dimension_numbers = #tpu.dot_dimension_numbers<[1], [0], [0], [1], [0, 0, 1, 1], [], []>} : vector<64x4xf32>, vector<4x4xf32>, vector<64x4xf32> -> vector<64x4xf32>
    %291 = arith.addf %279, %290 : vector<64x4xf32>
    %c0_297 = arith.constant 0 : index
    %c2_298 = arith.constant 2 : index
    %c0_299 = arith.constant 0 : index
    %c0_300 = arith.constant 0 : index
    %292 = vector.load %arg6[%c0_297, %c2_298, %c0_299, %c0_300] : memref<3x3x4x4xf32, #tpu.memory_space<vmem>>, vector<1x1x4x4xf32>
    %293 = vector.shape_cast %292 : vector<1x1x4x4xf32> to vector<4x4xf32>
    %cst_301 = arith.constant dense<0.000000e+00> : vector<64x4xf32>
    %294 = tpu.matmul %287, %293, %cst_301 {dimension_numbers = #tpu.dot_dimension_numbers<[1], [0], [0], [1], [0, 0, 1, 1], [], []>} : vector<64x4xf32>, vector<4x4xf32>, vector<64x4xf32> -> vector<64x4xf32>
    %295 = arith.addf %291, %294 : vector<64x4xf32>
    %c0_302 = arith.constant 0 : index
    %c0_303 = arith.constant 0 : index
    %c16_304 = arith.constant 16 : index
    %c0_305 = arith.constant 0 : index
    %296 = vector.load %arg2[%c0_302, %c0_303, %c16_304, %c0_305] : memref<1x4x96x4xf32, #tpu.memory_space<vmem>>, vector<1x1x64x4xf32>
    %297 = vector.shape_cast %296 : vector<1x1x64x4xf32> to vector<64x4xf32>
    %c0_306 = arith.constant 0 : index
    %c16_307 = arith.constant 16 : index
    %c0_308 = arith.constant 0 : index
    %298 = vector.load %arg11[%c0_306, %c16_307, %c0_308] : memref<4x96x4xf32, #tpu.memory_space<vmem>>, vector<1x64x4xf32>
    %299 = vector.shape_cast %298 : vector<1x64x4xf32> to vector<64x4xf32>
    %c1_309 = arith.constant 1 : index
    %c0_310 = arith.constant 0 : index
    %c0_311 = arith.constant 0 : index
    %c0_312 = arith.constant 0 : index
    %300 = vector.load %arg5[%c1_309, %c0_310, %c0_311, %c0_312] : memref<3x3x4x4xf32, #tpu.memory_space<vmem>>, vector<1x1x4x4xf32>
    %301 = vector.shape_cast %300 : vector<1x1x4x4xf32> to vector<4x4xf32>
    %cst_313 = arith.constant dense<0.000000e+00> : vector<64x4xf32>
    %302 = tpu.matmul %297, %301, %cst_313 {dimension_numbers = #tpu.dot_dimension_numbers<[1], [0], [0], [1], [0, 0, 1, 1], [], []>} : vector<64x4xf32>, vector<4x4xf32>, vector<64x4xf32> -> vector<64x4xf32>
    %303 = arith.addf %295, %302 : vector<64x4xf32>
    %c1_314 = arith.constant 1 : index
    %c0_315 = arith.constant 0 : index
    %c0_316 = arith.constant 0 : index
    %c0_317 = arith.constant 0 : index
    %304 = vector.load %arg6[%c1_314, %c0_315, %c0_316, %c0_317] : memref<3x3x4x4xf32, #tpu.memory_space<vmem>>, vector<1x1x4x4xf32>
    %305 = vector.shape_cast %304 : vector<1x1x4x4xf32> to vector<4x4xf32>
    %cst_318 = arith.constant dense<0.000000e+00> : vector<64x4xf32>
    %306 = tpu.matmul %299, %305, %cst_318 {dimension_numbers = #tpu.dot_dimension_numbers<[1], [0], [0], [1], [0, 0, 1, 1], [], []>} : vector<64x4xf32>, vector<4x4xf32>, vector<64x4xf32> -> vector<64x4xf32>
    %307 = arith.addf %303, %306 : vector<64x4xf32>
    %c0_319 = arith.constant 0 : index
    %c1_320 = arith.constant 1 : index
    %c16_321 = arith.constant 16 : index
    %c0_322 = arith.constant 0 : index
    %308 = vector.load %arg2[%c0_319, %c1_320, %c16_321, %c0_322] : memref<1x4x96x4xf32, #tpu.memory_space<vmem>>, vector<1x1x64x4xf32>
    %309 = vector.shape_cast %308 : vector<1x1x64x4xf32> to vector<64x4xf32>
    %c1_323 = arith.constant 1 : index
    %c16_324 = arith.constant 16 : index
    %c0_325 = arith.constant 0 : index
    %310 = vector.load %arg11[%c1_323, %c16_324, %c0_325] : memref<4x96x4xf32, #tpu.memory_space<vmem>>, vector<1x64x4xf32>
    %311 = vector.shape_cast %310 : vector<1x64x4xf32> to vector<64x4xf32>
    %c1_326 = arith.constant 1 : index
    %c1_327 = arith.constant 1 : index
    %c0_328 = arith.constant 0 : index
    %c0_329 = arith.constant 0 : index
    %312 = vector.load %arg5[%c1_326, %c1_327, %c0_328, %c0_329] : memref<3x3x4x4xf32, #tpu.memory_space<vmem>>, vector<1x1x4x4xf32>
    %313 = vector.shape_cast %312 : vector<1x1x4x4xf32> to vector<4x4xf32>
    %cst_330 = arith.constant dense<0.000000e+00> : vector<64x4xf32>
    %314 = tpu.matmul %309, %313, %cst_330 {dimension_numbers = #tpu.dot_dimension_numbers<[1], [0], [0], [1], [0, 0, 1, 1], [], []>} : vector<64x4xf32>, vector<4x4xf32>, vector<64x4xf32> -> vector<64x4xf32>
    %315 = arith.addf %307, %314 : vector<64x4xf32>
    %c1_331 = arith.constant 1 : index
    %c1_332 = arith.constant 1 : index
    %c0_333 = arith.constant 0 : index
    %c0_334 = arith.constant 0 : index
    %316 = vector.load %arg6[%c1_331, %c1_332, %c0_333, %c0_334] : memref<3x3x4x4xf32, #tpu.memory_space<vmem>>, vector<1x1x4x4xf32>
    %317 = vector.shape_cast %316 : vector<1x1x4x4xf32> to vector<4x4xf32>
    %cst_335 = arith.constant dense<0.000000e+00> : vector<64x4xf32>
    %318 = tpu.matmul %311, %317, %cst_335 {dimension_numbers = #tpu.dot_dimension_numbers<[1], [0], [0], [1], [0, 0, 1, 1], [], []>} : vector<64x4xf32>, vector<4x4xf32>, vector<64x4xf32> -> vector<64x4xf32>
    %319 = arith.addf %315, %318 : vector<64x4xf32>
    %c0_336 = arith.constant 0 : index
    %c0_337 = arith.constant 0 : index
    %c17 = arith.constant 17 : index
    %c0_338 = arith.constant 0 : index
    %320 = vector.load %arg2[%c0_336, %c0_337, %c17, %c0_338] : memref<1x4x96x4xf32, #tpu.memory_space<vmem>>, vector<1x1x64x4xf32>
    %321 = vector.shape_cast %320 : vector<1x1x64x4xf32> to vector<64x4xf32>
    %322 = vector.broadcast %24 : vector<64x1xf32> to vector<64x4xf32>
    %323 = arith.mulf %321, %322 : vector<64x4xf32>
    %c0_339 = arith.constant 0 : index
    %c17_340 = arith.constant 17 : index
    %c0_341 = arith.constant 0 : index
    %324 = vector.load %arg11[%c0_339, %c17_340, %c0_341] : memref<4x96x4xf32, #tpu.memory_space<vmem>>, vector<1x64x4xf32>
    %325 = vector.shape_cast %324 : vector<1x64x4xf32> to vector<64x4xf32>
    %326 = vector.broadcast %24 : vector<64x1xf32> to vector<64x4xf32>
    %327 = arith.mulf %325, %326 : vector<64x4xf32>
    %c1_342 = arith.constant 1 : index
    %c2_343 = arith.constant 2 : index
    %c0_344 = arith.constant 0 : index
    %c0_345 = arith.constant 0 : index
    %328 = vector.load %arg5[%c1_342, %c2_343, %c0_344, %c0_345] : memref<3x3x4x4xf32, #tpu.memory_space<vmem>>, vector<1x1x4x4xf32>
    %329 = vector.shape_cast %328 : vector<1x1x4x4xf32> to vector<4x4xf32>
    %cst_346 = arith.constant dense<0.000000e+00> : vector<64x4xf32>
    %330 = tpu.matmul %323, %329, %cst_346 {dimension_numbers = #tpu.dot_dimension_numbers<[1], [0], [0], [1], [0, 0, 1, 1], [], []>} : vector<64x4xf32>, vector<4x4xf32>, vector<64x4xf32> -> vector<64x4xf32>
    %331 = arith.addf %319, %330 : vector<64x4xf32>
    %c1_347 = arith.constant 1 : index
    %c2_348 = arith.constant 2 : index
    %c0_349 = arith.constant 0 : index
    %c0_350 = arith.constant 0 : index
    %332 = vector.load %arg6[%c1_347, %c2_348, %c0_349, %c0_350] : memref<3x3x4x4xf32, #tpu.memory_space<vmem>>, vector<1x1x4x4xf32>
    %333 = vector.shape_cast %332 : vector<1x1x4x4xf32> to vector<4x4xf32>
    %cst_351 = arith.constant dense<0.000000e+00> : vector<64x4xf32>
    %334 = tpu.matmul %327, %333, %cst_351 {dimension_numbers = #tpu.dot_dimension_numbers<[1], [0], [0], [1], [0, 0, 1, 1], [], []>} : vector<64x4xf32>, vector<4x4xf32>, vector<64x4xf32> -> vector<64x4xf32>
    %335 = arith.addf %331, %334 : vector<64x4xf32>
    %c0_352 = arith.constant 0 : index
    %c2_353 = arith.constant 2 : index
    %c16_354 = arith.constant 16 : index
    %c0_355 = arith.constant 0 : index
    %336 = vector.load %arg2[%c0_352, %c2_353, %c16_354, %c0_355] : memref<1x4x96x4xf32, #tpu.memory_space<vmem>>, vector<1x1x64x4xf32>
    %337 = vector.shape_cast %336 : vector<1x1x64x4xf32> to vector<64x4xf32>
    %c2_356 = arith.constant 2 : index
    %c16_357 = arith.constant 16 : index
    %c0_358 = arith.constant 0 : index
    %338 = vector.load %arg11[%c2_356, %c16_357, %c0_358] : memref<4x96x4xf32, #tpu.memory_space<vmem>>, vector<1x64x4xf32>
    %339 = vector.shape_cast %338 : vector<1x64x4xf32> to vector<64x4xf32>
    %c2_359 = arith.constant 2 : index
    %c0_360 = arith.constant 0 : index
    %c0_361 = arith.constant 0 : index
    %c0_362 = arith.constant 0 : index
    %340 = vector.load %arg5[%c2_359, %c0_360, %c0_361, %c0_362] : memref<3x3x4x4xf32, #tpu.memory_space<vmem>>, vector<1x1x4x4xf32>
    %341 = vector.shape_cast %340 : vector<1x1x4x4xf32> to vector<4x4xf32>
    %cst_363 = arith.constant dense<0.000000e+00> : vector<64x4xf32>
    %342 = tpu.matmul %337, %341, %cst_363 {dimension_numbers = #tpu.dot_dimension_numbers<[1], [0], [0], [1], [0, 0, 1, 1], [], []>} : vector<64x4xf32>, vector<4x4xf32>, vector<64x4xf32> -> vector<64x4xf32>
    %343 = arith.addf %335, %342 : vector<64x4xf32>
    %c2_364 = arith.constant 2 : index
    %c0_365 = arith.constant 0 : index
    %c0_366 = arith.constant 0 : index
    %c0_367 = arith.constant 0 : index
    %344 = vector.load %arg6[%c2_364, %c0_365, %c0_366, %c0_367] : memref<3x3x4x4xf32, #tpu.memory_space<vmem>>, vector<1x1x4x4xf32>
    %345 = vector.shape_cast %344 : vector<1x1x4x4xf32> to vector<4x4xf32>
    %cst_368 = arith.constant dense<0.000000e+00> : vector<64x4xf32>
    %346 = tpu.matmul %339, %345, %cst_368 {dimension_numbers = #tpu.dot_dimension_numbers<[1], [0], [0], [1], [0, 0, 1, 1], [], []>} : vector<64x4xf32>, vector<4x4xf32>, vector<64x4xf32> -> vector<64x4xf32>
    %347 = arith.addf %343, %346 : vector<64x4xf32>
    %c0_369 = arith.constant 0 : index
    %c3_370 = arith.constant 3 : index
    %c16_371 = arith.constant 16 : index
    %c0_372 = arith.constant 0 : index
    %348 = vector.load %arg2[%c0_369, %c3_370, %c16_371, %c0_372] : memref<1x4x96x4xf32, #tpu.memory_space<vmem>>, vector<1x1x64x4xf32>
    %349 = vector.shape_cast %348 : vector<1x1x64x4xf32> to vector<64x4xf32>
    %c3_373 = arith.constant 3 : index
    %c16_374 = arith.constant 16 : index
    %c0_375 = arith.constant 0 : index
    %350 = vector.load %arg11[%c3_373, %c16_374, %c0_375] : memref<4x96x4xf32, #tpu.memory_space<vmem>>, vector<1x64x4xf32>
    %351 = vector.shape_cast %350 : vector<1x64x4xf32> to vector<64x4xf32>
    %c2_376 = arith.constant 2 : index
    %c1_377 = arith.constant 1 : index
    %c0_378 = arith.constant 0 : index
    %c0_379 = arith.constant 0 : index
    %352 = vector.load %arg5[%c2_376, %c1_377, %c0_378, %c0_379] : memref<3x3x4x4xf32, #tpu.memory_space<vmem>>, vector<1x1x4x4xf32>
    %353 = vector.shape_cast %352 : vector<1x1x4x4xf32> to vector<4x4xf32>
    %cst_380 = arith.constant dense<0.000000e+00> : vector<64x4xf32>
    %354 = tpu.matmul %349, %353, %cst_380 {dimension_numbers = #tpu.dot_dimension_numbers<[1], [0], [0], [1], [0, 0, 1, 1], [], []>} : vector<64x4xf32>, vector<4x4xf32>, vector<64x4xf32> -> vector<64x4xf32>
    %355 = arith.addf %347, %354 : vector<64x4xf32>
    %c2_381 = arith.constant 2 : index
    %c1_382 = arith.constant 1 : index
    %c0_383 = arith.constant 0 : index
    %c0_384 = arith.constant 0 : index
    %356 = vector.load %arg6[%c2_381, %c1_382, %c0_383, %c0_384] : memref<3x3x4x4xf32, #tpu.memory_space<vmem>>, vector<1x1x4x4xf32>
    %357 = vector.shape_cast %356 : vector<1x1x4x4xf32> to vector<4x4xf32>
    %cst_385 = arith.constant dense<0.000000e+00> : vector<64x4xf32>
    %358 = tpu.matmul %351, %357, %cst_385 {dimension_numbers = #tpu.dot_dimension_numbers<[1], [0], [0], [1], [0, 0, 1, 1], [], []>} : vector<64x4xf32>, vector<4x4xf32>, vector<64x4xf32> -> vector<64x4xf32>
    %359 = arith.addf %355, %358 : vector<64x4xf32>
    %c0_386 = arith.constant 0 : index
    %c2_387 = arith.constant 2 : index
    %c17_388 = arith.constant 17 : index
    %c0_389 = arith.constant 0 : index
    %360 = vector.load %arg2[%c0_386, %c2_387, %c17_388, %c0_389] : memref<1x4x96x4xf32, #tpu.memory_space<vmem>>, vector<1x1x64x4xf32>
    %361 = vector.shape_cast %360 : vector<1x1x64x4xf32> to vector<64x4xf32>
    %362 = vector.broadcast %24 : vector<64x1xf32> to vector<64x4xf32>
    %363 = arith.mulf %361, %362 : vector<64x4xf32>
    %c2_390 = arith.constant 2 : index
    %c17_391 = arith.constant 17 : index
    %c0_392 = arith.constant 0 : index
    %364 = vector.load %arg11[%c2_390, %c17_391, %c0_392] : memref<4x96x4xf32, #tpu.memory_space<vmem>>, vector<1x64x4xf32>
    %365 = vector.shape_cast %364 : vector<1x64x4xf32> to vector<64x4xf32>
    %366 = vector.broadcast %24 : vector<64x1xf32> to vector<64x4xf32>
    %367 = arith.mulf %365, %366 : vector<64x4xf32>
    %c2_393 = arith.constant 2 : index
    %c2_394 = arith.constant 2 : index
    %c0_395 = arith.constant 0 : index
    %c0_396 = arith.constant 0 : index
    %368 = vector.load %arg5[%c2_393, %c2_394, %c0_395, %c0_396] : memref<3x3x4x4xf32, #tpu.memory_space<vmem>>, vector<1x1x4x4xf32>
    %369 = vector.shape_cast %368 : vector<1x1x4x4xf32> to vector<4x4xf32>
    %cst_397 = arith.constant dense<0.000000e+00> : vector<64x4xf32>
    %370 = tpu.matmul %363, %369, %cst_397 {dimension_numbers = #tpu.dot_dimension_numbers<[1], [0], [0], [1], [0, 0, 1, 1], [], []>} : vector<64x4xf32>, vector<4x4xf32>, vector<64x4xf32> -> vector<64x4xf32>
    %371 = arith.addf %359, %370 : vector<64x4xf32>
    %c2_398 = arith.constant 2 : index
    %c2_399 = arith.constant 2 : index
    %c0_400 = arith.constant 0 : index
    %c0_401 = arith.constant 0 : index
    %372 = vector.load %arg6[%c2_398, %c2_399, %c0_400, %c0_401] : memref<3x3x4x4xf32, #tpu.memory_space<vmem>>, vector<1x1x4x4xf32>
    %373 = vector.shape_cast %372 : vector<1x1x4x4xf32> to vector<4x4xf32>
    %cst_402 = arith.constant dense<0.000000e+00> : vector<64x4xf32>
    %374 = tpu.matmul %367, %373, %cst_402 {dimension_numbers = #tpu.dot_dimension_numbers<[1], [0], [0], [1], [0, 0, 1, 1], [], []>} : vector<64x4xf32>, vector<4x4xf32>, vector<64x4xf32> -> vector<64x4xf32>
    %375 = arith.addf %371, %374 : vector<64x4xf32>
    %cst_403 = arith.constant 0.000000e+00 : f32
    %376 = vector.broadcast %cst_403 : f32 to vector<64x4xf32>
    %377 = arith.maximumf %375, %376 : vector<64x4xf32>
    %c1_404 = arith.constant 1 : index
    %c16_405 = arith.constant 16 : index
    %c0_406 = arith.constant 0 : index
    %378 = vector.load %arg12[%c1_404, %c16_405, %c0_406] : memref<4x96x4xf32, #tpu.memory_space<vmem>>, vector<1x64x4xf32>
    %379 = vector.shape_cast %378 : vector<1x64x4xf32> to vector<64x4xf32>
    %380 = vector.shape_cast %377 : vector<64x4xf32> to vector<1x64x4xf32>
    tpu.vector_store %arg12[%c1_404, %c16_405, %c0_406], %380 {strides = array<i32>} : memref<4x96x4xf32, #tpu.memory_space<vmem>>, vector<1x64x4xf32>,
    %cst_407 = arith.constant 0.000000e+00 : f32
    %381 = vector.broadcast %cst_407 : f32 to vector<64x4xf32>
    %382 = vector.broadcast %124 : vector<1x4xf32> to vector<64x4xf32>
    %383 = arith.addf %381, %382 : vector<64x4xf32>
    %c0_408 = arith.constant 0 : index
    %c1_409 = arith.constant 1 : index
    %c15_410 = arith.constant 15 : index
    %c0_411 = arith.constant 0 : index
    %384 = vector.load %arg2[%c0_408, %c1_409, %c15_410, %c0_411] : memref<1x4x96x4xf32, #tpu.memory_space<vmem>>, vector<1x1x64x4xf32>
    %385 = vector.shape_cast %384 : vector<1x1x64x4xf32> to vector<64x4xf32>
    %386 = vector.broadcast %20 : vector<64x1xf32> to vector<64x4xf32>
    %387 = arith.mulf %385, %386 : vector<64x4xf32>
    %c1_412 = arith.constant 1 : index
    %c15_413 = arith.constant 15 : index
    %c0_414 = arith.constant 0 : index
    %388 = vector.load %arg11[%c1_412, %c15_413, %c0_414] : memref<4x96x4xf32, #tpu.memory_space<vmem>>, vector<1x64x4xf32>
    %389 = vector.shape_cast %388 : vector<1x64x4xf32> to vector<64x4xf32>
    %390 = vector.broadcast %20 : vector<64x1xf32> to vector<64x4xf32>
    %391 = arith.mulf %389, %390 : vector<64x4xf32>
    %c0_415 = arith.constant 0 : index
    %c0_416 = arith.constant 0 : index
    %c0_417 = arith.constant 0 : index
    %c0_418 = arith.constant 0 : index
    %392 = vector.load %arg5[%c0_415, %c0_416, %c0_417, %c0_418] : memref<3x3x4x4xf32, #tpu.memory_space<vmem>>, vector<1x1x4x4xf32>
    %393 = vector.shape_cast %392 : vector<1x1x4x4xf32> to vector<4x4xf32>
    %cst_419 = arith.constant dense<0.000000e+00> : vector<64x4xf32>
    %394 = tpu.matmul %387, %393, %cst_419 {dimension_numbers = #tpu.dot_dimension_numbers<[1], [0], [0], [1], [0, 0, 1, 1], [], []>} : vector<64x4xf32>, vector<4x4xf32>, vector<64x4xf32> -> vector<64x4xf32>
    %395 = arith.addf %383, %394 : vector<64x4xf32>
    %c0_420 = arith.constant 0 : index
    %c0_421 = arith.constant 0 : index
    %c0_422 = arith.constant 0 : index
    %c0_423 = arith.constant 0 : index
    %396 = vector.load %arg6[%c0_420, %c0_421, %c0_422, %c0_423] : memref<3x3x4x4xf32, #tpu.memory_space<vmem>>, vector<1x1x4x4xf32>
    %397 = vector.shape_cast %396 : vector<1x1x4x4xf32> to vector<4x4xf32>
    %cst_424 = arith.constant dense<0.000000e+00> : vector<64x4xf32>
    %398 = tpu.matmul %391, %397, %cst_424 {dimension_numbers = #tpu.dot_dimension_numbers<[1], [0], [0], [1], [0, 0, 1, 1], [], []>} : vector<64x4xf32>, vector<4x4xf32>, vector<64x4xf32> -> vector<64x4xf32>
    %399 = arith.addf %395, %398 : vector<64x4xf32>
    %c0_425 = arith.constant 0 : index
    %c0_426 = arith.constant 0 : index
    %c16_427 = arith.constant 16 : index
    %c0_428 = arith.constant 0 : index
    %400 = vector.load %arg2[%c0_425, %c0_426, %c16_427, %c0_428] : memref<1x4x96x4xf32, #tpu.memory_space<vmem>>, vector<1x1x64x4xf32>
    %401 = vector.shape_cast %400 : vector<1x1x64x4xf32> to vector<64x4xf32>
    %c0_429 = arith.constant 0 : index
    %c16_430 = arith.constant 16 : index
    %c0_431 = arith.constant 0 : index
    %402 = vector.load %arg11[%c0_429, %c16_430, %c0_431] : memref<4x96x4xf32, #tpu.memory_space<vmem>>, vector<1x64x4xf32>
    %403 = vector.shape_cast %402 : vector<1x64x4xf32> to vector<64x4xf32>
    %c0_432 = arith.constant 0 : index
    %c1_433 = arith.constant 1 : index
    %c0_434 = arith.constant 0 : index
    %c0_435 = arith.constant 0 : index
    %404 = vector.load %arg5[%c0_432, %c1_433, %c0_434, %c0_435] : memref<3x3x4x4xf32, #tpu.memory_space<vmem>>, vector<1x1x4x4xf32>
    %405 = vector.shape_cast %404 : vector<1x1x4x4xf32> to vector<4x4xf32>
    %cst_436 = arith.constant dense<0.000000e+00> : vector<64x4xf32>
    %406 = tpu.matmul %401, %405, %cst_436 {dimension_numbers = #tpu.dot_dimension_numbers<[1], [0], [0], [1], [0, 0, 1, 1], [], []>} : vector<64x4xf32>, vector<4x4xf32>, vector<64x4xf32> -> vector<64x4xf32>
    %407 = arith.addf %399, %406 : vector<64x4xf32>
    %c0_437 = arith.constant 0 : index
    %c1_438 = arith.constant 1 : index
    %c0_439 = arith.constant 0 : index
    %c0_440 = arith.constant 0 : index
    %408 = vector.load %arg6[%c0_437, %c1_438, %c0_439, %c0_440] : memref<3x3x4x4xf32, #tpu.memory_space<vmem>>, vector<1x1x4x4xf32>
    %409 = vector.shape_cast %408 : vector<1x1x4x4xf32> to vector<4x4xf32>
    %cst_441 = arith.constant dense<0.000000e+00> : vector<64x4xf32>
    %410 = tpu.matmul %403, %409, %cst_441 {dimension_numbers = #tpu.dot_dimension_numbers<[1], [0], [0], [1], [0, 0, 1, 1], [], []>} : vector<64x4xf32>, vector<4x4xf32>, vector<64x4xf32> -> vector<64x4xf32>
    %411 = arith.addf %407, %410 : vector<64x4xf32>
    %c0_442 = arith.constant 0 : index
    %c1_443 = arith.constant 1 : index
    %c16_444 = arith.constant 16 : index
    %c0_445 = arith.constant 0 : index
    %412 = vector.load %arg2[%c0_442, %c1_443, %c16_444, %c0_445] : memref<1x4x96x4xf32, #tpu.memory_space<vmem>>, vector<1x1x64x4xf32>
    %413 = vector.shape_cast %412 : vector<1x1x64x4xf32> to vector<64x4xf32>
    %c1_446 = arith.constant 1 : index
    %c16_447 = arith.constant 16 : index
    %c0_448 = arith.constant 0 : index
    %414 = vector.load %arg11[%c1_446, %c16_447, %c0_448] : memref<4x96x4xf32, #tpu.memory_space<vmem>>, vector<1x64x4xf32>
    %415 = vector.shape_cast %414 : vector<1x64x4xf32> to vector<64x4xf32>
    %c0_449 = arith.constant 0 : index
    %c2_450 = arith.constant 2 : index
    %c0_451 = arith.constant 0 : index
    %c0_452 = arith.constant 0 : index
    %416 = vector.load %arg5[%c0_449, %c2_450, %c0_451, %c0_452] : memref<3x3x4x4xf32, #tpu.memory_space<vmem>>, vector<1x1x4x4xf32>
    %417 = vector.shape_cast %416 : vector<1x1x4x4xf32> to vector<4x4xf32>
    %cst_453 = arith.constant dense<0.000000e+00> : vector<64x4xf32>
    %418 = tpu.matmul %413, %417, %cst_453 {dimension_numbers = #tpu.dot_dimension_numbers<[1], [0], [0], [1], [0, 0, 1, 1], [], []>} : vector<64x4xf32>, vector<4x4xf32>, vector<64x4xf32> -> vector<64x4xf32>
    %419 = arith.addf %411, %418 : vector<64x4xf32>
    %c0_454 = arith.constant 0 : index
    %c2_455 = arith.constant 2 : index
    %c0_456 = arith.constant 0 : index
    %c0_457 = arith.constant 0 : index
    %420 = vector.load %arg6[%c0_454, %c2_455, %c0_456, %c0_457] : memref<3x3x4x4xf32, #tpu.memory_space<vmem>>, vector<1x1x4x4xf32>
    %421 = vector.shape_cast %420 : vector<1x1x4x4xf32> to vector<4x4xf32>
    %cst_458 = arith.constant dense<0.000000e+00> : vector<64x4xf32>
    %422 = tpu.matmul %415, %421, %cst_458 {dimension_numbers = #tpu.dot_dimension_numbers<[1], [0], [0], [1], [0, 0, 1, 1], [], []>} : vector<64x4xf32>, vector<4x4xf32>, vector<64x4xf32> -> vector<64x4xf32>
    %423 = arith.addf %419, %422 : vector<64x4xf32>
    %c0_459 = arith.constant 0 : index
    %c3_460 = arith.constant 3 : index
    %c15_461 = arith.constant 15 : index
    %c0_462 = arith.constant 0 : index
    %424 = vector.load %arg2[%c0_459, %c3_460, %c15_461, %c0_462] : memref<1x4x96x4xf32, #tpu.memory_space<vmem>>, vector<1x1x64x4xf32>
    %425 = vector.shape_cast %424 : vector<1x1x64x4xf32> to vector<64x4xf32>
    %426 = vector.broadcast %20 : vector<64x1xf32> to vector<64x4xf32>
    %427 = arith.mulf %425, %426 : vector<64x4xf32>
    %c3_463 = arith.constant 3 : index
    %c15_464 = arith.constant 15 : index
    %c0_465 = arith.constant 0 : index
    %428 = vector.load %arg11[%c3_463, %c15_464, %c0_465] : memref<4x96x4xf32, #tpu.memory_space<vmem>>, vector<1x64x4xf32>
    %429 = vector.shape_cast %428 : vector<1x64x4xf32> to vector<64x4xf32>
    %430 = vector.broadcast %20 : vector<64x1xf32> to vector<64x4xf32>
    %431 = arith.mulf %429, %430 : vector<64x4xf32>
    %c1_466 = arith.constant 1 : index
    %c0_467 = arith.constant 0 : index
    %c0_468 = arith.constant 0 : index
    %c0_469 = arith.constant 0 : index
    %432 = vector.load %arg5[%c1_466, %c0_467, %c0_468, %c0_469] : memref<3x3x4x4xf32, #tpu.memory_space<vmem>>, vector<1x1x4x4xf32>
    %433 = vector.shape_cast %432 : vector<1x1x4x4xf32> to vector<4x4xf32>
    %cst_470 = arith.constant dense<0.000000e+00> : vector<64x4xf32>
    %434 = tpu.matmul %427, %433, %cst_470 {dimension_numbers = #tpu.dot_dimension_numbers<[1], [0], [0], [1], [0, 0, 1, 1], [], []>} : vector<64x4xf32>, vector<4x4xf32>, vector<64x4xf32> -> vector<64x4xf32>
    %435 = arith.addf %423, %434 : vector<64x4xf32>
    %c1_471 = arith.constant 1 : index
    %c0_472 = arith.constant 0 : index
    %c0_473 = arith.constant 0 : index
    %c0_474 = arith.constant 0 : index
    %436 = vector.load %arg6[%c1_471, %c0_472, %c0_473, %c0_474] : memref<3x3x4x4xf32, #tpu.memory_space<vmem>>, vector<1x1x4x4xf32>
    %437 = vector.shape_cast %436 : vector<1x1x4x4xf32> to vector<4x4xf32>
    %cst_475 = arith.constant dense<0.000000e+00> : vector<64x4xf32>
    %438 = tpu.matmul %431, %437, %cst_475 {dimension_numbers = #tpu.dot_dimension_numbers<[1], [0], [0], [1], [0, 0, 1, 1], [], []>} : vector<64x4xf32>, vector<4x4xf32>, vector<64x4xf32> -> vector<64x4xf32>
    %439 = arith.addf %435, %438 : vector<64x4xf32>
    %c0_476 = arith.constant 0 : index
    %c2_477 = arith.constant 2 : index
    %c16_478 = arith.constant 16 : index
    %c0_479 = arith.constant 0 : index
    %440 = vector.load %arg2[%c0_476, %c2_477, %c16_478, %c0_479] : memref<1x4x96x4xf32, #tpu.memory_space<vmem>>, vector<1x1x64x4xf32>
    %441 = vector.shape_cast %440 : vector<1x1x64x4xf32> to vector<64x4xf32>
    %c2_480 = arith.constant 2 : index
    %c16_481 = arith.constant 16 : index
    %c0_482 = arith.constant 0 : index
    %442 = vector.load %arg11[%c2_480, %c16_481, %c0_482] : memref<4x96x4xf32, #tpu.memory_space<vmem>>, vector<1x64x4xf32>
    %443 = vector.shape_cast %442 : vector<1x64x4xf32> to vector<64x4xf32>
    %c1_483 = arith.constant 1 : index
    %c1_484 = arith.constant 1 : index
    %c0_485 = arith.constant 0 : index
    %c0_486 = arith.constant 0 : index
    %444 = vector.load %arg5[%c1_483, %c1_484, %c0_485, %c0_486] : memref<3x3x4x4xf32, #tpu.memory_space<vmem>>, vector<1x1x4x4xf32>
    %445 = vector.shape_cast %444 : vector<1x1x4x4xf32> to vector<4x4xf32>
    %cst_487 = arith.constant dense<0.000000e+00> : vector<64x4xf32>
    %446 = tpu.matmul %441, %445, %cst_487 {dimension_numbers = #tpu.dot_dimension_numbers<[1], [0], [0], [1], [0, 0, 1, 1], [], []>} : vector<64x4xf32>, vector<4x4xf32>, vector<64x4xf32> -> vector<64x4xf32>
    %447 = arith.addf %439, %446 : vector<64x4xf32>
    %c1_488 = arith.constant 1 : index
    %c1_489 = arith.constant 1 : index
    %c0_490 = arith.constant 0 : index
    %c0_491 = arith.constant 0 : index
    %448 = vector.load %arg6[%c1_488, %c1_489, %c0_490, %c0_491] : memref<3x3x4x4xf32, #tpu.memory_space<vmem>>, vector<1x1x4x4xf32>
    %449 = vector.shape_cast %448 : vector<1x1x4x4xf32> to vector<4x4xf32>
    %cst_492 = arith.constant dense<0.000000e+00> : vector<64x4xf32>
    %450 = tpu.matmul %443, %449, %cst_492 {dimension_numbers = #tpu.dot_dimension_numbers<[1], [0], [0], [1], [0, 0, 1, 1], [], []>} : vector<64x4xf32>, vector<4x4xf32>, vector<64x4xf32> -> vector<64x4xf32>
    %451 = arith.addf %447, %450 : vector<64x4xf32>
    %c0_493 = arith.constant 0 : index
    %c3_494 = arith.constant 3 : index
    %c16_495 = arith.constant 16 : index
    %c0_496 = arith.constant 0 : index
    %452 = vector.load %arg2[%c0_493, %c3_494, %c16_495, %c0_496] : memref<1x4x96x4xf32, #tpu.memory_space<vmem>>, vector<1x1x64x4xf32>
    %453 = vector.shape_cast %452 : vector<1x1x64x4xf32> to vector<64x4xf32>
    %c3_497 = arith.constant 3 : index
    %c16_498 = arith.constant 16 : index
    %c0_499 = arith.constant 0 : index
    %454 = vector.load %arg11[%c3_497, %c16_498, %c0_499] : memref<4x96x4xf32, #tpu.memory_space<vmem>>, vector<1x64x4xf32>
    %455 = vector.shape_cast %454 : vector<1x64x4xf32> to vector<64x4xf32>
    %c1_500 = arith.constant 1 : index
    %c2_501 = arith.constant 2 : index
    %c0_502 = arith.constant 0 : index
    %c0_503 = arith.constant 0 : index
    %456 = vector.load %arg5[%c1_500, %c2_501, %c0_502, %c0_503] : memref<3x3x4x4xf32, #tpu.memory_space<vmem>>, vector<1x1x4x4xf32>
    %457 = vector.shape_cast %456 : vector<1x1x4x4xf32> to vector<4x4xf32>
    %cst_504 = arith.constant dense<0.000000e+00> : vector<64x4xf32>
    %458 = tpu.matmul %453, %457, %cst_504 {dimension_numbers = #tpu.dot_dimension_numbers<[1], [0], [0], [1], [0, 0, 1, 1], [], []>} : vector<64x4xf32>, vector<4x4xf32>, vector<64x4xf32> -> vector<64x4xf32>
    %459 = arith.addf %451, %458 : vector<64x4xf32>
    %c1_505 = arith.constant 1 : index
    %c2_506 = arith.constant 2 : index
    %c0_507 = arith.constant 0 : index
    %c0_508 = arith.constant 0 : index
    %460 = vector.load %arg6[%c1_505, %c2_506, %c0_507, %c0_508] : memref<3x3x4x4xf32, #tpu.memory_space<vmem>>, vector<1x1x4x4xf32>
    %461 = vector.shape_cast %460 : vector<1x1x4x4xf32> to vector<4x4xf32>
    %cst_509 = arith.constant dense<0.000000e+00> : vector<64x4xf32>
    %462 = tpu.matmul %455, %461, %cst_509 {dimension_numbers = #tpu.dot_dimension_numbers<[1], [0], [0], [1], [0, 0, 1, 1], [], []>} : vector<64x4xf32>, vector<4x4xf32>, vector<64x4xf32> -> vector<64x4xf32>
    %463 = arith.addf %459, %462 : vector<64x4xf32>
    %c0_510 = arith.constant 0 : index
    %c1_511 = arith.constant 1 : index
    %c23 = arith.constant 23 : index
    %c0_512 = arith.constant 0 : index
    %464 = vector.load %arg2[%c0_510, %c1_511, %c23, %c0_512] : memref<1x4x96x4xf32, #tpu.memory_space<vmem>>, vector<1x1x64x4xf32>
    %465 = vector.shape_cast %464 : vector<1x1x64x4xf32> to vector<64x4xf32>
    %466 = vector.broadcast %20 : vector<64x1xf32> to vector<64x4xf32>
    %467 = arith.mulf %465, %466 : vector<64x4xf32>
    %c1_513 = arith.constant 1 : index
    %c23_514 = arith.constant 23 : index
    %c0_515 = arith.constant 0 : index
    %468 = vector.load %arg11[%c1_513, %c23_514, %c0_515] : memref<4x96x4xf32, #tpu.memory_space<vmem>>, vector<1x64x4xf32>
    %469 = vector.shape_cast %468 : vector<1x64x4xf32> to vector<64x4xf32>
    %470 = vector.broadcast %20 : vector<64x1xf32> to vector<64x4xf32>
    %471 = arith.mulf %469, %470 : vector<64x4xf32>
    %c2_516 = arith.constant 2 : index
    %c0_517 = arith.constant 0 : index
    %c0_518 = arith.constant 0 : index
    %c0_519 = arith.constant 0 : index
    %472 = vector.load %arg5[%c2_516, %c0_517, %c0_518, %c0_519] : memref<3x3x4x4xf32, #tpu.memory_space<vmem>>, vector<1x1x4x4xf32>
    %473 = vector.shape_cast %472 : vector<1x1x4x4xf32> to vector<4x4xf32>
    %cst_520 = arith.constant dense<0.000000e+00> : vector<64x4xf32>
    %474 = tpu.matmul %467, %473, %cst_520 {dimension_numbers = #tpu.dot_dimension_numbers<[1], [0], [0], [1], [0, 0, 1, 1], [], []>} : vector<64x4xf32>, vector<4x4xf32>, vector<64x4xf32> -> vector<64x4xf32>
    %475 = arith.addf %463, %474 : vector<64x4xf32>
    %c2_521 = arith.constant 2 : index
    %c0_522 = arith.constant 0 : index
    %c0_523 = arith.constant 0 : index
    %c0_524 = arith.constant 0 : index
    %476 = vector.load %arg6[%c2_521, %c0_522, %c0_523, %c0_524] : memref<3x3x4x4xf32, #tpu.memory_space<vmem>>, vector<1x1x4x4xf32>
    %477 = vector.shape_cast %476 : vector<1x1x4x4xf32> to vector<4x4xf32>
    %cst_525 = arith.constant dense<0.000000e+00> : vector<64x4xf32>
    %478 = tpu.matmul %471, %477, %cst_525 {dimension_numbers = #tpu.dot_dimension_numbers<[1], [0], [0], [1], [0, 0, 1, 1], [], []>} : vector<64x4xf32>, vector<4x4xf32>, vector<64x4xf32> -> vector<64x4xf32>
    %479 = arith.addf %475, %478 : vector<64x4xf32>
    %c0_526 = arith.constant 0 : index
    %c0_527 = arith.constant 0 : index
    %c24 = arith.constant 24 : index
    %c0_528 = arith.constant 0 : index
    %480 = vector.load %arg2[%c0_526, %c0_527, %c24, %c0_528] : memref<1x4x96x4xf32, #tpu.memory_space<vmem>>, vector<1x1x64x4xf32>
    %481 = vector.shape_cast %480 : vector<1x1x64x4xf32> to vector<64x4xf32>
    %c0_529 = arith.constant 0 : index
    %c24_530 = arith.constant 24 : index
    %c0_531 = arith.constant 0 : index
    %482 = vector.load %arg11[%c0_529, %c24_530, %c0_531] : memref<4x96x4xf32, #tpu.memory_space<vmem>>, vector<1x64x4xf32>
    %483 = vector.shape_cast %482 : vector<1x64x4xf32> to vector<64x4xf32>
    %c2_532 = arith.constant 2 : index
    %c1_533 = arith.constant 1 : index
    %c0_534 = arith.constant 0 : index
    %c0_535 = arith.constant 0 : index
    %484 = vector.load %arg5[%c2_532, %c1_533, %c0_534, %c0_535] : memref<3x3x4x4xf32, #tpu.memory_space<vmem>>, vector<1x1x4x4xf32>
    %485 = vector.shape_cast %484 : vector<1x1x4x4xf32> to vector<4x4xf32>
    %cst_536 = arith.constant dense<0.000000e+00> : vector<64x4xf32>
    %486 = tpu.matmul %481, %485, %cst_536 {dimension_numbers = #tpu.dot_dimension_numbers<[1], [0], [0], [1], [0, 0, 1, 1], [], []>} : vector<64x4xf32>, vector<4x4xf32>, vector<64x4xf32> -> vector<64x4xf32>
    %487 = arith.addf %479, %486 : vector<64x4xf32>
    %c2_537 = arith.constant 2 : index
    %c1_538 = arith.constant 1 : index
    %c0_539 = arith.constant 0 : index
    %c0_540 = arith.constant 0 : index
    %488 = vector.load %arg6[%c2_537, %c1_538, %c0_539, %c0_540] : memref<3x3x4x4xf32, #tpu.memory_space<vmem>>, vector<1x1x4x4xf32>
    %489 = vector.shape_cast %488 : vector<1x1x4x4xf32> to vector<4x4xf32>
    %cst_541 = arith.constant dense<0.000000e+00> : vector<64x4xf32>
    %490 = tpu.matmul %483, %489, %cst_541 {dimension_numbers = #tpu.dot_dimension_numbers<[1], [0], [0], [1], [0, 0, 1, 1], [], []>} : vector<64x4xf32>, vector<4x4xf32>, vector<64x4xf32> -> vector<64x4xf32>
    %491 = arith.addf %487, %490 : vector<64x4xf32>
    %c0_542 = arith.constant 0 : index
    %c1_543 = arith.constant 1 : index
    %c24_544 = arith.constant 24 : index
    %c0_545 = arith.constant 0 : index
    %492 = vector.load %arg2[%c0_542, %c1_543, %c24_544, %c0_545] : memref<1x4x96x4xf32, #tpu.memory_space<vmem>>, vector<1x1x64x4xf32>
    %493 = vector.shape_cast %492 : vector<1x1x64x4xf32> to vector<64x4xf32>
    %c1_546 = arith.constant 1 : index
    %c24_547 = arith.constant 24 : index
    %c0_548 = arith.constant 0 : index
    %494 = vector.load %arg11[%c1_546, %c24_547, %c0_548] : memref<4x96x4xf32, #tpu.memory_space<vmem>>, vector<1x64x4xf32>
    %495 = vector.shape_cast %494 : vector<1x64x4xf32> to vector<64x4xf32>
    %c2_549 = arith.constant 2 : index
    %c2_550 = arith.constant 2 : index
    %c0_551 = arith.constant 0 : index
    %c0_552 = arith.constant 0 : index
    %496 = vector.load %arg5[%c2_549, %c2_550, %c0_551, %c0_552] : memref<3x3x4x4xf32, #tpu.memory_space<vmem>>, vector<1x1x4x4xf32>
    %497 = vector.shape_cast %496 : vector<1x1x4x4xf32> to vector<4x4xf32>
    %cst_553 = arith.constant dense<0.000000e+00> : vector<64x4xf32>
    %498 = tpu.matmul %493, %497, %cst_553 {dimension_numbers = #tpu.dot_dimension_numbers<[1], [0], [0], [1], [0, 0, 1, 1], [], []>} : vector<64x4xf32>, vector<4x4xf32>, vector<64x4xf32> -> vector<64x4xf32>
    %499 = arith.addf %491, %498 : vector<64x4xf32>
    %c2_554 = arith.constant 2 : index
    %c2_555 = arith.constant 2 : index
    %c0_556 = arith.constant 0 : index
    %c0_557 = arith.constant 0 : index
    %500 = vector.load %arg6[%c2_554, %c2_555, %c0_556, %c0_557] : memref<3x3x4x4xf32, #tpu.memory_space<vmem>>, vector<1x1x4x4xf32>
    %501 = vector.shape_cast %500 : vector<1x1x4x4xf32> to vector<4x4xf32>
    %cst_558 = arith.constant dense<0.000000e+00> : vector<64x4xf32>
    %502 = tpu.matmul %495, %501, %cst_558 {dimension_numbers = #tpu.dot_dimension_numbers<[1], [0], [0], [1], [0, 0, 1, 1], [], []>} : vector<64x4xf32>, vector<4x4xf32>, vector<64x4xf32> -> vector<64x4xf32>
    %503 = arith.addf %499, %502 : vector<64x4xf32>
    %cst_559 = arith.constant 0.000000e+00 : f32
    %504 = vector.broadcast %cst_559 : f32 to vector<64x4xf32>
    %505 = arith.maximumf %503, %504 : vector<64x4xf32>
    %c2_560 = arith.constant 2 : index
    %c16_561 = arith.constant 16 : index
    %c0_562 = arith.constant 0 : index
    %506 = vector.load %arg12[%c2_560, %c16_561, %c0_562] : memref<4x96x4xf32, #tpu.memory_space<vmem>>, vector<1x64x4xf32>
    %507 = vector.shape_cast %506 : vector<1x64x4xf32> to vector<64x4xf32>
    %508 = vector.shape_cast %505 : vector<64x4xf32> to vector<1x64x4xf32>
    tpu.vector_store %arg12[%c2_560, %c16_561, %c0_562], %508 {strides = array<i32>} : memref<4x96x4xf32, #tpu.memory_space<vmem>>, vector<1x64x4xf32>,
    %cst_563 = arith.constant 0.000000e+00 : f32
    %509 = vector.broadcast %cst_563 : f32 to vector<64x4xf32>
    %510 = vector.broadcast %124 : vector<1x4xf32> to vector<64x4xf32>
    %511 = arith.addf %509, %510 : vector<64x4xf32>
    %c0_564 = arith.constant 0 : index
    %c0_565 = arith.constant 0 : index
    %c16_566 = arith.constant 16 : index
    %c0_567 = arith.constant 0 : index
    %512 = vector.load %arg2[%c0_564, %c0_565, %c16_566, %c0_567] : memref<1x4x96x4xf32, #tpu.memory_space<vmem>>, vector<1x1x64x4xf32>
    %513 = vector.shape_cast %512 : vector<1x1x64x4xf32> to vector<64x4xf32>
    %c0_568 = arith.constant 0 : index
    %c16_569 = arith.constant 16 : index
    %c0_570 = arith.constant 0 : index
    %514 = vector.load %arg11[%c0_568, %c16_569, %c0_570] : memref<4x96x4xf32, #tpu.memory_space<vmem>>, vector<1x64x4xf32>
    %515 = vector.shape_cast %514 : vector<1x64x4xf32> to vector<64x4xf32>
    %c0_571 = arith.constant 0 : index
    %c0_572 = arith.constant 0 : index
    %c0_573 = arith.constant 0 : index
    %c0_574 = arith.constant 0 : index
    %516 = vector.load %arg5[%c0_571, %c0_572, %c0_573, %c0_574] : memref<3x3x4x4xf32, #tpu.memory_space<vmem>>, vector<1x1x4x4xf32>
    %517 = vector.shape_cast %516 : vector<1x1x4x4xf32> to vector<4x4xf32>
    %cst_575 = arith.constant dense<0.000000e+00> : vector<64x4xf32>
    %518 = tpu.matmul %513, %517, %cst_575 {dimension_numbers = #tpu.dot_dimension_numbers<[1], [0], [0], [1], [0, 0, 1, 1], [], []>} : vector<64x4xf32>, vector<4x4xf32>, vector<64x4xf32> -> vector<64x4xf32>
    %519 = arith.addf %511, %518 : vector<64x4xf32>
    %c0_576 = arith.constant 0 : index
    %c0_577 = arith.constant 0 : index
    %c0_578 = arith.constant 0 : index
    %c0_579 = arith.constant 0 : index
    %520 = vector.load %arg6[%c0_576, %c0_577, %c0_578, %c0_579] : memref<3x3x4x4xf32, #tpu.memory_space<vmem>>, vector<1x1x4x4xf32>
    %521 = vector.shape_cast %520 : vector<1x1x4x4xf32> to vector<4x4xf32>
    %cst_580 = arith.constant dense<0.000000e+00> : vector<64x4xf32>
    %522 = tpu.matmul %515, %521, %cst_580 {dimension_numbers = #tpu.dot_dimension_numbers<[1], [0], [0], [1], [0, 0, 1, 1], [], []>} : vector<64x4xf32>, vector<4x4xf32>, vector<64x4xf32> -> vector<64x4xf32>
    %523 = arith.addf %519, %522 : vector<64x4xf32>
    %c0_581 = arith.constant 0 : index
    %c1_582 = arith.constant 1 : index
    %c16_583 = arith.constant 16 : index
    %c0_584 = arith.constant 0 : index
    %524 = vector.load %arg2[%c0_581, %c1_582, %c16_583, %c0_584] : memref<1x4x96x4xf32, #tpu.memory_space<vmem>>, vector<1x1x64x4xf32>
    %525 = vector.shape_cast %524 : vector<1x1x64x4xf32> to vector<64x4xf32>
    %c1_585 = arith.constant 1 : index
    %c16_586 = arith.constant 16 : index
    %c0_587 = arith.constant 0 : index
    %526 = vector.load %arg11[%c1_585, %c16_586, %c0_587] : memref<4x96x4xf32, #tpu.memory_space<vmem>>, vector<1x64x4xf32>
    %527 = vector.shape_cast %526 : vector<1x64x4xf32> to vector<64x4xf32>
    %c0_588 = arith.constant 0 : index
    %c1_589 = arith.constant 1 : index
    %c0_590 = arith.constant 0 : index
    %c0_591 = arith.constant 0 : index
    %528 = vector.load %arg5[%c0_588, %c1_589, %c0_590, %c0_591] : memref<3x3x4x4xf32, #tpu.memory_space<vmem>>, vector<1x1x4x4xf32>
    %529 = vector.shape_cast %528 : vector<1x1x4x4xf32> to vector<4x4xf32>
    %cst_592 = arith.constant dense<0.000000e+00> : vector<64x4xf32>
    %530 = tpu.matmul %525, %529, %cst_592 {dimension_numbers = #tpu.dot_dimension_numbers<[1], [0], [0], [1], [0, 0, 1, 1], [], []>} : vector<64x4xf32>, vector<4x4xf32>, vector<64x4xf32> -> vector<64x4xf32>
    %531 = arith.addf %523, %530 : vector<64x4xf32>
    %c0_593 = arith.constant 0 : index
    %c1_594 = arith.constant 1 : index
    %c0_595 = arith.constant 0 : index
    %c0_596 = arith.constant 0 : index
    %532 = vector.load %arg6[%c0_593, %c1_594, %c0_595, %c0_596] : memref<3x3x4x4xf32, #tpu.memory_space<vmem>>, vector<1x1x4x4xf32>
    %533 = vector.shape_cast %532 : vector<1x1x4x4xf32> to vector<4x4xf32>
    %cst_597 = arith.constant dense<0.000000e+00> : vector<64x4xf32>
    %534 = tpu.matmul %527, %533, %cst_597 {dimension_numbers = #tpu.dot_dimension_numbers<[1], [0], [0], [1], [0, 0, 1, 1], [], []>} : vector<64x4xf32>, vector<4x4xf32>, vector<64x4xf32> -> vector<64x4xf32>
    %535 = arith.addf %531, %534 : vector<64x4xf32>
    %c0_598 = arith.constant 0 : index
    %c0_599 = arith.constant 0 : index
    %c17_600 = arith.constant 17 : index
    %c0_601 = arith.constant 0 : index
    %536 = vector.load %arg2[%c0_598, %c0_599, %c17_600, %c0_601] : memref<1x4x96x4xf32, #tpu.memory_space<vmem>>, vector<1x1x64x4xf32>
    %537 = vector.shape_cast %536 : vector<1x1x64x4xf32> to vector<64x4xf32>
    %538 = vector.broadcast %24 : vector<64x1xf32> to vector<64x4xf32>
    %539 = arith.mulf %537, %538 : vector<64x4xf32>
    %c0_602 = arith.constant 0 : index
    %c17_603 = arith.constant 17 : index
    %c0_604 = arith.constant 0 : index
    %540 = vector.load %arg11[%c0_602, %c17_603, %c0_604] : memref<4x96x4xf32, #tpu.memory_space<vmem>>, vector<1x64x4xf32>
    %541 = vector.shape_cast %540 : vector<1x64x4xf32> to vector<64x4xf32>
    %542 = vector.broadcast %24 : vector<64x1xf32> to vector<64x4xf32>
    %543 = arith.mulf %541, %542 : vector<64x4xf32>
    %c0_605 = arith.constant 0 : index
    %c2_606 = arith.constant 2 : index
    %c0_607 = arith.constant 0 : index
    %c0_608 = arith.constant 0 : index
    %544 = vector.load %arg5[%c0_605, %c2_606, %c0_607, %c0_608] : memref<3x3x4x4xf32, #tpu.memory_space<vmem>>, vector<1x1x4x4xf32>
    %545 = vector.shape_cast %544 : vector<1x1x4x4xf32> to vector<4x4xf32>
    %cst_609 = arith.constant dense<0.000000e+00> : vector<64x4xf32>
    %546 = tpu.matmul %539, %545, %cst_609 {dimension_numbers = #tpu.dot_dimension_numbers<[1], [0], [0], [1], [0, 0, 1, 1], [], []>} : vector<64x4xf32>, vector<4x4xf32>, vector<64x4xf32> -> vector<64x4xf32>
    %547 = arith.addf %535, %546 : vector<64x4xf32>
    %c0_610 = arith.constant 0 : index
    %c2_611 = arith.constant 2 : index
    %c0_612 = arith.constant 0 : index
    %c0_613 = arith.constant 0 : index
    %548 = vector.load %arg6[%c0_610, %c2_611, %c0_612, %c0_613] : memref<3x3x4x4xf32, #tpu.memory_space<vmem>>, vector<1x1x4x4xf32>
    %549 = vector.shape_cast %548 : vector<1x1x4x4xf32> to vector<4x4xf32>
    %cst_614 = arith.constant dense<0.000000e+00> : vector<64x4xf32>
    %550 = tpu.matmul %543, %549, %cst_614 {dimension_numbers = #tpu.dot_dimension_numbers<[1], [0], [0], [1], [0, 0, 1, 1], [], []>} : vector<64x4xf32>, vector<4x4xf32>, vector<64x4xf32> -> vector<64x4xf32>
    %551 = arith.addf %547, %550 : vector<64x4xf32>
    %c0_615 = arith.constant 0 : index
    %c2_616 = arith.constant 2 : index
    %c16_617 = arith.constant 16 : index
    %c0_618 = arith.constant 0 : index
    %552 = vector.load %arg2[%c0_615, %c2_616, %c16_617, %c0_618] : memref<1x4x96x4xf32, #tpu.memory_space<vmem>>, vector<1x1x64x4xf32>
    %553 = vector.shape_cast %552 : vector<1x1x64x4xf32> to vector<64x4xf32>
    %c2_619 = arith.constant 2 : index
    %c16_620 = arith.constant 16 : index
    %c0_621 = arith.constant 0 : index
    %554 = vector.load %arg11[%c2_619, %c16_620, %c0_621] : memref<4x96x4xf32, #tpu.memory_space<vmem>>, vector<1x64x4xf32>
    %555 = vector.shape_cast %554 : vector<1x64x4xf32> to vector<64x4xf32>
    %c1_622 = arith.constant 1 : index
    %c0_623 = arith.constant 0 : index
    %c0_624 = arith.constant 0 : index
    %c0_625 = arith.constant 0 : index
    %556 = vector.load %arg5[%c1_622, %c0_623, %c0_624, %c0_625] : memref<3x3x4x4xf32, #tpu.memory_space<vmem>>, vector<1x1x4x4xf32>
    %557 = vector.shape_cast %556 : vector<1x1x4x4xf32> to vector<4x4xf32>
    %cst_626 = arith.constant dense<0.000000e+00> : vector<64x4xf32>
    %558 = tpu.matmul %553, %557, %cst_626 {dimension_numbers = #tpu.dot_dimension_numbers<[1], [0], [0], [1], [0, 0, 1, 1], [], []>} : vector<64x4xf32>, vector<4x4xf32>, vector<64x4xf32> -> vector<64x4xf32>
    %559 = arith.addf %551, %558 : vector<64x4xf32>
    %c1_627 = arith.constant 1 : index
    %c0_628 = arith.constant 0 : index
    %c0_629 = arith.constant 0 : index
    %c0_630 = arith.constant 0 : index
    %560 = vector.load %arg6[%c1_627, %c0_628, %c0_629, %c0_630] : memref<3x3x4x4xf32, #tpu.memory_space<vmem>>, vector<1x1x4x4xf32>
    %561 = vector.shape_cast %560 : vector<1x1x4x4xf32> to vector<4x4xf32>
    %cst_631 = arith.constant dense<0.000000e+00> : vector<64x4xf32>
    %562 = tpu.matmul %555, %561, %cst_631 {dimension_numbers = #tpu.dot_dimension_numbers<[1], [0], [0], [1], [0, 0, 1, 1], [], []>} : vector<64x4xf32>, vector<4x4xf32>, vector<64x4xf32> -> vector<64x4xf32>
    %563 = arith.addf %559, %562 : vector<64x4xf32>
    %c0_632 = arith.constant 0 : index
    %c3_633 = arith.constant 3 : index
    %c16_634 = arith.constant 16 : index
    %c0_635 = arith.constant 0 : index
    %564 = vector.load %arg2[%c0_632, %c3_633, %c16_634, %c0_635] : memref<1x4x96x4xf32, #tpu.memory_space<vmem>>, vector<1x1x64x4xf32>
    %565 = vector.shape_cast %564 : vector<1x1x64x4xf32> to vector<64x4xf32>
    %c3_636 = arith.constant 3 : index
    %c16_637 = arith.constant 16 : index
    %c0_638 = arith.constant 0 : index
    %566 = vector.load %arg11[%c3_636, %c16_637, %c0_638] : memref<4x96x4xf32, #tpu.memory_space<vmem>>, vector<1x64x4xf32>
    %567 = vector.shape_cast %566 : vector<1x64x4xf32> to vector<64x4xf32>
    %c1_639 = arith.constant 1 : index
    %c1_640 = arith.constant 1 : index
    %c0_641 = arith.constant 0 : index
    %c0_642 = arith.constant 0 : index
    %568 = vector.load %arg5[%c1_639, %c1_640, %c0_641, %c0_642] : memref<3x3x4x4xf32, #tpu.memory_space<vmem>>, vector<1x1x4x4xf32>
    %569 = vector.shape_cast %568 : vector<1x1x4x4xf32> to vector<4x4xf32>
    %cst_643 = arith.constant dense<0.000000e+00> : vector<64x4xf32>
    %570 = tpu.matmul %565, %569, %cst_643 {dimension_numbers = #tpu.dot_dimension_numbers<[1], [0], [0], [1], [0, 0, 1, 1], [], []>} : vector<64x4xf32>, vector<4x4xf32>, vector<64x4xf32> -> vector<64x4xf32>
    %571 = arith.addf %563, %570 : vector<64x4xf32>
    %c1_644 = arith.constant 1 : index
    %c1_645 = arith.constant 1 : index
    %c0_646 = arith.constant 0 : index
    %c0_647 = arith.constant 0 : index
    %572 = vector.load %arg6[%c1_644, %c1_645, %c0_646, %c0_647] : memref<3x3x4x4xf32, #tpu.memory_space<vmem>>, vector<1x1x4x4xf32>
    %573 = vector.shape_cast %572 : vector<1x1x4x4xf32> to vector<4x4xf32>
    %cst_648 = arith.constant dense<0.000000e+00> : vector<64x4xf32>
    %574 = tpu.matmul %567, %573, %cst_648 {dimension_numbers = #tpu.dot_dimension_numbers<[1], [0], [0], [1], [0, 0, 1, 1], [], []>} : vector<64x4xf32>, vector<4x4xf32>, vector<64x4xf32> -> vector<64x4xf32>
    %575 = arith.addf %571, %574 : vector<64x4xf32>
    %c0_649 = arith.constant 0 : index
    %c2_650 = arith.constant 2 : index
    %c17_651 = arith.constant 17 : index
    %c0_652 = arith.constant 0 : index
    %576 = vector.load %arg2[%c0_649, %c2_650, %c17_651, %c0_652] : memref<1x4x96x4xf32, #tpu.memory_space<vmem>>, vector<1x1x64x4xf32>
    %577 = vector.shape_cast %576 : vector<1x1x64x4xf32> to vector<64x4xf32>
    %578 = vector.broadcast %24 : vector<64x1xf32> to vector<64x4xf32>
    %579 = arith.mulf %577, %578 : vector<64x4xf32>
    %c2_653 = arith.constant 2 : index
    %c17_654 = arith.constant 17 : index
    %c0_655 = arith.constant 0 : index
    %580 = vector.load %arg11[%c2_653, %c17_654, %c0_655] : memref<4x96x4xf32, #tpu.memory_space<vmem>>, vector<1x64x4xf32>
    %581 = vector.shape_cast %580 : vector<1x64x4xf32> to vector<64x4xf32>
    %582 = vector.broadcast %24 : vector<64x1xf32> to vector<64x4xf32>
    %583 = arith.mulf %581, %582 : vector<64x4xf32>
    %c1_656 = arith.constant 1 : index
    %c2_657 = arith.constant 2 : index
    %c0_658 = arith.constant 0 : index
    %c0_659 = arith.constant 0 : index
    %584 = vector.load %arg5[%c1_656, %c2_657, %c0_658, %c0_659] : memref<3x3x4x4xf32, #tpu.memory_space<vmem>>, vector<1x1x4x4xf32>
    %585 = vector.shape_cast %584 : vector<1x1x4x4xf32> to vector<4x4xf32>
    %cst_660 = arith.constant dense<0.000000e+00> : vector<64x4xf32>
    %586 = tpu.matmul %579, %585, %cst_660 {dimension_numbers = #tpu.dot_dimension_numbers<[1], [0], [0], [1], [0, 0, 1, 1], [], []>} : vector<64x4xf32>, vector<4x4xf32>, vector<64x4xf32> -> vector<64x4xf32>
    %587 = arith.addf %575, %586 : vector<64x4xf32>
    %c1_661 = arith.constant 1 : index
    %c2_662 = arith.constant 2 : index
    %c0_663 = arith.constant 0 : index
    %c0_664 = arith.constant 0 : index
    %588 = vector.load %arg6[%c1_661, %c2_662, %c0_663, %c0_664] : memref<3x3x4x4xf32, #tpu.memory_space<vmem>>, vector<1x1x4x4xf32>
    %589 = vector.shape_cast %588 : vector<1x1x4x4xf32> to vector<4x4xf32>
    %cst_665 = arith.constant dense<0.000000e+00> : vector<64x4xf32>
    %590 = tpu.matmul %583, %589, %cst_665 {dimension_numbers = #tpu.dot_dimension_numbers<[1], [0], [0], [1], [0, 0, 1, 1], [], []>} : vector<64x4xf32>, vector<4x4xf32>, vector<64x4xf32> -> vector<64x4xf32>
    %591 = arith.addf %587, %590 : vector<64x4xf32>
    %c0_666 = arith.constant 0 : index
    %c0_667 = arith.constant 0 : index
    %c24_668 = arith.constant 24 : index
    %c0_669 = arith.constant 0 : index
    %592 = vector.load %arg2[%c0_666, %c0_667, %c24_668, %c0_669] : memref<1x4x96x4xf32, #tpu.memory_space<vmem>>, vector<1x1x64x4xf32>
    %593 = vector.shape_cast %592 : vector<1x1x64x4xf32> to vector<64x4xf32>
    %c0_670 = arith.constant 0 : index
    %c24_671 = arith.constant 24 : index
    %c0_672 = arith.constant 0 : index
    %594 = vector.load %arg11[%c0_670, %c24_671, %c0_672] : memref<4x96x4xf32, #tpu.memory_space<vmem>>, vector<1x64x4xf32>
    %595 = vector.shape_cast %594 : vector<1x64x4xf32> to vector<64x4xf32>
    %c2_673 = arith.constant 2 : index
    %c0_674 = arith.constant 0 : index
    %c0_675 = arith.constant 0 : index
    %c0_676 = arith.constant 0 : index
    %596 = vector.load %arg5[%c2_673, %c0_674, %c0_675, %c0_676] : memref<3x3x4x4xf32, #tpu.memory_space<vmem>>, vector<1x1x4x4xf32>
    %597 = vector.shape_cast %596 : vector<1x1x4x4xf32> to vector<4x4xf32>
    %cst_677 = arith.constant dense<0.000000e+00> : vector<64x4xf32>
    %598 = tpu.matmul %593, %597, %cst_677 {dimension_numbers = #tpu.dot_dimension_numbers<[1], [0], [0], [1], [0, 0, 1, 1], [], []>} : vector<64x4xf32>, vector<4x4xf32>, vector<64x4xf32> -> vector<64x4xf32>
    %599 = arith.addf %591, %598 : vector<64x4xf32>
    %c2_678 = arith.constant 2 : index
    %c0_679 = arith.constant 0 : index
    %c0_680 = arith.constant 0 : index
    %c0_681 = arith.constant 0 : index
    %600 = vector.load %arg6[%c2_678, %c0_679, %c0_680, %c0_681] : memref<3x3x4x4xf32, #tpu.memory_space<vmem>>, vector<1x1x4x4xf32>
    %601 = vector.shape_cast %600 : vector<1x1x4x4xf32> to vector<4x4xf32>
    %cst_682 = arith.constant dense<0.000000e+00> : vector<64x4xf32>
    %602 = tpu.matmul %595, %601, %cst_682 {dimension_numbers = #tpu.dot_dimension_numbers<[1], [0], [0], [1], [0, 0, 1, 1], [], []>} : vector<64x4xf32>, vector<4x4xf32>, vector<64x4xf32> -> vector<64x4xf32>
    %603 = arith.addf %599, %602 : vector<64x4xf32>
    %c0_683 = arith.constant 0 : index
    %c1_684 = arith.constant 1 : index
    %c24_685 = arith.constant 24 : index
    %c0_686 = arith.constant 0 : index
    %604 = vector.load %arg2[%c0_683, %c1_684, %c24_685, %c0_686] : memref<1x4x96x4xf32, #tpu.memory_space<vmem>>, vector<1x1x64x4xf32>
    %605 = vector.shape_cast %604 : vector<1x1x64x4xf32> to vector<64x4xf32>
    %c1_687 = arith.constant 1 : index
    %c24_688 = arith.constant 24 : index
    %c0_689 = arith.constant 0 : index
    %606 = vector.load %arg11[%c1_687, %c24_688, %c0_689] : memref<4x96x4xf32, #tpu.memory_space<vmem>>, vector<1x64x4xf32>
    %607 = vector.shape_cast %606 : vector<1x64x4xf32> to vector<64x4xf32>
    %c2_690 = arith.constant 2 : index
    %c1_691 = arith.constant 1 : index
    %c0_692 = arith.constant 0 : index
    %c0_693 = arith.constant 0 : index
    %608 = vector.load %arg5[%c2_690, %c1_691, %c0_692, %c0_693] : memref<3x3x4x4xf32, #tpu.memory_space<vmem>>, vector<1x1x4x4xf32>
    %609 = vector.shape_cast %608 : vector<1x1x4x4xf32> to vector<4x4xf32>
    %cst_694 = arith.constant dense<0.000000e+00> : vector<64x4xf32>
    %610 = tpu.matmul %605, %609, %cst_694 {dimension_numbers = #tpu.dot_dimension_numbers<[1], [0], [0], [1], [0, 0, 1, 1], [], []>} : vector<64x4xf32>, vector<4x4xf32>, vector<64x4xf32> -> vector<64x4xf32>
    %611 = arith.addf %603, %610 : vector<64x4xf32>
    %c2_695 = arith.constant 2 : index
    %c1_696 = arith.constant 1 : index
    %c0_697 = arith.constant 0 : index
    %c0_698 = arith.constant 0 : index
    %612 = vector.load %arg6[%c2_695, %c1_696, %c0_697, %c0_698] : memref<3x3x4x4xf32, #tpu.memory_space<vmem>>, vector<1x1x4x4xf32>
    %613 = vector.shape_cast %612 : vector<1x1x4x4xf32> to vector<4x4xf32>
    %cst_699 = arith.constant dense<0.000000e+00> : vector<64x4xf32>
    %614 = tpu.matmul %607, %613, %cst_699 {dimension_numbers = #tpu.dot_dimension_numbers<[1], [0], [0], [1], [0, 0, 1, 1], [], []>} : vector<64x4xf32>, vector<4x4xf32>, vector<64x4xf32> -> vector<64x4xf32>
    %615 = arith.addf %611, %614 : vector<64x4xf32>
    %c0_700 = arith.constant 0 : index
    %c0_701 = arith.constant 0 : index
    %c25 = arith.constant 25 : index
    %c0_702 = arith.constant 0 : index
    %616 = vector.load %arg2[%c0_700, %c0_701, %c25, %c0_702] : memref<1x4x96x4xf32, #tpu.memory_space<vmem>>, vector<1x1x64x4xf32>
    %617 = vector.shape_cast %616 : vector<1x1x64x4xf32> to vector<64x4xf32>
    %618 = vector.broadcast %24 : vector<64x1xf32> to vector<64x4xf32>
    %619 = arith.mulf %617, %618 : vector<64x4xf32>
    %c0_703 = arith.constant 0 : index
    %c25_704 = arith.constant 25 : index
    %c0_705 = arith.constant 0 : index
    %620 = vector.load %arg11[%c0_703, %c25_704, %c0_705] : memref<4x96x4xf32, #tpu.memory_space<vmem>>, vector<1x64x4xf32>
    %621 = vector.shape_cast %620 : vector<1x64x4xf32> to vector<64x4xf32>
    %622 = vector.broadcast %24 : vector<64x1xf32> to vector<64x4xf32>
    %623 = arith.mulf %621, %622 : vector<64x4xf32>
    %c2_706 = arith.constant 2 : index
    %c2_707 = arith.constant 2 : index
    %c0_708 = arith.constant 0 : index
    %c0_709 = arith.constant 0 : index
    %624 = vector.load %arg5[%c2_706, %c2_707, %c0_708, %c0_709] : memref<3x3x4x4xf32, #tpu.memory_space<vmem>>, vector<1x1x4x4xf32>
    %625 = vector.shape_cast %624 : vector<1x1x4x4xf32> to vector<4x4xf32>
    %cst_710 = arith.constant dense<0.000000e+00> : vector<64x4xf32>
    %626 = tpu.matmul %619, %625, %cst_710 {dimension_numbers = #tpu.dot_dimension_numbers<[1], [0], [0], [1], [0, 0, 1, 1], [], []>} : vector<64x4xf32>, vector<4x4xf32>, vector<64x4xf32> -> vector<64x4xf32>
    %627 = arith.addf %615, %626 : vector<64x4xf32>
    %c2_711 = arith.constant 2 : index
    %c2_712 = arith.constant 2 : index
    %c0_713 = arith.constant 0 : index
    %c0_714 = arith.constant 0 : index
    %628 = vector.load %arg6[%c2_711, %c2_712, %c0_713, %c0_714] : memref<3x3x4x4xf32, #tpu.memory_space<vmem>>, vector<1x1x4x4xf32>
    %629 = vector.shape_cast %628 : vector<1x1x4x4xf32> to vector<4x4xf32>
    %cst_715 = arith.constant dense<0.000000e+00> : vector<64x4xf32>
    %630 = tpu.matmul %623, %629, %cst_715 {dimension_numbers = #tpu.dot_dimension_numbers<[1], [0], [0], [1], [0, 0, 1, 1], [], []>} : vector<64x4xf32>, vector<4x4xf32>, vector<64x4xf32> -> vector<64x4xf32>
    %631 = arith.addf %627, %630 : vector<64x4xf32>
    %cst_716 = arith.constant 0.000000e+00 : f32
    %632 = vector.broadcast %cst_716 : f32 to vector<64x4xf32>
    %633 = arith.maximumf %631, %632 : vector<64x4xf32>
    %c3_717 = arith.constant 3 : index
    %c16_718 = arith.constant 16 : index
    %c0_719 = arith.constant 0 : index
    %634 = vector.load %arg12[%c3_717, %c16_718, %c0_719] : memref<4x96x4xf32, #tpu.memory_space<vmem>>, vector<1x64x4xf32>
    %635 = vector.shape_cast %634 : vector<1x64x4xf32> to vector<64x4xf32>
    %636 = vector.shape_cast %633 : vector<64x4xf32> to vector<1x64x4xf32>
    tpu.vector_store %arg12[%c3_717, %c16_718, %c0_719], %636 {strides = array<i32>} : memref<4x96x4xf32, #tpu.memory_space<vmem>>, vector<1x64x4xf32>,
    %c0_720 = arith.constant 0 : index
    %c0_721 = arith.constant 0 : index
    %637 = vector.load %arg9[%c0_720, %c0_721] : memref<1x4xf32, #tpu.memory_space<vmem>>, vector<1x4xf32>
    %cst_722 = arith.constant 0.000000e+00 : f32
    %638 = vector.broadcast %cst_722 : f32 to vector<64x4xf32>
    %639 = vector.broadcast %637 : vector<1x4xf32> to vector<64x4xf32>
    %640 = arith.addf %638, %639 : vector<64x4xf32>
    %c3_723 = arith.constant 3 : index
    %c7_724 = arith.constant 7 : index
    %c0_725 = arith.constant 0 : index
    %641 = vector.load %arg12[%c3_723, %c7_724, %c0_725] : memref<4x96x4xf32, #tpu.memory_space<vmem>>, vector<1x64x4xf32>
    %642 = vector.shape_cast %641 : vector<1x64x4xf32> to vector<64x4xf32>
    %643 = vector.broadcast %20 : vector<64x1xf32> to vector<64x4xf32>
    %644 = arith.mulf %642, %643 : vector<64x4xf32>
    %c0_726 = arith.constant 0 : index
    %c0_727 = arith.constant 0 : index
    %c0_728 = arith.constant 0 : index
    %c0_729 = arith.constant 0 : index
    %645 = vector.load %arg8[%c0_726, %c0_727, %c0_728, %c0_729] : memref<3x3x4x4xf32, #tpu.memory_space<vmem>>, vector<1x1x4x4xf32>
    %646 = vector.shape_cast %645 : vector<1x1x4x4xf32> to vector<4x4xf32>
    %cst_730 = arith.constant dense<0.000000e+00> : vector<64x4xf32>
    %647 = tpu.matmul %644, %646, %cst_730 {dimension_numbers = #tpu.dot_dimension_numbers<[1], [0], [0], [1], [0, 0, 1, 1], [], []>} : vector<64x4xf32>, vector<4x4xf32>, vector<64x4xf32> -> vector<64x4xf32>
    %648 = arith.addf %640, %647 : vector<64x4xf32>
    %c2_731 = arith.constant 2 : index
    %c8_732 = arith.constant 8 : index
    %c0_733 = arith.constant 0 : index
    %649 = vector.load %arg12[%c2_731, %c8_732, %c0_733] : memref<4x96x4xf32, #tpu.memory_space<vmem>>, vector<1x64x4xf32>
    %650 = vector.shape_cast %649 : vector<1x64x4xf32> to vector<64x4xf32>
    %c0_734 = arith.constant 0 : index
    %c1_735 = arith.constant 1 : index
    %c0_736 = arith.constant 0 : index
    %c0_737 = arith.constant 0 : index
    %651 = vector.load %arg8[%c0_734, %c1_735, %c0_736, %c0_737] : memref<3x3x4x4xf32, #tpu.memory_space<vmem>>, vector<1x1x4x4xf32>
    %652 = vector.shape_cast %651 : vector<1x1x4x4xf32> to vector<4x4xf32>
    %cst_738 = arith.constant dense<0.000000e+00> : vector<64x4xf32>
    %653 = tpu.matmul %650, %652, %cst_738 {dimension_numbers = #tpu.dot_dimension_numbers<[1], [0], [0], [1], [0, 0, 1, 1], [], []>} : vector<64x4xf32>, vector<4x4xf32>, vector<64x4xf32> -> vector<64x4xf32>
    %654 = arith.addf %648, %653 : vector<64x4xf32>
    %c3_739 = arith.constant 3 : index
    %c8_740 = arith.constant 8 : index
    %c0_741 = arith.constant 0 : index
    %655 = vector.load %arg12[%c3_739, %c8_740, %c0_741] : memref<4x96x4xf32, #tpu.memory_space<vmem>>, vector<1x64x4xf32>
    %656 = vector.shape_cast %655 : vector<1x64x4xf32> to vector<64x4xf32>
    %c0_742 = arith.constant 0 : index
    %c2_743 = arith.constant 2 : index
    %c0_744 = arith.constant 0 : index
    %c0_745 = arith.constant 0 : index
    %657 = vector.load %arg8[%c0_742, %c2_743, %c0_744, %c0_745] : memref<3x3x4x4xf32, #tpu.memory_space<vmem>>, vector<1x1x4x4xf32>
    %658 = vector.shape_cast %657 : vector<1x1x4x4xf32> to vector<4x4xf32>
    %cst_746 = arith.constant dense<0.000000e+00> : vector<64x4xf32>
    %659 = tpu.matmul %656, %658, %cst_746 {dimension_numbers = #tpu.dot_dimension_numbers<[1], [0], [0], [1], [0, 0, 1, 1], [], []>} : vector<64x4xf32>, vector<4x4xf32>, vector<64x4xf32> -> vector<64x4xf32>
    %660 = arith.addf %654, %659 : vector<64x4xf32>
    %c1_747 = arith.constant 1 : index
    %c15_748 = arith.constant 15 : index
    %c0_749 = arith.constant 0 : index
    %661 = vector.load %arg12[%c1_747, %c15_748, %c0_749] : memref<4x96x4xf32, #tpu.memory_space<vmem>>, vector<1x64x4xf32>
    %662 = vector.shape_cast %661 : vector<1x64x4xf32> to vector<64x4xf32>
    %663 = vector.broadcast %20 : vector<64x1xf32> to vector<64x4xf32>
    %664 = arith.mulf %662, %663 : vector<64x4xf32>
    %c1_750 = arith.constant 1 : index
    %c0_751 = arith.constant 0 : index
    %c0_752 = arith.constant 0 : index
    %c0_753 = arith.constant 0 : index
    %665 = vector.load %arg8[%c1_750, %c0_751, %c0_752, %c0_753] : memref<3x3x4x4xf32, #tpu.memory_space<vmem>>, vector<1x1x4x4xf32>
    %666 = vector.shape_cast %665 : vector<1x1x4x4xf32> to vector<4x4xf32>
    %cst_754 = arith.constant dense<0.000000e+00> : vector<64x4xf32>
    %667 = tpu.matmul %664, %666, %cst_754 {dimension_numbers = #tpu.dot_dimension_numbers<[1], [0], [0], [1], [0, 0, 1, 1], [], []>} : vector<64x4xf32>, vector<4x4xf32>, vector<64x4xf32> -> vector<64x4xf32>
    %668 = arith.addf %660, %667 : vector<64x4xf32>
    %c0_755 = arith.constant 0 : index
    %c16_756 = arith.constant 16 : index
    %c0_757 = arith.constant 0 : index
    %669 = vector.load %arg12[%c0_755, %c16_756, %c0_757] : memref<4x96x4xf32, #tpu.memory_space<vmem>>, vector<1x64x4xf32>
    %670 = vector.shape_cast %669 : vector<1x64x4xf32> to vector<64x4xf32>
    %c1_758 = arith.constant 1 : index
    %c1_759 = arith.constant 1 : index
    %c0_760 = arith.constant 0 : index
    %c0_761 = arith.constant 0 : index
    %671 = vector.load %arg8[%c1_758, %c1_759, %c0_760, %c0_761] : memref<3x3x4x4xf32, #tpu.memory_space<vmem>>, vector<1x1x4x4xf32>
    %672 = vector.shape_cast %671 : vector<1x1x4x4xf32> to vector<4x4xf32>
    %cst_762 = arith.constant dense<0.000000e+00> : vector<64x4xf32>
    %673 = tpu.matmul %670, %672, %cst_762 {dimension_numbers = #tpu.dot_dimension_numbers<[1], [0], [0], [1], [0, 0, 1, 1], [], []>} : vector<64x4xf32>, vector<4x4xf32>, vector<64x4xf32> -> vector<64x4xf32>
    %674 = arith.addf %668, %673 : vector<64x4xf32>
    %c1_763 = arith.constant 1 : index
    %c16_764 = arith.constant 16 : index
    %c0_765 = arith.constant 0 : index
    %675 = vector.load %arg12[%c1_763, %c16_764, %c0_765] : memref<4x96x4xf32, #tpu.memory_space<vmem>>, vector<1x64x4xf32>
    %676 = vector.shape_cast %675 : vector<1x64x4xf32> to vector<64x4xf32>
    %c1_766 = arith.constant 1 : index
    %c2_767 = arith.constant 2 : index
    %c0_768 = arith.constant 0 : index
    %c0_769 = arith.constant 0 : index
    %677 = vector.load %arg8[%c1_766, %c2_767, %c0_768, %c0_769] : memref<3x3x4x4xf32, #tpu.memory_space<vmem>>, vector<1x1x4x4xf32>
    %678 = vector.shape_cast %677 : vector<1x1x4x4xf32> to vector<4x4xf32>
    %cst_770 = arith.constant dense<0.000000e+00> : vector<64x4xf32>
    %679 = tpu.matmul %676, %678, %cst_770 {dimension_numbers = #tpu.dot_dimension_numbers<[1], [0], [0], [1], [0, 0, 1, 1], [], []>} : vector<64x4xf32>, vector<4x4xf32>, vector<64x4xf32> -> vector<64x4xf32>
    %680 = arith.addf %674, %679 : vector<64x4xf32>
    %c3_771 = arith.constant 3 : index
    %c15_772 = arith.constant 15 : index
    %c0_773 = arith.constant 0 : index
    %681 = vector.load %arg12[%c3_771, %c15_772, %c0_773] : memref<4x96x4xf32, #tpu.memory_space<vmem>>, vector<1x64x4xf32>
    %682 = vector.shape_cast %681 : vector<1x64x4xf32> to vector<64x4xf32>
    %683 = vector.broadcast %20 : vector<64x1xf32> to vector<64x4xf32>
    %684 = arith.mulf %682, %683 : vector<64x4xf32>
    %c2_774 = arith.constant 2 : index
    %c0_775 = arith.constant 0 : index
    %c0_776 = arith.constant 0 : index
    %c0_777 = arith.constant 0 : index
    %685 = vector.load %arg8[%c2_774, %c0_775, %c0_776, %c0_777] : memref<3x3x4x4xf32, #tpu.memory_space<vmem>>, vector<1x1x4x4xf32>
    %686 = vector.shape_cast %685 : vector<1x1x4x4xf32> to vector<4x4xf32>
    %cst_778 = arith.constant dense<0.000000e+00> : vector<64x4xf32>
    %687 = tpu.matmul %684, %686, %cst_778 {dimension_numbers = #tpu.dot_dimension_numbers<[1], [0], [0], [1], [0, 0, 1, 1], [], []>} : vector<64x4xf32>, vector<4x4xf32>, vector<64x4xf32> -> vector<64x4xf32>
    %688 = arith.addf %680, %687 : vector<64x4xf32>
    %c2_779 = arith.constant 2 : index
    %c16_780 = arith.constant 16 : index
    %c0_781 = arith.constant 0 : index
    %689 = vector.load %arg12[%c2_779, %c16_780, %c0_781] : memref<4x96x4xf32, #tpu.memory_space<vmem>>, vector<1x64x4xf32>
    %690 = vector.shape_cast %689 : vector<1x64x4xf32> to vector<64x4xf32>
    %c2_782 = arith.constant 2 : index
    %c1_783 = arith.constant 1 : index
    %c0_784 = arith.constant 0 : index
    %c0_785 = arith.constant 0 : index
    %691 = vector.load %arg8[%c2_782, %c1_783, %c0_784, %c0_785] : memref<3x3x4x4xf32, #tpu.memory_space<vmem>>, vector<1x1x4x4xf32>
    %692 = vector.shape_cast %691 : vector<1x1x4x4xf32> to vector<4x4xf32>
    %cst_786 = arith.constant dense<0.000000e+00> : vector<64x4xf32>
    %693 = tpu.matmul %690, %692, %cst_786 {dimension_numbers = #tpu.dot_dimension_numbers<[1], [0], [0], [1], [0, 0, 1, 1], [], []>} : vector<64x4xf32>, vector<4x4xf32>, vector<64x4xf32> -> vector<64x4xf32>
    %694 = arith.addf %688, %693 : vector<64x4xf32>
    %c3_787 = arith.constant 3 : index
    %c16_788 = arith.constant 16 : index
    %c0_789 = arith.constant 0 : index
    %695 = vector.load %arg12[%c3_787, %c16_788, %c0_789] : memref<4x96x4xf32, #tpu.memory_space<vmem>>, vector<1x64x4xf32>
    %696 = vector.shape_cast %695 : vector<1x64x4xf32> to vector<64x4xf32>
    %c2_790 = arith.constant 2 : index
    %c2_791 = arith.constant 2 : index
    %c0_792 = arith.constant 0 : index
    %c0_793 = arith.constant 0 : index
    %697 = vector.load %arg8[%c2_790, %c2_791, %c0_792, %c0_793] : memref<3x3x4x4xf32, #tpu.memory_space<vmem>>, vector<1x1x4x4xf32>
    %698 = vector.shape_cast %697 : vector<1x1x4x4xf32> to vector<4x4xf32>
    %cst_794 = arith.constant dense<0.000000e+00> : vector<64x4xf32>
    %699 = tpu.matmul %696, %698, %cst_794 {dimension_numbers = #tpu.dot_dimension_numbers<[1], [0], [0], [1], [0, 0, 1, 1], [], []>} : vector<64x4xf32>, vector<4x4xf32>, vector<64x4xf32> -> vector<64x4xf32>
    %700 = arith.addf %694, %699 : vector<64x4xf32>
    %cst_795 = arith.constant 0.000000e+00 : f32
    %701 = vector.broadcast %cst_795 : f32 to vector<64x4xf32>
    %702 = arith.maximumf %700, %701 : vector<64x4xf32>
    %c0_796 = arith.constant 0 : index
    %c0_797 = arith.constant 0 : index
    %c0_798 = arith.constant 0 : index
    %c0_799 = arith.constant 0 : index
    %703 = vector.load %arg10[%c0_796, %c0_797, %c0_798, %c0_799] : memref<1x4x64x4xf32, #tpu.memory_space<vmem>>, vector<1x1x64x4xf32>
    %704 = vector.shape_cast %703 : vector<1x1x64x4xf32> to vector<64x4xf32>
    %705 = vector.shape_cast %702 : vector<64x4xf32> to vector<1x1x64x4xf32>
    tpu.vector_store %arg10[%c0_796, %c0_797, %c0_798, %c0_799], %705 {strides = array<i32>} : memref<1x4x64x4xf32, #tpu.memory_space<vmem>>, vector<1x1x64x4xf32>,
    %cst_800 = arith.constant 0.000000e+00 : f32
    %706 = vector.broadcast %cst_800 : f32 to vector<64x4xf32>
    %707 = vector.broadcast %637 : vector<1x4xf32> to vector<64x4xf32>
    %708 = arith.addf %706, %707 : vector<64x4xf32>
    %c2_801 = arith.constant 2 : index
    %c8_802 = arith.constant 8 : index
    %c0_803 = arith.constant 0 : index
    %709 = vector.load %arg12[%c2_801, %c8_802, %c0_803] : memref<4x96x4xf32, #tpu.memory_space<vmem>>, vector<1x64x4xf32>
    %710 = vector.shape_cast %709 : vector<1x64x4xf32> to vector<64x4xf32>
    %c0_804 = arith.constant 0 : index
    %c0_805 = arith.constant 0 : index
    %c0_806 = arith.constant 0 : index
    %c0_807 = arith.constant 0 : index
    %711 = vector.load %arg8[%c0_804, %c0_805, %c0_806, %c0_807] : memref<3x3x4x4xf32, #tpu.memory_space<vmem>>, vector<1x1x4x4xf32>
    %712 = vector.shape_cast %711 : vector<1x1x4x4xf32> to vector<4x4xf32>
    %cst_808 = arith.constant dense<0.000000e+00> : vector<64x4xf32>
    %713 = tpu.matmul %710, %712, %cst_808 {dimension_numbers = #tpu.dot_dimension_numbers<[1], [0], [0], [1], [0, 0, 1, 1], [], []>} : vector<64x4xf32>, vector<4x4xf32>, vector<64x4xf32> -> vector<64x4xf32>
    %714 = arith.addf %708, %713 : vector<64x4xf32>
    %c3_809 = arith.constant 3 : index
    %c8_810 = arith.constant 8 : index
    %c0_811 = arith.constant 0 : index
    %715 = vector.load %arg12[%c3_809, %c8_810, %c0_811] : memref<4x96x4xf32, #tpu.memory_space<vmem>>, vector<1x64x4xf32>
    %716 = vector.shape_cast %715 : vector<1x64x4xf32> to vector<64x4xf32>
    %c0_812 = arith.constant 0 : index
    %c1_813 = arith.constant 1 : index
    %c0_814 = arith.constant 0 : index
    %c0_815 = arith.constant 0 : index
    %717 = vector.load %arg8[%c0_812, %c1_813, %c0_814, %c0_815] : memref<3x3x4x4xf32, #tpu.memory_space<vmem>>, vector<1x1x4x4xf32>
    %718 = vector.shape_cast %717 : vector<1x1x4x4xf32> to vector<4x4xf32>
    %cst_816 = arith.constant dense<0.000000e+00> : vector<64x4xf32>
    %719 = tpu.matmul %716, %718, %cst_816 {dimension_numbers = #tpu.dot_dimension_numbers<[1], [0], [0], [1], [0, 0, 1, 1], [], []>} : vector<64x4xf32>, vector<4x4xf32>, vector<64x4xf32> -> vector<64x4xf32>
    %720 = arith.addf %714, %719 : vector<64x4xf32>
    %c2_817 = arith.constant 2 : index
    %c9_818 = arith.constant 9 : index
    %c0_819 = arith.constant 0 : index
    %721 = vector.load %arg12[%c2_817, %c9_818, %c0_819] : memref<4x96x4xf32, #tpu.memory_space<vmem>>, vector<1x64x4xf32>
    %722 = vector.shape_cast %721 : vector<1x64x4xf32> to vector<64x4xf32>
    %723 = vector.broadcast %24 : vector<64x1xf32> to vector<64x4xf32>
    %724 = arith.mulf %722, %723 : vector<64x4xf32>
    %c0_820 = arith.constant 0 : index
    %c2_821 = arith.constant 2 : index
    %c0_822 = arith.constant 0 : index
    %c0_823 = arith.constant 0 : index
    %725 = vector.load %arg8[%c0_820, %c2_821, %c0_822, %c0_823] : memref<3x3x4x4xf32, #tpu.memory_space<vmem>>, vector<1x1x4x4xf32>
    %726 = vector.shape_cast %725 : vector<1x1x4x4xf32> to vector<4x4xf32>
    %cst_824 = arith.constant dense<0.000000e+00> : vector<64x4xf32>
    %727 = tpu.matmul %724, %726, %cst_824 {dimension_numbers = #tpu.dot_dimension_numbers<[1], [0], [0], [1], [0, 0, 1, 1], [], []>} : vector<64x4xf32>, vector<4x4xf32>, vector<64x4xf32> -> vector<64x4xf32>
    %728 = arith.addf %720, %727 : vector<64x4xf32>
    %c0_825 = arith.constant 0 : index
    %c16_826 = arith.constant 16 : index
    %c0_827 = arith.constant 0 : index
    %729 = vector.load %arg12[%c0_825, %c16_826, %c0_827] : memref<4x96x4xf32, #tpu.memory_space<vmem>>, vector<1x64x4xf32>
    %730 = vector.shape_cast %729 : vector<1x64x4xf32> to vector<64x4xf32>
    %c1_828 = arith.constant 1 : index
    %c0_829 = arith.constant 0 : index
    %c0_830 = arith.constant 0 : index
    %c0_831 = arith.constant 0 : index
    %731 = vector.load %arg8[%c1_828, %c0_829, %c0_830, %c0_831] : memref<3x3x4x4xf32, #tpu.memory_space<vmem>>, vector<1x1x4x4xf32>
    %732 = vector.shape_cast %731 : vector<1x1x4x4xf32> to vector<4x4xf32>
    %cst_832 = arith.constant dense<0.000000e+00> : vector<64x4xf32>
    %733 = tpu.matmul %730, %732, %cst_832 {dimension_numbers = #tpu.dot_dimension_numbers<[1], [0], [0], [1], [0, 0, 1, 1], [], []>} : vector<64x4xf32>, vector<4x4xf32>, vector<64x4xf32> -> vector<64x4xf32>
    %734 = arith.addf %728, %733 : vector<64x4xf32>
    %c1_833 = arith.constant 1 : index
    %c16_834 = arith.constant 16 : index
    %c0_835 = arith.constant 0 : index
    %735 = vector.load %arg12[%c1_833, %c16_834, %c0_835] : memref<4x96x4xf32, #tpu.memory_space<vmem>>, vector<1x64x4xf32>
    %736 = vector.shape_cast %735 : vector<1x64x4xf32> to vector<64x4xf32>
    %c1_836 = arith.constant 1 : index
    %c1_837 = arith.constant 1 : index
    %c0_838 = arith.constant 0 : index
    %c0_839 = arith.constant 0 : index
    %737 = vector.load %arg8[%c1_836, %c1_837, %c0_838, %c0_839] : memref<3x3x4x4xf32, #tpu.memory_space<vmem>>, vector<1x1x4x4xf32>
    %738 = vector.shape_cast %737 : vector<1x1x4x4xf32> to vector<4x4xf32>
    %cst_840 = arith.constant dense<0.000000e+00> : vector<64x4xf32>
    %739 = tpu.matmul %736, %738, %cst_840 {dimension_numbers = #tpu.dot_dimension_numbers<[1], [0], [0], [1], [0, 0, 1, 1], [], []>} : vector<64x4xf32>, vector<4x4xf32>, vector<64x4xf32> -> vector<64x4xf32>
    %740 = arith.addf %734, %739 : vector<64x4xf32>
    %c0_841 = arith.constant 0 : index
    %c17_842 = arith.constant 17 : index
    %c0_843 = arith.constant 0 : index
    %741 = vector.load %arg12[%c0_841, %c17_842, %c0_843] : memref<4x96x4xf32, #tpu.memory_space<vmem>>, vector<1x64x4xf32>
    %742 = vector.shape_cast %741 : vector<1x64x4xf32> to vector<64x4xf32>
    %743 = vector.broadcast %24 : vector<64x1xf32> to vector<64x4xf32>
    %744 = arith.mulf %742, %743 : vector<64x4xf32>
    %c1_844 = arith.constant 1 : index
    %c2_845 = arith.constant 2 : index
    %c0_846 = arith.constant 0 : index
    %c0_847 = arith.constant 0 : index
    %745 = vector.load %arg8[%c1_844, %c2_845, %c0_846, %c0_847] : memref<3x3x4x4xf32, #tpu.memory_space<vmem>>, vector<1x1x4x4xf32>
    %746 = vector.shape_cast %745 : vector<1x1x4x4xf32> to vector<4x4xf32>
    %cst_848 = arith.constant dense<0.000000e+00> : vector<64x4xf32>
    %747 = tpu.matmul %744, %746, %cst_848 {dimension_numbers = #tpu.dot_dimension_numbers<[1], [0], [0], [1], [0, 0, 1, 1], [], []>} : vector<64x4xf32>, vector<4x4xf32>, vector<64x4xf32> -> vector<64x4xf32>
    %748 = arith.addf %740, %747 : vector<64x4xf32>
    %c2_849 = arith.constant 2 : index
    %c16_850 = arith.constant 16 : index
    %c0_851 = arith.constant 0 : index
    %749 = vector.load %arg12[%c2_849, %c16_850, %c0_851] : memref<4x96x4xf32, #tpu.memory_space<vmem>>, vector<1x64x4xf32>
    %750 = vector.shape_cast %749 : vector<1x64x4xf32> to vector<64x4xf32>
    %c2_852 = arith.constant 2 : index
    %c0_853 = arith.constant 0 : index
    %c0_854 = arith.constant 0 : index
    %c0_855 = arith.constant 0 : index
    %751 = vector.load %arg8[%c2_852, %c0_853, %c0_854, %c0_855] : memref<3x3x4x4xf32, #tpu.memory_space<vmem>>, vector<1x1x4x4xf32>
    %752 = vector.shape_cast %751 : vector<1x1x4x4xf32> to vector<4x4xf32>
    %cst_856 = arith.constant dense<0.000000e+00> : vector<64x4xf32>
    %753 = tpu.matmul %750, %752, %cst_856 {dimension_numbers = #tpu.dot_dimension_numbers<[1], [0], [0], [1], [0, 0, 1, 1], [], []>} : vector<64x4xf32>, vector<4x4xf32>, vector<64x4xf32> -> vector<64x4xf32>
    %754 = arith.addf %748, %753 : vector<64x4xf32>
    %c3_857 = arith.constant 3 : index
    %c16_858 = arith.constant 16 : index
    %c0_859 = arith.constant 0 : index
    %755 = vector.load %arg12[%c3_857, %c16_858, %c0_859] : memref<4x96x4xf32, #tpu.memory_space<vmem>>, vector<1x64x4xf32>
    %756 = vector.shape_cast %755 : vector<1x64x4xf32> to vector<64x4xf32>
    %c2_860 = arith.constant 2 : index
    %c1_861 = arith.constant 1 : index
    %c0_862 = arith.constant 0 : index
    %c0_863 = arith.constant 0 : index
    %757 = vector.load %arg8[%c2_860, %c1_861, %c0_862, %c0_863] : memref<3x3x4x4xf32, #tpu.memory_space<vmem>>, vector<1x1x4x4xf32>
    %758 = vector.shape_cast %757 : vector<1x1x4x4xf32> to vector<4x4xf32>
    %cst_864 = arith.constant dense<0.000000e+00> : vector<64x4xf32>
    %759 = tpu.matmul %756, %758, %cst_864 {dimension_numbers = #tpu.dot_dimension_numbers<[1], [0], [0], [1], [0, 0, 1, 1], [], []>} : vector<64x4xf32>, vector<4x4xf32>, vector<64x4xf32> -> vector<64x4xf32>
    %760 = arith.addf %754, %759 : vector<64x4xf32>
    %c2_865 = arith.constant 2 : index
    %c17_866 = arith.constant 17 : index
    %c0_867 = arith.constant 0 : index
    %761 = vector.load %arg12[%c2_865, %c17_866, %c0_867] : memref<4x96x4xf32, #tpu.memory_space<vmem>>, vector<1x64x4xf32>
    %762 = vector.shape_cast %761 : vector<1x64x4xf32> to vector<64x4xf32>
    %763 = vector.broadcast %24 : vector<64x1xf32> to vector<64x4xf32>
    %764 = arith.mulf %762, %763 : vector<64x4xf32>
    %c2_868 = arith.constant 2 : index
    %c2_869 = arith.constant 2 : index
    %c0_870 = arith.constant 0 : index
    %c0_871 = arith.constant 0 : index
    %765 = vector.load %arg8[%c2_868, %c2_869, %c0_870, %c0_871] : memref<3x3x4x4xf32, #tpu.memory_space<vmem>>, vector<1x1x4x4xf32>
    %766 = vector.shape_cast %765 : vector<1x1x4x4xf32> to vector<4x4xf32>
    %cst_872 = arith.constant dense<0.000000e+00> : vector<64x4xf32>
    %767 = tpu.matmul %764, %766, %cst_872 {dimension_numbers = #tpu.dot_dimension_numbers<[1], [0], [0], [1], [0, 0, 1, 1], [], []>} : vector<64x4xf32>, vector<4x4xf32>, vector<64x4xf32> -> vector<64x4xf32>
    %768 = arith.addf %760, %767 : vector<64x4xf32>
    %cst_873 = arith.constant 0.000000e+00 : f32
    %769 = vector.broadcast %cst_873 : f32 to vector<64x4xf32>
    %770 = arith.maximumf %768, %769 : vector<64x4xf32>
    %c0_874 = arith.constant 0 : index
    %c1_875 = arith.constant 1 : index
    %c0_876 = arith.constant 0 : index
    %c0_877 = arith.constant 0 : index
    %771 = vector.load %arg10[%c0_874, %c1_875, %c0_876, %c0_877] : memref<1x4x64x4xf32, #tpu.memory_space<vmem>>, vector<1x1x64x4xf32>
    %772 = vector.shape_cast %771 : vector<1x1x64x4xf32> to vector<64x4xf32>
    %773 = vector.shape_cast %770 : vector<64x4xf32> to vector<1x1x64x4xf32>
    tpu.vector_store %arg10[%c0_874, %c1_875, %c0_876, %c0_877], %773 {strides = array<i32>} : memref<1x4x64x4xf32, #tpu.memory_space<vmem>>, vector<1x1x64x4xf32>,
    %cst_878 = arith.constant 0.000000e+00 : f32
    %774 = vector.broadcast %cst_878 : f32 to vector<64x4xf32>
    %775 = vector.broadcast %637 : vector<1x4xf32> to vector<64x4xf32>
    %776 = arith.addf %774, %775 : vector<64x4xf32>
    %c1_879 = arith.constant 1 : index
    %c15_880 = arith.constant 15 : index
    %c0_881 = arith.constant 0 : index
    %777 = vector.load %arg12[%c1_879, %c15_880, %c0_881] : memref<4x96x4xf32, #tpu.memory_space<vmem>>, vector<1x64x4xf32>
    %778 = vector.shape_cast %777 : vector<1x64x4xf32> to vector<64x4xf32>
    %779 = vector.broadcast %20 : vector<64x1xf32> to vector<64x4xf32>
    %780 = arith.mulf %778, %779 : vector<64x4xf32>
    %c0_882 = arith.constant 0 : index
    %c0_883 = arith.constant 0 : index
    %c0_884 = arith.constant 0 : index
    %c0_885 = arith.constant 0 : index
    %781 = vector.load %arg8[%c0_882, %c0_883, %c0_884, %c0_885] : memref<3x3x4x4xf32, #tpu.memory_space<vmem>>, vector<1x1x4x4xf32>
    %782 = vector.shape_cast %781 : vector<1x1x4x4xf32> to vector<4x4xf32>
    %cst_886 = arith.constant dense<0.000000e+00> : vector<64x4xf32>
    %783 = tpu.matmul %780, %782, %cst_886 {dimension_numbers = #tpu.dot_dimension_numbers<[1], [0], [0], [1], [0, 0, 1, 1], [], []>} : vector<64x4xf32>, vector<4x4xf32>, vector<64x4xf32> -> vector<64x4xf32>
    %784 = arith.addf %776, %783 : vector<64x4xf32>
    %c0_887 = arith.constant 0 : index
    %c16_888 = arith.constant 16 : index
    %c0_889 = arith.constant 0 : index
    %785 = vector.load %arg12[%c0_887, %c16_888, %c0_889] : memref<4x96x4xf32, #tpu.memory_space<vmem>>, vector<1x64x4xf32>
    %786 = vector.shape_cast %785 : vector<1x64x4xf32> to vector<64x4xf32>
    %c0_890 = arith.constant 0 : index
    %c1_891 = arith.constant 1 : index
    %c0_892 = arith.constant 0 : index
    %c0_893 = arith.constant 0 : index
    %787 = vector.load %arg8[%c0_890, %c1_891, %c0_892, %c0_893] : memref<3x3x4x4xf32, #tpu.memory_space<vmem>>, vector<1x1x4x4xf32>
    %788 = vector.shape_cast %787 : vector<1x1x4x4xf32> to vector<4x4xf32>
    %cst_894 = arith.constant dense<0.000000e+00> : vector<64x4xf32>
    %789 = tpu.matmul %786, %788, %cst_894 {dimension_numbers = #tpu.dot_dimension_numbers<[1], [0], [0], [1], [0, 0, 1, 1], [], []>} : vector<64x4xf32>, vector<4x4xf32>, vector<64x4xf32> -> vector<64x4xf32>
    %790 = arith.addf %784, %789 : vector<64x4xf32>
    %c1_895 = arith.constant 1 : index
    %c16_896 = arith.constant 16 : index
    %c0_897 = arith.constant 0 : index
    %791 = vector.load %arg12[%c1_895, %c16_896, %c0_897] : memref<4x96x4xf32, #tpu.memory_space<vmem>>, vector<1x64x4xf32>
    %792 = vector.shape_cast %791 : vector<1x64x4xf32> to vector<64x4xf32>
    %c0_898 = arith.constant 0 : index
    %c2_899 = arith.constant 2 : index
    %c0_900 = arith.constant 0 : index
    %c0_901 = arith.constant 0 : index
    %793 = vector.load %arg8[%c0_898, %c2_899, %c0_900, %c0_901] : memref<3x3x4x4xf32, #tpu.memory_space<vmem>>, vector<1x1x4x4xf32>
    %794 = vector.shape_cast %793 : vector<1x1x4x4xf32> to vector<4x4xf32>
    %cst_902 = arith.constant dense<0.000000e+00> : vector<64x4xf32>
    %795 = tpu.matmul %792, %794, %cst_902 {dimension_numbers = #tpu.dot_dimension_numbers<[1], [0], [0], [1], [0, 0, 1, 1], [], []>} : vector<64x4xf32>, vector<4x4xf32>, vector<64x4xf32> -> vector<64x4xf32>
    %796 = arith.addf %790, %795 : vector<64x4xf32>
    %c3_903 = arith.constant 3 : index
    %c15_904 = arith.constant 15 : index
    %c0_905 = arith.constant 0 : index
    %797 = vector.load %arg12[%c3_903, %c15_904, %c0_905] : memref<4x96x4xf32, #tpu.memory_space<vmem>>, vector<1x64x4xf32>
    %798 = vector.shape_cast %797 : vector<1x64x4xf32> to vector<64x4xf32>
    %799 = vector.broadcast %20 : vector<64x1xf32> to vector<64x4xf32>
    %800 = arith.mulf %798, %799 : vector<64x4xf32>
    %c1_906 = arith.constant 1 : index
    %c0_907 = arith.constant 0 : index
    %c0_908 = arith.constant 0 : index
    %c0_909 = arith.constant 0 : index
    %801 = vector.load %arg8[%c1_906, %c0_907, %c0_908, %c0_909] : memref<3x3x4x4xf32, #tpu.memory_space<vmem>>, vector<1x1x4x4xf32>
    %802 = vector.shape_cast %801 : vector<1x1x4x4xf32> to vector<4x4xf32>
    %cst_910 = arith.constant dense<0.000000e+00> : vector<64x4xf32>
    %803 = tpu.matmul %800, %802, %cst_910 {dimension_numbers = #tpu.dot_dimension_numbers<[1], [0], [0], [1], [0, 0, 1, 1], [], []>} : vector<64x4xf32>, vector<4x4xf32>, vector<64x4xf32> -> vector<64x4xf32>
    %804 = arith.addf %796, %803 : vector<64x4xf32>
    %c2_911 = arith.constant 2 : index
    %c16_912 = arith.constant 16 : index
    %c0_913 = arith.constant 0 : index
    %805 = vector.load %arg12[%c2_911, %c16_912, %c0_913] : memref<4x96x4xf32, #tpu.memory_space<vmem>>, vector<1x64x4xf32>
    %806 = vector.shape_cast %805 : vector<1x64x4xf32> to vector<64x4xf32>
    %c1_914 = arith.constant 1 : index
    %c1_915 = arith.constant 1 : index
    %c0_916 = arith.constant 0 : index
    %c0_917 = arith.constant 0 : index
    %807 = vector.load %arg8[%c1_914, %c1_915, %c0_916, %c0_917] : memref<3x3x4x4xf32, #tpu.memory_space<vmem>>, vector<1x1x4x4xf32>
    %808 = vector.shape_cast %807 : vector<1x1x4x4xf32> to vector<4x4xf32>
    %cst_918 = arith.constant dense<0.000000e+00> : vector<64x4xf32>
    %809 = tpu.matmul %806, %808, %cst_918 {dimension_numbers = #tpu.dot_dimension_numbers<[1], [0], [0], [1], [0, 0, 1, 1], [], []>} : vector<64x4xf32>, vector<4x4xf32>, vector<64x4xf32> -> vector<64x4xf32>
    %810 = arith.addf %804, %809 : vector<64x4xf32>
    %c3_919 = arith.constant 3 : index
    %c16_920 = arith.constant 16 : index
    %c0_921 = arith.constant 0 : index
    %811 = vector.load %arg12[%c3_919, %c16_920, %c0_921] : memref<4x96x4xf32, #tpu.memory_space<vmem>>, vector<1x64x4xf32>
    %812 = vector.shape_cast %811 : vector<1x64x4xf32> to vector<64x4xf32>
    %c1_922 = arith.constant 1 : index
    %c2_923 = arith.constant 2 : index
    %c0_924 = arith.constant 0 : index
    %c0_925 = arith.constant 0 : index
    %813 = vector.load %arg8[%c1_922, %c2_923, %c0_924, %c0_925] : memref<3x3x4x4xf32, #tpu.memory_space<vmem>>, vector<1x1x4x4xf32>
    %814 = vector.shape_cast %813 : vector<1x1x4x4xf32> to vector<4x4xf32>
    %cst_926 = arith.constant dense<0.000000e+00> : vector<64x4xf32>
    %815 = tpu.matmul %812, %814, %cst_926 {dimension_numbers = #tpu.dot_dimension_numbers<[1], [0], [0], [1], [0, 0, 1, 1], [], []>} : vector<64x4xf32>, vector<4x4xf32>, vector<64x4xf32> -> vector<64x4xf32>
    %816 = arith.addf %810, %815 : vector<64x4xf32>
    %c1_927 = arith.constant 1 : index
    %c23_928 = arith.constant 23 : index
    %c0_929 = arith.constant 0 : index
    %817 = vector.load %arg12[%c1_927, %c23_928, %c0_929] : memref<4x96x4xf32, #tpu.memory_space<vmem>>, vector<1x64x4xf32>
    %818 = vector.shape_cast %817 : vector<1x64x4xf32> to vector<64x4xf32>
    %819 = vector.broadcast %20 : vector<64x1xf32> to vector<64x4xf32>
    %820 = arith.mulf %818, %819 : vector<64x4xf32>
    %c2_930 = arith.constant 2 : index
    %c0_931 = arith.constant 0 : index
    %c0_932 = arith.constant 0 : index
    %c0_933 = arith.constant 0 : index
    %821 = vector.load %arg8[%c2_930, %c0_931, %c0_932, %c0_933] : memref<3x3x4x4xf32, #tpu.memory_space<vmem>>, vector<1x1x4x4xf32>
    %822 = vector.shape_cast %821 : vector<1x1x4x4xf32> to vector<4x4xf32>
    %cst_934 = arith.constant dense<0.000000e+00> : vector<64x4xf32>
    %823 = tpu.matmul %820, %822, %cst_934 {dimension_numbers = #tpu.dot_dimension_numbers<[1], [0], [0], [1], [0, 0, 1, 1], [], []>} : vector<64x4xf32>, vector<4x4xf32>, vector<64x4xf32> -> vector<64x4xf32>
    %824 = arith.addf %816, %823 : vector<64x4xf32>
    %c0_935 = arith.constant 0 : index
    %c24_936 = arith.constant 24 : index
    %c0_937 = arith.constant 0 : index
    %825 = vector.load %arg12[%c0_935, %c24_936, %c0_937] : memref<4x96x4xf32, #tpu.memory_space<vmem>>, vector<1x64x4xf32>
    %826 = vector.shape_cast %825 : vector<1x64x4xf32> to vector<64x4xf32>
    %c2_938 = arith.constant 2 : index
    %c1_939 = arith.constant 1 : index
    %c0_940 = arith.constant 0 : index
    %c0_941 = arith.constant 0 : index
    %827 = vector.load %arg8[%c2_938, %c1_939, %c0_940, %c0_941] : memref<3x3x4x4xf32, #tpu.memory_space<vmem>>, vector<1x1x4x4xf32>
    %828 = vector.shape_cast %827 : vector<1x1x4x4xf32> to vector<4x4xf32>
    %cst_942 = arith.constant dense<0.000000e+00> : vector<64x4xf32>
    %829 = tpu.matmul %826, %828, %cst_942 {dimension_numbers = #tpu.dot_dimension_numbers<[1], [0], [0], [1], [0, 0, 1, 1], [], []>} : vector<64x4xf32>, vector<4x4xf32>, vector<64x4xf32> -> vector<64x4xf32>
    %830 = arith.addf %824, %829 : vector<64x4xf32>
    %c1_943 = arith.constant 1 : index
    %c24_944 = arith.constant 24 : index
    %c0_945 = arith.constant 0 : index
    %831 = vector.load %arg12[%c1_943, %c24_944, %c0_945] : memref<4x96x4xf32, #tpu.memory_space<vmem>>, vector<1x64x4xf32>
    %832 = vector.shape_cast %831 : vector<1x64x4xf32> to vector<64x4xf32>
    %c2_946 = arith.constant 2 : index
    %c2_947 = arith.constant 2 : index
    %c0_948 = arith.constant 0 : index
    %c0_949 = arith.constant 0 : index
    %833 = vector.load %arg8[%c2_946, %c2_947, %c0_948, %c0_949] : memref<3x3x4x4xf32, #tpu.memory_space<vmem>>, vector<1x1x4x4xf32>
    %834 = vector.shape_cast %833 : vector<1x1x4x4xf32> to vector<4x4xf32>
    %cst_950 = arith.constant dense<0.000000e+00> : vector<64x4xf32>
    %835 = tpu.matmul %832, %834, %cst_950 {dimension_numbers = #tpu.dot_dimension_numbers<[1], [0], [0], [1], [0, 0, 1, 1], [], []>} : vector<64x4xf32>, vector<4x4xf32>, vector<64x4xf32> -> vector<64x4xf32>
    %836 = arith.addf %830, %835 : vector<64x4xf32>
    %cst_951 = arith.constant 0.000000e+00 : f32
    %837 = vector.broadcast %cst_951 : f32 to vector<64x4xf32>
    %838 = arith.maximumf %836, %837 : vector<64x4xf32>
    %c0_952 = arith.constant 0 : index
    %c2_953 = arith.constant 2 : index
    %c0_954 = arith.constant 0 : index
    %c0_955 = arith.constant 0 : index
    %839 = vector.load %arg10[%c0_952, %c2_953, %c0_954, %c0_955] : memref<1x4x64x4xf32, #tpu.memory_space<vmem>>, vector<1x1x64x4xf32>
    %840 = vector.shape_cast %839 : vector<1x1x64x4xf32> to vector<64x4xf32>
    %841 = vector.shape_cast %838 : vector<64x4xf32> to vector<1x1x64x4xf32>
    tpu.vector_store %arg10[%c0_952, %c2_953, %c0_954, %c0_955], %841 {strides = array<i32>} : memref<1x4x64x4xf32, #tpu.memory_space<vmem>>, vector<1x1x64x4xf32>,
    %cst_956 = arith.constant 0.000000e+00 : f32
    %842 = vector.broadcast %cst_956 : f32 to vector<64x4xf32>
    %843 = vector.broadcast %637 : vector<1x4xf32> to vector<64x4xf32>
    %844 = arith.addf %842, %843 : vector<64x4xf32>
    %c0_957 = arith.constant 0 : index
    %c16_958 = arith.constant 16 : index
    %c0_959 = arith.constant 0 : index
    %845 = vector.load %arg12[%c0_957, %c16_958, %c0_959] : memref<4x96x4xf32, #tpu.memory_space<vmem>>, vector<1x64x4xf32>
    %846 = vector.shape_cast %845 : vector<1x64x4xf32> to vector<64x4xf32>
    %c0_960 = arith.constant 0 : index
    %c0_961 = arith.constant 0 : index
    %c0_962 = arith.constant 0 : index
    %c0_963 = arith.constant 0 : index
    %847 = vector.load %arg8[%c0_960, %c0_961, %c0_962, %c0_963] : memref<3x3x4x4xf32, #tpu.memory_space<vmem>>, vector<1x1x4x4xf32>
    %848 = vector.shape_cast %847 : vector<1x1x4x4xf32> to vector<4x4xf32>
    %cst_964 = arith.constant dense<0.000000e+00> : vector<64x4xf32>
    %849 = tpu.matmul %846, %848, %cst_964 {dimension_numbers = #tpu.dot_dimension_numbers<[1], [0], [0], [1], [0, 0, 1, 1], [], []>} : vector<64x4xf32>, vector<4x4xf32>, vector<64x4xf32> -> vector<64x4xf32>
    %850 = arith.addf %844, %849 : vector<64x4xf32>
    %c1_965 = arith.constant 1 : index
    %c16_966 = arith.constant 16 : index
    %c0_967 = arith.constant 0 : index
    %851 = vector.load %arg12[%c1_965, %c16_966, %c0_967] : memref<4x96x4xf32, #tpu.memory_space<vmem>>, vector<1x64x4xf32>
    %852 = vector.shape_cast %851 : vector<1x64x4xf32> to vector<64x4xf32>
    %c0_968 = arith.constant 0 : index
    %c1_969 = arith.constant 1 : index
    %c0_970 = arith.constant 0 : index
    %c0_971 = arith.constant 0 : index
    %853 = vector.load %arg8[%c0_968, %c1_969, %c0_970, %c0_971] : memref<3x3x4x4xf32, #tpu.memory_space<vmem>>, vector<1x1x4x4xf32>
    %854 = vector.shape_cast %853 : vector<1x1x4x4xf32> to vector<4x4xf32>
    %cst_972 = arith.constant dense<0.000000e+00> : vector<64x4xf32>
    %855 = tpu.matmul %852, %854, %cst_972 {dimension_numbers = #tpu.dot_dimension_numbers<[1], [0], [0], [1], [0, 0, 1, 1], [], []>} : vector<64x4xf32>, vector<4x4xf32>, vector<64x4xf32> -> vector<64x4xf32>
    %856 = arith.addf %850, %855 : vector<64x4xf32>
    %c0_973 = arith.constant 0 : index
    %c17_974 = arith.constant 17 : index
    %c0_975 = arith.constant 0 : index
    %857 = vector.load %arg12[%c0_973, %c17_974, %c0_975] : memref<4x96x4xf32, #tpu.memory_space<vmem>>, vector<1x64x4xf32>
    %858 = vector.shape_cast %857 : vector<1x64x4xf32> to vector<64x4xf32>
    %859 = vector.broadcast %24 : vector<64x1xf32> to vector<64x4xf32>
    %860 = arith.mulf %858, %859 : vector<64x4xf32>
    %c0_976 = arith.constant 0 : index
    %c2_977 = arith.constant 2 : index
    %c0_978 = arith.constant 0 : index
    %c0_979 = arith.constant 0 : index
    %861 = vector.load %arg8[%c0_976, %c2_977, %c0_978, %c0_979] : memref<3x3x4x4xf32, #tpu.memory_space<vmem>>, vector<1x1x4x4xf32>
    %862 = vector.shape_cast %861 : vector<1x1x4x4xf32> to vector<4x4xf32>
    %cst_980 = arith.constant dense<0.000000e+00> : vector<64x4xf32>
    %863 = tpu.matmul %860, %862, %cst_980 {dimension_numbers = #tpu.dot_dimension_numbers<[1], [0], [0], [1], [0, 0, 1, 1], [], []>} : vector<64x4xf32>, vector<4x4xf32>, vector<64x4xf32> -> vector<64x4xf32>
    %864 = arith.addf %856, %863 : vector<64x4xf32>
    %c2_981 = arith.constant 2 : index
    %c16_982 = arith.constant 16 : index
    %c0_983 = arith.constant 0 : index
    %865 = vector.load %arg12[%c2_981, %c16_982, %c0_983] : memref<4x96x4xf32, #tpu.memory_space<vmem>>, vector<1x64x4xf32>
    %866 = vector.shape_cast %865 : vector<1x64x4xf32> to vector<64x4xf32>
    %c1_984 = arith.constant 1 : index
    %c0_985 = arith.constant 0 : index
    %c0_986 = arith.constant 0 : index
    %c0_987 = arith.constant 0 : index
    %867 = vector.load %arg8[%c1_984, %c0_985, %c0_986, %c0_987] : memref<3x3x4x4xf32, #tpu.memory_space<vmem>>, vector<1x1x4x4xf32>
    %868 = vector.shape_cast %867 : vector<1x1x4x4xf32> to vector<4x4xf32>
    %cst_988 = arith.constant dense<0.000000e+00> : vector<64x4xf32>
    %869 = tpu.matmul %866, %868, %cst_988 {dimension_numbers = #tpu.dot_dimension_numbers<[1], [0], [0], [1], [0, 0, 1, 1], [], []>} : vector<64x4xf32>, vector<4x4xf32>, vector<64x4xf32> -> vector<64x4xf32>
    %870 = arith.addf %864, %869 : vector<64x4xf32>
    %c3_989 = arith.constant 3 : index
    %c16_990 = arith.constant 16 : index
    %c0_991 = arith.constant 0 : index
    %871 = vector.load %arg12[%c3_989, %c16_990, %c0_991] : memref<4x96x4xf32, #tpu.memory_space<vmem>>, vector<1x64x4xf32>
    %872 = vector.shape_cast %871 : vector<1x64x4xf32> to vector<64x4xf32>
    %c1_992 = arith.constant 1 : index
    %c1_993 = arith.constant 1 : index
    %c0_994 = arith.constant 0 : index
    %c0_995 = arith.constant 0 : index
    %873 = vector.load %arg8[%c1_992, %c1_993, %c0_994, %c0_995] : memref<3x3x4x4xf32, #tpu.memory_space<vmem>>, vector<1x1x4x4xf32>
    %874 = vector.shape_cast %873 : vector<1x1x4x4xf32> to vector<4x4xf32>
    %cst_996 = arith.constant dense<0.000000e+00> : vector<64x4xf32>
    %875 = tpu.matmul %872, %874, %cst_996 {dimension_numbers = #tpu.dot_dimension_numbers<[1], [0], [0], [1], [0, 0, 1, 1], [], []>} : vector<64x4xf32>, vector<4x4xf32>, vector<64x4xf32> -> vector<64x4xf32>
    %876 = arith.addf %870, %875 : vector<64x4xf32>
    %c2_997 = arith.constant 2 : index
    %c17_998 = arith.constant 17 : index
    %c0_999 = arith.constant 0 : index
    %877 = vector.load %arg12[%c2_997, %c17_998, %c0_999] : memref<4x96x4xf32, #tpu.memory_space<vmem>>, vector<1x64x4xf32>
    %878 = vector.shape_cast %877 : vector<1x64x4xf32> to vector<64x4xf32>
    %879 = vector.broadcast %24 : vector<64x1xf32> to vector<64x4xf32>
    %880 = arith.mulf %878, %879 : vector<64x4xf32>
    %c1_1000 = arith.constant 1 : index
    %c2_1001 = arith.constant 2 : index
    %c0_1002 = arith.constant 0 : index
    %c0_1003 = arith.constant 0 : index
    %881 = vector.load %arg8[%c1_1000, %c2_1001, %c0_1002, %c0_1003] : memref<3x3x4x4xf32, #tpu.memory_space<vmem>>, vector<1x1x4x4xf32>
    %882 = vector.shape_cast %881 : vector<1x1x4x4xf32> to vector<4x4xf32>
    %cst_1004 = arith.constant dense<0.000000e+00> : vector<64x4xf32>
    %883 = tpu.matmul %880, %882, %cst_1004 {dimension_numbers = #tpu.dot_dimension_numbers<[1], [0], [0], [1], [0, 0, 1, 1], [], []>} : vector<64x4xf32>, vector<4x4xf32>, vector<64x4xf32> -> vector<64x4xf32>
    %884 = arith.addf %876, %883 : vector<64x4xf32>
    %c0_1005 = arith.constant 0 : index
    %c24_1006 = arith.constant 24 : index
    %c0_1007 = arith.constant 0 : index
    %885 = vector.load %arg12[%c0_1005, %c24_1006, %c0_1007] : memref<4x96x4xf32, #tpu.memory_space<vmem>>, vector<1x64x4xf32>
    %886 = vector.shape_cast %885 : vector<1x64x4xf32> to vector<64x4xf32>
    %c2_1008 = arith.constant 2 : index
    %c0_1009 = arith.constant 0 : index
    %c0_1010 = arith.constant 0 : index
    %c0_1011 = arith.constant 0 : index
    %887 = vector.load %arg8[%c2_1008, %c0_1009, %c0_1010, %c0_1011] : memref<3x3x4x4xf32, #tpu.memory_space<vmem>>, vector<1x1x4x4xf32>
    %888 = vector.shape_cast %887 : vector<1x1x4x4xf32> to vector<4x4xf32>
    %cst_1012 = arith.constant dense<0.000000e+00> : vector<64x4xf32>
    %889 = tpu.matmul %886, %888, %cst_1012 {dimension_numbers = #tpu.dot_dimension_numbers<[1], [0], [0], [1], [0, 0, 1, 1], [], []>} : vector<64x4xf32>, vector<4x4xf32>, vector<64x4xf32> -> vector<64x4xf32>
    %890 = arith.addf %884, %889 : vector<64x4xf32>
    %c1_1013 = arith.constant 1 : index
    %c24_1014 = arith.constant 24 : index
    %c0_1015 = arith.constant 0 : index
    %891 = vector.load %arg12[%c1_1013, %c24_1014, %c0_1015] : memref<4x96x4xf32, #tpu.memory_space<vmem>>, vector<1x64x4xf32>
    %892 = vector.shape_cast %891 : vector<1x64x4xf32> to vector<64x4xf32>
    %c2_1016 = arith.constant 2 : index
    %c1_1017 = arith.constant 1 : index
    %c0_1018 = arith.constant 0 : index
    %c0_1019 = arith.constant 0 : index
    %893 = vector.load %arg8[%c2_1016, %c1_1017, %c0_1018, %c0_1019] : memref<3x3x4x4xf32, #tpu.memory_space<vmem>>, vector<1x1x4x4xf32>
    %894 = vector.shape_cast %893 : vector<1x1x4x4xf32> to vector<4x4xf32>
    %cst_1020 = arith.constant dense<0.000000e+00> : vector<64x4xf32>
    %895 = tpu.matmul %892, %894, %cst_1020 {dimension_numbers = #tpu.dot_dimension_numbers<[1], [0], [0], [1], [0, 0, 1, 1], [], []>} : vector<64x4xf32>, vector<4x4xf32>, vector<64x4xf32> -> vector<64x4xf32>
    %896 = arith.addf %890, %895 : vector<64x4xf32>
    %c0_1021 = arith.constant 0 : index
    %c25_1022 = arith.constant 25 : index
    %c0_1023 = arith.constant 0 : index
    %897 = vector.load %arg12[%c0_1021, %c25_1022, %c0_1023] : memref<4x96x4xf32, #tpu.memory_space<vmem>>, vector<1x64x4xf32>
    %898 = vector.shape_cast %897 : vector<1x64x4xf32> to vector<64x4xf32>
    %899 = vector.broadcast %24 : vector<64x1xf32> to vector<64x4xf32>
    %900 = arith.mulf %898, %899 : vector<64x4xf32>
    %c2_1024 = arith.constant 2 : index
    %c2_1025 = arith.constant 2 : index
    %c0_1026 = arith.constant 0 : index
    %c0_1027 = arith.constant 0 : index
    %901 = vector.load %arg8[%c2_1024, %c2_1025, %c0_1026, %c0_1027] : memref<3x3x4x4xf32, #tpu.memory_space<vmem>>, vector<1x1x4x4xf32>
    %902 = vector.shape_cast %901 : vector<1x1x4x4xf32> to vector<4x4xf32>
    %cst_1028 = arith.constant dense<0.000000e+00> : vector<64x4xf32>
    %903 = tpu.matmul %900, %902, %cst_1028 {dimension_numbers = #tpu.dot_dimension_numbers<[1], [0], [0], [1], [0, 0, 1, 1], [], []>} : vector<64x4xf32>, vector<4x4xf32>, vector<64x4xf32> -> vector<64x4xf32>
    %904 = arith.addf %896, %903 : vector<64x4xf32>
    %cst_1029 = arith.constant 0.000000e+00 : f32
    %905 = vector.broadcast %cst_1029 : f32 to vector<64x4xf32>
    %906 = arith.maximumf %904, %905 : vector<64x4xf32>
    %c0_1030 = arith.constant 0 : index
    %c3_1031 = arith.constant 3 : index
    %c0_1032 = arith.constant 0 : index
    %c0_1033 = arith.constant 0 : index
    %907 = vector.load %arg10[%c0_1030, %c3_1031, %c0_1032, %c0_1033] : memref<1x4x64x4xf32, #tpu.memory_space<vmem>>, vector<1x1x64x4xf32>
    %908 = vector.shape_cast %907 : vector<1x1x64x4xf32> to vector<64x4xf32>
    %909 = vector.shape_cast %906 : vector<64x4xf32> to vector<1x1x64x4xf32>
    tpu.vector_store %arg10[%c0_1030, %c3_1031, %c0_1032, %c0_1033], %909 {strides = array<i32>} : memref<1x4x64x4xf32, #tpu.memory_space<vmem>>, vector<1x1x64x4xf32>,
    return
  }
  func.func @transform_0(%arg0: i32) -> (i32, i32, i32) {
    %c0_i32 = arith.constant 0 : i32
    %c0_i32_0 = arith.constant 0 : i32
    %c0_i32_1 = arith.constant 0 : i32
    return %arg0, %c0_i32, %c0_i32_0 : i32, i32, i32
  }
  func.func @transform_1(%arg0: i32) -> (i32, i32, i32, i32) {
    %c0_i32 = arith.constant 0 : i32
    %c0_i32_0 = arith.constant 0 : i32
    %c0_i32_1 = arith.constant 0 : i32
    %c0_i32_2 = arith.constant 0 : i32
    return %arg0, %c0_i32, %c0_i32_0, %c0_i32_1 : i32, i32, i32, i32
  }
  func.func @transform_2(%arg0: i32) -> (i32, i32, i32) {
    %c0_i32 = arith.constant 0 : i32
    %c0_i32_0 = arith.constant 0 : i32
    %c0_i32_1 = arith.constant 0 : i32
    %c0_i32_2 = arith.constant 0 : i32
    return %c0_i32, %c0_i32_0, %c0_i32_1 : i32, i32, i32
  }
  func.func @transform_3(%arg0: i32) -> (i32, i32) {
    %c0_i32 = arith.constant 0 : i32
    %c0_i32_0 = arith.constant 0 : i32
    %c0_i32_1 = arith.constant 0 : i32
    return %c0_i32, %c0_i32_0 : i32, i32
  }
  func.func @transform_4(%arg0: i32) -> (i32, i32, i32, i32) {
    %c0_i32 = arith.constant 0 : i32
    %c0_i32_0 = arith.constant 0 : i32
    %c0_i32_1 = arith.constant 0 : i32
    %c0_i32_2 = arith.constant 0 : i32
    %c0_i32_3 = arith.constant 0 : i32
    return %c0_i32, %c0_i32_0, %c0_i32_1, %c0_i32_2 : i32, i32, i32, i32
  }
  func.func @transform_5(%arg0: i32) -> (i32, i32, i32, i32) {
    %c0_i32 = arith.constant 0 : i32
    %c0_i32_0 = arith.constant 0 : i32
    %c0_i32_1 = arith.constant 0 : i32
    %c0_i32_2 = arith.constant 0 : i32
    %c0_i32_3 = arith.constant 0 : i32
    return %c0_i32, %c0_i32_0, %c0_i32_1, %c0_i32_2 : i32, i32, i32, i32
  }
  func.func @transform_6(%arg0: i32) -> (i32, i32) {
    %c0_i32 = arith.constant 0 : i32
    %c0_i32_0 = arith.constant 0 : i32
    %c0_i32_1 = arith.constant 0 : i32
    return %c0_i32, %c0_i32_0 : i32, i32
  }
  func.func @transform_7(%arg0: i32) -> (i32, i32, i32, i32) {
    %c0_i32 = arith.constant 0 : i32
    %c0_i32_0 = arith.constant 0 : i32
    %c0_i32_1 = arith.constant 0 : i32
    %c0_i32_2 = arith.constant 0 : i32
    %c0_i32_3 = arith.constant 0 : i32
    return %c0_i32, %c0_i32_0, %c0_i32_1, %c0_i32_2 : i32, i32, i32, i32
  }
  func.func @transform_8(%arg0: i32) -> (i32, i32) {
    %c0_i32 = arith.constant 0 : i32
    %c0_i32_0 = arith.constant 0 : i32
    %c0_i32_1 = arith.constant 0 : i32
    return %c0_i32, %c0_i32_0 : i32, i32
  }
  func.func @transform_9(%arg0: i32) -> (i32, i32, i32, i32) {
    %c0_i32 = arith.constant 0 : i32
    %c0_i32_0 = arith.constant 0 : i32
    %c0_i32_1 = arith.constant 0 : i32
    %c0_i32_2 = arith.constant 0 : i32
    return %arg0, %c0_i32, %c0_i32_0, %c0_i32_1 : i32, i32, i32, i32
  }
}

</mosaic_0001>

<bundles_post_ra>
// kernel: upblock_forward.1
= control target key start
LH: loop header
LB: loop body
LE: loop exit
PB: predicated region body
PF: predicated region fallthrough
CT: control target
= control target key end

     0   :  { %s22551_s30 = smov 0   ;;  %s25989_s0 = inlined_call_operand.vmem [shape: f32[2,64,8], index: 0, kind: input, shape index: {}]   ;;  %s25990_s1 = inlined_call_operand.vmem [shape: f32[2,4,96,4], index: 1, kind: input, shape index: {}]   ;;  %s25991_s2 = inlined_call_operand.vmem [shape: f32[4,8,4], index: 2, kind: input, shape index: {}]   ;;  %s25992_s3 = inlined_call_operand.vmem [shape: f32[1,4], index: 3, kind: input, shape index: {}]   ;;  %s25993_s4 = inlined_call_operand.vmem [shape: f32[3,3,4,4], index: 4, kind: input, shape index: {}]   ;;  %s25994_s5 = inlined_call_operand.vmem [shape: f32[3,3,4,4], index: 5, kind: input, shape index: {}]   ;;  %s25995_s6 = inlined_call_operand.vmem [shape: f32[1,4], index: 6, kind: input, shape index: {}]   ;;  %s25996_s7 = inlined_call_operand.vmem [shape: f32[3,3,4,4], index: 7, kind: input, shape index: {}]   ;;  %s25997_s8 = inlined_call_operand.vmem [shape: f32[1,4], index: 8, kind: input, shape index: {}]   ;;  %s25998_s9 = inlined_call_operand.vmem [shape: f32[2,4,64,4], index: 9, kind: output, shape index: {}]  }
   0x1 LB: > { %s17666_s10 = sadd.s32 4294967295, %s22498_s30   ;;  %p17670_p0 = scmp.ge.s32.totalorder %s22498_s30, 1  ;;  %s22498_s30 = sphi %s22551_s30, %s19_s30  }
   0x2   : > { %p297_p1 = scmp.lt.s32.totalorder %s22498_s30, 3 }
   0x4   : > { %p298_p2 = pnand %p17670_p0, %p297_p1 }
   0x6   : > { %301 = sbr.rel (%p298_p2) target bundleno = 1533 (0x5fd), region = 56 }
   0xd   : > { %v524_v0 = vld [vmem:[%s25991_s2] sm:$0xff]  ;;  %v17701_v1 = vld [vmem:[%s25991_s2 + $0x8] sm:$0xff]  ;;  %p338_p3 = scmp.lt.s32.totalorder %s17666_s10, 1  ;;  %v17710_v2 = vld [vmem:[%s25991_s2 + $0x10] sm:$0xff]  ;;  %vm531_vm0 = vcmask 64512   ;;  %vm1110_vm1 = vcmask 1043456   ;;  %v353_v14 = vlaneseq }
   0xe   : > { %20050 = vmatprep.subr.mxu0 %v524_v0  ;;  %20064 = vmatprep.subr.mxu1 %v17701_v1  ;;  %v17719_v3 = vld [vmem:[%s25991_s2 + $0x18] sm:$0xff]  ;;  %v3834_v7 = vld [vmem:[%s25993_s4] sm:$0xf]  ;;  %vm515_vm2 = vcmask 31744   ;;  %v22500_v16 = vmov 0.0  }
   0xf   : > { %20051 = vmatpush3.msra.mxu0 %v524_v0  ;;  %20065 = vmatpush3.msra.mxu1 %v17701_v1  ;;  %s26086_s10 = smov (!%p338_p3, %s17666_s10), 1  ;;  %v1085_v8 = vld [vmem:[%s25993_s4] sm:$0xf]  ;;  %v22620_v15 = vshrl.u32 %v353_v14, 7  ;;  %518 = vst.msk [vmem:[#allocation2 + $0x50] sm:$0xff] %vm515_vm2, %v22500_v16  ;;  %519 = vst.msk [vmem:[#allocation2 + $0x58] sm:$0xff] %vm515_vm2, %v22500_v16 }
  0x10   : > { %20078 = vmatprep.subr.mxu0 %v17710_v2  ;;  %20092 = vmatprep.subr.mxu1 %v17719_v3  ;;  %s19040_s19 = sshll.u32 %s26086_s10, 6  ;;  %s22482_s27 = smul.u32 384, %s26086_s10  ;;  %522 = vst.msk [vmem:[#allocation3 + $0x50] sm:$0xff] %vm515_vm2, %v22500_v16  ;;  %523 = vst.msk [vmem:[#allocation3 + $0x58] sm:$0xff] %vm515_vm2, %v22500_v16  ;;  %v3975_v30 = vld [vmem:[%s25994_s5] sm:$0xf] }
  0x11   : > { %s342_s22 = scalar_lea.vmem %s25989_s0, %s19040_s19  ;;  %671 = vst.msk [vmem:[#allocation2 + $0x68] sm:$0xff] %vm515_vm2, %v22500_v16  ;;  %672 = vst.msk [vmem:[#allocation2 + $0xb0] sm:$0xff] %vm515_vm2, %v22500_v16  ;;  %v355_v17 = vadd.s32 8, %v22620_v15  ;;  %v366_v18 = vand.u32 7, %v22620_v15  ;;  %v356_v20 = vadd.s32 16, %v22620_v15  ;;  %v357_v24 = vadd.s32 24, %v22620_v15 }
  0x12   : > { %v506_v4 = vld [vmem:[%s342_s22] sm:$0xff]  ;;  %v507_v5 = vld [vmem:[%s342_s22 + $0x8] sm:$0xff]  ;;  %v508_v6 = vld [vmem:[%s342_s22 + $0x10] sm:$0xff]  ;;  %676 = vst.msk [vmem:[#allocation3 + $0x68] sm:$0xff] %vm515_vm2, %v22500_v16  ;;  %s22658_s11 = scalar_lea.vmem %s25990_s1, %s22482_s27  ;;  %v358_v34 = vadd.s32 32, %v22620_v15  ;;  %v359_v38 = vadd.s32 40, %v22620_v15 }
  0x13   : > { %20052 = vmatprep.mubr.msk.f32.mxu0 %vm531_vm0, %v506_v4  ;;  %20066 = vmatprep.mubr.msk.f32.mxu1 %vm531_vm0, %v506_v4  ;;  %v509_v9 = vld [vmem:[%s342_s22 + $0x18] sm:$0xff]  ;;  %v510_v10 = vld [vmem:[%s342_s22 + $0x20] sm:$0xff]  ;;  %v511_v11 = vld [vmem:[%s342_s22 + $0x28] sm:$0xff]  ;;  %677 = vst.msk [vmem:[#allocation3 + $0xb0] sm:$0xff] %vm515_vm2, %v22500_v16  ;;  %v373_v19 = vand.u32 7, %v355_v17  ;;  %vm458_vm3 = vcmp.ge.s32.totalorder %v366_v18, 1 }
  0x14   : > { %20053 = vmatmul.mubr.msk.f32.vlgmr.msra.gmra.mrb[0].mxu0 %vm531_vm0, %v507_v5  ;;  %20067 = vmatmul.mubr.msk.f32.vlgmr.msra.gmra.mrb[0].mxu1 %vm531_vm0, %v507_v5  ;;  %v512_v12 = vld [vmem:[%s342_s22 + $0x30] sm:$0xff]  ;;  %v513_v13 = vld [vmem:[%s342_s22 + $0x38] sm:$0xff]  ;;  %796 = vst.msk [vmem:[#allocation2 + $0xc8] sm:$0xff] %vm515_vm2, %v22500_v16  ;;  %797 = vst.msk [vmem:[#allocation2 + $0x110] sm:$0xff] %vm515_vm2, %v22500_v16  ;;  %v22666_v22 = vsel %vm458_vm3, 1.0, %v22500_v16  ;;  %v380_v29 = vand.u32 7, %v356_v20 }
  0x15   : > { %20079 = vmatpush3.msra.mxu0 %v17710_v2  ;;  %20093 = vmatpush3.msra.mxu1 %v17719_v3  ;;  %801 = vst.msk [vmem:[#allocation3 + $0xc8] sm:$0xff] %vm515_vm2, %v22500_v16  ;;  %802 = vst.msk [vmem:[#allocation3 + $0x110] sm:$0xff] %vm515_vm2, %v22500_v16  ;;  %v22663_v21 = vld [vmem:[%s22658_s11 + $0xc8] sm:$0xff]  ;;  %vm459_vm4 = vcmp.ge.s32.totalorder %v373_v19, 1  ;;  %v22673_v25 = vld [vmem:[%s22658_s11 + $0xd0] sm:$0xff]  ;;  %vm482_vm5 = vcmp.le.s32.totalorder %v366_v18, 6 }
  0x16   : > { %20055 = vmatprep.mubr.msk.f32.mxu0 %vm531_vm0, %v508_v6  ;;  %20069 = vmatprep.mubr.msk.f32.mxu1 %vm531_vm0, %v508_v6  ;;  %920 = vst.msk [vmem:[#allocation2 + $0x120] sm:$0xff] %vm515_vm2, %v22500_v16  ;;  %921 = vst.msk [vmem:[#allocation2 + $0x128] sm:$0xff] %vm515_vm2, %v22500_v16  ;;  %v17729_v23 = vld [vmem:[%s22658_s11 + $0x127] sm:$0xff]  ;;  %v22677_v27 = vsel %vm459_vm4, 1.0, %v22500_v16  ;;  %v17730_v28 = vld [vmem:[%s22658_s11 + $0x12f] sm:$0xff]  ;;  %v387_v32 = vand.u32 7, %v357_v24 }
  0x17   : > { %20358 = vmatprep.subr.msk.mxu1 %vm1110_vm1, %v3834_v7  ;;  %20106 = vmatprep.subr.msk.mxu0 %vm1110_vm1, %v1085_v8  ;;  %925 = vst.msk [vmem:[#allocation3 + $0x120] sm:$0xff] %vm515_vm2, %v22500_v16  ;;  %926 = vst.msk [vmem:[#allocation3 + $0x128] sm:$0xff] %vm515_vm2, %v22500_v16  ;;  %v1061_v26 = vmul.f32 %v17729_v23, %v22666_v22  ;;  %v1062_v31 = vmul.f32 %v17730_v28, %v22677_v27  ;;  %v22687_v33 = vsel %vm482_vm5, 1.0, %v22500_v16  ;;  %v22695_v35 = vld [vmem:[%s22658_s11 + $0xd8] sm:$0xff]  ;;  %v22705_v39 = vld [vmem:[%s22658_s11 + $0xe0] sm:$0xff]  ;;  %s19041_s28 = sshll.u32 %s26086_s10, 8 }
  0x18   : > { %20056 = vmatmul.mubr.msk.f32.gmra.mrb[2].mxu0 %vm531_vm0, %v509_v9  ;;  %20070 = vmatmul.mubr.msk.f32.gmra.mrb[2].mxu1 %vm531_vm0, %v509_v9  ;;  %26033 = vst [vmem:[#allocation4_spill] sm:$0xff] %v22666_v22  ;;  %vm460_vm6 = vcmp.ge.s32.totalorder %v380_v29, 1  ;;  %v17731_v37 = vld [vmem:[%s22658_s11 + $0x137] sm:$0xff]  ;;  %vm461_vm7 = vcmp.ge.s32.totalorder %v387_v32, 1  ;;  %v17732_v42 = vld [vmem:[%s22658_s11 + $0x13f] sm:$0xff]  ;;  %v394_v43 = vand.u32 7, %v358_v34  ;;  %s25890_s13 = scalar_lea.vmem %s25998_s9, %s19041_s28 }
  0x19   : > { %20058 = vmatprep.mubr.msk.f32.mxu0 %vm531_vm0, %v510_v10  ;;  %20072 = vmatprep.mubr.msk.f32.mxu1 %vm531_vm0, %v510_v10  ;;  %v22698_v36 = vsel %vm460_vm6, 1.0, %v22500_v16  ;;  %v22709_v41 = vsel %vm461_vm7, 1.0, %v22500_v16  ;;  %vm483_vm8 = vcmp.le.s32.totalorder %v373_v19, 6  ;;  %v1227_v44 = vld [vmem:[%s25994_s5] sm:$0xf]  ;;  %v401_v46 = vand.u32 7, %v359_v38 }
  0x1a   : > { %v1063_v40 = vmul.f32 %v17731_v37, %v22698_v36  ;;  %v1064_v45 = vmul.f32 %v17732_v42, %v22709_v41  ;;  %v22719_v47 = vsel %vm483_vm8, 1.0, %v22500_v16  ;;  %vm484_vm9 = vcmp.le.s32.totalorder %v380_v29, 6  ;;  %v22730_v51 = vld [vmem:[%s22658_s11 + $0xe8] sm:$0xff]  ;;  %v22740_v54 = vld [vmem:[%s22658_s11 + $0xf0] sm:$0xff]  ;;  %v22758_v63 = vld [vmem:[%s22658_s11 + $0xf8] sm:$0xff] }
  0x1b   : > { %vm462_vm10 = vcmp.ge.s32.totalorder %v394_v43, 1  ;;  %v360_v48 = vadd.s32 48, %v22620_v15  ;;  %v361_v49 = vadd.s32 56, %v22620_v15  ;;  %v22726_v50 = vsel %vm484_vm9, 1.0, %v22500_v16  ;;  %v17733_v53 = vld [vmem:[%s22658_s11 + $0x147] sm:$0xff]  ;;  %v17734_v57 = vld [vmem:[%s22658_s11 + $0x14f] sm:$0xff] }
  0x1c   : > { %20059 = vmatmul.mubr.msk.f32.gmra.mrb[4].mxu0 %vm531_vm0, %v511_v11  ;;  %20073 = vmatmul.mubr.msk.f32.gmra.mrb[4].mxu1 %vm531_vm0, %v511_v11  ;;  %v22733_v52 = vsel %vm462_vm10, 1.0, %v22500_v16  ;;  %vm463_vm11 = vcmp.ge.s32.totalorder %v401_v46, 1  ;;  %vm485_vm12 = vcmp.le.s32.totalorder %v387_v32, 6  ;;  %vm486_vm13 = vcmp.le.s32.totalorder %v394_v43, 6  ;;  %v17735_v1 = vld [vmem:[%s22658_s11 + $0x157] sm:$0xff]  ;;  %v22771_v3 = vld [vmem:[%s22658_s11 + $0x100] sm:$0xff] }
  0x1d   : > { %20061 = vmatprep.mubr.msk.f32.mxu0 %vm531_vm0, %v512_v12  ;;  %20075 = vmatprep.mubr.msk.f32.mxu1 %vm531_vm0, %v512_v12  ;;  %v1065_v55 = vmul.f32 %v17733_v53, %v22733_v52  ;;  %v22744_v56 = vsel %vm463_vm11, 1.0, %v22500_v16  ;;  %v408_v58 = vand.u32 7, %v360_v48  ;;  %v415_v59 = vand.u32 7, %v361_v49  ;;  %v22805_v14 = vld [vmem:[%s25993_s4 + $0x4] sm:$0xf] }
  0x1e   : > { %v1066_v60 = vmul.f32 %v17734_v57, %v22744_v56  ;;  %v22752_v61 = vsel %vm485_vm12, 1.0, %v22500_v16  ;;  %v22755_v62 = vsel %vm486_vm13, 1.0, %v22500_v16  ;;  %vm487_vm4 = vcmp.le.s32.totalorder %v401_v46, 6  ;;  %v22812_v15 = vld [vmem:[%s25992_s3] ss:$0 sm:$0xff] }
  0x1f   : > { %vm464_vm14 = vcmp.ge.s32.totalorder %v408_v58, 1  ;;  %vm465_vm15 = vcmp.ge.s32.totalorder %v415_v59, 1  ;;  %vm489_vm3 = vcmp.le.s32.totalorder %v415_v59, 6 }
  0x20   : > { %20062 = vmatmul.mubr.msk.f32.gmra.mrb[6].mxu0 %vm531_vm0, %v513_v13  ;;  %20076 = vmatmul.mubr.msk.f32.gmra.mrb[6].mxu1 %vm531_vm0, %v513_v13  ;;  %v22761_v0 = vsel %vm464_vm14, 1.0, %v22500_v16  ;;  %v22765_v2 = vsel %vm465_vm15, 1.0, %v22500_v16 }
  0x21   : > { %20080 = vmatprep.mubr.msk.f32.mxu0 %vm531_vm0, %v506_v4  ;;  %20094 = vmatprep.mubr.msk.f32.mxu1 %vm531_vm0, %v506_v4  ;;  %v1067_v4 = vmul.f32 %v17735_v1, %v22761_v0 }
  0x24   : > { %20081 = vmatmul.mubr.msk.f32.vlgmr.msra.gmra.mrb[8].mxu0 %vm531_vm0, %v507_v5  ;;  %20095 = vmatmul.mubr.msk.f32.vlgmr.msra.gmra.mrb[8].mxu1 %vm531_vm0, %v507_v5  ;;  %v17736_v5 = vld [vmem:[%s22658_s11 + $0x15f] sm:$0xff] }
  0x25   : > { %20083 = vmatprep.mubr.msk.f32.mxu0 %vm531_vm0, %v508_v6  ;;  %20097 = vmatprep.mubr.msk.f32.mxu1 %vm531_vm0, %v508_v6 }
  0x26   : > { %20359 = vmatpush3.msk.msra.mxu1 %vm1110_vm1, %v3834_v7  ;;  %20107 = vmatpush3.msk.msra.mxu0 %vm1110_vm1, %v1085_v8  ;;  %v22779_v7 = vsel %vm489_vm3, 1.0, %v22500_v16  ;;  %v1068_v8 = vmul.f32 %v17736_v5, %v22765_v2 }
  0x27   : > { %20372 = vmatprep.subr.msk.mxu1 %vm1110_vm1, %v3975_v30  ;;  %20120 = vmatprep.subr.msk.mxu0 %vm1110_vm1, %v1227_v44 }
  0x28   : > { %20084 = vmatmul.mubr.msk.f32.gmra.mrb[10].mxu0 %vm531_vm0, %v509_v9  ;;  %20098 = vmatmul.mubr.msk.f32.gmra.mrb[10].mxu1 %vm531_vm0, %v509_v9  ;;  %v22785_v9 = vsel %vm487_vm4, 1.0, %v22500_v16 }
  0x29   : > { %20086 = vmatprep.mubr.msk.f32.mxu0 %vm531_vm0, %v510_v10  ;;  %20100 = vmatprep.mubr.msk.f32.mxu1 %vm531_vm0, %v510_v10  ;;  %v22788_v10 = vld [vmem:[#allocation2 + $0xc8] sm:$0xff] }
  0x2c   : > { %20087 = vmatmul.mubr.msk.f32.gmra.mrb[12].mxu0 %vm531_vm0, %v511_v11  ;;  %20101 = vmatmul.mubr.msk.f32.gmra.mrb[12].mxu1 %vm531_vm0, %v511_v11  ;;  %v1069_v11 = vld [vmem:[#allocation2 + $0x127] sm:$0xff] }
  0x2d   : > { %20089 = vmatprep.mubr.msk.f32.mxu0 %vm531_vm0, %v512_v12  ;;  %20103 = vmatprep.mubr.msk.f32.mxu1 %vm531_vm0, %v512_v12  ;;  %v1077_v12 = vmul.f32 %v22666_v22, %v1069_v11 }
  0x30   : > { %20090 = vmatmul.mubr.msk.f32.gmra.mrb[14].mxu0 %vm531_vm0, %v513_v13  ;;  %20104 = vmatmul.mubr.msk.f32.gmra.mrb[14].mxu1 %vm531_vm0, %v513_v13  ;;  %vm488_vm0 = vcmp.le.s32.totalorder %v408_v58, 6  ;;  %v22797_v13 = vld [vmem:[%s25993_s4 + $0x4] sm:$0xf] }
  0x31   : > { %20360 = vmatprep.mubr.msk.f32.mxu1 %vm515_vm2, %v22663_v21  ;;  %20108 = vmatprep.mubr.msk.f32.mxu0 %vm515_vm2, %v1061_v26  ;;  %v22776_v6 = vsel %vm488_vm0, 1.0, %v22500_v16 }
  0x34   : > { %20361 = vmatmul.mubr.msk.f32.vlgmr.msra.gmra.mrb[16].mxu1 %vm515_vm2, %v22673_v25  ;;  %20109 = vmatmul.mubr.msk.f32.vlgmr.msra.gmra.mrb[16].mxu0 %vm515_vm2, %v1062_v31 }
  0x35   : > { %20373 = vmatpush3.msk.msra.mxu1 %vm1110_vm1, %v3975_v30  ;;  %20363 = vmatprep.mubr.msk.f32.mxu1 %vm515_vm2, %v22695_v35 }
  0x36   : > { %20111 = vmatprep.mubr.msk.f32.mxu0 %vm515_vm2, %v1063_v40  ;;  %20121 = vmatpush3.msk.msra.mxu0 %vm1110_vm1, %v1227_v44 }
  0x37   : > { %20386 = vmatprep.subr.msk.mxu1 %vm1110_vm1, %v22797_v13  ;;  %20134 = vmatprep.subr.msk.mxu0 %vm1110_vm1, %v22805_v14 }
  0x38   : > { %20364 = vmatmul.mubr.msk.f32.gmra.mrb[18].mxu1 %vm515_vm2, %v22705_v39  ;;  %20112 = vmatmul.mubr.msk.f32.gmra.mrb[18].mxu0 %vm515_vm2, %v1064_v45 }
  0x39   : > { %20366 = vmatprep.mubr.msk.f32.mxu1 %vm515_vm2, %v22730_v51  ;;  %20114 = vmatprep.mubr.msk.f32.mxu0 %vm515_vm2, %v1065_v55 }
  0x3c   : > { %20367 = vmatmul.mubr.msk.f32.gmra.mrb[20].mxu1 %vm515_vm2, %v22740_v54  ;;  %20115 = vmatmul.mubr.msk.f32.gmra.mrb[20].mxu0 %vm515_vm2, %v1066_v60 }
  0x3d   : > { %20369 = vmatprep.mubr.msk.f32.mxu1 %vm515_vm2, %v22758_v63  ;;  %20117 = vmatprep.mubr.msk.f32.mxu0 %vm515_vm2, %v1067_v4 }
  0x40   : > { %20370 = vmatmul.mubr.msk.f32.gmra.mrb[22].mxu1 %vm515_vm2, %v22771_v3  ;;  %20118 = vmatmul.mubr.msk.f32.gmra.mrb[22].mxu0 %vm515_vm2, %v1068_v8 }
  0x41   : > { %20374 = vmatprep.mubr.msk.f32.mxu1 %vm515_vm2, %v22788_v10  ;;  %20122 = vmatprep.mubr.msk.f32.mxu0 %vm515_vm2, %v1077_v12 }
  0xe7   : > { %v20054_v16 = vpop.f32.mrb[0].mxu0  ;;  %v20068_v17 = vpop.f32.mrb[0].mxu1 }
  0xe8   : > { %v628_v18 = vadd.f32 %v20054_v16, %v22812_v15  ;;  %v753_v19 = vadd.f32 %v20068_v17, %v22812_v15  ;;  %v622_v20 = vpop.f32.mrb[1].mxu0  ;;  %v747_v23 = vpop.f32.mrb[1].mxu1 }
  0xe9   : > { %v623_v24 = vadd.f32 %v22812_v15, %v622_v20  ;;  %v748_v26 = vadd.f32 %v22812_v15, %v747_v23 }
  0xea   : > { %662 = vst.msk [vmem:[#allocation2 + $0x18] sm:$0xff] %vm515_vm2, %v628_v18  ;;  %787 = vst.msk [vmem:[#allocation2 + $0x78] sm:$0xff] %vm515_vm2, %v753_v19 }
  0xeb   : > { %661 = vst.msk [vmem:[#allocation2 + $0x10] sm:$0xff] %vm515_vm2, %v623_v24  ;;  %786 = vst.msk [vmem:[#allocation2 + $0x70] sm:$0xff] %vm515_vm2, %v748_v26  ;;  %v20057_v28 = vpop.f32.mrb[2].mxu0  ;;  %v20071_v29 = vpop.f32.mrb[2].mxu1 }
  0xec   : > { %v638_v30 = vadd.f32 %v20057_v28, %v22812_v15  ;;  %v763_v31 = vadd.f32 %v20071_v29, %v22812_v15  ;;  %v632_v32 = vpop.f32.mrb[3].mxu0  ;;  %v757_v34 = vpop.f32.mrb[3].mxu1 }
  0xed   : > { %v633_v37 = vadd.f32 %v22812_v15, %v632_v32  ;;  %v758_v38 = vadd.f32 %v22812_v15, %v757_v34 }
  0xee   : > { %664 = vst.msk [vmem:[#allocation2 + $0x28] sm:$0xff] %vm515_vm2, %v638_v30  ;;  %789 = vst.msk [vmem:[#allocation2 + $0x88] sm:$0xff] %vm515_vm2, %v763_v31 }
  0xef   : > { %663 = vst.msk [vmem:[#allocation2 + $0x20] sm:$0xff] %vm515_vm2, %v633_v37  ;;  %788 = vst.msk [vmem:[#allocation2 + $0x80] sm:$0xff] %vm515_vm2, %v758_v38  ;;  %v20060_v40 = vpop.f32.mrb[4].mxu0  ;;  %v20074_v42 = vpop.f32.mrb[4].mxu1 }
  0xf0   : > { %v648_v43 = vadd.f32 %v20060_v40, %v22812_v15  ;;  %v773_v44 = vadd.f32 %v20074_v42, %v22812_v15  ;;  %v642_v45 = vpop.f32.mrb[5].mxu0  ;;  %v767_v46 = vpop.f32.mrb[5].mxu1 }
  0xf1   : > { %v643_v48 = vadd.f32 %v22812_v15, %v642_v45  ;;  %v768_v49 = vadd.f32 %v22812_v15, %v767_v46  ;;  %v22869_v45 = vld [vmem:[%s25994_s5 + $0x4] sm:$0xf] }
  0xf2   : > { %666 = vst.msk [vmem:[#allocation2 + $0x38] sm:$0xff] %vm515_vm2, %v648_v43  ;;  %791 = vst.msk [vmem:[#allocation2 + $0x98] sm:$0xff] %vm515_vm2, %v773_v44 }
  0xf3   : > { %665 = vst.msk [vmem:[#allocation2 + $0x30] sm:$0xff] %vm515_vm2, %v643_v48  ;;  %790 = vst.msk [vmem:[#allocation2 + $0x90] sm:$0xff] %vm515_vm2, %v768_v49  ;;  %v20063_v53 = vpop.f32.mrb[6].mxu0  ;;  %v20077_v55 = vpop.f32.mrb[6].mxu1 }
  0xf4   : > { %v658_v57 = vadd.f32 %v20063_v53, %v22812_v15  ;;  %v783_v58 = vadd.f32 %v20077_v55, %v22812_v15  ;;  %v652_v59 = vpop.f32.mrb[7].mxu0  ;;  %v777_v60 = vpop.f32.mrb[7].mxu1 }
  0xf5   : > { %v653_v1 = vadd.f32 %v22812_v15, %v652_v59  ;;  %v778_v4 = vadd.f32 %v22812_v15, %v777_v60 }
  0xf6   : > { %668 = vst.msk [vmem:[#allocation2 + $0x48] sm:$0xff] %vm515_vm2, %v658_v57  ;;  %793 = vst.msk [vmem:[#allocation2 + $0xa8] sm:$0xff] %vm515_vm2, %v783_v58 }
  0xf7   : > { %667 = vst.msk [vmem:[#allocation2 + $0x40] sm:$0xff] %vm515_vm2, %v653_v1  ;;  %792 = vst.msk [vmem:[#allocation2 + $0xa0] sm:$0xff] %vm515_vm2, %v778_v4  ;;  %v20082_v5 = vpop.f32.mrb[8].mxu0  ;;  %v20096_v8 = vpop.f32.mrb[8].mxu1 }
  0xf8   : > { %v878_v11 = vadd.f32 %v20082_v5, %v22812_v15  ;;  %v1003_v12 = vadd.f32 %v20096_v8, %v22812_v15  ;;  %v872_v16 = vpop.f32.mrb[9].mxu0  ;;  %v997_v17 = vpop.f32.mrb[9].mxu1  ;;  %v17773_v8 = vld [vmem:[%s25994_s5 + $0x4] sm:$0xf] }
  0xf9   : > { %v873_v18 = vadd.f32 %v22812_v15, %v872_v16  ;;  %v998_v19 = vadd.f32 %v22812_v15, %v997_v17 }
  0xfa   : > { %912 = vst.msk [vmem:[#allocation2 + $0xd8] sm:$0xff] %vm515_vm2, %v878_v11  ;;  %1037 = vst.msk [vmem:[#allocation2 + $0x138] sm:$0xff] %vm515_vm2, %v1003_v12 }
  0xfb   : > { %911 = vst.msk [vmem:[#allocation2 + $0xd0] sm:$0xff] %vm515_vm2, %v873_v18  ;;  %1036 = vst.msk [vmem:[#allocation2 + $0x130] sm:$0xff] %vm515_vm2, %v998_v19  ;;  %v20085_v20 = vpop.f32.mrb[10].mxu0  ;;  %v20099_v23 = vpop.f32.mrb[10].mxu1 }
  0xfc   : > { %v888_v24 = vadd.f32 %v20085_v20, %v22812_v15  ;;  %v1013_v26 = vadd.f32 %v20099_v23, %v22812_v15  ;;  %v882_v28 = vpop.f32.mrb[11].mxu0  ;;  %v1007_v29 = vpop.f32.mrb[11].mxu1 }
  0xfd   : > { %v883_v30 = vadd.f32 %v22812_v15, %v882_v28  ;;  %v1008_v31 = vadd.f32 %v22812_v15, %v1007_v29  ;;  %v22929_v29 = vld [vmem:[%s22658_s11 + $0x128] sm:$0xff] }
  0xfe   : > { %914 = vst.msk [vmem:[#allocation2 + $0xe8] sm:$0xff] %vm515_vm2, %v888_v24  ;;  %1039 = vst.msk [vmem:[#allocation2 + $0x148] sm:$0xff] %vm515_vm2, %v1013_v26 }
  0xff   : > { %913 = vst.msk [vmem:[#allocation2 + $0xe0] sm:$0xff] %vm515_vm2, %v883_v30  ;;  %1038 = vst.msk [vmem:[#allocation2 + $0x140] sm:$0xff] %vm515_vm2, %v1008_v31  ;;  %v20088_v32 = vpop.f32.mrb[12].mxu0  ;;  %v20102_v34 = vpop.f32.mrb[12].mxu1 }
 0x100   : > { %v898_v37 = vadd.f32 %v20088_v32, %v22812_v15  ;;  %v1023_v38 = vadd.f32 %v20102_v34, %v22812_v15  ;;  %v892_v40 = vpop.f32.mrb[13].mxu0  ;;  %v1017_v42 = vpop.f32.mrb[13].mxu1  ;;  %v22940_v34 = vld [vmem:[%s22658_s11 + $0x130] sm:$0xff] }
 0x101   : > { %v893_v43 = vadd.f32 %v22812_v15, %v892_v40  ;;  %v1018_v44 = vadd.f32 %v22812_v15, %v1017_v42  ;;  %v22879_v57 = vld [vmem:[#allocation2 + $0xd8] sm:$0xff]  ;;  %v22958_v40 = vld [vmem:[%s22658_s11 + $0x140] sm:$0xff]  ;;  %v22966_v42 = vld [vmem:[%s22658_s11 + $0x148] sm:$0xff] }
 0x102   : > { %916 = vst.msk [vmem:[#allocation2 + $0xf8] sm:$0xff] %vm515_vm2, %v898_v37  ;;  %1041 = vst.msk [vmem:[#allocation2 + $0x158] sm:$0xff] %vm515_vm2, %v1023_v38  ;;  %v22873_v46 = vld [vmem:[#allocation2 + $0xd0] sm:$0xff]  ;;  %v22944_v37 = vld [vmem:[%s22658_s11 + $0x138] sm:$0xff] }
 0x103   : > { %v1070_v48 = vld [vmem:[#allocation2 + $0x12f] sm:$0xff]  ;;  %v1071_v49 = vld [vmem:[#allocation2 + $0x137] sm:$0xff]  ;;  %915 = vst.msk [vmem:[#allocation2 + $0xf0] sm:$0xff] %vm515_vm2, %v893_v43  ;;  %1040 = vst.msk [vmem:[#allocation2 + $0x150] sm:$0xff] %vm515_vm2, %v1018_v44  ;;  %v20091_v53 = vpop.f32.mrb[14].mxu0  ;;  %v20105_v55 = vpop.f32.mrb[14].mxu1  ;;  %20375 = vmatmul.mubr.msk.f32.vlgmr.msra.gmra.mrb[16].mxu1 %vm515_vm2, %v22873_v46 }
 0x104   : > { %v1078_v58 = vmul.f32 %v22677_v27, %v1070_v48  ;;  %v1079_v59 = vmul.f32 %v22698_v36, %v1071_v49  ;;  %v908_v60 = vadd.f32 %v20091_v53, %v22812_v15  ;;  %v1033_v1 = vadd.f32 %v20105_v55, %v22812_v15  ;;  %20387 = vmatpush3.msk.msra.mxu1 %vm1110_vm1, %v22797_v13  ;;  %v902_v4 = vpop.f32.mrb[15].mxu0  ;;  %v1027_v5 = vpop.f32.mrb[15].mxu1  ;;  %v18033_v38 = vld [vmem:[%s25993_s4 + $0x8] sm:$0xf]  ;;  %v22978_v43 = vld [vmem:[%s22658_s11 + $0x150] sm:$0xff]  ;;  %v18027_v55 = vld [vmem:[%s22658_s11 + $0xd9] sm:$0xff] }
 0x105   : > { %20377 = vmatprep.mubr.msk.f32.mxu1 %vm515_vm2, %v22879_v57  ;;  %v903_v11 = vadd.f32 %v22812_v15, %v902_v4  ;;  %v1028_v12 = vadd.f32 %v22812_v15, %v1027_v5  ;;  %20400 = vmatprep.subr.msk.mxu1 %vm1110_vm1, %v22869_v45  ;;  %v22908_v15 = vld [vmem:[#allocation2 + $0xe8] sm:$0xff]  ;;  %v18026_v53 = vld [vmem:[%s22658_s11 + $0xd1] sm:$0xff] }
 0x106   : > { %20123 = vmatmul.mubr.msk.f32.vlgmr.msra.gmra.mrb[16].mxu0 %vm515_vm2, %v1078_v58  ;;  %918 = vst.msk [vmem:[#allocation2 + $0x108] sm:$0xff] %vm515_vm2, %v908_v60  ;;  %1043 = vst.msk [vmem:[#allocation2 + $0x168] sm:$0xff] %vm515_vm2, %v1033_v1  ;;  %v22902_v13 = vld [vmem:[#allocation2 + $0xe0] sm:$0xff]  ;;  %v22996_v44 = vld [vmem:[#allocation2 + $0x128] sm:$0xff]  ;;  %v4423_v58 = vmul.f32 %v18026_v53, %v22719_v47 }
 0x107   : > { %20135 = vmatpush3.msk.msra.mxu0 %vm1110_vm1, %v22805_v14  ;;  %20125 = vmatprep.mubr.msk.f32.mxu0 %vm515_vm2, %v1079_v59  ;;  %v1072_v16 = vld [vmem:[#allocation2 + $0x13f] sm:$0xff]  ;;  %v1073_v17 = vld [vmem:[#allocation2 + $0x147] sm:$0xff]  ;;  %917 = vst.msk [vmem:[#allocation2 + $0x100] sm:$0xff] %vm515_vm2, %v903_v11  ;;  %1042 = vst.msk [vmem:[#allocation2 + $0x160] sm:$0xff] %vm515_vm2, %v1028_v12  ;;  %v4424_v59 = vmul.f32 %v18027_v55, %v22726_v50 }
 0x108   : > { %20378 = vmatmul.mubr.msk.f32.gmra.mrb[18].mxu1 %vm515_vm2, %v22902_v13  ;;  %v1080_v18 = vmul.f32 %v22709_v41, %v1072_v16  ;;  %v1081_v14 = vmul.f32 %v22733_v52, %v1073_v17  ;;  %20148 = vmatprep.subr.msk.mxu0 %vm1110_vm1, %v17773_v8  ;;  %v18028_v60 = vld [vmem:[%s22658_s11 + $0xe1] sm:$0xff]  ;;  %v18029_v1 = vld [vmem:[%s22658_s11 + $0xe9] sm:$0xff]  ;;  %v18030_v11 = vld [vmem:[%s22658_s11 + $0xf1] sm:$0xff] }
 0x109   : > { %20380 = vmatprep.mubr.msk.f32.mxu1 %vm515_vm2, %v22908_v15  ;;  %v22921_v24 = vld [vmem:[#allocation2 + $0xf8] sm:$0xff]  ;;  %v18053_v4 = vld [vmem:[%s25993_s4 + $0xc] sm:$0xf]  ;;  %v4425_v5 = vmul.f32 %v18028_v60, %v22752_v61  ;;  %v4427_v16 = vmul.f32 %v18030_v11, %v22785_v9  ;;  %v17839_v53 = vld [vmem:[%s25993_s4 + $0x10] sm:$0xf] }
 0x10a   : > { %20126 = vmatmul.mubr.msk.f32.gmra.mrb[18].mxu0 %vm515_vm2, %v1080_v18  ;;  %v22917_v19 = vld [vmem:[#allocation2 + $0xf0] sm:$0xff]  ;;  %v23047_v48 = vld [vmem:[#allocation2 + $0x158] sm:$0xff]  ;;  %v17819_v12 = vld [vmem:[%s25993_s4 + $0xc] sm:$0xf] }
 0x10b   : > { %20128 = vmatprep.mubr.msk.f32.mxu0 %vm515_vm2, %v1081_v14  ;;  %v1074_v20 = vld [vmem:[#allocation2 + $0x14f] sm:$0xff]  ;;  %v1075_v23 = vld [vmem:[#allocation2 + $0x157] sm:$0xff]  ;;  %v17817_v60 = vld [vmem:[%s22658_s11 + $0x9f] sm:$0xff] }
 0x10c   : > { %20381 = vmatmul.mubr.msk.f32.gmra.mrb[20].mxu1 %vm515_vm2, %v22917_v19  ;;  %v1082_v26 = vmul.f32 %v22744_v56, %v1074_v20  ;;  %v1083_v28 = vmul.f32 %v22761_v0, %v1075_v23  ;;  %v4430_v14 = vld [vmem:[#allocation2 + $0xc9] sm:$0xff]  ;;  %v4431_v20 = vld [vmem:[#allocation2 + $0xd1] sm:$0xff]  ;;  %v4432_v23 = vld [vmem:[#allocation2 + $0xd9] sm:$0xff] }
 0x10d   : > { %20383 = vmatprep.mubr.msk.f32.mxu1 %vm515_vm2, %v22921_v24  ;;  %v17818_v11 = vld [vmem:[%s22658_s11 + $0xa7] sm:$0xff] }
 0x10e   : > { %20129 = vmatmul.mubr.msk.f32.gmra.mrb[20].mxu0 %vm515_vm2, %v1082_v26  ;;  %v22932_v30 = vld [vmem:[#allocation2 + $0x100] sm:$0xff]  ;;  %v4440_v26 = vmul.f32 %v22726_v50, %v4432_v23 }
 0x10f   : > { %20131 = vmatprep.mubr.msk.f32.mxu0 %vm515_vm2, %v1083_v28  ;;  %v1076_v31 = vld [vmem:[#allocation2 + $0x15f] sm:$0xff] }
 0x110   : > { %20384 = vmatmul.mubr.msk.f32.gmra.mrb[22].mxu1 %vm515_vm2, %v22932_v30  ;;  %v1084_v32 = vmul.f32 %v22765_v2, %v1076_v31  ;;  %v23116_v28 = vld [vmem:[#allocation2 + $0xe1] sm:$0xff]  ;;  %v17829_v31 = vld [vmem:[%s25994_s5 + $0xc] sm:$0xf] }
 0x111   : > { %20388 = vmatprep.mubr.msk.f32.mxu1 %vm515_vm2, %v22929_v29  ;;  %v23242_v23 = vld [vmem:[#allocation2 + $0x20] sm:$0xff] }
 0x112   : > { %20132 = vmatmul.mubr.msk.f32.gmra.mrb[22].mxu0 %vm515_vm2, %v1084_v32  ;;  %v4441_v32 = vmul.f32 %v22752_v61, %v23116_v28 }
 0x113   : > { %20136 = vmatprep.mubr.msk.f32.mxu0 %vm515_vm2, %v22663_v21  ;;  %v17791_v21 = vld [vmem:[%s25993_s4 + $0x8] sm:$0xf] }
 0x114   : > { %20389 = vmatmul.mubr.msk.f32.vlgmr.msra.gmra.mrb[16].mxu1 %vm515_vm2, %v22940_v34 }
 0x115   : > { %20401 = vmatpush3.msk.msra.mxu1 %vm1110_vm1, %v22869_v45  ;;  %20391 = vmatprep.mubr.msk.f32.mxu1 %vm515_vm2, %v22944_v37  ;;  %v18025_v45 = vld [vmem:[%s22658_s11 + $0xc9] sm:$0xff] }
 0x116   : > { %20137 = vmatmul.mubr.msk.f32.vlgmr.msra.gmra.mrb[16].mxu0 %vm515_vm2, %v22673_v25  ;;  %20414 = vmatprep.subr.msk.mxu1 %vm1110_vm1, %v18033_v38  ;;  %v22983_v25 = vld [vmem:[%s22658_s11 + $0x158] sm:$0xff]  ;;  %v4422_v49 = vmul.f32 %v18025_v45, %v22687_v33  ;;  %v17814_v45 = vld [vmem:[%s22658_s11 + $0x87] sm:$0xff] }
 0x117   : > { %20149 = vmatpush3.msk.msra.mxu0 %vm1110_vm1, %v17773_v8  ;;  %20139 = vmatprep.mubr.msk.f32.mxu0 %vm515_vm2, %v22695_v35  ;;  %v22992_v35 = vld [vmem:[%s22658_s11 + $0x160] sm:$0xff]  ;;  %v4426_v8 = vmul.f32 %v18029_v1, %v22755_v62  ;;  %v1981_v55 = vmul.f32 %v17814_v45, %v22709_v41  ;;  %v23206_v1 = vld [vmem:[%s22658_s11 + $0x38] sm:$0xff] }
 0x118   : > { %20392 = vmatmul.mubr.msk.f32.gmra.mrb[18].mxu1 %vm515_vm2, %v22958_v40  ;;  %20162 = vmatprep.subr.msk.mxu0 %vm1110_vm1, %v17791_v21  ;;  %v23292_v45 = vld [vmem:[%s22658_s11 + $0x78] sm:$0xff] }
 0x119   : > { %20394 = vmatprep.mubr.msk.f32.mxu1 %vm515_vm2, %v22966_v42 }
 0x11a   : > { %20140 = vmatmul.mubr.msk.f32.gmra.mrb[18].mxu0 %vm515_vm2, %v22705_v39  ;;  %v23006_v39 = vld [vmem:[#allocation2 + $0x130] sm:$0xff] }
 0x11b   : > { %20142 = vmatprep.mubr.msk.f32.mxu0 %vm515_vm2, %v22730_v51  ;;  %v18043_v51 = vld [vmem:[%s25994_s5 + $0x8] sm:$0xf] }
 0x11c   : > { %20395 = vmatmul.mubr.msk.f32.gmra.mrb[20].mxu1 %vm515_vm2, %v22978_v43 }
 0x11d   : > { %20397 = vmatprep.mubr.msk.f32.mxu1 %vm515_vm2, %v22983_v25 }
 0x11e   : > { %20143 = vmatmul.mubr.msk.f32.gmra.mrb[20].mxu0 %vm515_vm2, %v22740_v54  ;;  %v23015_v54 = vld [vmem:[#allocation2 + $0x138] sm:$0xff] }
 0x11f   : > { %20145 = vmatprep.mubr.msk.f32.mxu0 %vm515_vm2, %v22758_v63  ;;  %v17801_v63 = vld [vmem:[%s25994_s5 + $0x8] sm:$0xf] }
 0x120   : > { %20398 = vmatmul.mubr.msk.f32.gmra.mrb[22].mxu1 %vm515_vm2, %v22992_v35 }
 0x121   : > { %20402 = vmatprep.mubr.msk.f32.mxu1 %vm515_vm2, %v22996_v44 }
 0x122   : > { %20146 = vmatmul.mubr.msk.f32.gmra.mrb[22].mxu0 %vm515_vm2, %v22771_v3  ;;  %v23029_v3 = vld [vmem:[#allocation2 + $0x140] sm:$0xff] }
 0x123   : > { %20150 = vmatprep.mubr.msk.f32.mxu0 %vm515_vm2, %v22788_v10  ;;  %v23033_v10 = vld [vmem:[#allocation2 + $0x148] sm:$0xff] }
 0x124   : > { %20403 = vmatmul.mubr.msk.f32.vlgmr.msra.gmra.mrb[16].mxu1 %vm515_vm2, %v23006_v39 }
 0x125   : > { %20415 = vmatpush3.msk.msra.mxu1 %vm1110_vm1, %v18033_v38  ;;  %20405 = vmatprep.mubr.msk.f32.mxu1 %vm515_vm2, %v23015_v54  ;;  %v4436_v38 = vld [vmem:[#allocation2 + $0xf9] sm:$0xff] }
 0x126   : > { %20151 = vmatmul.mubr.msk.f32.vlgmr.msra.gmra.mrb[16].mxu0 %vm515_vm2, %v22873_v46  ;;  %20428 = vmatprep.subr.msk.mxu1 %vm1110_vm1, %v18043_v51  ;;  %v23043_v46 = vld [vmem:[#allocation2 + $0x150] sm:$0xff] }
 0x127   : > { %20163 = vmatpush3.msk.msra.mxu0 %vm1110_vm1, %v17791_v21  ;;  %20153 = vmatprep.mubr.msk.f32.mxu0 %vm515_vm2, %v22879_v57  ;;  %v23058_v57 = vld [vmem:[#allocation2 + $0x160] sm:$0xff]  ;;  %v4444_v21 = vmul.f32 %v22776_v6, %v4436_v38 }
 0x128   : > { %20406 = vmatmul.mubr.msk.f32.gmra.mrb[18].mxu1 %vm515_vm2, %v23029_v3  ;;  %20176 = vmatprep.subr.msk.mxu0 %vm1110_vm1, %v17801_v63 }
 0x129   : > { %20408 = vmatprep.mubr.msk.f32.mxu1 %vm515_vm2, %v23033_v10 }
 0x12a   : > { %20154 = vmatmul.mubr.msk.f32.gmra.mrb[18].mxu0 %vm515_vm2, %v22902_v13  ;;  %v18031_v13 = vld [vmem:[%s22658_s11 + $0xf9] sm:$0xff] }
 0x12b   : > { %20156 = vmatprep.mubr.msk.f32.mxu0 %vm515_vm2, %v22908_v15  ;;  %v4428_v17 = vmul.f32 %v18031_v13, %v22776_v6  ;;  %v18032_v15 = vld [vmem:[%s22658_s11 + $0x101] sm:$0xff]  ;;  %v1985_v13 = vmul.f32 %v17818_v11, %v22765_v2  ;;  %v23394_v11 = vld [vmem:[#allocation2 + $0x98] sm:$0xff] }
 0x12c   : > { %20409 = vmatmul.mubr.msk.f32.gmra.mrb[20].mxu1 %vm515_vm2, %v23043_v46  ;;  %v4429_v18 = vmul.f32 %v18032_v15, %v22779_v7 }
 0x12d   : > { %20411 = vmatprep.mubr.msk.f32.mxu1 %vm515_vm2, %v23047_v48 }
 0x12e   : > { %20157 = vmatmul.mubr.msk.f32.gmra.mrb[20].mxu0 %vm515_vm2, %v22917_v19  ;;  %v4438_v19 = vmul.f32 %v22687_v33, %v4430_v14  ;;  %v1988_v14 = vld [vmem:[#allocation2 + $0x7f] sm:$0xff] }
 0x12f   : > { %20159 = vmatprep.mubr.msk.f32.mxu0 %vm515_vm2, %v22921_v24  ;;  %v4439_v24 = vmul.f32 %v22719_v47, %v4431_v20  ;;  %v18091_v20 = vld [vmem:[%s25994_s5 + $0x10] sm:$0xf] }
 0x130   : > { %20412 = vmatmul.mubr.msk.f32.gmra.mrb[22].mxu1 %vm515_vm2, %v23058_v57 }
 0x131   : > { %20416 = vmatprep.mubr.msk.f32.mxu1 %vm515_vm2, %v4422_v49  ;;  %v23184_v49 = vld [vmem:[%s22658_s11 + $0x28] sm:$0xff] }
 0x132   : > { %20160 = vmatmul.mubr.msk.f32.gmra.mrb[22].mxu0 %vm515_vm2, %v22932_v30  ;;  %v4434_v30 = vld [vmem:[#allocation2 + $0xe9] sm:$0xff] }
 0x133   : > { %20164 = vmatprep.mubr.msk.f32.mxu0 %vm515_vm2, %v22929_v29  ;;  %v18063_v29 = vld [vmem:[%s25994_s5 + $0xc] sm:$0xf] }
 0x134   : > { %20417 = vmatmul.mubr.msk.f32.vlgmr.msra.gmra.mrb[16].mxu1 %vm515_vm2, %v4423_v58 }
 0x135   : > { %20429 = vmatpush3.msk.msra.mxu1 %vm1110_vm1, %v18043_v51  ;;  %20419 = vmatprep.mubr.msk.f32.mxu1 %vm515_vm2, %v4424_v59  ;;  %v17813_v51 = vld [vmem:[%s22658_s11 + $0x7f] sm:$0xff]  ;;  %v17816_v59 = vld [vmem:[%s22658_s11 + $0x97] sm:$0xff] }
 0x136   : > { %20165 = vmatmul.mubr.msk.f32.vlgmr.msra.gmra.mrb[16].mxu0 %vm515_vm2, %v22940_v34  ;;  %20442 = vmatprep.subr.msk.mxu1 %vm1110_vm1, %v18053_v4  ;;  %v4442_v34 = vmul.f32 %v22755_v62, %v4434_v30  ;;  %v17849_v30 = vld [vmem:[%s25994_s5 + $0x10] sm:$0xf] }
 0x137   : > { %20177 = vmatpush3.msk.msra.mxu0 %vm1110_vm1, %v17801_v63  ;;  %20167 = vmatprep.mubr.msk.f32.mxu0 %vm515_vm2, %v22944_v37  ;;  %v4435_v37 = vld [vmem:[#allocation2 + $0xf1] sm:$0xff] }
 0x138   : > { %20420 = vmatmul.mubr.msk.f32.gmra.mrb[18].mxu1 %vm515_vm2, %v4425_v5  ;;  %20190 = vmatprep.subr.msk.mxu0 %vm1110_vm1, %v17819_v12  ;;  %v23211_v5 = vld [vmem:[%s22658_s11 + $0x40] sm:$0xff] }
 0x139   : > { %20422 = vmatprep.mubr.msk.f32.mxu1 %vm515_vm2, %v4426_v8  ;;  %v1984_v8 = vmul.f32 %v17817_v60, %v22761_v0  ;;  %v23366_v60 = vld [vmem:[#allocation2 + $0x80] sm:$0xff] }
 0x13a   : > { %20168 = vmatmul.mubr.msk.f32.gmra.mrb[18].mxu0 %vm515_vm2, %v22958_v40  ;;  %v4443_v40 = vmul.f32 %v22785_v9, %v4435_v37 }
 0x13b   : > { %20170 = vmatprep.mubr.msk.f32.mxu0 %vm515_vm2, %v22966_v42  ;;  %v4437_v42 = vld [vmem:[#allocation2 + $0x101] sm:$0xff] }
 0x13c   : > { %20423 = vmatmul.mubr.msk.f32.gmra.mrb[20].mxu1 %vm515_vm2, %v4427_v16  ;;  %v1986_v16 = vld [vmem:[#allocation2 + $0x6f] sm:$0xff] }
 0x13d   : > { %20425 = vmatprep.mubr.msk.f32.mxu1 %vm515_vm2, %v4428_v17  ;;  %v23228_v17 = vld [vmem:[#allocation2 + $0x10] sm:$0xff]  ;;  %v1994_v15 = vmul.f32 %v22666_v22, %v1986_v16  ;;  %v5325_v16 = vld [vmem:[%s22658_s11 + $0x19] sm:$0xff] }
 0x13e   : > { %20171 = vmatmul.mubr.msk.f32.gmra.mrb[20].mxu0 %vm515_vm2, %v22978_v43  ;;  %v17811_v43 = vld [vmem:[%s22658_s11 + $0x6f] sm:$0xff] }
 0x13f   : > { %20173 = vmatprep.mubr.msk.f32.mxu0 %vm515_vm2, %v22983_v25  ;;  %v4445_v25 = vmul.f32 %v22779_v7, %v4437_v42  ;;  %v23269_v42 = vld [vmem:[#allocation2 + $0x38] sm:$0xff] }
 0x140   : > { %20426 = vmatmul.mubr.msk.f32.gmra.mrb[22].mxu1 %vm515_vm2, %v4429_v18  ;;  %v1987_v18 = vld [vmem:[#allocation2 + $0x77] sm:$0xff] }
 0x141   : > { %20430 = vmatprep.mubr.msk.f32.mxu1 %vm515_vm2, %v4438_v19  ;;  %v23235_v19 = vld [vmem:[#allocation2 + $0x18] sm:$0xff] }
 0x142   : > { %20174 = vmatmul.mubr.msk.f32.gmra.mrb[22].mxu0 %vm515_vm2, %v22992_v35  ;;  %v23152_v35 = vld [vmem:[%s22658_s11 + $0x10] sm:$0xff] }
 0x143   : > { %20178 = vmatprep.mubr.msk.f32.mxu0 %vm515_vm2, %v22996_v44  ;;  %v1978_v44 = vmul.f32 %v17811_v43, %v22666_v22  ;;  %v23273_v43 = vld [vmem:[#allocation2 + $0x40] sm:$0xff] }
 0x144   : > { %20431 = vmatmul.mubr.msk.f32.vlgmr.msra.gmra.mrb[16].mxu1 %vm515_vm2, %v4439_v24  ;;  %v1995_v24 = vmul.f32 %v22677_v27, %v1987_v18  ;;  %v5333_v18 = vmul.f32 %v22719_v47, %v5325_v16  ;;  %v23532_v16 = vld [vmem:[%s22658_s11 + $0xe8] sm:$0xff] }
 0x145   : > { %20443 = vmatpush3.msk.msra.mxu1 %vm1110_vm1, %v18053_v4  ;;  %20433 = vmatprep.mubr.msk.f32.mxu1 %vm515_vm2, %v4440_v26  ;;  %v1983_v4 = vmul.f32 %v17816_v59, %v22744_v56  ;;  %v1996_v26 = vmul.f32 %v22698_v36, %v1988_v14  ;;  %v18111_v59 = vld [vmem:[%s25994_s5 + $0x14] sm:$0xf] }
 0x146   : > { %20179 = vmatmul.mubr.msk.f32.vlgmr.msra.gmra.mrb[16].mxu0 %vm515_vm2, %v23006_v39  ;;  %20456 = vmatprep.subr.msk.mxu1 %vm1110_vm1, %v18063_v29  ;;  %v17812_v39 = vld [vmem:[%s22658_s11 + $0x77] sm:$0xff] }
 0x147   : > { %20191 = vmatpush3.msk.msra.mxu0 %vm1110_vm1, %v17819_v12  ;;  %20181 = vmatprep.mubr.msk.f32.mxu0 %vm515_vm2, %v23015_v54  ;;  %v23163_v54 = vld [vmem:[%s22658_s11 + $0x18] sm:$0xff]  ;;  %v1979_v63 = vmul.f32 %v17812_v39, %v22677_v27  ;;  %v23221_v12 = vld [vmem:[%s22658_s11 + $0x48] sm:$0xff] }
 0x148   : > { %20434 = vmatmul.mubr.msk.f32.gmra.mrb[18].mxu1 %vm515_vm2, %v4441_v32  ;;  %20204 = vmatprep.subr.msk.mxu0 %vm1110_vm1, %v17829_v31  ;;  %v23256_v32 = vld [vmem:[#allocation2 + $0x28] sm:$0xff] }
 0x149   : > { %20436 = vmatprep.mubr.msk.f32.mxu1 %vm515_vm2, %v4442_v34  ;;  %v23260_v34 = vld [vmem:[#allocation2 + $0x30] sm:$0xff]  ;;  %v1993_v39 = vld [vmem:[#allocation2 + $0xa7] sm:$0xff] }
 0x14a   : > { %20182 = vmatmul.mubr.msk.f32.gmra.mrb[18].mxu0 %vm515_vm2, %v23029_v3  ;;  %v23169_v3 = vld [vmem:[%s22658_s11 + $0x20] sm:$0xff] }
 0x14b   : > { %20184 = vmatprep.mubr.msk.f32.mxu0 %vm515_vm2, %v23033_v10  ;;  %v1980_v10 = vmul.f32 %v17813_v51, %v22698_v36  ;;  %v23281_v51 = vld [vmem:[%s22658_s11 + $0x70] sm:$0xff] }
 0x14c   : > { %20437 = vmatmul.mubr.msk.f32.gmra.mrb[20].mxu1 %vm515_vm2, %v4443_v40  ;;  %v1991_v40 = vld [vmem:[#allocation2 + $0x97] sm:$0xff] }
 0x14d   : > { %20439 = vmatprep.mubr.msk.f32.mxu1 %vm515_vm2, %v4444_v21  ;;  %v1992_v21 = vld [vmem:[#allocation2 + $0x9f] sm:$0xff] }
 0x14e   : > { %20185 = vmatmul.mubr.msk.f32.gmra.mrb[20].mxu0 %vm515_vm2, %v23043_v46  ;;  %v18081_v46 = vld [vmem:[%s25993_s4 + $0x10] sm:$0xf] }
 0x14f   : > { %20187 = vmatprep.mubr.msk.f32.mxu0 %vm515_vm2, %v23047_v48  ;;  %v17815_v48 = vld [vmem:[%s22658_s11 + $0x8f] sm:$0xff] }
 0x150   : > { %20440 = vmatmul.mubr.msk.f32.gmra.mrb[22].mxu1 %vm515_vm2, %v4445_v25  ;;  %v1982_v58 = vmul.f32 %v17815_v48, %v22733_v52  ;;  %v1999_v25 = vmul.f32 %v22744_v56, %v1991_v40  ;;  %v18101_v48 = vld [vmem:[%s25993_s4 + $0x14] sm:$0xf] }
 0x151   : > { %20444 = vmatprep.mubr.msk.f32.mxu1 %vm515_vm2, %v23152_v35  ;;  %v5340_v40 = vld [vmem:[#allocation2 + $0x11] sm:$0xff] }
 0x152   : > { %20188 = vmatmul.mubr.msk.f32.gmra.mrb[22].mxu0 %vm515_vm2, %v23058_v57  ;;  %v23192_v57 = vld [vmem:[%s22658_s11 + $0x30] sm:$0xff] }
 0x153   : > { %20192 = vmatprep.mubr.msk.f32.mxu0 %vm515_vm2, %v1978_v44  ;;  %v2000_v44 = vmul.f32 %v22761_v0, %v1992_v21  ;;  %v5348_v21 = vmul.f32 %v22687_v33, %v5340_v40  ;;  %v2903_v40 = vld [vmem:[#allocation2 + $0x137] sm:$0xff] }
 0x154   : > { %20445 = vmatmul.mubr.msk.f32.vlgmr.msra.gmra.mrb[16].mxu1 %vm515_vm2, %v23163_v54 }
 0x155   : > { %20457 = vmatpush3.msk.msra.mxu1 %vm1110_vm1, %v18063_v29  ;;  %20447 = vmatprep.mubr.msk.f32.mxu1 %vm515_vm2, %v23169_v3  ;;  %v1989_v29 = vld [vmem:[#allocation2 + $0x87] sm:$0xff] }
 0x156   : > { %20193 = vmatmul.mubr.msk.f32.vlgmr.msra.gmra.mrb[16].mxu0 %vm515_vm2, %v1979_v63  ;;  %20470 = vmatprep.subr.msk.mxu1 %vm1110_vm1, %v18081_v46  ;;  %v1997_v37 = vmul.f32 %v22709_v41, %v1989_v29  ;;  %v23284_v63 = vld [vmem:[#allocation2 + $0x48] sm:$0xff]  ;;  %v5329_v29 = vld [vmem:[%s22658_s11 + $0x39] sm:$0xff] }
 0x157   : > { %20205 = vmatpush3.msk.msra.mxu0 %vm1110_vm1, %v17829_v31  ;;  %20195 = vmatprep.mubr.msk.f32.mxu0 %vm515_vm2, %v1980_v10  ;;  %v1990_v31 = vld [vmem:[#allocation2 + $0x8f] sm:$0xff]  ;;  %v2001_v10 = vmul.f32 %v22765_v2, %v1993_v39 }
 0x158   : > { %20448 = vmatmul.mubr.msk.f32.gmra.mrb[18].mxu1 %vm515_vm2, %v23184_v49  ;;  %20218 = vmatprep.subr.msk.mxu0 %vm1110_vm1, %v17839_v53  ;;  %v1998_v38 = vmul.f32 %v22733_v52, %v1990_v31  ;;  %v5330_v31 = vld [vmem:[%s22658_s11 + $0x41] sm:$0xff]  ;;  %v5343_v39 = vld [vmem:[#allocation2 + $0x29] sm:$0xff] }
 0x159   : > { %20450 = vmatprep.mubr.msk.f32.mxu1 %vm515_vm2, %v23192_v57 }
 0x15a   : > { %20196 = vmatmul.mubr.msk.f32.gmra.mrb[18].mxu0 %vm515_vm2, %v1981_v55  ;;  %v23317_v55 = vld [vmem:[%s22658_s11 + $0x90] sm:$0xff] }
 0x15b   : > { %20198 = vmatprep.mubr.msk.f32.mxu0 %vm515_vm2, %v1982_v58  ;;  %v23329_v58 = vld [vmem:[%s22658_s11 + $0x98] sm:$0xff] }
 0x15c   : > { %20451 = vmatmul.mubr.msk.f32.gmra.mrb[20].mxu1 %vm515_vm2, %v23206_v1 }
 0x15d   : > { %20453 = vmatprep.mubr.msk.f32.mxu1 %vm515_vm2, %v23211_v5 }
 0x15e   : > { %20199 = vmatmul.mubr.msk.f32.gmra.mrb[20].mxu0 %vm515_vm2, %v1983_v4  ;;  %v23380_v4 = vld [vmem:[#allocation2 + $0x88] sm:$0xff] }
 0x15f   : > { %20201 = vmatprep.mubr.msk.f32.mxu0 %vm515_vm2, %v1984_v8  ;;  %v5324_v8 = vld [vmem:[%s22658_s11 + $0x11] sm:$0xff] }
 0x160   : > { %20454 = vmatmul.mubr.msk.f32.gmra.mrb[22].mxu1 %vm515_vm2, %v23221_v12 }
 0x161   : > { %20458 = vmatprep.mubr.msk.f32.mxu1 %vm515_vm2, %v23228_v17 }
 0x162   : > { %20202 = vmatmul.mubr.msk.f32.gmra.mrb[22].mxu0 %vm515_vm2, %v1985_v13  ;;  %v5332_v13 = vmul.f32 %v22687_v33, %v5324_v8 }
 0x163   : > { %20206 = vmatprep.mubr.msk.f32.mxu0 %vm515_vm2, %v1994_v15  ;;  %v23409_v15 = vld [vmem:[#allocation2 + $0xa8] sm:$0xff] }
 0x164   : > { %20459 = vmatmul.mubr.msk.f32.vlgmr.msra.gmra.mrb[16].mxu1 %vm515_vm2, %v23235_v19 }
 0x165   : > { %20471 = vmatpush3.msk.msra.mxu1 %vm1110_vm1, %v18081_v46  ;;  %20461 = vmatprep.mubr.msk.f32.mxu1 %vm515_vm2, %v23242_v23  ;;  %v23296_v46 = vld [vmem:[%s22658_s11 + $0x80] sm:$0xff] }
 0x166   : > { %20207 = vmatmul.mubr.msk.f32.vlgmr.msra.gmra.mrb[16].mxu0 %vm515_vm2, %v1995_v24  ;;  %20484 = vmatprep.subr.msk.mxu1 %vm1110_vm1, %v18091_v20 }
 0x167   : > { %20219 = vmatpush3.msk.msra.mxu0 %vm1110_vm1, %v17839_v53  ;;  %20209 = vmatprep.mubr.msk.f32.mxu0 %vm515_vm2, %v1996_v26  ;;  %v23309_v53 = vld [vmem:[%s22658_s11 + $0x88] sm:$0xff] }
 0x168   : > { %20462 = vmatmul.mubr.msk.f32.gmra.mrb[18].mxu1 %vm515_vm2, %v23256_v32  ;;  %20232 = vmatprep.subr.msk.mxu0 %vm1110_vm1, %v17849_v30 }
 0x169   : > { %20464 = vmatprep.mubr.msk.f32.mxu1 %vm515_vm2, %v23260_v34 }
 0x16a   : > { %20210 = vmatmul.mubr.msk.f32.gmra.mrb[18].mxu0 %vm515_vm2, %v1997_v37  ;;  %v5331_v37 = vld [vmem:[%s22658_s11 + $0x49] sm:$0xff] }
 0x16b   : > { %20212 = vmatprep.mubr.msk.f32.mxu0 %vm515_vm2, %v1998_v38  ;;  %v5339_v38 = vmul.f32 %v22779_v7, %v5331_v37  ;;  %v23576_v37 = vld [vmem:[#allocation2 + $0xd0] sm:$0xff] }
 0x16c   : > { %20465 = vmatmul.mubr.msk.f32.gmra.mrb[20].mxu1 %vm515_vm2, %v23269_v42 }
 0x16d   : > { %20467 = vmatprep.mubr.msk.f32.mxu1 %vm515_vm2, %v23273_v43 }
 0x16e   : > { %20213 = vmatmul.mubr.msk.f32.gmra.mrb[20].mxu0 %vm515_vm2, %v1999_v25 }
 0x16f   : > { %20215 = vmatprep.mubr.msk.f32.mxu0 %vm515_vm2, %v2000_v44 }
 0x170   : > { %20468 = vmatmul.mubr.msk.f32.gmra.mrb[22].mxu1 %vm515_vm2, %v23284_v63 }
 0x171   : > { %20472 = vmatprep.mubr.msk.f32.mxu1 %vm515_vm2, %v23281_v51 }
 0x172   : > { %20216 = vmatmul.mubr.msk.f32.gmra.mrb[22].mxu0 %vm515_vm2, %v2001_v10  ;;  %v17905_v10 = vld [vmem:[%s25994_s5 + $0x18] sm:$0xf] }
 0x173   : > { %20220 = vmatprep.mubr.msk.f32.mxu0 %vm515_vm2, %v23152_v35  ;;  %v17867_v35 = vld [vmem:[%s25993_s4 + $0x14] sm:$0xf] }
 0x174   : > { %20473 = vmatmul.mubr.msk.f32.vlgmr.msra.gmra.mrb[16].mxu1 %vm515_vm2, %v23292_v45 }
 0x175   : > { %20485 = vmatpush3.msk.msra.mxu1 %vm1110_vm1, %v18091_v20  ;;  %20475 = vmatprep.mubr.msk.f32.mxu1 %vm515_vm2, %v23296_v46  ;;  %v5328_v20 = vld [vmem:[%s22658_s11 + $0x31] sm:$0xff] }
 0x176   : > { %20221 = vmatmul.mubr.msk.f32.vlgmr.msra.gmra.mrb[16].mxu0 %vm515_vm2, %v23163_v54  ;;  %20498 = vmatprep.subr.msk.mxu1 %vm1110_vm1, %v18101_v48  ;;  %v23334_v54 = vld [vmem:[%s22658_s11 + $0xa0] sm:$0xff]  ;;  %v5336_v26 = vmul.f32 %v22755_v62, %v5328_v20 }
 0x177   : > { %20233 = vmatpush3.msk.msra.mxu0 %vm1110_vm1, %v17849_v30  ;;  %20223 = vmatprep.mubr.msk.f32.mxu0 %vm515_vm2, %v23169_v3  ;;  %v23343_v3 = vld [vmem:[%s22658_s11 + $0xa8] sm:$0xff]  ;;  %v17895_v30 = vld [vmem:[%s25993_s4 + $0x18] sm:$0xf]  ;;  %v17893_v20 = vld [vmem:[%s22658_s11 + $0x15f] sm:$0xff] }
 0x178   : > { %20476 = vmatmul.mubr.msk.f32.gmra.mrb[18].mxu1 %vm515_vm2, %v23309_v53  ;;  %20246 = vmatprep.subr.msk.mxu0 %vm1110_vm1, %v17867_v35 }
 0x179   : > { %20478 = vmatprep.mubr.msk.f32.mxu1 %vm515_vm2, %v23317_v55 }
 0x17a   : > { %20224 = vmatmul.mubr.msk.f32.gmra.mrb[18].mxu0 %vm515_vm2, %v23184_v49  ;;  %v23351_v49 = vld [vmem:[#allocation2 + $0x70] sm:$0xff] }
 0x17b   : > { %20226 = vmatprep.mubr.msk.f32.mxu0 %vm515_vm2, %v23192_v57  ;;  %v23359_v57 = vld [vmem:[#allocation2 + $0x78] sm:$0xff] }
 0x17c   : > { %20479 = vmatmul.mubr.msk.f32.gmra.mrb[20].mxu1 %vm515_vm2, %v23329_v58 }
 0x17d   : > { %20481 = vmatprep.mubr.msk.f32.mxu1 %vm515_vm2, %v23334_v54 }
 0x17e   : > { %20227 = vmatmul.mubr.msk.f32.gmra.mrb[20].mxu0 %vm515_vm2, %v23206_v1  ;;  %v17877_v1 = vld [vmem:[%s25994_s5 + $0x14] sm:$0xf] }
 0x17f   : > { %20229 = vmatprep.mubr.msk.f32.mxu0 %vm515_vm2, %v23211_v5  ;;  %v23384_v5 = vld [vmem:[#allocation2 + $0x90] sm:$0xff] }
 0x180   : > { %20482 = vmatmul.mubr.msk.f32.gmra.mrb[22].mxu1 %vm515_vm2, %v23343_v3 }
 0x181   : > { %20486 = vmatprep.mubr.msk.f32.mxu1 %vm515_vm2, %v23351_v49 }
 0x182   : > { %20230 = vmatmul.mubr.msk.f32.gmra.mrb[22].mxu0 %vm515_vm2, %v23221_v12  ;;  %v23398_v12 = vld [vmem:[#allocation2 + $0xa0] sm:$0xff] }
 0x183   : > { %20234 = vmatprep.mubr.msk.f32.mxu0 %vm515_vm2, %v23228_v17  ;;  %v5326_v17 = vld [vmem:[%s22658_s11 + $0x21] sm:$0xff] }
 0x184   : > { %20487 = vmatmul.mubr.msk.f32.vlgmr.msra.gmra.mrb[16].mxu1 %vm515_vm2, %v23359_v57  ;;  %v5334_v14 = vmul.f32 %v22726_v50, %v5326_v17  ;;  %v17923_v17 = vld [vmem:[%s25993_s4 + $0x1c] sm:$0xf] }
 0x185   : > { %20499 = vmatpush3.msk.msra.mxu1 %vm1110_vm1, %v18101_v48  ;;  %20489 = vmatprep.mubr.msk.f32.mxu1 %vm515_vm2, %v23366_v60  ;;  %v5345_v48 = vld [vmem:[#allocation2 + $0x39] sm:$0xff] }
 0x186   : > { %20235 = vmatmul.mubr.msk.f32.vlgmr.msra.gmra.mrb[16].mxu0 %vm515_vm2, %v23235_v19  ;;  %20512 = vmatprep.subr.msk.mxu1 %vm1110_vm1, %v18111_v59  ;;  %v5327_v19 = vld [vmem:[%s22658_s11 + $0x29] sm:$0xff] }
 0x187   : > { %20247 = vmatpush3.msk.msra.mxu0 %vm1110_vm1, %v17867_v35  ;;  %20237 = vmatprep.mubr.msk.f32.mxu0 %vm515_vm2, %v23242_v23  ;;  %v18129_v23 = vld [vmem:[%s25993_s4 + $0x18] sm:$0xf]  ;;  %v5335_v24 = vmul.f32 %v22752_v61, %v5327_v19  ;;  %v5353_v35 = vmul.f32 %v22785_v9, %v5345_v48 }
 0x188   : > { %20490 = vmatmul.mubr.msk.f32.gmra.mrb[18].mxu1 %vm515_vm2, %v23380_v4  ;;  %20260 = vmatprep.subr.msk.mxu0 %vm1110_vm1, %v17877_v1  ;;  %v17892_v19 = vld [vmem:[%s22658_s11 + $0x157] sm:$0xff] }
 0x189   : > { %20492 = vmatprep.mubr.msk.f32.mxu1 %vm515_vm2, %v23384_v5 }
 0x18a   : > { %20238 = vmatmul.mubr.msk.f32.gmra.mrb[18].mxu0 %vm515_vm2, %v23256_v32  ;;  %v5337_v32 = vmul.f32 %v22785_v9, %v5329_v29  ;;  %v2900_v29 = vmul.f32 %v17893_v20, %v22761_v0  ;;  %v23714_v20 = vld [vmem:[#allocation2 + $0x140] sm:$0xff] }
 0x18b   : > { %20240 = vmatprep.mubr.msk.f32.mxu0 %vm515_vm2, %v23260_v34  ;;  %v5338_v34 = vmul.f32 %v22776_v6, %v5330_v31  ;;  %v23569_v31 = vld [vmem:[%s22658_s11 + $0x108] sm:$0xff] }
 0x18c   : > { %20493 = vmatmul.mubr.msk.f32.gmra.mrb[20].mxu1 %vm515_vm2, %v23394_v11 }
 0x18d   : > { %20495 = vmatprep.mubr.msk.f32.mxu1 %vm515_vm2, %v23398_v12 }
 0x18e   : > { %20241 = vmatmul.mubr.msk.f32.gmra.mrb[20].mxu0 %vm515_vm2, %v23269_v42  ;;  %v5341_v42 = vld [vmem:[#allocation2 + $0x19] sm:$0xff] }
 0x18f   : > { %20243 = vmatprep.mubr.msk.f32.mxu0 %vm515_vm2, %v23273_v43  ;;  %v5342_v43 = vld [vmem:[#allocation2 + $0x21] sm:$0xff]  ;;  %v5349_v25 = vmul.f32 %v22719_v47, %v5341_v42  ;;  %v23583_v42 = vld [vmem:[#allocation2 + $0xd8] sm:$0xff] }
 0x190   : > { %20496 = vmatmul.mubr.msk.f32.gmra.mrb[22].mxu1 %vm515_vm2, %v23409_v15  ;;  %v5350_v44 = vmul.f32 %v22726_v50, %v5342_v43  ;;  %v18167_v43 = vld [vmem:[%s25994_s5 + $0x1c] sm:$0xf] }
 0x191   : > { %20500 = vmatprep.mubr.msk.f32.mxu1 %vm515_vm2, %v5332_v13  ;;  %v17891_v13 = vld [vmem:[%s22658_s11 + $0x14f] sm:$0xff] }
 0x192   : > { %20244 = vmatmul.mubr.msk.f32.gmra.mrb[22].mxu0 %vm515_vm2, %v23284_v63  ;;  %v5344_v63 = vld [vmem:[#allocation2 + $0x31] sm:$0xff] }
 0x193   : > { %20248 = vmatprep.mubr.msk.f32.mxu0 %vm515_vm2, %v23281_v51  ;;  %v18139_v51 = vld [vmem:[%s25994_s5 + $0x18] sm:$0xf] }
 0x194   : > { %20501 = vmatmul.mubr.msk.f32.vlgmr.msra.gmra.mrb[16].mxu1 %vm515_vm2, %v5333_v18  ;;  %v23540_v18 = vld [vmem:[%s22658_s11 + $0xf0] sm:$0xff] }
 0x195   : > { %20513 = vmatpush3.msk.msra.mxu1 %vm1110_vm1, %v18111_v59  ;;  %20503 = vmatprep.mubr.msk.f32.mxu1 %vm515_vm2, %v5334_v14  ;;  %v17888_v59 = vld [vmem:[%s22658_s11 + $0x137] sm:$0xff]  ;;  %v2898_v14 = vmul.f32 %v17891_v13, %v22733_v52  ;;  %v18185_v13 = vld [vmem:[%s25993_s4 + $0x20] sm:$0xf] }
 0x196   : > { %20249 = vmatmul.mubr.msk.f32.vlgmr.msra.gmra.mrb[16].mxu0 %vm515_vm2, %v23292_v45  ;;  %20526 = vmatprep.subr.msk.mxu1 %vm1110_vm1, %v18129_v23  ;;  %v5351_v45 = vmul.f32 %v22752_v61, %v5343_v39 }
 0x197   : > { %20261 = vmatpush3.msk.msra.mxu0 %vm1110_vm1, %v17877_v1  ;;  %20251 = vmatprep.mubr.msk.f32.mxu0 %vm515_vm2, %v23296_v46  ;;  %v5352_v46 = vmul.f32 %v22755_v62, %v5344_v63  ;;  %v23511_v1 = vld [vmem:[%s22658_s11 + $0xd8] sm:$0xff] }
 0x198   : > { %20504 = vmatmul.mubr.msk.f32.gmra.mrb[18].mxu1 %vm515_vm2, %v5335_v24  ;;  %20274 = vmatprep.subr.msk.mxu0 %vm1110_vm1, %v17895_v30  ;;  %v2899_v24 = vmul.f32 %v17892_v19, %v22744_v56  ;;  %v17933_v63 = vld [vmem:[%s25994_s5 + $0x1c] sm:$0xf]  ;;  %v18195_v19 = vld [vmem:[%s25994_s5 + $0x20] sm:$0xf] }
 0x199   : > { %20506 = vmatprep.mubr.msk.f32.mxu1 %vm515_vm2, %v5336_v26  ;;  %v23559_v26 = vld [vmem:[%s22658_s11 + $0x100] sm:$0xff] }
 0x19a   : > { %20252 = vmatmul.mubr.msk.f32.gmra.mrb[18].mxu0 %vm515_vm2, %v23309_v53  ;;  %v5346_v53 = vld [vmem:[#allocation2 + $0x41] sm:$0xff] }
 0x19b   : > { %20254 = vmatprep.mubr.msk.f32.mxu0 %vm515_vm2, %v23317_v55  ;;  %v5354_v55 = vmul.f32 %v22776_v6, %v5346_v53 }
 0x19c   : > { %20507 = vmatmul.mubr.msk.f32.gmra.mrb[20].mxu1 %vm515_vm2, %v5337_v32 }
 0x19d   : > { %20509 = vmatprep.mubr.msk.f32.mxu1 %vm515_vm2, %v5338_v34  ;;  %v2902_v34 = vld [vmem:[#allocation2 + $0x12f] sm:$0xff] }
 0x19e   : > { %20255 = vmatmul.mubr.msk.f32.gmra.mrb[20].mxu0 %vm515_vm2, %v23329_v58  ;;  %v5347_v58 = vld [vmem:[#allocation2 + $0x49] sm:$0xff] }
 0x19f   : > { %20257 = vmatprep.mubr.msk.f32.mxu0 %vm515_vm2, %v23334_v54  ;;  %v17887_v54 = vld [vmem:[%s22658_s11 + $0x12f] sm:$0xff] }
 0x1a0   : > { %20510 = vmatmul.mubr.msk.f32.gmra.mrb[22].mxu1 %vm515_vm2, %v5339_v38  ;;  %v2910_v38 = vmul.f32 %v22666_v22, %v2902_v34  ;;  %v18178_v34 = vld [vmem:[%s22658_s11 + $0xd9] sm:$0xff] }
 0x1a1   : > { %20514 = vmatprep.mubr.msk.f32.mxu1 %vm515_vm2, %v5348_v21  ;;  %v2904_v21 = vld [vmem:[#allocation2 + $0x13f] sm:$0xff] }
 0x1a2   : > { %20258 = vmatmul.mubr.msk.f32.gmra.mrb[22].mxu0 %vm515_vm2, %v23343_v3  ;;  %v5355_v3 = vmul.f32 %v22779_v7, %v5347_v58  ;;  %v2912_v39 = vmul.f32 %v22698_v36, %v2904_v21  ;;  %v23617_v58 = vld [vmem:[#allocation2 + $0xf8] sm:$0xff] }
 0x1a3   : > { %20262 = vmatprep.mubr.msk.f32.mxu0 %vm515_vm2, %v23351_v49  ;;  %v23500_v49 = vld [vmem:[%s22658_s11 + $0xd0] sm:$0xff] }
 0x1a4   : > { %20515 = vmatmul.mubr.msk.f32.vlgmr.msra.gmra.mrb[16].mxu1 %vm515_vm2, %v5349_v25  ;;  %v23590_v25 = vld [vmem:[#allocation2 + $0xe0] sm:$0xff] }
 0x1a5   : > { %20527 = vmatpush3.msk.msra.mxu1 %vm1110_vm1, %v18129_v23  ;;  %20517 = vmatprep.mubr.msk.f32.mxu1 %vm515_vm2, %v5350_v44  ;;  %v23554_v23 = vld [vmem:[%s22658_s11 + $0xf8] sm:$0xff]  ;;  %v2911_v44 = vmul.f32 %v22677_v27, %v2903_v40  ;;  %v6243_v40 = vmul.f32 %v18178_v34, %v22719_v47 }
 0x1a6   : > { %20263 = vmatmul.mubr.msk.f32.vlgmr.msra.gmra.mrb[16].mxu0 %vm515_vm2, %v23359_v57  ;;  %20540 = vmatprep.subr.msk.mxu1 %vm1110_vm1, %v18139_v51  ;;  %v2894_v57 = vmul.f32 %v17887_v54, %v22666_v22  ;;  %v23621_v54 = vld [vmem:[#allocation2 + $0x100] sm:$0xff] }
 0x1a7   : > { %20275 = vmatpush3.msk.msra.mxu0 %vm1110_vm1, %v17895_v30  ;;  %20265 = vmatprep.mubr.msk.f32.mxu0 %vm515_vm2, %v23366_v60  ;;  %v17889_v60 = vld [vmem:[%s22658_s11 + $0x13f] sm:$0xff]  ;;  %v17894_v30 = vld [vmem:[%s22658_s11 + $0x167] sm:$0xff] }
 0x1a8   : > { %20518 = vmatmul.mubr.msk.f32.gmra.mrb[18].mxu1 %vm515_vm2, %v5351_v45  ;;  %20288 = vmatprep.subr.msk.mxu0 %vm1110_vm1, %v17905_v10  ;;  %v2896_v8 = vmul.f32 %v17889_v60, %v22698_v36  ;;  %v2901_v32 = vmul.f32 %v17894_v30, %v22765_v2  ;;  %v23604_v45 = vld [vmem:[#allocation2 + $0xe8] sm:$0xff]  ;;  %v23629_v60 = vld [vmem:[%s22658_s11 + $0x130] sm:$0xff]  ;;  %v23742_v30 = vld [vmem:[#allocation2 + $0x158] sm:$0xff] }
 0x1a9   : > { %20520 = vmatprep.mubr.msk.f32.mxu1 %vm515_vm2, %v5352_v46  ;;  %v23608_v46 = vld [vmem:[#allocation2 + $0xf0] sm:$0xff] }
 0x1aa   : > { %20266 = vmatmul.mubr.msk.f32.gmra.mrb[18].mxu0 %vm515_vm2, %v23380_v4  ;;  %v2895_v4 = vmul.f32 %v17888_v59, %v22677_v27  ;;  %v2909_v59 = vld [vmem:[#allocation2 + $0x167] sm:$0xff] }
 0x1ab   : > { %20268 = vmatprep.mubr.msk.f32.mxu0 %vm515_vm2, %v23384_v5  ;;  %v23517_v5 = vld [vmem:[%s22658_s11 + $0xe0] sm:$0xff] }
 0x1ac   : > { %20521 = vmatmul.mubr.msk.f32.gmra.mrb[20].mxu1 %vm515_vm2, %v5353_v35  ;;  %v2907_v35 = vld [vmem:[#allocation2 + $0x157] sm:$0xff] }
 0x1ad   : > { %20523 = vmatprep.mubr.msk.f32.mxu1 %vm515_vm2, %v5354_v55  ;;  %v2908_v55 = vld [vmem:[#allocation2 + $0x15f] sm:$0xff] }
 0x1ae   : > { %20269 = vmatmul.mubr.msk.f32.gmra.mrb[20].mxu0 %vm515_vm2, %v23394_v11  ;;  %v17890_v11 = vld [vmem:[%s22658_s11 + $0x147] sm:$0xff] }
 0x1af   : > { %20271 = vmatprep.mubr.msk.f32.mxu0 %vm515_vm2, %v23398_v12  ;;  %v18157_v12 = vld [vmem:[%s25993_s4 + $0x1c] sm:$0xf] }
 0x1b0   : > { %20524 = vmatmul.mubr.msk.f32.gmra.mrb[22].mxu1 %vm515_vm2, %v5355_v3  ;;  %v2915_v3 = vmul.f32 %v22744_v56, %v2907_v35  ;;  %v6250_v35 = vld [vmem:[#allocation2 + $0xd1] sm:$0xff] }
 0x1b1   : > { %20528 = vmatprep.mubr.msk.f32.mxu1 %vm515_vm2, %v23500_v49 }
 0x1b2   : > { %20272 = vmatmul.mubr.msk.f32.gmra.mrb[22].mxu0 %vm515_vm2, %v23409_v15  ;;  %v2897_v15 = vmul.f32 %v17890_v11, %v22709_v41  ;;  %v23640_v11 = vld [vmem:[%s22658_s11 + $0x138] sm:$0xff] }
 0x1b3   : > { %20276 = vmatprep.mubr.msk.f32.mxu0 %vm515_vm2, %v2894_v57  ;;  %v2916_v57 = vmul.f32 %v22761_v0, %v2908_v55  ;;  %v6258_v55 = vmul.f32 %v22687_v33, %v6250_v35  ;;  %v23935_v35 = vld [vmem:[#allocation2 + $0x18] sm:$0xff] }
 0x1b4   : > { %20529 = vmatmul.mubr.msk.f32.vlgmr.msra.gmra.mrb[16].mxu1 %vm515_vm2, %v23511_v1 }
 0x1b5   : > { %20541 = vmatpush3.msk.msra.mxu1 %vm1110_vm1, %v18139_v51  ;;  %20531 = vmatprep.mubr.msk.f32.mxu1 %vm515_vm2, %v23517_v5  ;;  %v2905_v51 = vld [vmem:[#allocation2 + $0x147] sm:$0xff] }
 0x1b6   : > { %20277 = vmatmul.mubr.msk.f32.vlgmr.msra.gmra.mrb[16].mxu0 %vm515_vm2, %v2895_v4  ;;  %20554 = vmatprep.subr.msk.mxu1 %vm1110_vm1, %v18157_v12  ;;  %v2913_v48 = vmul.f32 %v22709_v41, %v2905_v51  ;;  %v23632_v4 = vld [vmem:[#allocation2 + $0x108] sm:$0xff]  ;;  %v18182_v51 = vld [vmem:[%s22658_s11 + $0xf9] sm:$0xff] }
 0x1b7   : > { %20289 = vmatpush3.msk.msra.mxu0 %vm1110_vm1, %v17905_v10  ;;  %20279 = vmatprep.mubr.msk.f32.mxu0 %vm515_vm2, %v2896_v8  ;;  %v2906_v10 = vld [vmem:[#allocation2 + $0x14f] sm:$0xff]  ;;  %v2917_v8 = vmul.f32 %v22765_v2, %v2909_v59  ;;  %v9467_v59 = vld [vmem:[%s25994_s5] sm:$0xf] }
 0x1b8   : > { %20532 = vmatmul.mubr.msk.f32.gmra.mrb[18].mxu1 %vm515_vm2, %v23532_v16  ;;  %20302 = vmatprep.subr.msk.mxu0 %vm1110_vm1, %v17923_v17  ;;  %v2914_v53 = vmul.f32 %v22733_v52, %v2906_v10  ;;  %v18183_v10 = vld [vmem:[%s22658_s11 + $0x101] sm:$0xff] }
 0x1b9   : > { %20534 = vmatprep.mubr.msk.f32.mxu1 %vm515_vm2, %v23540_v18 }
 0x1ba   : > { %20280 = vmatmul.mubr.msk.f32.gmra.mrb[18].mxu0 %vm515_vm2, %v2897_v15  ;;  %v23665_v15 = vld [vmem:[%s22658_s11 + $0x150] sm:$0xff] }
 0x1bb   : > { %20282 = vmatprep.mubr.msk.f32.mxu0 %vm515_vm2, %v2898_v14  ;;  %v23677_v14 = vld [vmem:[%s22658_s11 + $0x158] sm:$0xff] }
 0x1bc   : > { %20535 = vmatmul.mubr.msk.f32.gmra.mrb[20].mxu1 %vm515_vm2, %v23554_v23 }
 0x1bd   : > { %20537 = vmatprep.mubr.msk.f32.mxu1 %vm515_vm2, %v23559_v26 }
 0x1be   : > { %20283 = vmatmul.mubr.msk.f32.gmra.mrb[20].mxu0 %vm515_vm2, %v2899_v24  ;;  %v23728_v24 = vld [vmem:[#allocation2 + $0x148] sm:$0xff] }
 0x1bf   : > { %20285 = vmatprep.mubr.msk.f32.mxu0 %vm515_vm2, %v2900_v29  ;;  %v18177_v29 = vld [vmem:[%s22658_s11 + $0xd1] sm:$0xff] }
 0x1c0   : > { %20538 = vmatmul.mubr.msk.f32.gmra.mrb[22].mxu1 %vm515_vm2, %v23569_v31 }
 0x1c1   : > { %20542 = vmatprep.mubr.msk.f32.mxu1 %vm515_vm2, %v23576_v37 }
 0x1c2   : > { %20286 = vmatmul.mubr.msk.f32.gmra.mrb[22].mxu0 %vm515_vm2, %v2901_v32  ;;  %v6242_v32 = vmul.f32 %v18177_v29, %v22687_v33  ;;  %v18465_v29 = vld [vmem:[%s25993_s4 + $0x4] sm:$0xf] }
 0x1c3   : > { %20290 = vmatprep.mubr.msk.f32.mxu0 %vm515_vm2, %v2910_v38  ;;  %v23757_v38 = vld [vmem:[#allocation2 + $0x168] sm:$0xff] }
 0x1c4   : > { %20543 = vmatmul.mubr.msk.f32.vlgmr.msra.gmra.mrb[16].mxu1 %vm515_vm2, %v23583_v42 }
 0x1c5   : > { %20555 = vmatpush3.msk.msra.mxu1 %vm1110_vm1, %v18157_v12  ;;  %20545 = vmatprep.mubr.msk.f32.mxu1 %vm515_vm2, %v23590_v25  ;;  %v23644_v12 = vld [vmem:[%s22658_s11 + $0x140] sm:$0xff] }
 0x1c6   : > { %20291 = vmatmul.mubr.msk.f32.vlgmr.msra.gmra.mrb[16].mxu0 %vm515_vm2, %v2911_v44  ;;  %20568 = vmatprep.subr.msk.mxu1 %vm1110_vm1, %v18167_v43 }
 0x1c7   : > { %20303 = vmatpush3.msk.msra.mxu0 %vm1110_vm1, %v17923_v17  ;;  %20293 = vmatprep.mubr.msk.f32.mxu0 %vm515_vm2, %v2912_v39  ;;  %v23657_v17 = vld [vmem:[%s22658_s11 + $0x148] sm:$0xff] }
 0x1c8   : > { %20546 = vmatmul.mubr.msk.f32.gmra.mrb[18].mxu1 %vm515_vm2, %v23604_v45  ;;  %20316 = vmatprep.subr.msk.mxu0 %vm1110_vm1, %v17933_v63 }
 0x1c9   : > { %20548 = vmatprep.mubr.msk.f32.mxu1 %vm515_vm2, %v23608_v46 }
 0x1ca   : > { %20294 = vmatmul.mubr.msk.f32.gmra.mrb[18].mxu0 %vm515_vm2, %v2913_v48  ;;  %v18184_v48 = vld [vmem:[%s22658_s11 + $0x109] sm:$0xff] }
 0x1cb   : > { %20296 = vmatprep.mubr.msk.f32.mxu0 %vm515_vm2, %v2914_v53  ;;  %v6249_v53 = vmul.f32 %v18184_v48, %v22779_v7  ;;  %v6581_v48 = vld [vmem:[#allocation2 + $0x77] sm:$0xff] }
 0x1cc   : > { %20549 = vmatmul.mubr.msk.f32.gmra.mrb[20].mxu1 %vm515_vm2, %v23617_v58 }
 0x1cd   : > { %20551 = vmatprep.mubr.msk.f32.mxu1 %vm515_vm2, %v23621_v54 }
 0x1ce   : > { %20297 = vmatmul.mubr.msk.f32.gmra.mrb[20].mxu0 %vm515_vm2, %v2915_v3  ;;  %v6260_v3 = vmul.f32 %v22726_v50, %v23116_v28 }
 0x1cf   : > { %20299 = vmatprep.mubr.msk.f32.mxu0 %vm515_vm2, %v2916_v57  ;;  %v6253_v57 = vld [vmem:[#allocation2 + $0xe9] sm:$0xff] }
 0x1d0   : > { %20552 = vmatmul.mubr.msk.f32.gmra.mrb[22].mxu1 %vm515_vm2, %v23632_v4  ;;  %v6261_v28 = vmul.f32 %v22752_v61, %v6253_v57  ;;  %v6583_v57 = vld [vmem:[#allocation2 + $0x87] sm:$0xff] }
 0x1d1   : > { %20556 = vmatprep.mubr.msk.f32.mxu1 %vm515_vm2, %v23629_v60 }
 0x1d2   : > { %20300 = vmatmul.mubr.msk.f32.gmra.mrb[22].mxu0 %vm515_vm2, %v2917_v8 }
 0x1d3   : > { %20304 = vmatprep.mubr.msk.f32.mxu0 %vm515_vm2, %v23500_v49  ;;  %v17951_v49 = vld [vmem:[%s25993_s4 + $0x20] sm:$0xf] }
 0x1d4   : > { %20557 = vmatmul.mubr.msk.f32.vlgmr.msra.gmra.mrb[16].mxu1 %vm515_vm2, %v23640_v11 }
 0x1d5   : > { %20569 = vmatpush3.msk.msra.mxu1 %vm1110_vm1, %v18167_v43  ;;  %20559 = vmatprep.mubr.msk.f32.mxu1 %vm515_vm2, %v23644_v12  ;;  %v18181_v43 = vld [vmem:[%s22658_s11 + $0xf1] sm:$0xff] }
 0x1d6   : > { %20305 = vmatmul.mubr.msk.f32.vlgmr.msra.gmra.mrb[16].mxu0 %vm515_vm2, %v23511_v1  ;;  %20582 = vmatprep.subr.msk.mxu1 %vm1110_vm1, %v18185_v13  ;;  %v23682_v1 = vld [vmem:[%s22658_s11 + $0x160] sm:$0xff]  ;;  %v6246_v39 = vmul.f32 %v18181_v43, %v22755_v62 }
 0x1d7   : > { %20317 = vmatpush3.msk.msra.mxu0 %vm1110_vm1, %v17933_v63  ;;  %20307 = vmatprep.mubr.msk.f32.mxu0 %vm515_vm2, %v23517_v5  ;;  %v23691_v5 = vld [vmem:[%s22658_s11 + $0x168] sm:$0xff]  ;;  %v6596_v63 = vld [vmem:[%s25993_s4] sm:$0xf] }
 0x1d8   : > { %20560 = vmatmul.mubr.msk.f32.gmra.mrb[18].mxu1 %vm515_vm2, %v23657_v17  ;;  %20330 = vmatprep.subr.msk.mxu0 %vm1110_vm1, %v17951_v49 }
 0x1d9   : > { %20562 = vmatprep.mubr.msk.f32.mxu1 %vm515_vm2, %v23665_v15 }
 0x1da   : > { %20308 = vmatmul.mubr.msk.f32.gmra.mrb[18].mxu0 %vm515_vm2, %v23532_v16  ;;  %v23699_v16 = vld [vmem:[#allocation2 + $0x130] sm:$0xff] }
 0x1db   : > { %20310 = vmatprep.mubr.msk.f32.mxu0 %vm515_vm2, %v23540_v18  ;;  %v23707_v18 = vld [vmem:[#allocation2 + $0x138] sm:$0xff] }
 0x1dc   : > { %20563 = vmatmul.mubr.msk.f32.gmra.mrb[20].mxu1 %vm515_vm2, %v23677_v14 }
 0x1dd   : > { %20565 = vmatprep.mubr.msk.f32.mxu1 %vm515_vm2, %v23682_v1 }
 0x1de   : > { %20311 = vmatmul.mubr.msk.f32.gmra.mrb[20].mxu0 %vm515_vm2, %v23554_v23  ;;  %v17961_v23 = vld [vmem:[%s25994_s5 + $0x20] sm:$0xf] }
 0x1df   : > { %20313 = vmatprep.mubr.msk.f32.mxu0 %vm515_vm2, %v23559_v26  ;;  %v23732_v26 = vld [vmem:[#allocation2 + $0x150] sm:$0xff] }
 0x1e0   : > { %20566 = vmatmul.mubr.msk.f32.gmra.mrb[22].mxu1 %vm515_vm2, %v23691_v5 }
 0x1e1   : > { %20570 = vmatprep.mubr.msk.f32.mxu1 %vm515_vm2, %v23699_v16 }
 0x1e2   : > { %20314 = vmatmul.mubr.msk.f32.gmra.mrb[22].mxu0 %vm515_vm2, %v23569_v31  ;;  %v23746_v31 = vld [vmem:[#allocation2 + $0x160] sm:$0xff] }
 0x1e3   : > { %20318 = vmatprep.mubr.msk.f32.mxu0 %vm515_vm2, %v23576_v37  ;;  %v18179_v37 = vld [vmem:[%s22658_s11 + $0xe1] sm:$0xff] }
 0x1e4   : > { %20571 = vmatmul.mubr.msk.f32.vlgmr.msra.gmra.mrb[16].mxu1 %vm515_vm2, %v23707_v18  ;;  %v6244_v21 = vmul.f32 %v18179_v37, %v22726_v50  ;;  %v23892_v37 = vld [vmem:[%s22658_s11 + $0x30] sm:$0xff] }
 0x1e5   : > { %20583 = vmatpush3.msk.msra.mxu1 %vm1110_vm1, %v18185_v13  ;;  %20573 = vmatprep.mubr.msk.f32.mxu1 %vm515_vm2, %v23714_v20 }
 0x1e6   : > { %20319 = vmatmul.mubr.msk.f32.vlgmr.msra.gmra.mrb[16].mxu0 %vm515_vm2, %v23583_v42  ;;  %20596 = vmatprep.subr.msk.mxu1 %vm1110_vm1, %v18195_v19  ;;  %v18180_v42 = vld [vmem:[%s22658_s11 + $0xe9] sm:$0xff] }
 0x1e7   : > { %20331 = vmatpush3.msk.msra.mxu0 %vm1110_vm1, %v17951_v49  ;;  %20321 = vmatprep.mubr.msk.f32.mxu0 %vm515_vm2, %v23590_v25  ;;  %v9326_v25 = vld [vmem:[%s25993_s4] sm:$0xf]  ;;  %v6245_v44 = vmul.f32 %v18180_v42, %v22752_v61  ;;  %v6257_v49 = vld [vmem:[#allocation2 + $0x109] sm:$0xff]  ;;  %v23906_v42 = vld [vmem:[%s22658_s11 + $0x38] sm:$0xff] }
 0x1e8   : > { %20574 = vmatmul.mubr.msk.f32.gmra.mrb[18].mxu1 %vm515_vm2, %v23728_v24  ;;  %20344 = vmatprep.subr.msk.mxu0 %vm1110_vm1, %v17961_v23 }
 0x1e9   : > { %20576 = vmatprep.mubr.msk.f32.mxu1 %vm515_vm2, %v23732_v26 }
 0x1ea   : > { %20322 = vmatmul.mubr.msk.f32.gmra.mrb[18].mxu0 %vm515_vm2, %v23604_v45  ;;  %v6247_v45 = vmul.f32 %v18182_v51, %v22785_v9  ;;  %v23921_v51 = vld [vmem:[%s22658_s11 + $0x48] sm:$0xff] }
 0x1eb   : > { %20324 = vmatprep.mubr.msk.f32.mxu0 %vm515_vm2, %v23608_v46  ;;  %v6248_v46 = vmul.f32 %v18183_v10, %v22776_v6  ;;  %v6580_v10 = vld [vmem:[#allocation2 + $0x6f] sm:$0xff] }
 0x1ec   : > { %20577 = vmatmul.mubr.msk.f32.gmra.mrb[20].mxu1 %vm515_vm2, %v23742_v30 }
 0x1ed   : > { %20579 = vmatprep.mubr.msk.f32.mxu1 %vm515_vm2, %v23746_v31 }
 0x1ee   : > { %20325 = vmatmul.mubr.msk.f32.gmra.mrb[20].mxu0 %vm515_vm2, %v23617_v58  ;;  %v6251_v58 = vld [vmem:[#allocation2 + $0xd9] sm:$0xff] }
 0x1ef   : > { %20327 = vmatprep.mubr.msk.f32.mxu0 %vm515_vm2, %v23621_v54  ;;  %v6259_v54 = vmul.f32 %v22719_v47, %v6251_v58  ;;  %v23942_v58 = vld [vmem:[#allocation2 + $0x20] sm:$0xff] }
 0x1f0   : > { %20580 = vmatmul.mubr.msk.f32.gmra.mrb[22].mxu1 %vm515_vm2, %v23757_v38 }
 0x1f1   : > { %20584 = vmatprep.mubr.msk.f32.mxu1 %vm515_vm2, %v6242_v32  ;;  %v18231_v32 = vld [vmem:[%s25993_s4 + $0x4] sm:$0xf] }
 0x1f2   : > { %20328 = vmatmul.mubr.msk.f32.gmra.mrb[22].mxu0 %vm515_vm2, %v23632_v4  ;;  %v6737_v4 = vld [vmem:[%s25994_s5] sm:$0xf] }
 0x1f3   : > { %20332 = vmatprep.mubr.msk.f32.mxu0 %vm515_vm2, %v23629_v60  ;;  %v6254_v60 = vld [vmem:[#allocation2 + $0xf1] sm:$0xff] }
 0x1f4   : > { %20585 = vmatmul.mubr.msk.f32.vlgmr.msra.gmra.mrb[16].mxu1 %vm515_vm2, %v6243_v40  ;;  %v6262_v8 = vmul.f32 %v22755_v62, %v6254_v60  ;;  %v18210_v40 = vld [vmem:[%s22658_s11 + $0x97] sm:$0xff]  ;;  %v6584_v60 = vld [vmem:[#allocation2 + $0x8f] sm:$0xff] }
 0x1f5   : > { %20597 = vmatpush3.msk.msra.mxu1 %vm1110_vm1, %v18195_v19  ;;  %20587 = vmatprep.mubr.msk.f32.mxu1 %vm515_vm2, %v6244_v21  ;;  %v23862_v19 = vld [vmem:[%s22658_s11 + $0x18] sm:$0xff]  ;;  %v6577_v43 = vmul.f32 %v18210_v40, %v22744_v56  ;;  %v24043_v40 = vld [vmem:[%s22658_s11 + $0xa8] sm:$0xff] }
 0x1f6   : > { %20333 = vmatmul.mubr.msk.f32.vlgmr.msra.gmra.mrb[16].mxu0 %vm515_vm2, %v23640_v11  ;;  %20862 = vmatprep.subr.msk.mxu1 %vm1110_vm1, %v9326_v25  ;;  %v6255_v11 = vld [vmem:[#allocation2 + $0xf9] sm:$0xff] }
 0x1f7   : > { %20345 = vmatpush3.msk.msra.mxu0 %vm1110_vm1, %v17961_v23  ;;  %20335 = vmatprep.mubr.msk.f32.mxu0 %vm515_vm2, %v23644_v12  ;;  %v6256_v12 = vld [vmem:[#allocation2 + $0x101] sm:$0xff]  ;;  %v6263_v13 = vmul.f32 %v22785_v9, %v6255_v11  ;;  %v6592_v11 = vmul.f32 %v22733_v52, %v6584_v60  ;;  %v18287_v60 = vld [vmem:[%s25993_s4 + $0xc] sm:$0xf] }
 0x1f8   : > { %20588 = vmatmul.mubr.msk.f32.gmra.mrb[18].mxu1 %vm515_vm2, %v6245_v44  ;;  %20610 = vmatprep.subr.msk.mxu0 %vm1110_vm1, %v6596_v63  ;;  %v23868_v23 = vld [vmem:[%s22658_s11 + $0x20] sm:$0xff] }
 0x1f9   : > { %20590 = vmatprep.mubr.msk.f32.mxu1 %vm515_vm2, %v6246_v39  ;;  %v18211_v21 = vld [vmem:[%s22658_s11 + $0x9f] sm:$0xff]  ;;  %v18212_v39 = vld [vmem:[%s22658_s11 + $0xa7] sm:$0xff] }
 0x1fa   : > { %20336 = vmatmul.mubr.msk.f32.gmra.mrb[18].mxu0 %vm515_vm2, %v23657_v17  ;;  %v6264_v17 = vmul.f32 %v22776_v6, %v6256_v12  ;;  %v6578_v44 = vmul.f32 %v18211_v21, %v22761_v0  ;;  %v6585_v12 = vld [vmem:[#allocation2 + $0x97] sm:$0xff]  ;;  %v18495_v21 = vld [vmem:[%s25994_s5 + $0x8] sm:$0xf] }
 0x1fb   : > { %20338 = vmatprep.mubr.msk.f32.mxu0 %vm515_vm2, %v23665_v15  ;;  %v18205_v15 = vld [vmem:[%s22658_s11 + $0x6f] sm:$0xff] }
 0x1fc   : > { %20591 = vmatmul.mubr.msk.f32.gmra.mrb[20].mxu1 %vm515_vm2, %v6247_v45  ;;  %v23928_v45 = vld [vmem:[#allocation2 + $0x10] sm:$0xff] }
 0x1fd   : > { %20593 = vmatprep.mubr.msk.f32.mxu1 %vm515_vm2, %v6248_v46  ;;  %v6588_v46 = vmul.f32 %v22666_v22, %v6580_v10 }
 0x1fe   : > { %20339 = vmatmul.mubr.msk.f32.gmra.mrb[20].mxu0 %vm515_vm2, %v23677_v14  ;;  %v6265_v14 = vmul.f32 %v22779_v7, %v6257_v49  ;;  %v23973_v49 = vld [vmem:[#allocation2 + $0x40] sm:$0xff] }
 0x1ff   : > { %20341 = vmatprep.mubr.msk.f32.mxu0 %vm515_vm2, %v23682_v1  ;;  %v23849_v1 = vld [vmem:[%s22658_s11 + $0x10] sm:$0xff] }
 0x200   : > { %20594 = vmatmul.mubr.msk.f32.gmra.mrb[22].mxu1 %vm515_vm2, %v6249_v53  ;;  %v6582_v53 = vld [vmem:[#allocation2 + $0x7f] sm:$0xff] }
 0x201   : > { %20598 = vmatprep.mubr.msk.f32.mxu1 %vm515_vm2, %v6258_v55  ;;  %v18475_v55 = vld [vmem:[%s25994_s5 + $0x4] sm:$0xf] }
 0x202   : > { %20342 = vmatmul.mubr.msk.f32.gmra.mrb[22].mxu0 %vm515_vm2, %v23691_v5  ;;  %v6572_v5 = vmul.f32 %v18205_v15, %v22666_v22  ;;  %v6593_v15 = vmul.f32 %v22744_v56, %v6585_v12 }
 0x203   : > { %20346 = vmatprep.mubr.msk.f32.mxu0 %vm515_vm2, %v23699_v16  ;;  %v18206_v16 = vld [vmem:[%s22658_s11 + $0x77] sm:$0xff] }
 0x204   : > { %20599 = vmatmul.mubr.msk.f32.vlgmr.msra.gmra.mrb[16].mxu1 %vm515_vm2, %v6259_v54  ;;  %v6589_v54 = vmul.f32 %v22677_v27, %v6581_v48  ;;  %v24109_v48 = vld [vmem:[#allocation2 + $0xa8] sm:$0xff] }
 0x205   : > { %20863 = vmatpush3.msk.msra.mxu1 %vm1110_vm1, %v9326_v25  ;;  %20601 = vmatprep.mubr.msk.f32.mxu1 %vm515_vm2, %v6260_v3  ;;  %v23911_v25 = vld [vmem:[%s22658_s11 + $0x40] sm:$0xff]  ;;  %v6590_v3 = vmul.f32 %v22698_v36, %v6582_v53 }
 0x206   : > { %20347 = vmatmul.mubr.msk.f32.vlgmr.msra.gmra.mrb[16].mxu0 %vm515_vm2, %v23707_v18  ;;  %20876 = vmatprep.subr.msk.mxu1 %vm1110_vm1, %v9467_v59  ;;  %v23857_v18 = vld [vmem:[%s22658_s11 + $0x7f] sm:$0xff] }
 0x207   : > { %20611 = vmatpush3.msk.msra.mxu0 %vm1110_vm1, %v6596_v63  ;;  %20349 = vmatprep.mubr.msk.f32.mxu0 %vm515_vm2, %v23714_v20  ;;  %v6573_v20 = vmul.f32 %v18206_v16, %v22677_v27  ;;  %v6579_v63 = vmul.f32 %v18212_v39, %v22765_v2  ;;  %v23981_v16 = vld [vmem:[%s22658_s11 + $0x70] sm:$0xff] }
 0x208   : > { %20602 = vmatmul.mubr.msk.f32.gmra.mrb[18].mxu1 %vm515_vm2, %v6261_v28  ;;  %20624 = vmatprep.subr.msk.mxu0 %vm1110_vm1, %v6737_v4  ;;  %v23960_v28 = vld [vmem:[#allocation2 + $0x30] sm:$0xff] }
 0x209   : > { %20604 = vmatprep.mubr.msk.f32.mxu1 %vm515_vm2, %v6262_v8  ;;  %v6591_v8 = vmul.f32 %v22709_v41, %v6583_v57  ;;  %v9906_v39 = vld [vmem:[%s22658_s11 + $0x11] sm:$0xff] }
 0x20a   : > { %20350 = vmatmul.mubr.msk.f32.gmra.mrb[18].mxu0 %vm515_vm2, %v23728_v24  ;;  %v6574_v24 = vmul.f32 %v23857_v18, %v22698_v36  ;;  %v9914_v10 = vmul.f32 %v22687_v33, %v9906_v39  ;;  %v24217_v39 = vld [vmem:[%s22658_s11 + $0xe0] sm:$0xff] }
 0x20b   : > { %20352 = vmatprep.mubr.msk.f32.mxu0 %vm515_vm2, %v23732_v26  ;;  %v18208_v26 = vld [vmem:[%s22658_s11 + $0x87] sm:$0xff] }
 0x20c   : > { %20605 = vmatmul.mubr.msk.f32.gmra.mrb[20].mxu1 %vm515_vm2, %v6263_v13  ;;  %v6575_v34 = vmul.f32 %v18208_v26, %v22709_v41  ;;  %v6586_v13 = vld [vmem:[#allocation2 + $0x9f] sm:$0xff] }
 0x20d   : > { %20607 = vmatprep.mubr.msk.f32.mxu1 %vm515_vm2, %v6264_v17  ;;  %v23969_v17 = vld [vmem:[#allocation2 + $0x38] sm:$0xff] }
 0x20e   : > { %20353 = vmatmul.mubr.msk.f32.gmra.mrb[20].mxu0 %vm515_vm2, %v23742_v30  ;;  %v18209_v30 = vld [vmem:[%s22658_s11 + $0x8f] sm:$0xff]  ;;  %v23992_v26 = vld [vmem:[%s22658_s11 + $0x78] sm:$0xff] }
 0x20f   : > { %20355 = vmatprep.mubr.msk.f32.mxu0 %vm515_vm2, %v23746_v31  ;;  %v23884_v31 = vld [vmem:[%s22658_s11 + $0x28] sm:$0xff] }
 0x210   : > { %20608 = vmatmul.mubr.msk.f32.gmra.mrb[22].mxu1 %vm515_vm2, %v6265_v14  ;;  %v6594_v14 = vmul.f32 %v22761_v0, %v6586_v13  ;;  %v9922_v13 = vld [vmem:[#allocation2 + $0x11] sm:$0xff] }
 0x211   : > { %20864 = vmatprep.mubr.msk.f32.mxu1 %vm515_vm2, %v23849_v1 }
 0x212   : > { %20356 = vmatmul.mubr.msk.f32.gmra.mrb[22].mxu0 %vm515_vm2, %v23757_v38  ;;  %v6576_v38 = vmul.f32 %v18209_v30, %v22733_v52  ;;  %v18485_v30 = vld [vmem:[%s25993_s4 + $0x8] sm:$0xf] }
 0x213   : > { %20612 = vmatprep.mubr.msk.f32.mxu0 %vm515_vm2, %v6572_v5  ;;  %v6587_v5 = vld [vmem:[#allocation2 + $0xa7] sm:$0xff] }
 0x214   : > { %20865 = vmatmul.mubr.msk.f32.vlgmr.msra.gmra.mrb[24].mxu1 %vm515_vm2, %v23862_v19 }
 0x215   : > { %20877 = vmatpush3.msk.msra.mxu1 %vm1110_vm1, %v9467_v59  ;;  %20867 = vmatprep.mubr.msk.f32.mxu1 %vm515_vm2, %v23868_v23  ;;  %v18241_v59 = vld [vmem:[%s25994_s5 + $0x4] sm:$0xf] }
 0x216   : > { %20613 = vmatmul.mubr.msk.f32.vlgmr.msra.gmra.mrb[24].mxu0 %vm515_vm2, %v6573_v20  ;;  %20890 = vmatprep.subr.msk.mxu1 %vm1110_vm1, %v18465_v29  ;;  %v23984_v20 = vld [vmem:[#allocation2 + $0x48] sm:$0xff] }
 0x217   : > { %20625 = vmatpush3.msk.msra.mxu0 %vm1110_vm1, %v6737_v4  ;;  %20615 = vmatprep.mubr.msk.f32.mxu0 %vm515_vm2, %v6574_v24  ;;  %v23956_v4 = vld [vmem:[#allocation2 + $0x28] sm:$0xff]  ;;  %v6595_v24 = vmul.f32 %v22765_v2, %v6587_v5 }
 0x218   : > { %20868 = vmatmul.mubr.msk.f32.gmra.mrb[26].mxu1 %vm515_vm2, %v23884_v31  ;;  %20638 = vmatprep.subr.msk.mxu0 %vm1110_vm1, %v18231_v32 }
 0x219   : > { %20870 = vmatprep.mubr.msk.f32.mxu1 %vm515_vm2, %v23892_v37 }
 0x21a   : > { %20616 = vmatmul.mubr.msk.f32.gmra.mrb[26].mxu0 %vm515_vm2, %v6575_v34  ;;  %v24017_v34 = vld [vmem:[%s22658_s11 + $0x90] sm:$0xff] }
 0x21b   : > { %20618 = vmatprep.mubr.msk.f32.mxu0 %vm515_vm2, %v6576_v38  ;;  %v24029_v38 = vld [vmem:[%s22658_s11 + $0x98] sm:$0xff] }
 0x21c   : > { %20871 = vmatmul.mubr.msk.f32.gmra.mrb[28].mxu1 %vm515_vm2, %v23906_v42 }
 0x21d   : > { %20873 = vmatprep.mubr.msk.f32.mxu1 %vm515_vm2, %v23911_v25 }
 0x21e   : > { %20619 = vmatmul.mubr.msk.f32.gmra.mrb[28].mxu0 %vm515_vm2, %v6577_v43  ;;  %v18269_v43 = vld [vmem:[%s25994_s5 + $0x8] sm:$0xf] }
 0x21f   : > { %20621 = vmatprep.mubr.msk.f32.mxu0 %vm515_vm2, %v6578_v44  ;;  %v24084_v44 = vld [vmem:[#allocation2 + $0x90] sm:$0xff] }
 0x220   : > { %20874 = vmatmul.mubr.msk.f32.gmra.mrb[30].mxu1 %vm515_vm2, %v23921_v51 }
 0x221   : > { %20878 = vmatprep.mubr.msk.f32.mxu1 %vm515_vm2, %v23928_v45 }
 0x222   : > { %20622 = vmatmul.mubr.msk.f32.gmra.mrb[30].mxu0 %vm515_vm2, %v6579_v63  ;;  %v24098_v63 = vld [vmem:[#allocation2 + $0xa0] sm:$0xff] }
 0x223   : > { %20626 = vmatprep.mubr.msk.f32.mxu0 %vm515_vm2, %v6588_v46  ;;  %v9908_v46 = vld [vmem:[%s22658_s11 + $0x21] sm:$0xff] }
 0x224   : > { %20879 = vmatmul.mubr.msk.f32.vlgmr.msra.gmra.mrb[24].mxu1 %vm515_vm2, %v23935_v35 }
 0x225   : > { %20891 = vmatpush3.msk.msra.mxu1 %vm1110_vm1, %v18465_v29  ;;  %20881 = vmatprep.mubr.msk.f32.mxu1 %vm515_vm2, %v23942_v58  ;;  %v23996_v29 = vld [vmem:[%s22658_s11 + $0x80] sm:$0xff] }
 0x226   : > { %20627 = vmatmul.mubr.msk.f32.vlgmr.msra.gmra.mrb[24].mxu0 %vm515_vm2, %v6589_v54  ;;  %20904 = vmatprep.subr.msk.mxu1 %vm1110_vm1, %v18475_v55  ;;  %v18513_v54 = vld [vmem:[%s25993_s4 + $0xc] sm:$0xf] }
 0x227   : > { %20639 = vmatpush3.msk.msra.mxu0 %vm1110_vm1, %v18231_v32  ;;  %20629 = vmatprep.mubr.msk.f32.mxu0 %vm515_vm2, %v6590_v3  ;;  %v24009_v32 = vld [vmem:[%s22658_s11 + $0x88] sm:$0xff] }
 0x228   : > { %20882 = vmatmul.mubr.msk.f32.gmra.mrb[26].mxu1 %vm515_vm2, %v23956_v4  ;;  %20652 = vmatprep.subr.msk.mxu0 %vm1110_vm1, %v18241_v59 }
 0x229   : > { %20884 = vmatprep.mubr.msk.f32.mxu1 %vm515_vm2, %v23960_v28 }
 0x22a   : > { %20630 = vmatmul.mubr.msk.f32.gmra.mrb[26].mxu0 %vm515_vm2, %v6591_v8 }
 0x22b   : > { %20632 = vmatprep.mubr.msk.f32.mxu0 %vm515_vm2, %v6592_v11  ;;  %v9913_v11 = vld [vmem:[%s22658_s11 + $0x49] sm:$0xff] }
 0x22c   : > { %20885 = vmatmul.mubr.msk.f32.gmra.mrb[28].mxu1 %vm515_vm2, %v23969_v17  ;;  %v9921_v12 = vmul.f32 %v22779_v7, %v9913_v11  ;;  %v7490_v11 = vld [vmem:[#allocation2 + $0x12f] sm:$0xff] }
 0x22d   : > { %20887 = vmatprep.mubr.msk.f32.mxu1 %vm515_vm2, %v23973_v49 }
 0x22e   : > { %20633 = vmatmul.mubr.msk.f32.gmra.mrb[28].mxu0 %vm515_vm2, %v6593_v15  ;;  %v9924_v15 = vld [vmem:[#allocation2 + $0x21] sm:$0xff] }
 0x22f   : > { %20635 = vmatprep.mubr.msk.f32.mxu0 %vm515_vm2, %v6594_v14  ;;  %v9932_v5 = vmul.f32 %v22726_v50, %v9924_v15  ;;  %v24283_v15 = vld [vmem:[#allocation2 + $0xd8] sm:$0xff] }
 0x230   : > { %20888 = vmatmul.mubr.msk.f32.gmra.mrb[30].mxu1 %vm515_vm2, %v23984_v20 }
 0x231   : > { %20892 = vmatprep.mubr.msk.f32.mxu1 %vm515_vm2, %v23981_v16 }
 0x232   : > { %20636 = vmatmul.mubr.msk.f32.gmra.mrb[30].mxu0 %vm515_vm2, %v6595_v24  ;;  %v9926_v24 = vld [vmem:[#allocation2 + $0x31] sm:$0xff] }
 0x233   : > { %20640 = vmatprep.mubr.msk.f32.mxu0 %vm515_vm2, %v23849_v1  ;;  %v18259_v1 = vld [vmem:[%s25993_s4 + $0x8] sm:$0xf] }
 0x234   : > { %20893 = vmatmul.mubr.msk.f32.vlgmr.msra.gmra.mrb[24].mxu1 %vm515_vm2, %v23992_v26 }
 0x235   : > { %20905 = vmatpush3.msk.msra.mxu1 %vm1110_vm1, %v18475_v55  ;;  %20895 = vmatprep.mubr.msk.f32.mxu1 %vm515_vm2, %v23996_v29  ;;  %v9909_v55 = vld [vmem:[%s22658_s11 + $0x29] sm:$0xff] }
 0x236   : > { %20641 = vmatmul.mubr.msk.f32.vlgmr.msra.gmra.mrb[24].mxu0 %vm515_vm2, %v23862_v19  ;;  %20918 = vmatprep.subr.msk.mxu1 %vm1110_vm1, %v18485_v30  ;;  %v24034_v19 = vld [vmem:[%s22658_s11 + $0xa0] sm:$0xff]  ;;  %v9917_v3 = vmul.f32 %v22752_v61, %v9909_v55 }
 0x237   : > { %20653 = vmatpush3.msk.msra.mxu0 %vm1110_vm1, %v18241_v59  ;;  %20643 = vmatprep.mubr.msk.f32.mxu0 %vm515_vm2, %v23868_v23  ;;  %v9911_v59 = vld [vmem:[%s22658_s11 + $0x39] sm:$0xff] }
 0x238   : > { %20896 = vmatmul.mubr.msk.f32.gmra.mrb[26].mxu1 %vm515_vm2, %v24009_v32  ;;  %20666 = vmatprep.subr.msk.mxu0 %vm1110_vm1, %v18259_v1 }
 0x239   : > { %20898 = vmatprep.mubr.msk.f32.mxu1 %vm515_vm2, %v24017_v34 }
 0x23a   : > { %20644 = vmatmul.mubr.msk.f32.gmra.mrb[26].mxu0 %vm515_vm2, %v23884_v31  ;;  %v24051_v31 = vld [vmem:[#allocation2 + $0x70] sm:$0xff] }
 0x23b   : > { %20646 = vmatprep.mubr.msk.f32.mxu0 %vm515_vm2, %v23892_v37  ;;  %v24059_v37 = vld [vmem:[#allocation2 + $0x78] sm:$0xff] }
 0x23c   : > { %20899 = vmatmul.mubr.msk.f32.gmra.mrb[28].mxu1 %vm515_vm2, %v24029_v38 }
 0x23d   : > { %20901 = vmatprep.mubr.msk.f32.mxu1 %vm515_vm2, %v24034_v19 }
 0x23e   : > { %20647 = vmatmul.mubr.msk.f32.gmra.mrb[28].mxu0 %vm515_vm2, %v23906_v42  ;;  %v24066_v42 = vld [vmem:[#allocation2 + $0x80] sm:$0xff] }
 0x23f   : > { %20649 = vmatprep.mubr.msk.f32.mxu0 %vm515_vm2, %v23911_v25  ;;  %v24080_v25 = vld [vmem:[#allocation2 + $0x88] sm:$0xff] }
 0x240   : > { %20902 = vmatmul.mubr.msk.f32.gmra.mrb[30].mxu1 %vm515_vm2, %v24043_v40 }
 0x241   : > { %20906 = vmatprep.mubr.msk.f32.mxu1 %vm515_vm2, %v24051_v31 }
 0x242   : > { %20650 = vmatmul.mubr.msk.f32.gmra.mrb[30].mxu0 %vm515_vm2, %v23921_v51  ;;  %v24094_v51 = vld [vmem:[#allocation2 + $0x98] sm:$0xff] }
 0x243   : > { %20654 = vmatprep.mubr.msk.f32.mxu0 %vm515_vm2, %v23928_v45  ;;  %v9907_v45 = vld [vmem:[%s22658_s11 + $0x19] sm:$0xff] }
 0x244   : > { %20907 = vmatmul.mubr.msk.f32.vlgmr.msra.gmra.mrb[24].mxu1 %vm515_vm2, %v24059_v37  ;;  %v9915_v53 = vmul.f32 %v22719_v47, %v9907_v45  ;;  %v18283_v45 = vld [vmem:[%s22658_s11 + $0x14f] sm:$0xff] }
 0x245   : > { %20919 = vmatpush3.msk.msra.mxu1 %vm1110_vm1, %v18485_v30  ;;  %20909 = vmatprep.mubr.msk.f32.mxu1 %vm515_vm2, %v24066_v42  ;;  %v9934_v30 = vmul.f32 %v22755_v62, %v9926_v24  ;;  %v7486_v55 = vmul.f32 %v18283_v45, %v22733_v52  ;;  %v7493_v24 = vld [vmem:[#allocation2 + $0x147] sm:$0xff] }
 0x246   : > { %20655 = vmatmul.mubr.msk.f32.vlgmr.msra.gmra.mrb[24].mxu0 %vm515_vm2, %v23935_v35  ;;  %20932 = vmatprep.subr.msk.mxu1 %vm1110_vm1, %v18495_v21  ;;  %v9916_v35 = vmul.f32 %v22726_v50, %v9908_v46  ;;  %v24232_v46 = vld [vmem:[%s22658_s11 + $0xe8] sm:$0xff]  ;;  %v24344_v45 = vld [vmem:[%s22658_s11 + $0x140] sm:$0xff] }
 0x247   : > { %20667 = vmatpush3.msk.msra.mxu0 %vm1110_vm1, %v18259_v1  ;;  %20657 = vmatprep.mubr.msk.f32.mxu0 %vm515_vm2, %v23942_v58  ;;  %v9910_v58 = vld [vmem:[%s22658_s11 + $0x31] sm:$0xff]  ;;  %v9928_v1 = vld [vmem:[#allocation2 + $0x41] sm:$0xff] }
 0x248   : > { %20910 = vmatmul.mubr.msk.f32.gmra.mrb[26].mxu1 %vm515_vm2, %v24080_v25  ;;  %20680 = vmatprep.subr.msk.mxu0 %vm1110_vm1, %v18269_v43  ;;  %v9918_v57 = vmul.f32 %v22755_v62, %v9910_v58  ;;  %v18284_v58 = vld [vmem:[%s22658_s11 + $0x157] sm:$0xff] }
 0x249   : > { %20912 = vmatprep.mubr.msk.f32.mxu1 %vm515_vm2, %v24084_v44 }
 0x24a   : > { %20658 = vmatmul.mubr.msk.f32.gmra.mrb[26].mxu0 %vm515_vm2, %v23956_v4  ;;  %v9912_v4 = vld [vmem:[%s22658_s11 + $0x41] sm:$0xff] }
 0x24b   : > { %20660 = vmatprep.mubr.msk.f32.mxu0 %vm515_vm2, %v23960_v28  ;;  %v9919_v28 = vmul.f32 %v22785_v9, %v9911_v59  ;;  %v9920_v8 = vmul.f32 %v22776_v6, %v9912_v4  ;;  %v24259_v59 = vld [vmem:[%s22658_s11 + $0x100] sm:$0xff] }
 0x24c   : > { %20913 = vmatmul.mubr.msk.f32.gmra.mrb[28].mxu1 %vm515_vm2, %v24094_v51  ;;  %v18286_v4 = vld [vmem:[%s22658_s11 + $0x167] sm:$0xff] }
 0x24d   : > { %20915 = vmatprep.mubr.msk.f32.mxu1 %vm515_vm2, %v24098_v63 }
 0x24e   : > { %20661 = vmatmul.mubr.msk.f32.gmra.mrb[28].mxu0 %vm515_vm2, %v23969_v17  ;;  %v9930_v17 = vmul.f32 %v22687_v33, %v9922_v13  ;;  %v7498_v13 = vmul.f32 %v22666_v22, %v7490_v11 }
 0x24f   : > { %20663 = vmatprep.mubr.msk.f32.mxu0 %vm515_vm2, %v23973_v49  ;;  %v9923_v49 = vld [vmem:[#allocation2 + $0x19] sm:$0xff] }
 0x250   : > { %20916 = vmatmul.mubr.msk.f32.gmra.mrb[30].mxu1 %vm515_vm2, %v24109_v48  ;;  %v9931_v14 = vmul.f32 %v22719_v47, %v9923_v49  ;;  %v7492_v49 = vld [vmem:[#allocation2 + $0x13f] sm:$0xff] }
 0x251   : > { %20920 = vmatprep.mubr.msk.f32.mxu1 %vm515_vm2, %v9914_v10  ;;  %v18541_v10 = vld [vmem:[%s25993_s4 + $0x10] sm:$0xf] }
 0x252   : > { %20664 = vmatmul.mubr.msk.f32.gmra.mrb[30].mxu0 %vm515_vm2, %v23984_v20  ;;  %v18523_v20 = vld [vmem:[%s25994_s5 + $0xc] sm:$0xf] }
 0x253   : > { %20668 = vmatprep.mubr.msk.f32.mxu0 %vm515_vm2, %v23981_v16  ;;  %v9925_v16 = vld [vmem:[#allocation2 + $0x29] sm:$0xff] }
 0x254   : > { %20921 = vmatmul.mubr.msk.f32.vlgmr.msra.gmra.mrb[24].mxu1 %vm515_vm2, %v9915_v53 }
 0x255   : > { %20933 = vmatpush3.msk.msra.mxu1 %vm1110_vm1, %v18495_v21  ;;  %20923 = vmatprep.mubr.msk.f32.mxu1 %vm515_vm2, %v9916_v35  ;;  %v24240_v35 = vld [vmem:[%s22658_s11 + $0xf0] sm:$0xff] }
 0x256   : > { %20669 = vmatmul.mubr.msk.f32.vlgmr.msra.gmra.mrb[24].mxu0 %vm515_vm2, %v23992_v26  ;;  %20946 = vmatprep.subr.msk.mxu1 %vm1110_vm1, %v18513_v54  ;;  %v18297_v26 = vld [vmem:[%s25994_s5 + $0xc] sm:$0xf] }
 0x257   : > { %20681 = vmatpush3.msk.msra.mxu0 %vm1110_vm1, %v18269_v43  ;;  %20671 = vmatprep.mubr.msk.f32.mxu0 %vm515_vm2, %v23996_v29  ;;  %v9933_v29 = vmul.f32 %v22752_v61, %v9925_v16  ;;  %v18281_v43 = vld [vmem:[%s22658_s11 + $0x13f] sm:$0xff] }
 0x258   : > { %20924 = vmatmul.mubr.msk.f32.gmra.mrb[26].mxu1 %vm515_vm2, %v9917_v3  ;;  %20694 = vmatprep.subr.msk.mxu0 %vm1110_vm1, %v18287_v60  ;;  %v24254_v3 = vld [vmem:[%s22658_s11 + $0xf8] sm:$0xff] }
 0x259   : > { %20926 = vmatprep.mubr.msk.f32.mxu1 %vm515_vm2, %v9918_v57  ;;  %v7487_v57 = vmul.f32 %v18284_v58, %v22744_v56  ;;  %v24377_v58 = vld [vmem:[%s22658_s11 + $0x158] sm:$0xff] }
 0x25a   : > { %20672 = vmatmul.mubr.msk.f32.gmra.mrb[26].mxu0 %vm515_vm2, %v24009_v32  ;;  %v9927_v32 = vld [vmem:[#allocation2 + $0x39] sm:$0xff] }
 0x25b   : > { %20674 = vmatprep.mubr.msk.f32.mxu0 %vm515_vm2, %v24017_v34  ;;  %v9935_v34 = vmul.f32 %v22785_v9, %v9927_v32  ;;  %v24308_v32 = vld [vmem:[#allocation2 + $0xf0] sm:$0xff] }
 0x25c   : > { %20927 = vmatmul.mubr.msk.f32.gmra.mrb[28].mxu1 %vm515_vm2, %v9919_v28  ;;  %v24269_v28 = vld [vmem:[%s22658_s11 + $0x108] sm:$0xff] }
 0x25d   : > { %20929 = vmatprep.mubr.msk.f32.mxu1 %vm515_vm2, %v9920_v8  ;;  %v7489_v8 = vmul.f32 %v18286_v4, %v22765_v2  ;;  %v18561_v4 = vld [vmem:[%s22658_s11 + $0xd1] sm:$0xff] }
 0x25e   : > { %20675 = vmatmul.mubr.msk.f32.gmra.mrb[28].mxu0 %vm515_vm2, %v24029_v38  ;;  %v9936_v38 = vmul.f32 %v22776_v6, %v9928_v1  ;;  %v7501_v1 = vmul.f32 %v22709_v41, %v7493_v24  ;;  %v10824_v11 = vmul.f32 %v18561_v4, %v22687_v33  ;;  %v18366_v4 = vld [vmem:[%s22658_s11 + $0x8f] sm:$0xff] }
 0x25f   : > { %20677 = vmatprep.mubr.msk.f32.mxu0 %vm515_vm2, %v24034_v19  ;;  %v9929_v19 = vld [vmem:[#allocation2 + $0x49] sm:$0xff] }
 0x260   : > { %20930 = vmatmul.mubr.msk.f32.gmra.mrb[30].mxu1 %vm515_vm2, %v9921_v12  ;;  %v24276_v12 = vld [vmem:[#allocation2 + $0xd0] sm:$0xff] }
 0x261   : > { %20934 = vmatprep.mubr.msk.f32.mxu1 %vm515_vm2, %v9930_v17  ;;  %v7491_v17 = vld [vmem:[#allocation2 + $0x137] sm:$0xff] }
 0x262   : > { %20678 = vmatmul.mubr.msk.f32.gmra.mrb[30].mxu0 %vm515_vm2, %v24043_v40  ;;  %v18279_v40 = vld [vmem:[%s22658_s11 + $0x12f] sm:$0xff]  ;;  %v7499_v16 = vmul.f32 %v22677_v27, %v7491_v17 }
 0x263   : > { %20682 = vmatprep.mubr.msk.f32.mxu0 %vm515_vm2, %v24051_v31  ;;  %v9937_v31 = vmul.f32 %v22779_v7, %v9929_v19  ;;  %v7482_v21 = vmul.f32 %v18279_v40, %v22666_v22  ;;  %v7496_v19 = vld [vmem:[#allocation2 + $0x15f] sm:$0xff]  ;;  %v24457_v17 = vld [vmem:[#allocation2 + $0x168] sm:$0xff] }
 0x264   : > { %20935 = vmatmul.mubr.msk.f32.vlgmr.msra.gmra.mrb[24].mxu1 %vm515_vm2, %v9931_v14  ;;  %v18551_v14 = vld [vmem:[%s25994_s5 + $0x10] sm:$0xf]  ;;  %v24317_v40 = vld [vmem:[#allocation2 + $0xf8] sm:$0xff] }
 0x265   : > { %20947 = vmatpush3.msk.msra.mxu1 %vm1110_vm1, %v18513_v54  ;;  %20937 = vmatprep.mubr.msk.f32.mxu1 %vm515_vm2, %v9932_v5  ;;  %v18285_v54 = vld [vmem:[%s22658_s11 + $0x15f] sm:$0xff] }
 0x266   : > { %20683 = vmatmul.mubr.msk.f32.vlgmr.msra.gmra.mrb[24].mxu0 %vm515_vm2, %v24059_v37  ;;  %20960 = vmatprep.subr.msk.mxu1 %vm1110_vm1, %v18523_v20  ;;  %v24200_v37 = vld [vmem:[%s22658_s11 + $0xd0] sm:$0xff]  ;;  %v24290_v5 = vld [vmem:[#allocation2 + $0xe0] sm:$0xff] }
 0x267   : > { %20695 = vmatpush3.msk.msra.mxu0 %vm1110_vm1, %v18287_v60  ;;  %20685 = vmatprep.mubr.msk.f32.mxu0 %vm515_vm2, %v24066_v42  ;;  %v18280_v42 = vld [vmem:[%s22658_s11 + $0x137] sm:$0xff]  ;;  %v7488_v60 = vmul.f32 %v18285_v54, %v22761_v0 }
 0x268   : > { %20938 = vmatmul.mubr.msk.f32.gmra.mrb[26].mxu1 %vm515_vm2, %v9933_v29  ;;  %20708 = vmatprep.subr.msk.mxu0 %vm1110_vm1, %v18297_v26  ;;  %v7494_v29 = vld [vmem:[#allocation2 + $0x14f] sm:$0xff] }
 0x269   : > { %20940 = vmatprep.mubr.msk.f32.mxu1 %vm515_vm2, %v9934_v30  ;;  %v24304_v30 = vld [vmem:[#allocation2 + $0xe8] sm:$0xff]  ;;  %v18579_v54 = vld [vmem:[%s25994_s5 + $0x14] sm:$0xf] }
 0x26a   : > { %20686 = vmatmul.mubr.msk.f32.gmra.mrb[26].mxu0 %vm515_vm2, %v24080_v25  ;;  %v24211_v25 = vld [vmem:[%s22658_s11 + $0xd8] sm:$0xff] }
 0x26b   : > { %20688 = vmatprep.mubr.msk.f32.mxu0 %vm515_vm2, %v24084_v44  ;;  %v7483_v44 = vmul.f32 %v18280_v42, %v22677_v27  ;;  %v7504_v42 = vmul.f32 %v22761_v0, %v7496_v19  ;;  %v10832_v19 = vld [vmem:[#allocation2 + $0xd1] sm:$0xff] }
 0x26c   : > { %20941 = vmatmul.mubr.msk.f32.gmra.mrb[28].mxu1 %vm515_vm2, %v9935_v34  ;;  %v7502_v34 = vmul.f32 %v22733_v52, %v7494_v29  ;;  %v18371_v29 = vld [vmem:[%s25993_s4 + $0x18] sm:$0xf] }
 0x26d   : > { %20943 = vmatprep.mubr.msk.f32.mxu1 %vm515_vm2, %v9936_v38  ;;  %v7495_v38 = vld [vmem:[#allocation2 + $0x157] sm:$0xff] }
 0x26e   : > { %20689 = vmatmul.mubr.msk.f32.gmra.mrb[28].mxu0 %vm515_vm2, %v24094_v51  ;;  %v7484_v51 = vmul.f32 %v18281_v43, %v22698_v36  ;;  %v7497_v43 = vld [vmem:[#allocation2 + $0x167] sm:$0xff] }
 0x26f   : > { %20691 = vmatprep.mubr.msk.f32.mxu0 %vm515_vm2, %v24098_v63  ;;  %v18282_v63 = vld [vmem:[%s22658_s11 + $0x147] sm:$0xff] }
 0x270   : > { %20944 = vmatmul.mubr.msk.f32.gmra.mrb[30].mxu1 %vm515_vm2, %v9937_v31  ;;  %v7485_v53 = vmul.f32 %v18282_v63, %v22709_v41  ;;  %v24321_v31 = vld [vmem:[#allocation2 + $0x100] sm:$0xff]  ;;  %v7505_v63 = vmul.f32 %v22765_v2, %v7497_v43 }
 0x271   : > { %20948 = vmatprep.mubr.msk.f32.mxu1 %vm515_vm2, %v24200_v37 }
 0x272   : > { %20692 = vmatmul.mubr.msk.f32.gmra.mrb[30].mxu0 %vm515_vm2, %v24109_v48  ;;  %v18315_v48 = vld [vmem:[%s25993_s4 + $0x10] sm:$0xf] }
 0x273   : > { %20696 = vmatprep.mubr.msk.f32.mxu0 %vm515_vm2, %v7482_v21  ;;  %v7503_v21 = vmul.f32 %v22744_v56, %v7495_v38 }
 0x274   : > { %20949 = vmatmul.mubr.msk.f32.vlgmr.msra.gmra.mrb[24].mxu1 %vm515_vm2, %v24211_v25 }
 0x275   : > { %20961 = vmatpush3.msk.msra.mxu1 %vm1110_vm1, %v18523_v20  ;;  %20951 = vmatprep.mubr.msk.f32.mxu1 %vm515_vm2, %v24217_v39  ;;  %v7500_v20 = vmul.f32 %v22698_v36, %v7492_v49 }
 0x276   : > { %20697 = vmatmul.mubr.msk.f32.vlgmr.msra.gmra.mrb[24].mxu0 %vm515_vm2, %v7483_v44  ;;  %20974 = vmatprep.subr.msk.mxu1 %vm1110_vm1, %v18541_v10  ;;  %v24329_v44 = vld [vmem:[%s22658_s11 + $0x130] sm:$0xff] }
 0x277   : > { %20709 = vmatpush3.msk.msra.mxu0 %vm1110_vm1, %v18297_v26  ;;  %20699 = vmatprep.mubr.msk.f32.mxu0 %vm515_vm2, %v7484_v51  ;;  %v18325_v26 = vld [vmem:[%s25994_s5 + $0x10] sm:$0xf]  ;;  %v24332_v51 = vld [vmem:[#allocation2 + $0x108] sm:$0xff] }
 0x278   : > { %20952 = vmatmul.mubr.msk.f32.gmra.mrb[26].mxu1 %vm515_vm2, %v24232_v46  ;;  %20722 = vmatprep.subr.msk.mxu0 %vm1110_vm1, %v18315_v48 }
 0x279   : > { %20954 = vmatprep.mubr.msk.f32.mxu1 %vm515_vm2, %v24240_v35 }
 0x27a   : > { %20700 = vmatmul.mubr.msk.f32.gmra.mrb[26].mxu0 %vm515_vm2, %v7485_v53  ;;  %v24357_v53 = vld [vmem:[%s22658_s11 + $0x148] sm:$0xff] }
 0x27b   : > { %20702 = vmatprep.mubr.msk.f32.mxu0 %vm515_vm2, %v7486_v55  ;;  %v24365_v55 = vld [vmem:[%s22658_s11 + $0x150] sm:$0xff] }
 0x27c   : > { %20955 = vmatmul.mubr.msk.f32.gmra.mrb[28].mxu1 %vm515_vm2, %v24254_v3 }
 0x27d   : > { %20957 = vmatprep.mubr.msk.f32.mxu1 %vm515_vm2, %v24259_v59 }
 0x27e   : > { %20703 = vmatmul.mubr.msk.f32.gmra.mrb[28].mxu0 %vm515_vm2, %v7487_v57  ;;  %v18353_v57 = vld [vmem:[%s25994_s5 + $0x14] sm:$0xf] }
 0x27f   : > { %20705 = vmatprep.mubr.msk.f32.mxu0 %vm515_vm2, %v7488_v60  ;;  %v24432_v60 = vld [vmem:[#allocation2 + $0x150] sm:$0xff] }
 0x280   : > { %20958 = vmatmul.mubr.msk.f32.gmra.mrb[30].mxu1 %vm515_vm2, %v24269_v28 }
 0x281   : > { %20962 = vmatprep.mubr.msk.f32.mxu1 %vm515_vm2, %v24276_v12 }
 0x282   : > { %20706 = vmatmul.mubr.msk.f32.gmra.mrb[30].mxu0 %vm515_vm2, %v7489_v8  ;;  %v24446_v8 = vld [vmem:[#allocation2 + $0x160] sm:$0xff] }
 0x283   : > { %20710 = vmatprep.mubr.msk.f32.mxu0 %vm515_vm2, %v7498_v13  ;;  %v18563_v13 = vld [vmem:[%s22658_s11 + $0xe1] sm:$0xff] }
 0x284   : > { %20963 = vmatmul.mubr.msk.f32.vlgmr.msra.gmra.mrb[24].mxu1 %vm515_vm2, %v24283_v15 }
 0x285   : > { %20975 = vmatpush3.msk.msra.mxu1 %vm1110_vm1, %v18541_v10  ;;  %20965 = vmatprep.mubr.msk.f32.mxu1 %vm515_vm2, %v24290_v5  ;;  %v24340_v10 = vld [vmem:[%s22658_s11 + $0x138] sm:$0xff] }
 0x286   : > { %20711 = vmatmul.mubr.msk.f32.vlgmr.msra.gmra.mrb[24].mxu0 %vm515_vm2, %v7499_v16  ;;  %20988 = vmatprep.subr.msk.mxu1 %vm1110_vm1, %v18551_v14  ;;  %v18589_v16 = vld [vmem:[%s25993_s4 + $0x18] sm:$0xf] }
 0x287   : > { %20723 = vmatpush3.msk.msra.mxu0 %vm1110_vm1, %v18315_v48  ;;  %20713 = vmatprep.mubr.msk.f32.mxu0 %vm515_vm2, %v7500_v20  ;;  %v18569_v48 = vld [vmem:[%s25993_s4 + $0x14] sm:$0xf] }
 0x288   : > { %20966 = vmatmul.mubr.msk.f32.gmra.mrb[26].mxu1 %vm515_vm2, %v24304_v30  ;;  %20736 = vmatprep.subr.msk.mxu0 %vm1110_vm1, %v18325_v26 }
 0x289   : > { %20968 = vmatprep.mubr.msk.f32.mxu1 %vm515_vm2, %v24308_v32 }
 0x28a   : > { %20714 = vmatmul.mubr.msk.f32.gmra.mrb[26].mxu0 %vm515_vm2, %v7501_v1 }
 0x28b   : > { %20716 = vmatprep.mubr.msk.f32.mxu0 %vm515_vm2, %v7502_v34  ;;  %v18568_v34 = vld [vmem:[%s22658_s11 + $0x109] sm:$0xff] }
 0x28c   : > { %20969 = vmatmul.mubr.msk.f32.gmra.mrb[28].mxu1 %vm515_vm2, %v24317_v40  ;;  %v10831_v38 = vmul.f32 %v18568_v34, %v22779_v7  ;;  %v24618_v34 = vld [vmem:[%s22658_s11 + $0x48] sm:$0xff] }
 0x28d   : > { %20971 = vmatprep.mubr.msk.f32.mxu1 %vm515_vm2, %v24321_v31 }
 0x28e   : > { %20717 = vmatmul.mubr.msk.f32.gmra.mrb[28].mxu0 %vm515_vm2, %v7503_v21  ;;  %v10834_v21 = vld [vmem:[#allocation2 + $0xe1] sm:$0xff] }
 0x28f   : > { %20719 = vmatprep.mubr.msk.f32.mxu0 %vm515_vm2, %v7504_v42  ;;  %v10842_v43 = vmul.f32 %v22726_v50, %v10834_v21  ;;  %v18370_v21 = vld [vmem:[%s22658_s11 + $0xaf] sm:$0xff] }
 0x290   : > { %20972 = vmatmul.mubr.msk.f32.gmra.mrb[30].mxu1 %vm515_vm2, %v24332_v51 }
 0x291   : > { %20976 = vmatprep.mubr.msk.f32.mxu1 %vm515_vm2, %v24329_v44 }
 0x292   : > { %20720 = vmatmul.mubr.msk.f32.gmra.mrb[30].mxu0 %vm515_vm2, %v7505_v63  ;;  %v10836_v63 = vld [vmem:[#allocation2 + $0xf1] sm:$0xff] }
 0x293   : > { %20724 = vmatprep.mubr.msk.f32.mxu0 %vm515_vm2, %v24200_v37  ;;  %v18343_v37 = vld [vmem:[%s25993_s4 + $0x14] sm:$0xf] }
 0x294   : > { %20977 = vmatmul.mubr.msk.f32.vlgmr.msra.gmra.mrb[24].mxu1 %vm515_vm2, %v24340_v10 }
 0x295   : > { %20989 = vmatpush3.msk.msra.mxu1 %vm1110_vm1, %v18551_v14  ;;  %20979 = vmatprep.mubr.msk.f32.mxu1 %vm515_vm2, %v24344_v45  ;;  %v18564_v14 = vld [vmem:[%s22658_s11 + $0xe9] sm:$0xff] }
 0x296   : > { %20725 = vmatmul.mubr.msk.f32.vlgmr.msra.gmra.mrb[24].mxu0 %vm515_vm2, %v24211_v25  ;;  %21002 = vmatprep.subr.msk.mxu1 %vm1110_vm1, %v18569_v48  ;;  %v24382_v25 = vld [vmem:[%s22658_s11 + $0x160] sm:$0xff]  ;;  %v10827_v20 = vmul.f32 %v18564_v14, %v22752_v61 }
 0x297   : > { %20737 = vmatpush3.msk.msra.mxu0 %vm1110_vm1, %v18325_v26  ;;  %20727 = vmatprep.mubr.msk.f32.mxu0 %vm515_vm2, %v24217_v39  ;;  %v24391_v39 = vld [vmem:[%s22658_s11 + $0x168] sm:$0xff]  ;;  %v18566_v26 = vld [vmem:[%s22658_s11 + $0xf9] sm:$0xff] }
 0x298   : > { %20980 = vmatmul.mubr.msk.f32.gmra.mrb[26].mxu1 %vm515_vm2, %v24357_v53  ;;  %20750 = vmatprep.subr.msk.mxu0 %vm1110_vm1, %v18343_v37 }
 0x299   : > { %20982 = vmatprep.mubr.msk.f32.mxu1 %vm515_vm2, %v24365_v55 }
 0x29a   : > { %20728 = vmatmul.mubr.msk.f32.gmra.mrb[26].mxu0 %vm515_vm2, %v24232_v46  ;;  %v24399_v46 = vld [vmem:[#allocation2 + $0x130] sm:$0xff] }
 0x29b   : > { %20730 = vmatprep.mubr.msk.f32.mxu0 %vm515_vm2, %v24240_v35  ;;  %v24407_v35 = vld [vmem:[#allocation2 + $0x138] sm:$0xff] }
 0x29c   : > { %20983 = vmatmul.mubr.msk.f32.gmra.mrb[28].mxu1 %vm515_vm2, %v24377_v58 }
 0x29d   : > { %20985 = vmatprep.mubr.msk.f32.mxu1 %vm515_vm2, %v24382_v25 }
 0x29e   : > { %20731 = vmatmul.mubr.msk.f32.gmra.mrb[28].mxu0 %vm515_vm2, %v24254_v3  ;;  %v24414_v3 = vld [vmem:[#allocation2 + $0x140] sm:$0xff] }
 0x29f   : > { %20733 = vmatprep.mubr.msk.f32.mxu0 %vm515_vm2, %v24259_v59  ;;  %v24428_v59 = vld [vmem:[#allocation2 + $0x148] sm:$0xff] }
 0x2a0   : > { %20986 = vmatmul.mubr.msk.f32.gmra.mrb[30].mxu1 %vm515_vm2, %v24391_v39 }
 0x2a1   : > { %20990 = vmatprep.mubr.msk.f32.mxu1 %vm515_vm2, %v24399_v46 }
 0x2a2   : > { %20734 = vmatmul.mubr.msk.f32.gmra.mrb[30].mxu0 %vm515_vm2, %v24269_v28  ;;  %v24442_v28 = vld [vmem:[#allocation2 + $0x158] sm:$0xff] }
 0x2a3   : > { %20738 = vmatprep.mubr.msk.f32.mxu0 %vm515_vm2, %v24276_v12  ;;  %v18562_v12 = vld [vmem:[%s22658_s11 + $0xd9] sm:$0xff] }
 0x2a4   : > { %20991 = vmatmul.mubr.msk.f32.vlgmr.msra.gmra.mrb[24].mxu1 %vm515_vm2, %v24407_v35  ;;  %v10825_v49 = vmul.f32 %v18562_v12, %v22719_v47  ;;  %v24589_v12 = vld [vmem:[%s25993_s4 + $0x1c] sm:$0xf] }
 0x2a5   : > { %21003 = vmatpush3.msk.msra.mxu1 %vm1110_vm1, %v18569_v48  ;;  %20993 = vmatprep.mubr.msk.f32.mxu1 %vm515_vm2, %v24414_v3  ;;  %v10844_v48 = vmul.f32 %v22755_v62, %v10836_v63 }
 0x2a6   : > { %20739 = vmatmul.mubr.msk.f32.vlgmr.msra.gmra.mrb[24].mxu0 %vm515_vm2, %v24283_v15  ;;  %21016 = vmatprep.subr.msk.mxu1 %vm1110_vm1, %v18579_v54  ;;  %v10826_v15 = vmul.f32 %v18563_v13, %v22726_v50  ;;  %v24594_v13 = vld [vmem:[%s22658_s11 + $0x38] sm:$0xff] }
 0x2a7   : > { %20751 = vmatpush3.msk.msra.mxu0 %vm1110_vm1, %v18343_v37  ;;  %20741 = vmatprep.mubr.msk.f32.mxu0 %vm515_vm2, %v24290_v5  ;;  %v18565_v5 = vld [vmem:[%s22658_s11 + $0xf1] sm:$0xff]  ;;  %v10838_v37 = vld [vmem:[#allocation2 + $0x101] sm:$0xff] }
 0x2a8   : > { %20994 = vmatmul.mubr.msk.f32.gmra.mrb[26].mxu1 %vm515_vm2, %v24428_v59  ;;  %20764 = vmatprep.subr.msk.mxu0 %vm1110_vm1, %v18353_v57  ;;  %v10828_v24 = vmul.f32 %v18565_v5, %v22755_v62 }
 0x2a9   : > { %20996 = vmatprep.mubr.msk.f32.mxu1 %vm515_vm2, %v24432_v60 }
 0x2aa   : > { %20742 = vmatmul.mubr.msk.f32.gmra.mrb[26].mxu0 %vm515_vm2, %v24304_v30  ;;  %v18567_v30 = vld [vmem:[%s22658_s11 + $0x101] sm:$0xff] }
 0x2ab   : > { %20744 = vmatprep.mubr.msk.f32.mxu0 %vm515_vm2, %v24308_v32  ;;  %v10829_v32 = vmul.f32 %v18566_v26, %v22785_v9  ;;  %v10830_v1 = vmul.f32 %v18567_v30, %v22776_v6  ;;  %v24612_v26 = vld [vmem:[%s22658_s11 + $0x40] sm:$0xff] }
 0x2ac   : > { %20997 = vmatmul.mubr.msk.f32.gmra.mrb[28].mxu1 %vm515_vm2, %v24442_v28 }
 0x2ad   : > { %20999 = vmatprep.mubr.msk.f32.mxu1 %vm515_vm2, %v24446_v8 }
 0x2ae   : > { %20745 = vmatmul.mubr.msk.f32.gmra.mrb[28].mxu0 %vm515_vm2, %v24317_v40  ;;  %v10840_v40 = vmul.f32 %v22687_v33, %v10832_v19 }
 0x2af   : > { %20747 = vmatprep.mubr.msk.f32.mxu0 %vm515_vm2, %v24321_v31  ;;  %v10833_v31 = vld [vmem:[#allocation2 + $0xd9] sm:$0xff] }
 0x2b0   : > { %21000 = vmatmul.mubr.msk.f32.gmra.mrb[30].mxu1 %vm515_vm2, %v24457_v17  ;;  %v10841_v42 = vmul.f32 %v22719_v47, %v10833_v31 }
 0x2b1   : > { %21004 = vmatprep.mubr.msk.f32.mxu1 %vm515_vm2, %v10824_v11  ;;  %v24584_v11 = vld [vmem:[%s22658_s11 + $0x30] sm:$0xff] }
 0x2b2   : > { %20748 = vmatmul.mubr.msk.f32.gmra.mrb[30].mxu0 %vm515_vm2, %v24332_v51  ;;  %v18599_v51 = vld [vmem:[%s25994_s5 + $0x18] sm:$0xf] }
 0x2b3   : > { %20752 = vmatprep.mubr.msk.f32.mxu0 %vm515_vm2, %v24329_v44  ;;  %v10835_v44 = vld [vmem:[#allocation2 + $0xe9] sm:$0xff] }
 0x2b4   : > { %21005 = vmatmul.mubr.msk.f32.vlgmr.msra.gmra.mrb[24].mxu1 %vm515_vm2, %v10825_v49 }
 0x2b5   : > { %21017 = vmatpush3.msk.msra.mxu1 %vm1110_vm1, %v18579_v54  ;;  %21007 = vmatprep.mubr.msk.f32.mxu1 %vm515_vm2, %v10826_v15  ;;  %v18368_v15 = vld [vmem:[%s22658_s11 + $0x9f] sm:$0xff] }
 0x2b6   : > { %20753 = vmatmul.mubr.msk.f32.vlgmr.msra.gmra.mrb[24].mxu0 %vm515_vm2, %v24340_v10  ;;  %21030 = vmatprep.subr.msk.mxu1 %vm1110_vm1, %v18589_v16  ;;  %v18381_v10 = vld [vmem:[%s25994_s5 + $0x18] sm:$0xf] }
 0x2b7   : > { %20765 = vmatpush3.msk.msra.mxu0 %vm1110_vm1, %v18353_v57  ;;  %20755 = vmatprep.mubr.msk.f32.mxu0 %vm515_vm2, %v24344_v45  ;;  %v10843_v45 = vmul.f32 %v22752_v61, %v10835_v44  ;;  %v8393_v57 = vmul.f32 %v23857_v18, %v22677_v27  ;;  %v24579_v18 = vld [vmem:[%s25995_s6] ss:$0 sm:$0xff] }
 0x2b8   : > { %21008 = vmatmul.mubr.msk.f32.gmra.mrb[26].mxu1 %vm515_vm2, %v10827_v20  ;;  %20778 = vmatprep.subr.msk.mxu0 %vm1110_vm1, %v18371_v29 }
 0x2b9   : > { %21010 = vmatprep.mubr.msk.f32.mxu1 %vm515_vm2, %v10828_v24 }
 0x2ba   : > { %20756 = vmatmul.mubr.msk.f32.gmra.mrb[26].mxu0 %vm515_vm2, %v24357_v53  ;;  %v10837_v53 = vld [vmem:[#allocation2 + $0xf9] sm:$0xff] }
 0x2bb   : > { %20758 = vmatprep.mubr.msk.f32.mxu0 %vm515_vm2, %v24365_v55  ;;  %v10845_v55 = vmul.f32 %v22785_v9, %v10837_v53 }
 0x2bc   : > { %21011 = vmatmul.mubr.msk.f32.gmra.mrb[28].mxu1 %vm515_vm2, %v10829_v32 }
 0x2bd   : > { %21013 = vmatprep.mubr.msk.f32.mxu1 %vm515_vm2, %v10830_v1  ;;  %v8397_v1 = vmul.f32 %v18368_v15, %v22744_v56 }
 0x2be   : > { %20759 = vmatmul.mubr.msk.f32.gmra.mrb[28].mxu0 %vm515_vm2, %v24377_v58  ;;  %v10846_v58 = vmul.f32 %v22776_v6, %v10838_v37 }
 0x2bf   : > { %20761 = vmatprep.mubr.msk.f32.mxu0 %vm515_vm2, %v24382_v25  ;;  %v10839_v25 = vld [vmem:[#allocation2 + $0x109] sm:$0xff] }
 0x2c0   : > { %21014 = vmatmul.mubr.msk.f32.gmra.mrb[30].mxu1 %vm515_vm2, %v10831_v38 }
 0x2c1   : > { %21018 = vmatprep.mubr.msk.f32.mxu1 %vm515_vm2, %v10840_v40 }
 0x2c2   : > { %20762 = vmatmul.mubr.msk.f32.gmra.mrb[30].mxu0 %vm515_vm2, %v24391_v39  ;;  %v18363_v39 = vld [vmem:[%s22658_s11 + $0x77] sm:$0xff] }
 0x2c3   : > { %20766 = vmatprep.mubr.msk.f32.mxu0 %vm515_vm2, %v24399_v46  ;;  %v10847_v46 = vmul.f32 %v22779_v7, %v10839_v25  ;;  %v8392_v54 = vmul.f32 %v18363_v39, %v22666_v22 }
 0x2c4   : > { %21019 = vmatmul.mubr.msk.f32.vlgmr.msra.gmra.mrb[24].mxu1 %vm515_vm2, %v10841_v42 }
 0x2c5   : > { %21031 = vmatpush3.msk.msra.mxu1 %vm1110_vm1, %v18589_v16  ;;  %21021 = vmatprep.mubr.msk.f32.mxu1 %vm515_vm2, %v10842_v43  ;;  %v18369_v16 = vld [vmem:[%s22658_s11 + $0xa7] sm:$0xff] }
 0x2c6   : > { %20767 = vmatmul.mubr.msk.f32.vlgmr.msra.gmra.mrb[24].mxu0 %vm515_vm2, %v24407_v35  ;;  %21044 = vmatprep.subr.msk.mxu1 %vm1110_vm1, %v18599_v51  ;;  %v24548_v35 = vld [vmem:[%s22658_s11 + $0x18] sm:$0xff]  ;;  %v8398_v31 = vmul.f32 %v18369_v16, %v22761_v0  ;;  %v8402_v16 = vld [vmem:[#allocation2 + $0x87] sm:$0xff] }
 0x2c7   : > { %20779 = vmatpush3.msk.msra.mxu0 %vm1110_vm1, %v18371_v29  ;;  %20769 = vmatprep.mubr.msk.f32.mxu0 %vm515_vm2, %v24414_v3  ;;  %v18365_v3 = vld [vmem:[%s22658_s11 + $0x87] sm:$0xff] }
 0x2c8   : > { %21022 = vmatmul.mubr.msk.f32.gmra.mrb[26].mxu1 %vm515_vm2, %v10843_v45  ;;  %20792 = vmatprep.subr.msk.mxu0 %vm1110_vm1, %v18381_v10  ;;  %v24633_v45 = vld [vmem:[%s22658_s11 + $0x50] sm:$0xff] }
 0x2c9   : > { %21024 = vmatprep.mubr.msk.f32.mxu1 %vm515_vm2, %v10844_v48 }
 0x2ca   : > { %20770 = vmatmul.mubr.msk.f32.gmra.mrb[26].mxu0 %vm515_vm2, %v24428_v59  ;;  %v24562_v59 = vld [vmem:[%s22658_s11 + $0x28] sm:$0xff] }
 0x2cb   : > { %20772 = vmatprep.mubr.msk.f32.mxu0 %vm515_vm2, %v24432_v60  ;;  %v8394_v60 = vmul.f32 %v18365_v3, %v22698_v36 }
 0x2cc   : > { %21025 = vmatmul.mubr.msk.f32.gmra.mrb[28].mxu1 %vm515_vm2, %v10845_v55  ;;  %v8399_v55 = vmul.f32 %v18370_v21, %v22765_v2 }
 0x2cd   : > { %21027 = vmatprep.mubr.msk.f32.mxu1 %vm515_vm2, %v10846_v58  ;;  %v8400_v58 = vld [vmem:[#allocation2 + $0x77] sm:$0xff] }
 0x2ce   : > { %20773 = vmatmul.mubr.msk.f32.gmra.mrb[28].mxu0 %vm515_vm2, %v24442_v28  ;;  %v24570_v28 = vld [vmem:[%s25993_s4 + $0x1c] sm:$0xf] }
 0x2cf   : > { %20775 = vmatprep.mubr.msk.f32.mxu0 %vm515_vm2, %v24446_v8  ;;  %v18367_v8 = vld [vmem:[%s22658_s11 + $0x97] sm:$0xff] }
 0x2d0   : > { %21028 = vmatmul.mubr.msk.f32.gmra.mrb[30].mxu1 %vm515_vm2, %v10847_v46  ;;  %v8396_v49 = vmul.f32 %v18367_v8, %v22733_v52 }
 0x2d1   : > { %21032 = vmatprep.mubr.msk.f32.mxu1 %vm515_vm2, %v24548_v35 }
 0x2d2   : > { %20776 = vmatmul.mubr.msk.f32.gmra.mrb[30].mxu0 %vm515_vm2, %v24457_v17 }
 0x2d3   : > { %20780 = vmatprep.mubr.msk.f32.mxu0 %vm515_vm2, %v8392_v54 }
 0x2d4   : > { %21033 = vmatmul.mubr.msk.f32.vlgmr.msra.gmra.mrb[24].mxu1 %vm515_vm2, %v23868_v23  ;;  %v8395_v23 = vmul.f32 %v18366_v4, %v22709_v41 }
 0x2d5   : > { %21045 = vmatpush3.msk.msra.mxu1 %vm1110_vm1, %v18599_v51  ;;  %21035 = vmatprep.mubr.msk.f32.mxu1 %vm515_vm2, %v24562_v59 }
 0x2d6   : > { %20781 = vmatmul.mubr.msk.f32.vlgmr.msra.gmra.mrb[24].mxu0 %vm515_vm2, %v8393_v57  ;;  %21058 = vmatprep.subr.msk.mxu1 %vm1110_vm1, %v24570_v28 }
 0x2d7   : > { %20793 = vmatpush3.msk.msra.mxu0 %vm1110_vm1, %v18381_v10  ;;  %v20600_v17 = vpop.f32.mrb[16].mxu1  ;;  %20783 = vmatprep.mubr.msk.f32.mxu0 %vm515_vm2, %v8394_v60  ;;  %v24646_v60 = vld [vmem:[#allocation2 + $0x18] sm:$0xff] }
 0x2d8   : > { %v21626_v14 = vadd.f32 %v20600_v17, %v24579_v18  ;;  %v6501_v5 = vpop.f32.mrb[17].mxu1  ;;  %21036 = vmatmul.mubr.msk.f32.gmra.mrb[26].mxu1 %vm515_vm2, %v24584_v11  ;;  %20806 = vmatprep.subr.msk.mxu0 %vm1110_vm1, %v24589_v12  ;;  %v8408_v17 = vmul.f32 %v22666_v22, %v8400_v58  ;;  %v24693_v58 = vld [vmem:[#allocation2 + $0x30] sm:$0xff] }
 0x2d9   : > { %v21627_v20 = vadd.f32 %v24579_v18, %v6501_v5  ;;  %v20348_v24 = vpop.f32.mrb[16].mxu0  ;;  %21038 = vmatprep.mubr.msk.f32.mxu1 %vm515_vm2, %v24594_v13 }
 0x2da   : > { %v6549_v29 = vmax.f32 %v21626_v14, 0.0  ;;  %v21618_v30 = vadd.f32 %v20348_v24, %v24579_v18  ;;  %v3755_v32 = vpop.f32.mrb[17].mxu0  ;;  %20784 = vmatmul.mubr.msk.f32.gmra.mrb[26].mxu0 %vm515_vm2, %v8395_v23 }
 0x2db   : > { %v6548_v38 = vmax.f32 %v21627_v20, 0.0  ;;  %v21619_v19 = vadd.f32 %v24579_v18, %v3755_v32  ;;  %v20603_v40 = vpop.f32.mrb[18].mxu1  ;;  %20786 = vmatprep.mubr.msk.f32.mxu0 %vm515_vm2, %v8396_v49  ;;  %v8401_v49 = vld [vmem:[#allocation2 + $0x7f] sm:$0xff] }
 0x2dc   : > { %6557 = vst.msk [vmem:[#allocation3 + $0x78] sm:$0xff] %vm515_vm2, %v6549_v29  ;;  %v3803_v42 = vmax.f32 %v21618_v30, 0.0  ;;  %v21628_v43 = vadd.f32 %v20603_v40, %v24579_v18  ;;  %v6511_v44 = vpop.f32.mrb[19].mxu1  ;;  %21039 = vmatmul.mubr.msk.f32.gmra.mrb[28].mxu1 %vm515_vm2, %v24612_v26  ;;  %v24659_v30 = vld [vmem:[#allocation2 + $0x20] sm:$0xff]  ;;  %v24664_v32 = vld [vmem:[%s25994_s5 + $0x1c] sm:$0xf] }
 0x2dd   : > { %6556 = vst.msk [vmem:[#allocation3 + $0x70] sm:$0xff] %vm515_vm2, %v6548_v38  ;;  %v3802_v51 = vmax.f32 %v21619_v19, 0.0  ;;  %v21629_v63 = vadd.f32 %v24579_v18, %v6511_v44  ;;  %v20351_v10 = vpop.f32.mrb[18].mxu0  ;;  %21041 = vmatprep.mubr.msk.f32.mxu1 %vm515_vm2, %v24618_v34  ;;  %v24670_v40 = vld [vmem:[#allocation2 + $0x28] sm:$0xff]  ;;  %v8410_v44 = vmul.f32 %v22698_v36, %v8402_v16  ;;  %v24733_v16 = vld [vmem:[%s22658_s11 + $0x80] sm:$0xff] }
 0x2de   : > { %3811 = vst.msk [vmem:[#allocation3 + $0x18] sm:$0xff] %vm515_vm2, %v3803_v42  ;;  %v6551_v48 = vmax.f32 %v21628_v43, 0.0  ;;  %v21620_v53 = vadd.f32 %v20351_v10, %v24579_v18  ;;  %v3765_v37 = vpop.f32.mrb[19].mxu0  ;;  %20787 = vmatmul.mubr.msk.f32.gmra.mrb[28].mxu0 %vm515_vm2, %v8397_v1 }
 0x2df   : > { %3810 = vst.msk [vmem:[#allocation3 + $0x10] sm:$0xff] %vm515_vm2, %v3802_v51  ;;  %v6550_v25 = vmax.f32 %v21629_v63, 0.0  ;;  %v21621_v39 = vadd.f32 %v24579_v18, %v3765_v37  ;;  %v20606_v46 = vpop.f32.mrb[20].mxu1  ;;  %20789 = vmatprep.mubr.msk.f32.mxu0 %vm515_vm2, %v8398_v31  ;;  %v8409_v31 = vmul.f32 %v22677_v27, %v8401_v49  ;;  %v8403_v51 = vld [vmem:[#allocation2 + $0x8f] sm:$0xff]  ;;  %v18401_v63 = vld [vmem:[%s25994_s5 + $0x1c] sm:$0xf] }
 0x2e0   : > { %6559 = vst.msk [vmem:[#allocation3 + $0x88] sm:$0xff] %vm515_vm2, %v6551_v48  ;;  %v3805_v54 = vmax.f32 %v21620_v53, 0.0  ;;  %v21630_v3 = vadd.f32 %v20606_v46, %v24579_v18  ;;  %v6521_v57 = vpop.f32.mrb[21].mxu1  ;;  %21042 = vmatmul.mubr.msk.f32.gmra.mrb[30].mxu1 %vm515_vm2, %v24633_v45  ;;  %v8411_v46 = vmul.f32 %v22709_v41, %v8403_v51  ;;  %v24720_v49 = vld [vmem:[#allocation2 + $0x50] sm:$0xff] }
 0x2e1   : > { %6558 = vst.msk [vmem:[#allocation3 + $0x80] sm:$0xff] %vm515_vm2, %v6550_v25  ;;  %v3804_v4 = vmax.f32 %v21621_v39, 0.0  ;;  %v21631_v8 = vadd.f32 %v24579_v18, %v6521_v57  ;;  %v20354_v23 = vpop.f32.mrb[20].mxu0  ;;  %21046 = vmatprep.mubr.msk.f32.mxu1 %vm515_vm2, %v24646_v60  ;;  %v24698_v39 = vld [vmem:[#allocation2 + $0x38] sm:$0xff]  ;;  %v8406_v57 = vld [vmem:[#allocation2 + $0xa7] sm:$0xff] }
 0x2e2   : > { %3813 = vst.msk [vmem:[#allocation3 + $0x28] sm:$0xff] %vm515_vm2, %v3805_v54  ;;  %v6553_v15 = vmax.f32 %v21630_v3, 0.0  ;;  %v21622_v14 = vadd.f32 %v20354_v23, %v24579_v18  ;;  %v3775_v5 = vpop.f32.mrb[21].mxu0  ;;  %20790 = vmatmul.mubr.msk.f32.gmra.mrb[30].mxu0 %vm515_vm2, %v8399_v55  ;;  %v8405_v3 = vld [vmem:[#allocation2 + $0x9f] sm:$0xff]  ;;  %v11728_v51 = vld [vmem:[%s22658_s11 + $0x29] sm:$0xff] }
 0x2e3   : > { %3812 = vst.msk [vmem:[#allocation3 + $0x20] sm:$0xff] %vm515_vm2, %v3804_v4  ;;  %v6552_v20 = vmax.f32 %v21631_v8, 0.0  ;;  %v21623_v24 = vadd.f32 %v24579_v18, %v3775_v5  ;;  %v20609_v29 = vpop.f32.mrb[22].mxu1  ;;  %20794 = vmatprep.mubr.msk.f32.mxu0 %vm515_vm2, %v8408_v17  ;;  %v24710_v4 = vld [vmem:[#allocation2 + $0x40] sm:$0xff]  ;;  %v24714_v8 = vld [vmem:[#allocation2 + $0x48] sm:$0xff]  ;;  %v8413_v23 = vmul.f32 %v22744_v56, %v8405_v3  ;;  %v8414_v17 = vmul.f32 %v22761_v0, %v8406_v57 }
 0x2e4   : > { %6561 = vst.msk [vmem:[#allocation3 + $0x98] sm:$0xff] %vm515_vm2, %v6553_v15  ;;  %v3807_v1 = vmax.f32 %v21622_v14, 0.0  ;;  %v21632_v38 = vadd.f32 %v20609_v29, %v24579_v18  ;;  %v6531_v19 = vpop.f32.mrb[23].mxu1  ;;  %21047 = vmatmul.mubr.msk.f32.vlgmr.msra.gmra.mrb[24].mxu1 %vm515_vm2, %v24659_v30  ;;  %v8407_v15 = vld [vmem:[#allocation2 + $0xaf] sm:$0xff]  ;;  %v24724_v14 = vld [vmem:[%s22658_s11 + $0x78] sm:$0xff] }
 0x2e5   : > { %6560 = vst.msk [vmem:[#allocation3 + $0x90] sm:$0xff] %vm515_vm2, %v6552_v20  ;;  %v3806_v21 = vmax.f32 %v21623_v24, 0.0  ;;  %v21633_v42 = vadd.f32 %v24579_v18, %v6531_v19  ;;  %21059 = vmatpush3.msk.msra.mxu1 %vm1110_vm1, %v24570_v28  ;;  %v20357_v43 = vpop.f32.mrb[22].mxu0  ;;  %21049 = vmatprep.mubr.msk.f32.mxu1 %vm515_vm2, %v24670_v40  ;;  %v8404_v28 = vld [vmem:[#allocation2 + $0x97] sm:$0xff]  ;;  %v8415_v5 = vmul.f32 %v22765_v2, %v8407_v15  ;;  %v24737_v20 = vld [vmem:[%s22658_s11 + $0x88] sm:$0xff]  ;;  %v8699_v24 = vld [vmem:[%s22658_s11 + $0x20] sm:$0xff] }
 0x2e6   : > { %3815 = vst.msk [vmem:[#allocation3 + $0x38] sm:$0xff] %vm515_vm2, %v3807_v1  ;;  %v6555_v10 = vmax.f32 %v21632_v38, 0.0  ;;  %v21624_v48 = vadd.f32 %v20357_v43, %v24579_v18  ;;  %v3785_v53 = vpop.f32.mrb[23].mxu0  ;;  %20795 = vmatmul.mubr.msk.f32.vlgmr.msra.gmra.mrb[24].mxu0 %vm515_vm2, %v8409_v31  ;;  %21072 = vmatprep.subr.msk.mxu1 %vm1110_vm1, %v24664_v32  ;;  %v18637_v29 = vld [vmem:[%s25993_s4 + $0x20] sm:$0xf]  ;;  %v24752_v1 = vld [vmem:[%s22658_s11 + $0x90] sm:$0xff] }
 0x2e7   : > { %3814 = vst.msk [vmem:[#allocation3 + $0x30] sm:$0xff] %vm515_vm2, %v3806_v21  ;;  %v6554_v37 = vmax.f32 %v21633_v42, 0.0  ;;  %v21625_v55 = vadd.f32 %v24579_v18, %v3785_v53  ;;  %20807 = vmatpush3.msk.msra.mxu0 %vm1110_vm1, %v24589_v12  ;;  %20797 = vmatprep.mubr.msk.f32.mxu0 %vm515_vm2, %v8410_v44  ;;  %v8412_v12 = vmul.f32 %v22733_v52, %v8404_v28  ;;  %v24759_v38 = vld [vmem:[%s22658_s11 + $0x98] sm:$0xff]  ;;  %v24776_v19 = vld [vmem:[%s22658_s11 + $0xa8] sm:$0xff]  ;;  %v24844_v42 = vld [vmem:[#allocation2 + $0xb0] sm:$0xff] }
 0x2e8   : > { %6563 = vst.msk [vmem:[#allocation3 + $0xa8] sm:$0xff] %vm515_vm2, %v6555_v10  ;;  %v3809_v25 = vmax.f32 %v21624_v48, 0.0  ;;  %21050 = vmatmul.mubr.msk.f32.gmra.mrb[26].mxu1 %vm515_vm2, %v24693_v58  ;;  %20820 = vmatprep.subr.msk.mxu0 %vm1110_vm1, %v18401_v63  ;;  %v24826_v31 = vld [vmem:[#allocation2 + $0x98] sm:$0xff]  ;;  %v24840_v21 = vld [vmem:[#allocation2 + $0xa8] sm:$0xff]  ;;  %v11736_v10 = vmul.f32 %v22726_v50, %v11728_v51  ;;  %v13461_v28 = vld [vmem:[%s25996_s7] sm:$0xf] }
 0x2e9   : > { %6562 = vst.msk [vmem:[#allocation3 + $0xa0] sm:$0xff] %vm515_vm2, %v6554_v37  ;;  %v3808_v54 = vmax.f32 %v21625_v55, 0.0  ;;  %21052 = vmatprep.mubr.msk.f32.mxu1 %vm515_vm2, %v24698_v39  ;;  %v11727_v44 = vld [vmem:[%s22658_s11 + $0x21] sm:$0xff]  ;;  %v11729_v48 = vld [vmem:[%s22658_s11 + $0x31] sm:$0xff]  ;;  %v11730_v53 = vld [vmem:[%s22658_s11 + $0x39] sm:$0xff] }
 0x2ea   : > { %3817 = vst.msk [vmem:[#allocation3 + $0x48] sm:$0xff] %vm515_vm2, %v3809_v25  ;;  %20798 = vmatmul.mubr.msk.f32.gmra.mrb[26].mxu0 %vm515_vm2, %v8411_v46  ;;  %v11737_v37 = vmul.f32 %v22752_v61, %v11729_v48  ;;  %v11738_v55 = vmul.f32 %v22755_v62, %v11730_v53  ;;  %v12080_v25 = vld [vmem:[%s25996_s7] sm:$0xf]  ;;  %v11745_v15 = vld [vmem:[#allocation2 + $0x31] sm:$0xff] }
 0x2eb   : > { %3816 = vst.msk [vmem:[#allocation3 + $0x40] sm:$0xff] %vm515_vm2, %v3808_v54  ;;  %20800 = vmatprep.mubr.msk.f32.mxu0 %vm515_vm2, %v8412_v12  ;;  %v11733_v12 = vld [vmem:[%s22658_s11 + $0x51] sm:$0xff]  ;;  %v11742_v57 = vld [vmem:[#allocation2 + $0x19] sm:$0xff] }
 0x2ec   : > { %21053 = vmatmul.mubr.msk.f32.gmra.mrb[28].mxu1 %vm515_vm2, %v24710_v4  ;;  %v11741_v3 = vmul.f32 %v22779_v7, %v11733_v12 }
 0x2ed   : > { %21055 = vmatprep.mubr.msk.f32.mxu1 %vm515_vm2, %v24714_v8 }
 0x2ee   : > { %20801 = vmatmul.mubr.msk.f32.gmra.mrb[28].mxu0 %vm515_vm2, %v8413_v23  ;;  %v11744_v23 = vld [vmem:[#allocation2 + $0x29] sm:$0xff] }
 0x2ef   : > { %20803 = vmatprep.mubr.msk.f32.mxu0 %vm515_vm2, %v8414_v17 }
 0x2f0   : > { %21056 = vmatmul.mubr.msk.f32.gmra.mrb[30].mxu1 %vm515_vm2, %v24720_v49 }
 0x2f1   : > { %21060 = vmatprep.mubr.msk.f32.mxu1 %vm515_vm2, %v24724_v14 }
 0x2f2   : > { %20804 = vmatmul.mubr.msk.f32.gmra.mrb[30].mxu0 %vm515_vm2, %v8415_v5  ;;  %v11753_v5 = vmul.f32 %v22752_v61, %v11745_v15 }
 0x2f3   : > { %20808 = vmatprep.mubr.msk.f32.mxu0 %vm515_vm2, %v24548_v35  ;;  %v18419_v35 = vld [vmem:[%s25993_s4 + $0x20] sm:$0xf] }
 0x2f4   : > { %21061 = vmatmul.mubr.msk.f32.vlgmr.msra.gmra.mrb[24].mxu1 %vm515_vm2, %v24733_v16 }
 0x2f5   : > { %21073 = vmatpush3.msk.msra.mxu1 %vm1110_vm1, %v24664_v32  ;;  %21063 = vmatprep.mubr.msk.f32.mxu1 %vm515_vm2, %v24737_v20  ;;  %v24771_v32 = vld [vmem:[%s22658_s11 + $0xa0] sm:$0xff] }
 0x2f6   : > { %20809 = vmatmul.mubr.msk.f32.vlgmr.msra.gmra.mrb[24].mxu0 %vm515_vm2, %v8699_v24  ;;  %21086 = vmatprep.subr.msk.mxu1 %vm1110_vm1, %v18637_v29  ;;  %v11748_v24 = vld [vmem:[#allocation2 + $0x49] sm:$0xff] }
 0x2f7   : > { %20821 = vmatpush3.msk.msra.mxu0 %vm1110_vm1, %v18401_v63  ;;  %20811 = vmatprep.mubr.msk.f32.mxu0 %vm515_vm2, %v24562_v59  ;;  %v24785_v59 = vld [vmem:[%s22658_s11 + $0xb0] sm:$0xff]  ;;  %v11735_v63 = vmul.f32 %v22719_v47, %v11727_v44 }
 0x2f8   : > { %21064 = vmatmul.mubr.msk.f32.gmra.mrb[26].mxu1 %vm515_vm2, %v24752_v1  ;;  %20834 = vmatprep.subr.msk.mxu0 %vm1110_vm1, %v18419_v35 }
 0x2f9   : > { %21066 = vmatprep.mubr.msk.f32.mxu1 %vm515_vm2, %v24759_v38 }
 0x2fa   : > { %20812 = vmatmul.mubr.msk.f32.gmra.mrb[26].mxu0 %vm515_vm2, %v24584_v11  ;;  %v24793_v11 = vld [vmem:[#allocation2 + $0x78] sm:$0xff] }
 0x2fb   : > { %20814 = vmatprep.mubr.msk.f32.mxu0 %vm515_vm2, %v24594_v13  ;;  %v24801_v13 = vld [vmem:[#allocation2 + $0x80] sm:$0xff] }
 0x2fc   : > { %21067 = vmatmul.mubr.msk.f32.gmra.mrb[28].mxu1 %vm515_vm2, %v24771_v32 }
 0x2fd   : > { %21069 = vmatprep.mubr.msk.f32.mxu1 %vm515_vm2, %v24776_v19 }
 0x2fe   : > { %20815 = vmatmul.mubr.msk.f32.gmra.mrb[28].mxu0 %vm515_vm2, %v24612_v26  ;;  %v18647_v26 = vld [vmem:[%s25994_s5 + $0x20] sm:$0xf] }
 0x2ff   : > { %20817 = vmatprep.mubr.msk.f32.mxu0 %vm515_vm2, %v24618_v34  ;;  %v24808_v34 = vld [vmem:[#allocation2 + $0x88] sm:$0xff] }
 0x300   : > { %21070 = vmatmul.mubr.msk.f32.gmra.mrb[30].mxu1 %vm515_vm2, %v24785_v59 }
 0x301   : > { %21074 = vmatprep.mubr.msk.f32.mxu1 %vm515_vm2, %v24793_v11 }
 0x302   : > { %20818 = vmatmul.mubr.msk.f32.gmra.mrb[30].mxu0 %vm515_vm2, %v24633_v45  ;;  %v18429_v45 = vld [vmem:[%s25994_s5 + $0x20] sm:$0xf] }
 0x303   : > { %20822 = vmatprep.mubr.msk.f32.mxu0 %vm515_vm2, %v24646_v60  ;;  %v24822_v60 = vld [vmem:[#allocation2 + $0x90] sm:$0xff] }
 0x304   : > { %21075 = vmatmul.mubr.msk.f32.vlgmr.msra.gmra.mrb[24].mxu1 %vm515_vm2, %v24801_v13 }
 0x305   : > { %21087 = vmatpush3.msk.msra.mxu1 %vm1110_vm1, %v18637_v29  ;;  %21077 = vmatprep.mubr.msk.f32.mxu1 %vm515_vm2, %v24808_v34  ;;  %v11749_v29 = vld [vmem:[#allocation2 + $0x51] sm:$0xff] }
 0x306   : > { %20823 = vmatmul.mubr.msk.f32.vlgmr.msra.gmra.mrb[24].mxu0 %vm515_vm2, %v24659_v30  ;;  %21100 = vmatprep.subr.msk.mxu1 %vm1110_vm1, %v18647_v26  ;;  %v11726_v30 = vld [vmem:[%s22658_s11 + $0x19] sm:$0xff] }
 0x307   : > { %20835 = vmatpush3.msk.msra.mxu0 %vm1110_vm1, %v18419_v35  ;;  %20825 = vmatprep.mubr.msk.f32.mxu0 %vm515_vm2, %v24670_v40  ;;  %v24836_v40 = vld [vmem:[#allocation2 + $0xa0] sm:$0xff]  ;;  %v11734_v43 = vmul.f32 %v22687_v33, %v11726_v30  ;;  %v11756_v35 = vmul.f32 %v22776_v6, %v11748_v24 }
 0x308   : > { %21078 = vmatmul.mubr.msk.f32.gmra.mrb[26].mxu1 %vm515_vm2, %v24822_v60  ;;  %20848 = vmatprep.subr.msk.mxu0 %vm1110_vm1, %v18429_v45 }
 0x309   : > { %21080 = vmatprep.mubr.msk.f32.mxu1 %vm515_vm2, %v24826_v31 }
 0x30a   : > { %20826 = vmatmul.mubr.msk.f32.gmra.mrb[26].mxu0 %vm515_vm2, %v24693_v58  ;;  %v11731_v58 = vld [vmem:[%s22658_s11 + $0x41] sm:$0xff] }
 0x30b   : > { %20828 = vmatprep.mubr.msk.f32.mxu0 %vm515_vm2, %v24698_v39  ;;  %v11732_v39 = vld [vmem:[%s22658_s11 + $0x49] sm:$0xff]  ;;  %v11739_v46 = vmul.f32 %v22785_v9, %v11731_v58 }
 0x30c   : > { %21081 = vmatmul.mubr.msk.f32.gmra.mrb[28].mxu1 %vm515_vm2, %v24836_v40  ;;  %v11740_v54 = vmul.f32 %v22776_v6, %v11732_v39 }
 0x30d   : > { %21083 = vmatprep.mubr.msk.f32.mxu1 %vm515_vm2, %v24840_v21 }
 0x30e   : > { %20829 = vmatmul.mubr.msk.f32.gmra.mrb[28].mxu0 %vm515_vm2, %v24710_v4  ;;  %v11750_v4 = vmul.f32 %v22687_v33, %v11742_v57 }
 0x30f   : > { %20831 = vmatprep.mubr.msk.f32.mxu0 %vm515_vm2, %v24714_v8  ;;  %v11743_v8 = vld [vmem:[#allocation2 + $0x21] sm:$0xff] }
 0x310   : > { %21084 = vmatmul.mubr.msk.f32.gmra.mrb[30].mxu1 %vm515_vm2, %v24844_v42  ;;  %v11751_v17 = vmul.f32 %v22719_v47, %v11743_v8 }
 0x311   : > { %21088 = vmatprep.mubr.msk.f32.mxu1 %vm515_vm2, %v11734_v43 }
 0x312   : > { %20832 = vmatmul.mubr.msk.f32.gmra.mrb[30].mxu0 %vm515_vm2, %v24720_v49  ;;  %v11752_v49 = vmul.f32 %v22726_v50, %v11744_v23 }
 0x313   : > { %20836 = vmatprep.mubr.msk.f32.mxu0 %vm515_vm2, %v24724_v14  ;;  %v11746_v14 = vld [vmem:[#allocation2 + $0x39] sm:$0xff] }
 0x314   : > { %21089 = vmatmul.mubr.msk.f32.vlgmr.msra.gmra.mrb[24].mxu1 %vm515_vm2, %v11735_v63 }
 0x315   : > { %21101 = vmatpush3.msk.msra.mxu1 %vm1110_vm1, %v18647_v26  ;;  %21091 = vmatprep.mubr.msk.f32.mxu1 %vm515_vm2, %v11736_v10 }
 0x316   : > { %20837 = vmatmul.mubr.msk.f32.vlgmr.msra.gmra.mrb[24].mxu0 %vm515_vm2, %v24733_v16  ;;  %21240 = vmatprep.subr.msk.mxu1 %vm1110_vm1, %v13461_v28  ;;  %v11754_v16 = vmul.f32 %v22755_v62, %v11746_v14 }
 0x317   : > { %20849 = vmatpush3.msk.msra.mxu0 %vm1110_vm1, %v18429_v45  ;;  %20839 = vmatprep.mubr.msk.f32.mxu0 %vm515_vm2, %v24737_v20  ;;  %v11747_v20 = vld [vmem:[#allocation2 + $0x41] sm:$0xff] }
 0x318   : > { %21092 = vmatmul.mubr.msk.f32.gmra.mrb[26].mxu1 %vm515_vm2, %v11737_v37  ;;  %21114 = vmatprep.subr.msk.mxu0 %vm1110_vm1, %v12080_v25 }
 0x319   : > { %21094 = vmatprep.mubr.msk.f32.mxu1 %vm515_vm2, %v11738_v55 }
 0x31a   : > { %20840 = vmatmul.mubr.msk.f32.gmra.mrb[26].mxu0 %vm515_vm2, %v24752_v1  ;;  %v11755_v1 = vmul.f32 %v22785_v9, %v11747_v20 }
 0x31b   : > { %20842 = vmatprep.mubr.msk.f32.mxu0 %vm515_vm2, %v24759_v38  ;;  %v11757_v38 = vmul.f32 %v22779_v7, %v11749_v29 }
 0x31c   : > { %21095 = vmatmul.mubr.msk.f32.gmra.mrb[28].mxu1 %vm515_vm2, %v11739_v46 }
 0x31d   : > { %21097 = vmatprep.mubr.msk.f32.mxu1 %vm515_vm2, %v11740_v54 }
 0x31e   : > { %20843 = vmatmul.mubr.msk.f32.gmra.mrb[28].mxu0 %vm515_vm2, %v24771_v32  ;;  %v12064_v32 = vld [vmem:[#allocation3 + $0x127] sm:$0xff] }
 0x31f   : > { %20845 = vmatprep.mubr.msk.f32.mxu0 %vm515_vm2, %v24776_v19  ;;  %v24940_v19 = vld [vmem:[%s25996_s7 + $0x4] sm:$0xf] }
 0x320   : > { %21098 = vmatmul.mubr.msk.f32.gmra.mrb[30].mxu1 %vm515_vm2, %v11741_v3 }
 0x321   : > { %21102 = vmatprep.mubr.msk.f32.mxu1 %vm515_vm2, %v11750_v4 }
 0x322   : > { %20846 = vmatmul.mubr.msk.f32.gmra.mrb[30].mxu0 %vm515_vm2, %v24785_v59  ;;  %v24942_v59 = vld [vmem:[#allocation3 + $0xc8] sm:$0xff] }
 0x323   : > { %20850 = vmatprep.mubr.msk.f32.mxu0 %vm515_vm2, %v24793_v11  ;;  %v12072_v11 = vmul.f32 %v22666_v22, %v12064_v32 }
 0x324   : > { %21103 = vmatmul.mubr.msk.f32.vlgmr.msra.gmra.mrb[24].mxu1 %vm515_vm2, %v11751_v17 }
 0x325   : > { %21105 = vmatprep.mubr.msk.f32.mxu1 %vm515_vm2, %v11752_v49  ;;  %21241 = vmatpush3.msk.msra.mxu1 %vm1110_vm1, %v13461_v28 }
 0x326   : > { %20851 = vmatmul.mubr.msk.f32.vlgmr.msra.gmra.mrb[24].mxu0 %vm515_vm2, %v24801_v13  ;;  %v24952_v13 = vld [vmem:[%s25996_s7 + $0x4] sm:$0xf] }
 0x327   : > { %20853 = vmatprep.mubr.msk.f32.mxu0 %vm515_vm2, %v24808_v34  ;;  %21115 = vmatpush3.msk.msra.mxu0 %vm1110_vm1, %v12080_v25 }
 0x328   : > { %21106 = vmatmul.mubr.msk.f32.gmra.mrb[26].mxu1 %vm515_vm2, %v11753_v5  ;;  %21128 = vmatprep.subr.msk.mxu0 %vm1110_vm1, %v24940_v19 }
 0x329   : > { %21108 = vmatprep.mubr.msk.f32.mxu1 %vm515_vm2, %v11754_v16  ;;  %21254 = vmatprep.subr.msk.mxu1 %vm1110_vm1, %v24952_v13 }
 0x32a   : > { %20854 = vmatmul.mubr.msk.f32.gmra.mrb[26].mxu0 %vm515_vm2, %v24822_v60 }
 0x32b   : > { %20856 = vmatprep.mubr.msk.f32.mxu0 %vm515_vm2, %v24826_v31 }
 0x32c   : > { %21109 = vmatmul.mubr.msk.f32.gmra.mrb[28].mxu1 %vm515_vm2, %v11755_v1 }
 0x32d   : > { %21111 = vmatprep.mubr.msk.f32.mxu1 %vm515_vm2, %v11756_v35 }
 0x32e   : > { %20857 = vmatmul.mubr.msk.f32.gmra.mrb[28].mxu0 %vm515_vm2, %v24836_v40 }
 0x32f   : > { %20859 = vmatprep.mubr.msk.f32.mxu0 %vm515_vm2, %v24840_v21 }
 0x330   : > { %21112 = vmatmul.mubr.msk.f32.gmra.mrb[30].mxu1 %vm515_vm2, %v11757_v38 }
 0x331   : > { %21242 = vmatprep.mubr.msk.f32.mxu1 %vm515_vm2, %v24942_v59 }
 0x332   : > { %20860 = vmatmul.mubr.msk.f32.gmra.mrb[30].mxu0 %vm515_vm2, %v24844_v42 }
 0x333   : > { %21116 = vmatprep.mubr.msk.f32.mxu0 %vm515_vm2, %v12072_v11 }
 0x3f7   : > { %v21104_v26 = vpop.f32.mrb[24].mxu1 }
 0x3f8   : > { %v21642_v34 = vadd.f32 %v21104_v26, %v24579_v18  ;;  %v11993_v45 = vpop.f32.mrb[25].mxu1 }
 0x3f9   : > { %v21643_v60 = vadd.f32 %v24579_v18, %v11993_v45  ;;  %v20852_v31 = vpop.f32.mrb[24].mxu0 }
 0x3fa   : > { %v12041_v30 = vmax.f32 %v21642_v34, 0.0  ;;  %v21634_v40 = vadd.f32 %v20852_v31, %v24579_v18  ;;  %v9247_v21 = vpop.f32.mrb[25].mxu0 }
 0x3fb   : > { %v12040_v42 = vmax.f32 %v21643_v60, 0.0  ;;  %v21635_v43 = vadd.f32 %v24579_v18, %v9247_v21  ;;  %v21107_v44 = vpop.f32.mrb[26].mxu1  ;;  %v18677_v21 = vld [vmem:[%s25996_s7 + $0x8] sm:$0xf] }
 0x3fc   : > { %12049 = vst.msk [vmem:[#allocation3 + $0x138] sm:$0xff] %vm515_vm2, %v12041_v30  ;;  %v9295_v51 = vmax.f32 %v21634_v40, 0.0  ;;  %v21644_v63 = vadd.f32 %v21107_v44, %v24579_v18  ;;  %v12003_v10 = vpop.f32.mrb[27].mxu1 }
 0x3fd   : > { %12048 = vst.msk [vmem:[#allocation3 + $0x130] sm:$0xff] %vm515_vm2, %v12040_v42  ;;  %v9294_v48 = vmax.f32 %v21635_v43, 0.0  ;;  %v21645_v53 = vadd.f32 %v24579_v18, %v12003_v10  ;;  %v20855_v28 = vpop.f32.mrb[26].mxu0  ;;  %v18766_v42 = vld [vmem:[%s25996_s7 + $0x8] sm:$0xf] }
 0x3fe   : > { %9303 = vst.msk [vmem:[#allocation3 + $0xd8] sm:$0xff] %vm515_vm2, %v9295_v51  ;;  %v12043_v37 = vmax.f32 %v21644_v63, 0.0  ;;  %v21636_v55 = vadd.f32 %v20855_v28, %v24579_v18  ;;  %v9257_v58 = vpop.f32.mrb[27].mxu0 }
 0x3ff   : > { %9302 = vst.msk [vmem:[#allocation3 + $0xd0] sm:$0xff] %vm515_vm2, %v9294_v48  ;;  %v12042_v25 = vmax.f32 %v21645_v53, 0.0  ;;  %v21637_v39 = vadd.f32 %v24579_v18, %v9257_v58  ;;  %v21110_v46 = vpop.f32.mrb[28].mxu1 }
 0x400   : > { %12051 = vst.msk [vmem:[#allocation3 + $0x148] sm:$0xff] %vm515_vm2, %v12043_v37  ;;  %v9297_v54 = vmax.f32 %v21636_v55, 0.0  ;;  %v21646_v12 = vadd.f32 %v21110_v46, %v24579_v18  ;;  %v12013_v3 = vpop.f32.mrb[29].mxu1 }
 0x401   : > { %12050 = vst.msk [vmem:[#allocation3 + $0x140] sm:$0xff] %vm515_vm2, %v12042_v25  ;;  %v9296_v57 = vmax.f32 %v21637_v39, 0.0  ;;  %v21647_v4 = vadd.f32 %v24579_v18, %v12013_v3  ;;  %v20858_v8 = vpop.f32.mrb[28].mxu0 }
 0x402   : > { %9305 = vst.msk [vmem:[#allocation3 + $0xe8] sm:$0xff] %vm515_vm2, %v9297_v54  ;;  %v12045_v23 = vmax.f32 %v21646_v12, 0.0  ;;  %v21638_v17 = vadd.f32 %v20858_v8, %v24579_v18  ;;  %v9267_v49 = vpop.f32.mrb[29].mxu0  ;;  %v13602_v54 = vld [vmem:[#allocation3 + $0x128] sm:$0xff] }
 0x403   : > { %9304 = vst.msk [vmem:[#allocation3 + $0xe0] sm:$0xff] %vm515_vm2, %v9296_v57  ;;  %v12044_v15 = vmax.f32 %v21647_v4, 0.0  ;;  %v21639_v14 = vadd.f32 %v24579_v18, %v9267_v49  ;;  %v21113_v5 = vpop.f32.mrb[30].mxu1  ;;  %v18687_v57 = vld [vmem:[%s25996_s7 + $0xc] sm:$0xf] }
 0x404   : > { %12053 = vst.msk [vmem:[#allocation3 + $0x158] sm:$0xff] %vm515_vm2, %v12045_v23  ;;  %v9299_v16 = vmax.f32 %v21638_v17, 0.0  ;;  %v21648_v20 = vadd.f32 %v21113_v5, %v24579_v18  ;;  %v12023_v24 = vpop.f32.mrb[31].mxu1  ;;  %v24979_v29 = vld [vmem:[#allocation3 + $0x12f] sm:$0xff]  ;;  %v24981_v1 = vld [vmem:[#allocation3 + $0x137] sm:$0xff] }
 0x405   : > { %12052 = vst.msk [vmem:[#allocation3 + $0x150] sm:$0xff] %vm515_vm2, %v12044_v15  ;;  %v9298_v35 = vmax.f32 %v21639_v14, 0.0  ;;  %v21649_v38 = vadd.f32 %v24579_v18, %v12023_v24  ;;  %v20861_v32 = vpop.f32.mrb[30].mxu0  ;;  %v12073_v11 = vmul.f32 %v22677_v27, %v24979_v29  ;;  %v12074_v26 = vmul.f32 %v22698_v36, %v24981_v1  ;;  %v25067_v3 = vld [vmem:[#allocation3 + $0x130] sm:$0xff]  ;;  %v18776_v4 = vld [vmem:[%s25996_s7 + $0xc] sm:$0xf] }
 0x406   : > { %9307 = vst.msk [vmem:[#allocation3 + $0xf8] sm:$0xff] %vm515_vm2, %v9299_v16  ;;  %v12047_v34 = vmax.f32 %v21648_v20, 0.0  ;;  %v21640_v45 = vadd.f32 %v20861_v32, %v24579_v18  ;;  %v9277_v60 = vpop.f32.mrb[31].mxu0  ;;  %v24991_v31 = vld [vmem:[#allocation3 + $0xd0] sm:$0xff] }
 0x407   : > { %9306 = vst.msk [vmem:[#allocation3 + $0xf0] sm:$0xff] %vm515_vm2, %v9298_v35  ;;  %v12046_v30 = vmax.f32 %v21649_v38, 0.0  ;;  %v21641_v40 = vadd.f32 %v24579_v18, %v9277_v60  ;;  %21117 = vmatmul.mubr.msk.f32.vlgmr.msra.gmra.mrb[32].mxu0 %vm515_vm2, %v12073_v11  ;;  %21243 = vmatmul.mubr.msk.f32.vlgmr.msra.gmra.mrb[32].mxu1 %vm515_vm2, %v24991_v31  ;;  %v25009_v18 = vld [vmem:[#allocation3 + $0xd8] sm:$0xff]  ;;  %v25095_v23 = vld [vmem:[#allocation3 + $0x148] sm:$0xff]  ;;  %v18697_v11 = vld [vmem:[%s25996_s7 + $0x10] sm:$0xf] }
 0x408   : > { %12055 = vst.msk [vmem:[#allocation3 + $0x168] sm:$0xff] %vm515_vm2, %v12047_v34  ;;  %v9301_v43 = vmax.f32 %v21640_v45, 0.0  ;;  %21129 = vmatpush3.msk.msra.mxu0 %vm1110_vm1, %v24940_v19  ;;  %21255 = vmatpush3.msk.msra.mxu1 %vm1110_vm1, %v24952_v13  ;;  %v25011_v44 = vld [vmem:[#allocation3 + $0x13f] sm:$0xff]  ;;  %v25013_v51 = vld [vmem:[#allocation3 + $0x147] sm:$0xff]  ;;  %v25116_v16 = vld [vmem:[#allocation3 + $0xd1] sm:$0xff] }
 0x409   : > { %12054 = vst.msk [vmem:[#allocation3 + $0x160] sm:$0xff] %vm515_vm2, %v12046_v30  ;;  %v9300_v63 = vmax.f32 %v21641_v40, 0.0  ;;  %21119 = vmatprep.mubr.msk.f32.mxu0 %vm515_vm2, %v12074_v26  ;;  %21245 = vmatprep.mubr.msk.f32.mxu1 %vm515_vm2, %v25009_v18  ;;  %v12075_v19 = vmul.f32 %v22709_v41, %v25011_v44  ;;  %v12076_v13 = vmul.f32 %v22733_v52, %v25013_v51  ;;  %v25032_v48 = vld [vmem:[#allocation3 + $0xe8] sm:$0xff]  ;;  %v25087_v8 = vld [vmem:[#allocation3 + $0x140] sm:$0xff]  ;;  %v18786_v26 = vld [vmem:[%s25996_s7 + $0x10] sm:$0xf] }
 0x40a   : > { %9309 = vst.msk [vmem:[#allocation3 + $0x108] sm:$0xff] %vm515_vm2, %v9301_v43  ;;  %v25024_v10 = vld [vmem:[#allocation3 + $0xe0] sm:$0xff]  ;;  %21142 = vmatprep.subr.msk.mxu0 %vm1110_vm1, %v18677_v21  ;;  %21268 = vmatprep.subr.msk.mxu1 %vm1110_vm1, %v18766_v42  ;;  %v13751_v15 = vld [vmem:[#allocation3 + $0xc9] sm:$0xff]  ;;  %v13760_v24 = vmul.f32 %v22719_v47, %v25116_v16 }
 0x40b   : > { %9308 = vst.msk [vmem:[#allocation3 + $0x100] sm:$0xff] %vm515_vm2, %v9300_v63  ;;  %21120 = vmatmul.mubr.msk.f32.gmra.mrb[34].mxu0 %vm515_vm2, %v12075_v19  ;;  %21246 = vmatmul.mubr.msk.f32.gmra.mrb[34].mxu1 %vm515_vm2, %v25024_v10  ;;  %v25107_v49 = vld [vmem:[#allocation3 + $0x158] sm:$0xff]  ;;  %v13759_v5 = vmul.f32 %v22687_v33, %v13751_v15  ;;  %v25128_v35 = vld [vmem:[#allocation3 + $0xe1] sm:$0xff]  ;;  %v12521_v43 = vld [vmem:[#allocation3 + $0x6f] sm:$0xff] }
 0x40c   : > { %21122 = vmatprep.mubr.msk.f32.mxu0 %vm515_vm2, %v12076_v13  ;;  %21248 = vmatprep.mubr.msk.f32.mxu1 %vm515_vm2, %v25032_v48  ;;  %v25037_v53 = vld [vmem:[#allocation3 + $0x14f] sm:$0xff]  ;;  %v25039_v28 = vld [vmem:[#allocation3 + $0x157] sm:$0xff]  ;;  %v13762_v34 = vmul.f32 %v22752_v61, %v25128_v35  ;;  %v25179_v19 = vmul.f32 %v22666_v22, %v12521_v43 }
 0x40d   : > { %v12077_v37 = vmul.f32 %v22744_v56, %v25037_v53  ;;  %v12078_v55 = vmul.f32 %v22761_v0, %v25039_v28  ;;  %v25050_v25 = vld [vmem:[#allocation3 + $0xf8] sm:$0xff]  ;;  %v25101_v17 = vld [vmem:[#allocation3 + $0x150] sm:$0xff] }
 0x40e   : > { %v25045_v58 = vld [vmem:[#allocation3 + $0xf0] sm:$0xff]  ;;  %v25124_v20 = vld [vmem:[#allocation3 + $0xd9] sm:$0xff] }
 0x40f   : > { %21123 = vmatmul.mubr.msk.f32.gmra.mrb[36].mxu0 %vm515_vm2, %v12077_v37  ;;  %21249 = vmatmul.mubr.msk.f32.gmra.mrb[36].mxu1 %vm515_vm2, %v25045_v58  ;;  %v13761_v38 = vmul.f32 %v22726_v50, %v25124_v20  ;;  %v25135_v32 = vld [vmem:[#allocation3 + $0xe9] sm:$0xff]  ;;  %v25152_v60 = vld [vmem:[#allocation3 + $0xf1] sm:$0xff] }
 0x410   : > { %21125 = vmatprep.mubr.msk.f32.mxu0 %vm515_vm2, %v12078_v55  ;;  %21251 = vmatprep.mubr.msk.f32.mxu1 %vm515_vm2, %v25050_v25  ;;  %v25055_v39 = vld [vmem:[#allocation3 + $0x15f] sm:$0xff]  ;;  %v13763_v45 = vmul.f32 %v22755_v62, %v25135_v32  ;;  %v13764_v40 = vmul.f32 %v22785_v9, %v25152_v60  ;;  %v25181_v13 = vld [vmem:[#allocation3 + $0x77] sm:$0xff]  ;;  %v12525_v15 = vld [vmem:[#allocation3 + $0x8f] sm:$0xff] }
 0x411   : > { %v12079_v46 = vmul.f32 %v22765_v2, %v25055_v39  ;;  %v25113_v14 = vld [vmem:[#allocation3 + $0x160] sm:$0xff]  ;;  %26034 = vst [vmem:[#allocation5_spill] sm:$0xff] %v25181_v13  ;;  %v25186_v37 = vld [vmem:[#allocation3 + $0x10] sm:$0xff] }
 0x412   : > { %v25059_v12 = vld [vmem:[#allocation3 + $0x100] sm:$0xff] }
 0x413   : > { %21126 = vmatmul.mubr.msk.f32.gmra.mrb[38].mxu0 %vm515_vm2, %v12079_v46  ;;  %21252 = vmatmul.mubr.msk.f32.gmra.mrb[38].mxu1 %vm515_vm2, %v25059_v12  ;;  %v25159_v30 = vld [vmem:[#allocation3 + $0xf9] sm:$0xff]  ;;  %v25194_v46 = vmul.f32 %v22677_v27, %v25181_v13  ;;  %v25266_v13 = vld [vmem:[#allocation3 + $0x70] sm:$0xff] }
 0x414   : > { %21130 = vmatprep.mubr.msk.f32.mxu0 %vm515_vm2, %v24942_v59  ;;  %21256 = vmatprep.mubr.msk.f32.mxu1 %vm515_vm2, %v13602_v54  ;;  %v25081_v59 = vld [vmem:[#allocation3 + $0x138] sm:$0xff]  ;;  %26047 = vst [vmem:[#allocation18_spill] sm:$0xff] %v25266_v13 }
 0x415   : > { %v12523_v55 = vld [vmem:[#allocation3 + $0x7f] sm:$0xff] }
 0x417   : > { %21131 = vmatmul.mubr.msk.f32.vlgmr.msra.gmra.mrb[32].mxu0 %vm515_vm2, %v24991_v31  ;;  %21257 = vmatmul.mubr.msk.f32.vlgmr.msra.gmra.mrb[32].mxu1 %vm515_vm2, %v25067_v3 }
 0x418   : > { %21143 = vmatpush3.msk.msra.mxu0 %vm1110_vm1, %v18677_v21  ;;  %21269 = vmatpush3.msk.msra.mxu1 %vm1110_vm1, %v18766_v42  ;;  %v13765_v21 = vmul.f32 %v22776_v6, %v25159_v30  ;;  %v25168_v42 = vld [vmem:[#allocation3 + $0x101] sm:$0xff] }
 0x419   : > { %21133 = vmatprep.mubr.msk.f32.mxu0 %vm515_vm2, %v25009_v18  ;;  %21259 = vmatprep.mubr.msk.f32.mxu1 %vm515_vm2, %v25081_v59  ;;  %v13766_v63 = vmul.f32 %v22779_v7, %v25168_v42 }
 0x41a   : > { %21156 = vmatprep.subr.msk.mxu0 %vm1110_vm1, %v18687_v57  ;;  %21282 = vmatprep.subr.msk.mxu1 %vm1110_vm1, %v18776_v4 }
 0x41b   : > { %21134 = vmatmul.mubr.msk.f32.gmra.mrb[34].mxu0 %vm515_vm2, %v25024_v10  ;;  %21260 = vmatmul.mubr.msk.f32.gmra.mrb[34].mxu1 %vm515_vm2, %v25087_v8 }
 0x41c   : > { %21136 = vmatprep.mubr.msk.f32.mxu0 %vm515_vm2, %v25032_v48  ;;  %21262 = vmatprep.mubr.msk.f32.mxu1 %vm515_vm2, %v25095_v23 }
 0x41f   : > { %21137 = vmatmul.mubr.msk.f32.gmra.mrb[36].mxu0 %vm515_vm2, %v25045_v58  ;;  %21263 = vmatmul.mubr.msk.f32.gmra.mrb[36].mxu1 %vm515_vm2, %v25101_v17 }
 0x420   : > { %21139 = vmatprep.mubr.msk.f32.mxu0 %vm515_vm2, %v25050_v25  ;;  %21265 = vmatprep.mubr.msk.f32.mxu1 %vm515_vm2, %v25107_v49 }
 0x423   : > { %21140 = vmatmul.mubr.msk.f32.gmra.mrb[38].mxu0 %vm515_vm2, %v25059_v12  ;;  %21266 = vmatmul.mubr.msk.f32.gmra.mrb[38].mxu1 %vm515_vm2, %v25113_v14 }
 0x424   : > { %21270 = vmatprep.mubr.msk.f32.mxu1 %vm515_vm2, %v13759_v5  ;;  %21144 = vmatprep.mubr.msk.f32.mxu0 %vm515_vm2, %v13602_v54  ;;  %v25196_v54 = vld [vmem:[#allocation3 + $0x18] sm:$0xff]  ;;  %v18707_v5 = vld [vmem:[%s25996_s7 + $0x14] sm:$0xf] }
 0x427   : > { %21145 = vmatmul.mubr.msk.f32.vlgmr.msra.gmra.mrb[32].mxu0 %vm515_vm2, %v25067_v3  ;;  %21271 = vmatmul.mubr.msk.f32.vlgmr.msra.gmra.mrb[32].mxu1 %vm515_vm2, %v13760_v24  ;;  %v18796_v24 = vld [vmem:[%s25996_s7 + $0x14] sm:$0xf] }
 0x428   : > { %21157 = vmatpush3.msk.msra.mxu0 %vm1110_vm1, %v18687_v57  ;;  %21283 = vmatpush3.msk.msra.mxu1 %vm1110_vm1, %v18776_v4  ;;  %v12524_v57 = vld [vmem:[#allocation3 + $0x87] sm:$0xff]  ;;  %v25203_v4 = vmul.f32 %v22698_v36, %v12523_v55 }
 0x429   : > { %21147 = vmatprep.mubr.msk.f32.mxu0 %vm515_vm2, %v25081_v59  ;;  %21273 = vmatprep.mubr.msk.f32.mxu1 %vm515_vm2, %v13761_v38  ;;  %v25213_v38 = vld [vmem:[#allocation3 + $0x20] sm:$0xff] }
 0x42a   : > { %21170 = vmatprep.subr.msk.mxu0 %vm1110_vm1, %v18697_v11  ;;  %21296 = vmatprep.subr.msk.mxu1 %vm1110_vm1, %v18786_v26  ;;  %26035 = vst [vmem:[#allocation6_spill] sm:$0xff] %v25203_v4  ;;  %26036 = vst [vmem:[#allocation7_spill] sm:$0xff] %v25213_v38 }
 0x42b   : > { %21148 = vmatmul.mubr.msk.f32.gmra.mrb[34].mxu0 %vm515_vm2, %v25087_v8  ;;  %21274 = vmatmul.mubr.msk.f32.gmra.mrb[34].mxu1 %vm515_vm2, %v13762_v34  ;;  %v25220_v34 = vmul.f32 %v22709_v41, %v12524_v57  ;;  %v12528_v57 = vld [vmem:[#allocation3 + $0xa7] sm:$0xff] }
 0x42c   : > { %21150 = vmatprep.mubr.msk.f32.mxu0 %vm515_vm2, %v25095_v23  ;;  %21276 = vmatprep.mubr.msk.f32.mxu1 %vm515_vm2, %v13763_v45  ;;  %v25222_v45 = vld [vmem:[#allocation3 + $0x28] sm:$0xff] }
 0x42d   : > { %26037 = vst [vmem:[#allocation8_spill] sm:$0xff] %v25220_v34  ;;  %26038 = vst [vmem:[#allocation9_spill] sm:$0xff] %v25222_v45 }
 0x42f   : > { %21151 = vmatmul.mubr.msk.f32.gmra.mrb[36].mxu0 %vm515_vm2, %v25101_v17  ;;  %21277 = vmatmul.mubr.msk.f32.gmra.mrb[36].mxu1 %vm515_vm2, %v13764_v40  ;;  %v25225_v40 = vmul.f32 %v22733_v52, %v12525_v15  ;;  %v25251_v15 = vld [vmem:[#allocation3 + $0x40] sm:$0xff] }
 0x430   : > { %21153 = vmatprep.mubr.msk.f32.mxu0 %vm515_vm2, %v25107_v49  ;;  %21279 = vmatprep.mubr.msk.f32.mxu1 %vm515_vm2, %v13765_v21  ;;  %v12526_v21 = vld [vmem:[#allocation3 + $0x97] sm:$0xff]  ;;  %26044 = vst [vmem:[#allocation15_spill] sm:$0xff] %v25251_v15 }
 0x431   : > { %26039 = vst [vmem:[#allocation10_spill] sm:$0xff] %v25225_v40  ;;  %v25240_v43 = vmul.f32 %v22744_v56, %v12526_v21  ;;  %v25258_v21 = vmul.f32 %v22765_v2, %v12528_v57  ;;  %v18717_v57 = vld [vmem:[%s25996_s7 + $0x18] sm:$0xf] }
 0x433   : > { %21154 = vmatmul.mubr.msk.f32.gmra.mrb[38].mxu0 %vm515_vm2, %v25113_v14  ;;  %21280 = vmatmul.mubr.msk.f32.gmra.mrb[38].mxu1 %vm515_vm2, %v13766_v63  ;;  %26041 = vst [vmem:[#allocation12_spill] sm:$0xff] %v25240_v43  ;;  %v25242_v63 = vld [vmem:[#allocation3 + $0x38] sm:$0xff]  ;;  %26045 = vst [vmem:[#allocation16_spill] sm:$0xff] %v25258_v21 }
 0x434   : > { %21158 = vmatprep.mubr.msk.f32.mxu0 %vm515_vm2, %v25179_v19  ;;  %21284 = vmatprep.mubr.msk.f32.mxu1 %vm515_vm2, %v25186_v37  ;;  %26042 = vst [vmem:[#allocation13_spill] sm:$0xff] %v25242_v63 }
 0x437   : > { %21159 = vmatmul.mubr.msk.f32.vlgmr.msra.gmra.mrb[32].mxu0 %vm515_vm2, %v25194_v46  ;;  %21285 = vmatmul.mubr.msk.f32.vlgmr.msra.gmra.mrb[32].mxu1 %vm515_vm2, %v25196_v54 }
 0x438   : > { %21171 = vmatpush3.msk.msra.mxu0 %vm1110_vm1, %v18697_v11  ;;  %21297 = vmatpush3.msk.msra.mxu1 %vm1110_vm1, %v18786_v26  ;;  %v25233_v11 = vld [vmem:[#allocation3 + $0x30] sm:$0xff]  ;;  %v12527_v26 = vld [vmem:[#allocation3 + $0x9f] sm:$0xff] }
 0x439   : > { %21161 = vmatprep.mubr.msk.f32.mxu0 %vm515_vm2, %v25203_v4  ;;  %21287 = vmatprep.mubr.msk.f32.mxu1 %vm515_vm2, %v25213_v38  ;;  %26040 = vst [vmem:[#allocation11_spill] sm:$0xff] %v25233_v11  ;;  %v25245_v55 = vmul.f32 %v22761_v0, %v12527_v26  ;;  %v25260_v26 = vld [vmem:[#allocation3 + $0x48] sm:$0xff]  ;;  %v25323_v4 = vld [vmem:[#allocation3 + $0x19] sm:$0xff] }
 0x43a   : > { %21184 = vmatprep.subr.msk.mxu0 %vm1110_vm1, %v18707_v5  ;;  %21310 = vmatprep.subr.msk.mxu1 %vm1110_vm1, %v18796_v24  ;;  %26046 = vst [vmem:[#allocation17_spill] sm:$0xff] %v25260_v26  ;;  %26050 = vst [vmem:[#allocation21_spill] sm:$0xff] %v25323_v4 }
 0x43b   : > { %21162 = vmatmul.mubr.msk.f32.gmra.mrb[34].mxu0 %vm515_vm2, %v25220_v34  ;;  %21288 = vmatmul.mubr.msk.f32.gmra.mrb[34].mxu1 %vm515_vm2, %v25222_v45  ;;  %26043 = vst [vmem:[#allocation14_spill] sm:$0xff] %v25245_v55  ;;  %v14206_v34 = vld [vmem:[#allocation3 + $0x11] sm:$0xff] }
 0x43c   : > { %21164 = vmatprep.mubr.msk.f32.mxu0 %vm515_vm2, %v25225_v40  ;;  %21290 = vmatprep.mubr.msk.f32.mxu1 %vm515_vm2, %v25233_v11  ;;  %v25292_v40 = vld [vmem:[#allocation3 + $0x88] sm:$0xff] }
 0x43f   : > { %21165 = vmatmul.mubr.msk.f32.gmra.mrb[36].mxu0 %vm515_vm2, %v25240_v43  ;;  %21291 = vmatmul.mubr.msk.f32.gmra.mrb[36].mxu1 %vm515_vm2, %v25242_v63  ;;  %v25286_v43 = vld [vmem:[#allocation3 + $0x80] sm:$0xff] }
 0x440   : > { %21167 = vmatprep.mubr.msk.f32.mxu0 %vm515_vm2, %v25245_v55  ;;  %21293 = vmatprep.mubr.msk.f32.mxu1 %vm515_vm2, %v25251_v15  ;;  %v25272_v55 = vld [vmem:[#allocation3 + $0x78] sm:$0xff] }
 0x441   : > { %26048 = vst [vmem:[#allocation19_spill] sm:$0xff] %v25272_v55 }
 0x443   : > { %21168 = vmatmul.mubr.msk.f32.gmra.mrb[38].mxu0 %vm515_vm2, %v25258_v21  ;;  %21294 = vmatmul.mubr.msk.f32.gmra.mrb[38].mxu1 %vm515_vm2, %v25260_v26  ;;  %v18806_v21 = vld [vmem:[%s25996_s7 + $0x18] sm:$0xf] }
 0x444   : > { %21172 = vmatprep.mubr.msk.f32.mxu0 %vm515_vm2, %v25186_v37  ;;  %21298 = vmatprep.mubr.msk.f32.mxu1 %vm515_vm2, %v25266_v13 }
 0x447   : > { %21173 = vmatmul.mubr.msk.f32.vlgmr.msra.gmra.mrb[32].mxu0 %vm515_vm2, %v25196_v54  ;;  %21299 = vmatmul.mubr.msk.f32.vlgmr.msra.gmra.mrb[32].mxu1 %vm515_vm2, %v25272_v55 }
 0x448   : > { %21185 = vmatpush3.msk.msra.mxu0 %vm1110_vm1, %v18707_v5  ;;  %21311 = vmatpush3.msk.msra.mxu1 %vm1110_vm1, %v18796_v24  ;;  %v25300_v5 = vld [vmem:[#allocation3 + $0x90] sm:$0xff]  ;;  %v25306_v24 = vld [vmem:[#allocation3 + $0x98] sm:$0xff] }
 0x449   : > { %21175 = vmatprep.mubr.msk.f32.mxu0 %vm515_vm2, %v25213_v38  ;;  %21301 = vmatprep.mubr.msk.f32.mxu1 %vm515_vm2, %v25286_v43  ;;  %v25321_v38 = vmul.f32 %v22687_v33, %v14206_v34  ;;  %v25337_v34 = vmul.f32 %v22719_v47, %v25323_v4  ;;  %v18816_v4 = vld [vmem:[%s25996_s7 + $0x1c] sm:$0xf] }
 0x44a   : > { %21198 = vmatprep.subr.msk.mxu0 %vm1110_vm1, %v18717_v57  ;;  %21324 = vmatprep.subr.msk.mxu1 %vm1110_vm1, %v18806_v21 }
 0x44b   : > { %21176 = vmatmul.mubr.msk.f32.gmra.mrb[34].mxu0 %vm515_vm2, %v25222_v45  ;;  %21302 = vmatmul.mubr.msk.f32.gmra.mrb[34].mxu1 %vm515_vm2, %v25292_v40  ;;  %v25312_v45 = vld [vmem:[#allocation3 + $0xa0] sm:$0xff]  ;;  %26049 = vst [vmem:[#allocation20_spill] sm:$0xff] %v25321_v38  ;;  %26052 = vst [vmem:[#allocation23_spill] sm:$0xff] %v25337_v34 }
 0x44c   : > { %21178 = vmatprep.mubr.msk.f32.mxu0 %vm515_vm2, %v25233_v11  ;;  %21304 = vmatprep.mubr.msk.f32.mxu1 %vm515_vm2, %v25300_v5  ;;  %v25318_v11 = vld [vmem:[#allocation3 + $0xa8] sm:$0xff] }
 0x44f   : > { %21179 = vmatmul.mubr.msk.f32.gmra.mrb[36].mxu0 %vm515_vm2, %v25242_v63  ;;  %21305 = vmatmul.mubr.msk.f32.gmra.mrb[36].mxu1 %vm515_vm2, %v25306_v24  ;;  %v25339_v63 = vld [vmem:[#allocation3 + $0x29] sm:$0xff] }
 0x450   : > { %21181 = vmatprep.mubr.msk.f32.mxu0 %vm515_vm2, %v25251_v15  ;;  %21307 = vmatprep.mubr.msk.f32.mxu1 %vm515_vm2, %v25312_v45  ;;  %v25333_v15 = vld [vmem:[#allocation3 + $0x21] sm:$0xff]  ;;  %26053 = vst [vmem:[#allocation24_spill] sm:$0xff] %v25339_v63 }
 0x451   : > { %26051 = vst [vmem:[#allocation22_spill] sm:$0xff] %v25333_v15 }
 0x453   : > { %21182 = vmatmul.mubr.msk.f32.gmra.mrb[38].mxu0 %vm515_vm2, %v25260_v26  ;;  %21308 = vmatmul.mubr.msk.f32.gmra.mrb[38].mxu1 %vm515_vm2, %v25318_v11  ;;  %v25349_v26 = vld [vmem:[#allocation3 + $0x31] sm:$0xff] }
 0x454   : > { %21186 = vmatprep.mubr.msk.f32.mxu0 %vm515_vm2, %v25266_v13  ;;  %21312 = vmatprep.mubr.msk.f32.mxu1 %vm515_vm2, %v25321_v38  ;;  %v25347_v13 = vmul.f32 %v22726_v50, %v25333_v15  ;;  %26054 = vst [vmem:[#allocation25_spill] sm:$0xff] %v25349_v26  ;;  %v18727_v38 = vld [vmem:[%s25996_s7 + $0x1c] sm:$0xf]  ;;  %v25365_v15 = vmul.f32 %v22752_v61, %v25339_v63  ;;  %v25393_v63 = vld [vmem:[#allocation3 + $0x49] sm:$0xff] }
 0x455   : > { %26057 = vst [vmem:[#allocation28_spill] sm:$0xff] %v25393_v63 }
 0x457   : > { %21187 = vmatmul.mubr.msk.f32.vlgmr.msra.gmra.mrb[32].mxu0 %vm515_vm2, %v25272_v55  ;;  %21313 = vmatmul.mubr.msk.f32.vlgmr.msra.gmra.mrb[32].mxu1 %vm515_vm2, %v25337_v34  ;;  %v25369_v34 = vmul.f32 %v22755_v62, %v25349_v26  ;;  %v25371_v55 = vld [vmem:[#allocation3 + $0x39] sm:$0xff] }
 0x458   : > { %21199 = vmatpush3.msk.msra.mxu0 %vm1110_vm1, %v18717_v57  ;;  %21325 = vmatpush3.msk.msra.mxu1 %vm1110_vm1, %v18806_v21  ;;  %26055 = vst [vmem:[#allocation26_spill] sm:$0xff] %v25371_v55  ;;  %v25379_v21 = vld [vmem:[#allocation3 + $0x41] sm:$0xff]  ;;  %v25387_v57 = vmul.f32 %v22785_v9, %v25371_v55  ;;  %v25405_v55 = vmul.f32 %v22779_v7, %v25393_v63 }
 0x459   : > { %21189 = vmatprep.mubr.msk.f32.mxu0 %vm515_vm2, %v25286_v43  ;;  %21315 = vmatprep.mubr.msk.f32.mxu1 %vm515_vm2, %v25347_v13  ;;  %26056 = vst [vmem:[#allocation27_spill] sm:$0xff] %v25379_v21  ;;  %v25391_v26 = vmul.f32 %v22776_v6, %v25379_v21  ;;  %v25409_v21 = vmul.f32 %v22666_v22, %v24979_v29  ;;  %v18737_v22 = vld [vmem:[%s25996_s7 + $0x20] sm:$0xf] }
 0x45a   : > { %21212 = vmatprep.subr.msk.mxu0 %vm1110_vm1, %v18727_v38  ;;  %21338 = vmatprep.subr.msk.mxu1 %vm1110_vm1, %v18816_v4  ;;  %v12988_v63 = vmul.f32 %v22677_v27, %v24981_v1  ;;  %v12989_v29 = vmul.f32 %v22698_v36, %v25011_v44  ;;  %v12990_v1 = vmul.f32 %v22709_v41, %v25013_v51 }
 0x45b   : > { %21190 = vmatmul.mubr.msk.f32.gmra.mrb[34].mxu0 %vm515_vm2, %v25292_v40  ;;  %21316 = vmatmul.mubr.msk.f32.gmra.mrb[34].mxu1 %vm515_vm2, %v25365_v15  ;;  %26058 = vst [vmem:[#allocation29_spill] sm:$0xff] %v25409_v21  ;;  %v12991_v44 = vmul.f32 %v22733_v52, %v25037_v53  ;;  %v12992_v51 = vmul.f32 %v22744_v56, %v25039_v28  ;;  %v14851_v28 = vld [vmem:[%s25996_s7] sm:$0xf] }
 0x45c   : > { %21192 = vmatprep.mubr.msk.f32.mxu0 %vm515_vm2, %v25300_v5  ;;  %21318 = vmatprep.mubr.msk.f32.mxu1 %vm515_vm2, %v25369_v34  ;;  %v12993_v53 = vmul.f32 %v22761_v0, %v25055_v39  ;;  %v16225_v39 = vld [vmem:[%s25996_s7] sm:$0xf] }
 0x45f   : > { %21193 = vmatmul.mubr.msk.f32.gmra.mrb[36].mxu0 %vm515_vm2, %v25306_v24  ;;  %21319 = vmatmul.mubr.msk.f32.gmra.mrb[36].mxu1 %vm515_vm2, %v25387_v57 }
 0x460   : > { %21195 = vmatprep.mubr.msk.f32.mxu0 %vm515_vm2, %v25312_v45  ;;  %21321 = vmatprep.mubr.msk.f32.mxu1 %vm515_vm2, %v25391_v26 }
 0x463   : > { %21196 = vmatmul.mubr.msk.f32.gmra.mrb[38].mxu0 %vm515_vm2, %v25318_v11  ;;  %21322 = vmatmul.mubr.msk.f32.gmra.mrb[38].mxu1 %vm515_vm2, %v25405_v55 }
 0x464   : > { %21200 = vmatprep.mubr.msk.f32.mxu0 %vm515_vm2, %v25409_v21  ;;  %21326 = vmatprep.mubr.msk.f32.mxu1 %vm515_vm2, %v24991_v31  ;;  %v18826_v21 = vld [vmem:[%s25996_s7 + $0x20] sm:$0xf] }
 0x467   : > { %21201 = vmatmul.mubr.msk.f32.vlgmr.msra.gmra.mrb[32].mxu0 %vm515_vm2, %v12988_v63  ;;  %21327 = vmatmul.mubr.msk.f32.vlgmr.msra.gmra.mrb[32].mxu1 %vm515_vm2, %v25009_v18  ;;  %v25462_v63 = vld [vmem:[#allocation3 + $0x108] sm:$0xff] }
 0x468   : > { %21213 = vmatpush3.msk.msra.mxu0 %vm1110_vm1, %v18727_v38  ;;  %21339 = vmatpush3.msk.msra.mxu1 %vm1110_vm1, %v18816_v4  ;;  %v12986_v4 = vld [vmem:[#allocation3 + $0x167] sm:$0xff] }
 0x469   : > { %21203 = vmatprep.mubr.msk.f32.mxu0 %vm515_vm2, %v12989_v29  ;;  %21329 = vmatprep.mubr.msk.f32.mxu1 %vm515_vm2, %v25024_v10  ;;  %v25460_v38 = vmul.f32 %v22765_v2, %v12986_v4  ;;  %v26068_v29 = vld [vmem:[#allocation15_spill] sm:$0xff]  ;;  %v18873_v4 = vld [vmem:[%s25996_s7 + $0xc] sm:$0xf] }
 0x46a   : > { %21226 = vmatprep.subr.msk.mxu0 %vm1110_vm1, %v18737_v22  ;;  %21352 = vmatprep.subr.msk.mxu1 %vm1110_vm1, %v18826_v21 }
 0x46b   : > { %21204 = vmatmul.mubr.msk.f32.gmra.mrb[34].mxu0 %vm515_vm2, %v12990_v1  ;;  %21330 = vmatmul.mubr.msk.f32.gmra.mrb[34].mxu1 %vm515_vm2, %v25032_v48  ;;  %v26069_v1 = vld [vmem:[#allocation16_spill] sm:$0xff] }
 0x46c   : > { %21206 = vmatprep.mubr.msk.f32.mxu0 %vm515_vm2, %v12991_v44  ;;  %21332 = vmatprep.mubr.msk.f32.mxu1 %vm515_vm2, %v25045_v58  ;;  %v26070_v44 = vld [vmem:[#allocation17_spill] sm:$0xff] }
 0x46f   : > { %21207 = vmatmul.mubr.msk.f32.gmra.mrb[36].mxu0 %vm515_vm2, %v12992_v51  ;;  %21333 = vmatmul.mubr.msk.f32.gmra.mrb[36].mxu1 %vm515_vm2, %v25050_v25  ;;  %v26071_v51 = vld [vmem:[#allocation18_spill] sm:$0xff] }
 0x470   : > { %21209 = vmatprep.mubr.msk.f32.mxu0 %vm515_vm2, %v12993_v53  ;;  %21335 = vmatprep.mubr.msk.f32.mxu1 %vm515_vm2, %v25059_v12  ;;  %v26072_v53 = vld [vmem:[#allocation19_spill] sm:$0xff] }
 0x473   : > { %21210 = vmatmul.mubr.msk.f32.gmra.mrb[38].mxu0 %vm515_vm2, %v25460_v38  ;;  %21336 = vmatmul.mubr.msk.f32.gmra.mrb[38].mxu1 %vm515_vm2, %v25462_v63 }
 0x474   : > { %21214 = vmatprep.mubr.msk.f32.mxu0 %vm515_vm2, %v24991_v31  ;;  %21340 = vmatprep.mubr.msk.f32.mxu1 %vm515_vm2, %v25067_v3 }
 0x477   : > { %21215 = vmatmul.mubr.msk.f32.vlgmr.msra.gmra.mrb[32].mxu0 %vm515_vm2, %v25009_v18  ;;  %21341 = vmatmul.mubr.msk.f32.vlgmr.msra.gmra.mrb[32].mxu1 %vm515_vm2, %v25081_v59  ;;  %v25510_v18 = vmul.f32 %v22687_v33, %v25116_v16  ;;  %v14675_v16 = vmul.f32 %v22776_v6, %v25168_v42  ;;  %v26064_v42 = vld [vmem:[#allocation11_spill] sm:$0xff] }
 0x478   : > { %21227 = vmatpush3.msk.msra.mxu0 %vm1110_vm1, %v18737_v22  ;;  %21353 = vmatpush3.msk.msra.mxu1 %vm1110_vm1, %v18826_v21  ;;  %v25506_v22 = vld [vmem:[#allocation3 + $0x168] sm:$0xff]  ;;  %v26067_v21 = vld [vmem:[#allocation14_spill] sm:$0xff] }
 0x479   : > { %21217 = vmatprep.mubr.msk.f32.mxu0 %vm515_vm2, %v25024_v10  ;;  %21343 = vmatprep.mubr.msk.f32.mxu1 %vm515_vm2, %v25087_v8  ;;  %v14670_v10 = vmul.f32 %v22719_v47, %v25124_v20  ;;  %v14668_v20 = vld [vmem:[#allocation3 + $0x109] sm:$0xff] }
 0x47a   : > { %21366 = vmatprep.subr.msk.mxu0 %vm1110_vm1, %v14851_v28  ;;  %21492 = vmatprep.subr.msk.mxu1 %vm1110_vm1, %v16225_v39 }
 0x47b   : > { %21218 = vmatmul.mubr.msk.f32.gmra.mrb[34].mxu0 %vm515_vm2, %v25032_v48  ;;  %21344 = vmatmul.mubr.msk.f32.gmra.mrb[34].mxu1 %vm515_vm2, %v25095_v23  ;;  %v14671_v48 = vmul.f32 %v22726_v50, %v25128_v35  ;;  %v26060_v35 = vld [vmem:[#allocation7_spill] sm:$0xff] }
 0x47c   : > { %21220 = vmatprep.mubr.msk.f32.mxu0 %vm515_vm2, %v25045_v58  ;;  %21346 = vmatprep.mubr.msk.f32.mxu1 %vm515_vm2, %v25101_v17  ;;  %v18853_v58 = vld [vmem:[%s25996_s7 + $0x4] sm:$0xf] }
 0x47f   : > { %21221 = vmatmul.mubr.msk.f32.gmra.mrb[36].mxu0 %vm515_vm2, %v25050_v25  ;;  %21347 = vmatmul.mubr.msk.f32.gmra.mrb[36].mxu1 %vm515_vm2, %v25107_v49  ;;  %v18950_v25 = vld [vmem:[%s25996_s7 + $0x4] sm:$0xf] }
 0x480   : > { %21223 = vmatprep.mubr.msk.f32.mxu0 %vm515_vm2, %v25059_v12  ;;  %21349 = vmatprep.mubr.msk.f32.mxu1 %vm515_vm2, %v25113_v14  ;;  %v14672_v12 = vmul.f32 %v22752_v61, %v25135_v32  ;;  %v26061_v32 = vld [vmem:[#allocation8_spill] sm:$0xff] }
 0x483   : > { %21224 = vmatmul.mubr.msk.f32.gmra.mrb[38].mxu0 %vm515_vm2, %v25462_v63  ;;  %21350 = vmatmul.mubr.msk.f32.gmra.mrb[38].mxu1 %vm515_vm2, %v25506_v22 }
 0x484   : > { %21228 = vmatprep.mubr.msk.f32.mxu0 %vm515_vm2, %v25067_v3  ;;  %21354 = vmatprep.mubr.msk.f32.mxu1 %vm515_vm2, %v25510_v18 }
 0x487   : > { %21229 = vmatmul.mubr.msk.f32.vlgmr.msra.gmra.mrb[32].mxu0 %vm515_vm2, %v25081_v59  ;;  %21355 = vmatmul.mubr.msk.f32.vlgmr.msra.gmra.mrb[32].mxu1 %vm515_vm2, %v14670_v10  ;;  %v14673_v59 = vmul.f32 %v22755_v62, %v25152_v60  ;;  %v26062_v60 = vld [vmem:[#allocation9_spill] sm:$0xff]  ;;  %v18883_v10 = vld [vmem:[%s25996_s7 + $0x10] sm:$0xf] }
 0x488   : > { %21367 = vmatpush3.msk.msra.mxu0 %vm1110_vm1, %v14851_v28  ;;  %21493 = vmatpush3.msk.msra.mxu1 %vm1110_vm1, %v16225_v39  ;;  %v18970_v28 = vld [vmem:[%s25996_s7 + $0xc] sm:$0xf]  ;;  %v26074_v39 = vld [vmem:[#allocation23_spill] sm:$0xff] }
 0x489   : > { %21231 = vmatprep.mubr.msk.f32.mxu0 %vm515_vm2, %v25087_v8  ;;  %21357 = vmatprep.mubr.msk.f32.mxu1 %vm515_vm2, %v14671_v48  ;;  %v14674_v8 = vmul.f32 %v22785_v9, %v25159_v30  ;;  %v26063_v30 = vld [vmem:[#allocation10_spill] sm:$0xff] }
 0x48a   : > { %21380 = vmatprep.subr.msk.mxu0 %vm1110_vm1, %v18853_v58  ;;  %21506 = vmatprep.subr.msk.mxu1 %vm1110_vm1, %v18950_v25  ;;  %v18980_v48 = vld [vmem:[%s25996_s7 + $0x10] sm:$0xf] }
 0x48b   : > { %21232 = vmatmul.mubr.msk.f32.gmra.mrb[34].mxu0 %vm515_vm2, %v25095_v23  ;;  %21358 = vmatmul.mubr.msk.f32.gmra.mrb[34].mxu1 %vm515_vm2, %v14672_v12  ;;  %v25561_v23 = vmul.f32 %v22779_v7, %v14668_v20  ;;  %v16676_v12 = vld [vmem:[#allocation3 + $0xf0] sm:$0xff] }
 0x48c   : > { %21234 = vmatprep.mubr.msk.f32.mxu0 %vm515_vm2, %v25101_v17  ;;  %21360 = vmatprep.mubr.msk.f32.mxu1 %vm515_vm2, %v14673_v59  ;;  %v18863_v17 = vld [vmem:[%s25996_s7 + $0x8] sm:$0xf]  ;;  %v15296_v59 = vld [vmem:[#allocation3 + $0x15f] sm:$0xff] }
 0x48d   : > { %v15304_v20 = vmul.f32 %v22761_v0, %v15296_v59  ;;  %v17133_v59 = vld [vmem:[#allocation3 + $0x48] sm:$0xff] }
 0x48f   : > { %21235 = vmatmul.mubr.msk.f32.gmra.mrb[36].mxu0 %vm515_vm2, %v25107_v49  ;;  %21361 = vmatmul.mubr.msk.f32.gmra.mrb[36].mxu1 %vm515_vm2, %v14674_v8  ;;  %v18960_v49 = vld [vmem:[%s25996_s7 + $0x8] sm:$0xf] }
 0x490   : > { %21237 = vmatprep.mubr.msk.f32.mxu0 %vm515_vm2, %v25113_v14  ;;  %21363 = vmatprep.mubr.msk.f32.mxu1 %vm515_vm2, %v14675_v16  ;;  %v26059_v14 = vld [vmem:[#allocation6_spill] sm:$0xff]  ;;  %v16677_v16 = vld [vmem:[#allocation3 + $0xf8] sm:$0xff] }
 0x493   : > { %21238 = vmatmul.mubr.msk.f32.gmra.mrb[38].mxu0 %vm515_vm2, %v25506_v22  ;;  %21364 = vmatmul.mubr.msk.f32.gmra.mrb[38].mxu1 %vm515_vm2, %v25561_v23 }
 0x494   : > { %21368 = vmatprep.mubr.msk.f32.mxu0 %vm515_vm2, %v25179_v19  ;;  %21494 = vmatprep.mubr.msk.f32.mxu1 %vm515_vm2, %v25186_v37  ;;  %v26065_v19 = vld [vmem:[#allocation12_spill] sm:$0xff] }
 0x497   : > { %21369 = vmatmul.mubr.msk.f32.vlgmr.msra.gmra.mrb[40].mxu0 %vm515_vm2, %v25194_v46  ;;  %21495 = vmatmul.mubr.msk.f32.vlgmr.msra.gmra.mrb[40].mxu1 %vm515_vm2, %v25196_v54  ;;  %v26066_v46 = vld [vmem:[#allocation13_spill] sm:$0xff] }
 0x498   : > { %21381 = vmatpush3.msk.msra.mxu0 %vm1110_vm1, %v18853_v58  ;;  %21507 = vmatpush3.msk.msra.mxu1 %vm1110_vm1, %v18950_v25  ;;  %v15295_v25 = vld [vmem:[#allocation3 + $0x157] sm:$0xff] }
 0x499   : > { %21371 = vmatprep.mubr.msk.f32.mxu0 %vm515_vm2, %v26059_v14  ;;  %21497 = vmatprep.mubr.msk.f32.mxu1 %vm515_vm2, %v26060_v35  ;;  %v15303_v8 = vmul.f32 %v22744_v56, %v15295_v25  ;;  %v16822_v14 = vld [vmem:[#allocation3 + $0x138] sm:$0xff]  ;;  %v17132_v25 = vld [vmem:[#allocation3 + $0x40] sm:$0xff] }
 0x49a   : > { %21394 = vmatprep.subr.msk.mxu0 %vm1110_vm1, %v18863_v17  ;;  %21520 = vmatprep.subr.msk.mxu1 %vm1110_vm1, %v18960_v49 }
 0x49b   : > { %21372 = vmatmul.mubr.msk.f32.gmra.mrb[42].mxu0 %vm515_vm2, %v26061_v32  ;;  %21498 = vmatmul.mubr.msk.f32.gmra.mrb[42].mxu1 %vm515_vm2, %v26062_v60  ;;  %v16823_v32 = vld [vmem:[#allocation3 + $0x140] sm:$0xff] }
 0x49c   : > { %21374 = vmatprep.mubr.msk.f32.mxu0 %vm515_vm2, %v26063_v30  ;;  %21500 = vmatprep.mubr.msk.f32.mxu1 %vm515_vm2, %v26064_v42  ;;  %v16826_v30 = vld [vmem:[#allocation3 + $0x158] sm:$0xff] }
 0x49f   : > { %21375 = vmatmul.mubr.msk.f32.gmra.mrb[44].mxu0 %vm515_vm2, %v26065_v19  ;;  %21501 = vmatmul.mubr.msk.f32.gmra.mrb[44].mxu1 %vm515_vm2, %v26066_v46  ;;  %v16971_v19 = vld [vmem:[#allocation3 + $0xd9] sm:$0xff] }
 0x4a0   : > { %21377 = vmatprep.mubr.msk.f32.mxu0 %vm515_vm2, %v26067_v21  ;;  %21503 = vmatprep.mubr.msk.f32.mxu1 %vm515_vm2, %v26068_v29  ;;  %v16972_v21 = vld [vmem:[#allocation3 + $0xe1] sm:$0xff] }
 0x4a3   : > { %21378 = vmatmul.mubr.msk.f32.gmra.mrb[46].mxu0 %vm515_vm2, %v26069_v1  ;;  %21504 = vmatmul.mubr.msk.f32.gmra.mrb[46].mxu1 %vm515_vm2, %v26070_v44  ;;  %v16973_v1 = vld [vmem:[#allocation3 + $0xe9] sm:$0xff] }
 0x4a4   : > { %21382 = vmatprep.mubr.msk.f32.mxu0 %vm515_vm2, %v25186_v37  ;;  %21508 = vmatprep.mubr.msk.f32.mxu1 %vm515_vm2, %v26071_v51  ;;  %v26073_v37 = vld [vmem:[#allocation20_spill] sm:$0xff] }
 0x4a7   : > { %21383 = vmatmul.mubr.msk.f32.vlgmr.msra.gmra.mrb[40].mxu0 %vm515_vm2, %v25196_v54  ;;  %21509 = vmatmul.mubr.msk.f32.vlgmr.msra.gmra.mrb[40].mxu1 %vm515_vm2, %v26072_v53 }
 0x4a8   : > { %21395 = vmatpush3.msk.msra.mxu0 %vm1110_vm1, %v18863_v17  ;;  %21521 = vmatpush3.msk.msra.mxu1 %vm1110_vm1, %v18960_v49  ;;  %v16678_v17 = vld [vmem:[#allocation3 + $0x100] sm:$0xff]  ;;  %v15447_v49 = vld [vmem:[#allocation3 + $0xd0] sm:$0xff] }
 0x4a9   : > { %21385 = vmatprep.mubr.msk.f32.mxu0 %vm515_vm2, %v26060_v35  ;;  %21511 = vmatprep.mubr.msk.f32.mxu1 %vm515_vm2, %v25286_v43  ;;  %v18903_v35 = vld [vmem:[%s25996_s7 + $0x18] sm:$0xf] }
 0x4aa   : > { %21408 = vmatprep.subr.msk.mxu0 %vm1110_vm1, %v18873_v4  ;;  %21534 = vmatprep.subr.msk.mxu1 %vm1110_vm1, %v18970_v28 }
 0x4ab   : > { %21386 = vmatmul.mubr.msk.f32.gmra.mrb[42].mxu0 %vm515_vm2, %v26062_v60  ;;  %21512 = vmatmul.mubr.msk.f32.gmra.mrb[42].mxu1 %vm515_vm2, %v25292_v40  ;;  %v16825_v60 = vld [vmem:[#allocation3 + $0x150] sm:$0xff] }
 0x4ac   : > { %21388 = vmatprep.mubr.msk.f32.mxu0 %vm515_vm2, %v26064_v42  ;;  %21514 = vmatprep.mubr.msk.f32.mxu1 %vm515_vm2, %v25300_v5  ;;  %v16827_v42 = vld [vmem:[#allocation3 + $0x160] sm:$0xff] }
 0x4af   : > { %21389 = vmatmul.mubr.msk.f32.gmra.mrb[44].mxu0 %vm515_vm2, %v26066_v46  ;;  %21515 = vmatmul.mubr.msk.f32.gmra.mrb[44].mxu1 %vm515_vm2, %v25306_v24  ;;  %v15596_v46 = vld [vmem:[#allocation3 + $0x130] sm:$0xff] }
 0x4b0   : > { %21391 = vmatprep.mubr.msk.f32.mxu0 %vm515_vm2, %v26068_v29  ;;  %21517 = vmatprep.mubr.msk.f32.mxu1 %vm515_vm2, %v25312_v45  ;;  %v16979_v29 = vmul.f32 %v22719_v47, %v16971_v19 }
 0x4b3   : > { %21392 = vmatmul.mubr.msk.f32.gmra.mrb[46].mxu0 %vm515_vm2, %v26070_v44  ;;  %21518 = vmatmul.mubr.msk.f32.gmra.mrb[46].mxu1 %vm515_vm2, %v25318_v11  ;;  %v16980_v44 = vmul.f32 %v22726_v50, %v16972_v21 }
 0x4b4   : > { %21396 = vmatprep.mubr.msk.f32.mxu0 %vm515_vm2, %v26071_v51  ;;  %21522 = vmatprep.mubr.msk.f32.mxu1 %vm515_vm2, %v26073_v37  ;;  %v18913_v51 = vld [vmem:[%s25996_s7 + $0x1c] sm:$0xf] }
 0x4b5   : > { %v16975_v37 = vld [vmem:[#allocation3 + $0xf9] sm:$0xff] }
 0x4b7   : > { %21397 = vmatmul.mubr.msk.f32.vlgmr.msra.gmra.mrb[40].mxu0 %vm515_vm2, %v26072_v53  ;;  %21523 = vmatmul.mubr.msk.f32.vlgmr.msra.gmra.mrb[40].mxu1 %vm515_vm2, %v26074_v39  ;;  %v16976_v39 = vld [vmem:[#allocation3 + $0x101] sm:$0xff] }
 0x4b8   : > { %21409 = vmatpush3.msk.msra.mxu0 %vm1110_vm1, %v18873_v4  ;;  %21535 = vmatpush3.msk.msra.mxu1 %vm1110_vm1, %v18970_v28  ;;  %v19010_v4 = vld [vmem:[%s25996_s7 + $0x1c] sm:$0xf] }
 0x4b9   : > { %21399 = vmatprep.mubr.msk.f32.mxu0 %vm515_vm2, %v25286_v43  ;;  %21525 = vmatprep.mubr.msk.f32.mxu1 %vm515_vm2, %v25347_v13  ;;  %v15291_v13 = vld [vmem:[#allocation3 + $0x137] sm:$0xff]  ;;  %v15292_v43 = vld [vmem:[#allocation3 + $0x13f] sm:$0xff] }
 0x4ba   : > { %21422 = vmatprep.subr.msk.mxu0 %vm1110_vm1, %v18883_v10  ;;  %21548 = vmatprep.subr.msk.mxu1 %vm1110_vm1, %v18980_v48 }
 0x4bb   : > { %21400 = vmatmul.mubr.msk.f32.gmra.mrb[42].mxu0 %vm515_vm2, %v25292_v40  ;;  %21526 = vmatmul.mubr.msk.f32.gmra.mrb[42].mxu1 %vm515_vm2, %v25365_v15  ;;  %v26075_v40 = vld [vmem:[#allocation29_spill] sm:$0xff]  ;;  %v15299_v15 = vmul.f32 %v22677_v27, %v15291_v13 }
 0x4bc   : > { %21402 = vmatprep.mubr.msk.f32.mxu0 %vm515_vm2, %v25300_v5  ;;  %21528 = vmatprep.mubr.msk.f32.mxu1 %vm515_vm2, %v25369_v34  ;;  %v15293_v5 = vld [vmem:[#allocation3 + $0x147] sm:$0xff] }
 0x4bd   : > { %v15301_v34 = vmul.f32 %v22709_v41, %v15293_v5  ;;  %v26076_v13 = vld [vmem:[#allocation5_spill] sm:$0xff] }
 0x4bf   : > { %21403 = vmatmul.mubr.msk.f32.gmra.mrb[44].mxu0 %vm515_vm2, %v25306_v24  ;;  %21529 = vmatmul.mubr.msk.f32.gmra.mrb[44].mxu1 %vm515_vm2, %v25387_v57  ;;  %v16674_v24 = vld [vmem:[#allocation3 + $0xe0] sm:$0xff]  ;;  %v16675_v57 = vld [vmem:[#allocation3 + $0xe8] sm:$0xff] }
 0x4c0   : > { %21405 = vmatprep.mubr.msk.f32.mxu0 %vm515_vm2, %v25312_v45  ;;  %21531 = vmatprep.mubr.msk.f32.mxu1 %vm515_vm2, %v25391_v26  ;;  %v16673_v45 = vld [vmem:[#allocation3 + $0xd8] sm:$0xff]  ;;  %v15294_v26 = vld [vmem:[#allocation3 + $0x14f] sm:$0xff] }
 0x4c1   : > { %v15302_v58 = vmul.f32 %v22733_v52, %v15294_v26  ;;  %v15748_v26 = vld [vmem:[#allocation3 + $0x8f] sm:$0xff] }
 0x4c3   : > { %21406 = vmatmul.mubr.msk.f32.gmra.mrb[46].mxu0 %vm515_vm2, %v25318_v11  ;;  %21532 = vmatmul.mubr.msk.f32.gmra.mrb[46].mxu1 %vm515_vm2, %v25405_v55  ;;  %v15300_v11 = vmul.f32 %v22698_v36, %v15292_v43  ;;  %v18893_v55 = vld [vmem:[%s25996_s7 + $0x14] sm:$0xf] }
 0x4c4   : > { %21410 = vmatprep.mubr.msk.f32.mxu0 %vm515_vm2, %v26075_v40  ;;  %21536 = vmatprep.mubr.msk.f32.mxu1 %vm515_vm2, %v24991_v31  ;;  %v18990_v31 = vld [vmem:[%s25996_s7 + $0x14] sm:$0xf]  ;;  %v26077_v40 = vld [vmem:[#allocation4_spill] sm:$0xff] }
 0x4c5   : > { %v15753_v43 = vmul.f32 %v26077_v40, %v26076_v13 }
 0x4c7   : > { %21411 = vmatmul.mubr.msk.f32.vlgmr.msra.gmra.mrb[40].mxu0 %vm515_vm2, %v15299_v15  ;;  %21537 = vmatmul.mubr.msk.f32.vlgmr.msra.gmra.mrb[40].mxu1 %vm515_vm2, %v16673_v45  ;;  %v15746_v15 = vld [vmem:[#allocation3 + $0x7f] sm:$0xff] }
 0x4c8   : > { %21423 = vmatpush3.msk.msra.mxu0 %vm1110_vm1, %v18883_v10  ;;  %21549 = vmatpush3.msk.msra.mxu1 %vm1110_vm1, %v18980_v48  ;;  %v16983_v10 = vmul.f32 %v22785_v9, %v16975_v37  ;;  %v16984_v48 = vmul.f32 %v22776_v6, %v16976_v39  ;;  %v15754_v5 = vmul.f32 %v22677_v27, %v15746_v15  ;;  %v17129_v27 = vld [vmem:[#allocation3 + $0x28] sm:$0xff] }
 0x4c9   : > { %21413 = vmatprep.mubr.msk.f32.mxu0 %vm515_vm2, %v15300_v11  ;;  %21539 = vmatprep.mubr.msk.f32.mxu1 %vm515_vm2, %v16674_v24  ;;  %v17128_v11 = vld [vmem:[#allocation3 + $0x20] sm:$0xff] }
 0x4ca   : > { %21436 = vmatprep.subr.msk.mxu0 %vm1110_vm1, %v18893_v55  ;;  %21562 = vmatprep.subr.msk.mxu1 %vm1110_vm1, %v18990_v31 }
 0x4cb   : > { %21414 = vmatmul.mubr.msk.f32.gmra.mrb[42].mxu0 %vm515_vm2, %v15301_v34  ;;  %21540 = vmatmul.mubr.msk.f32.gmra.mrb[42].mxu1 %vm515_vm2, %v16675_v57  ;;  %v15750_v34 = vld [vmem:[#allocation3 + $0x9f] sm:$0xff] }
 0x4cc   : > { %21416 = vmatprep.mubr.msk.f32.mxu0 %vm515_vm2, %v15302_v58  ;;  %21542 = vmatprep.mubr.msk.f32.mxu1 %vm515_vm2, %v16676_v12  ;;  %v15751_v58 = vld [vmem:[#allocation3 + $0xa7] sm:$0xff] }
 0x4cf   : > { %21417 = vmatmul.mubr.msk.f32.gmra.mrb[44].mxu0 %vm515_vm2, %v15303_v8  ;;  %21543 = vmatmul.mubr.msk.f32.gmra.mrb[44].mxu1 %vm515_vm2, %v16677_v16  ;;  %v17134_v8 = vld [vmem:[#allocation3 + $0x50] sm:$0xff] }
 0x4d0   : > { %21419 = vmatprep.mubr.msk.f32.mxu0 %vm515_vm2, %v15304_v20  ;;  %21545 = vmatprep.mubr.msk.f32.mxu1 %vm515_vm2, %v16678_v17  ;;  %v17279_v20 = vld [vmem:[#allocation3 + $0x90] sm:$0xff] }
 0x4d3   : > { %21420 = vmatmul.mubr.msk.f32.gmra.mrb[46].mxu0 %vm515_vm2, %v25460_v38  ;;  %21546 = vmatmul.mubr.msk.f32.gmra.mrb[46].mxu1 %vm515_vm2, %v25462_v63  ;;  %v19000_v38 = vld [vmem:[%s25996_s7 + $0x18] sm:$0xf] }
 0x4d4   : > { %21424 = vmatprep.mubr.msk.f32.mxu0 %vm515_vm2, %v15447_v49  ;;  %21550 = vmatprep.mubr.msk.f32.mxu1 %vm515_vm2, %v25067_v3  ;;  %v16824_v3 = vld [vmem:[#allocation3 + $0x148] sm:$0xff] }
 0x4d5   : > { %v17282_v49 = vld [vmem:[#allocation3 + $0xa8] sm:$0xff] }
 0x4d7   : > { %21425 = vmatmul.mubr.msk.f32.vlgmr.msra.gmra.mrb[40].mxu0 %vm515_vm2, %v16673_v45  ;;  %21551 = vmatmul.mubr.msk.f32.vlgmr.msra.gmra.mrb[40].mxu1 %vm515_vm2, %v16822_v14  ;;  %v15747_v45 = vld [vmem:[#allocation3 + $0x87] sm:$0xff] }
 0x4d8   : > { %21437 = vmatpush3.msk.msra.mxu0 %vm1110_vm1, %v18893_v55  ;;  %21563 = vmatpush3.msk.msra.mxu1 %vm1110_vm1, %v18990_v31  ;;  %v15755_v55 = vmul.f32 %v22698_v36, %v15747_v45  ;;  %v15756_v36 = vmul.f32 %v22709_v41, %v15748_v26  ;;  %v17130_v31 = vld [vmem:[#allocation3 + $0x30] sm:$0xff]  ;;  %v15758_v41 = vmul.f32 %v22744_v56, %v15750_v34  ;;  %v15902_v56 = vld [vmem:[#allocation3 + $0x18] sm:$0xff] }
 0x4d9   : > { %21427 = vmatprep.mubr.msk.f32.mxu0 %vm515_vm2, %v16674_v24  ;;  %21553 = vmatprep.mubr.msk.f32.mxu1 %vm515_vm2, %v16823_v32 }
 0x4da   : > { %21450 = vmatprep.subr.msk.mxu0 %vm1110_vm1, %v18903_v35  ;;  %21576 = vmatprep.subr.msk.mxu1 %vm1110_vm1, %v19000_v38 }
 0x4db   : > { %21428 = vmatmul.mubr.msk.f32.gmra.mrb[42].mxu0 %vm515_vm2, %v16675_v57  ;;  %21554 = vmatmul.mubr.msk.f32.gmra.mrb[42].mxu1 %vm515_vm2, %v16824_v3  ;;  %v17131_v57 = vld [vmem:[#allocation3 + $0x38] sm:$0xff] }
 0x4dc   : > { %21430 = vmatprep.mubr.msk.f32.mxu0 %vm515_vm2, %v16676_v12  ;;  %21556 = vmatprep.mubr.msk.f32.mxu1 %vm515_vm2, %v16825_v60  ;;  %v15752_v12 = vld [vmem:[#allocation3 + $0xaf] sm:$0xff] }
 0x4df   : > { %21431 = vmatmul.mubr.msk.f32.gmra.mrb[44].mxu0 %vm515_vm2, %v16677_v16  ;;  %21557 = vmatmul.mubr.msk.f32.gmra.mrb[44].mxu1 %vm515_vm2, %v16826_v30  ;;  %v15760_v16 = vmul.f32 %v22765_v2, %v15752_v12  ;;  %v17278_v2 = vld [vmem:[#allocation3 + $0x88] sm:$0xff] }
 0x4e0   : > { %21433 = vmatprep.mubr.msk.f32.mxu0 %vm515_vm2, %v16678_v17  ;;  %21559 = vmatprep.mubr.msk.f32.mxu1 %vm515_vm2, %v16827_v42  ;;  %v17281_v17 = vld [vmem:[#allocation3 + $0xa0] sm:$0xff] }
 0x4e3   : > { %21434 = vmatmul.mubr.msk.f32.gmra.mrb[46].mxu0 %vm515_vm2, %v25462_v63  ;;  %21560 = vmatmul.mubr.msk.f32.gmra.mrb[46].mxu1 %vm515_vm2, %v25506_v22  ;;  %v16974_v63 = vld [vmem:[#allocation3 + $0xf1] sm:$0xff] }
 0x4e4   : > { %21438 = vmatprep.mubr.msk.f32.mxu0 %vm515_vm2, %v15596_v46  ;;  %21564 = vmatprep.mubr.msk.f32.mxu1 %vm515_vm2, %v25510_v18  ;;  %v16981_v18 = vmul.f32 %v22752_v61, %v16973_v1  ;;  %v16982_v28 = vmul.f32 %v22755_v62, %v16974_v63  ;;  %v26082_v46 = vld [vmem:[#allocation26_spill] sm:$0xff]  ;;  %v26084_v1 = vld [vmem:[#allocation28_spill] sm:$0xff] }
 0x4e5   : > { %v17437_v21 = vmul.f32 %v22755_v62, %v26082_v46  ;;  %v25882_v62 = vld [vmem:[%s25997_s8] ss:$0 sm:$0xff] }
 0x4e7   : > { %21439 = vmatmul.mubr.msk.f32.vlgmr.msra.gmra.mrb[40].mxu0 %vm515_vm2, %v16822_v14  ;;  %21565 = vmatmul.mubr.msk.f32.vlgmr.msra.gmra.mrb[40].mxu1 %vm515_vm2, %v16979_v29  ;;  %v17283_v14 = vld [vmem:[#allocation3 + $0xb0] sm:$0xff] }
 0x4e8   : > { %21451 = vmatpush3.msk.msra.mxu0 %vm1110_vm1, %v18903_v35  ;;  %21577 = vmatpush3.msk.msra.mxu1 %vm1110_vm1, %v19000_v38  ;;  %v26078_v35 = vld [vmem:[#allocation21_spill] sm:$0xff] }
 0x4e9   : > { %21441 = vmatprep.mubr.msk.f32.mxu0 %vm515_vm2, %v16823_v32  ;;  %21567 = vmatprep.mubr.msk.f32.mxu1 %vm515_vm2, %v16980_v44  ;;  %v17433_v38 = vmul.f32 %v22687_v33, %v26078_v35  ;;  %v16051_v32 = vld [vmem:[#allocation3 + $0x78] sm:$0xff]  ;;  %v26081_v33 = vld [vmem:[#allocation25_spill] sm:$0xff]  ;;  %v17439_v44 = vmul.f32 %v22776_v6, %v26084_v1 }
 0x4ea   : > { %21464 = vmatprep.subr.msk.mxu0 %vm1110_vm1, %v18913_v51  ;;  %21590 = vmatprep.subr.msk.mxu1 %vm1110_vm1, %v19010_v4  ;;  %v17436_v19 = vmul.f32 %v22752_v61, %v26081_v33 }
 0x4eb   : > { %21442 = vmatmul.mubr.msk.f32.gmra.mrb[42].mxu0 %vm515_vm2, %v16824_v3  ;;  %21568 = vmatmul.mubr.msk.f32.gmra.mrb[42].mxu1 %vm515_vm2, %v16981_v18  ;;  %v26079_v3 = vld [vmem:[#allocation22_spill] sm:$0xff] }
 0x4ec   : > { %21444 = vmatprep.mubr.msk.f32.mxu0 %vm515_vm2, %v16825_v60  ;;  %21570 = vmatprep.mubr.msk.f32.mxu1 %vm515_vm2, %v16982_v28  ;;  %v17434_v60 = vmul.f32 %v22719_v47, %v26079_v3  ;;  %v17432_v47 = vld [vmem:[#allocation3 + $0x51] sm:$0xff] }
 0x4ed   : > { %v17440_v61 = vmul.f32 %v22779_v7, %v17432_v47 }
 0x4ef   : > { %21445 = vmatmul.mubr.msk.f32.gmra.mrb[44].mxu0 %vm515_vm2, %v16826_v30  ;;  %21571 = vmatmul.mubr.msk.f32.gmra.mrb[44].mxu1 %vm515_vm2, %v16983_v10  ;;  %v26080_v30 = vld [vmem:[#allocation24_spill] sm:$0xff] }
 0x4f0   : > { %21447 = vmatprep.mubr.msk.f32.mxu0 %vm515_vm2, %v16827_v42  ;;  %21573 = vmatprep.mubr.msk.f32.mxu1 %vm515_vm2, %v16984_v48  ;;  %v17435_v42 = vmul.f32 %v22726_v50, %v26080_v30  ;;  %v26083_v50 = vld [vmem:[#allocation27_spill] sm:$0xff] }
 0x4f1   : > { %v17438_v29 = vmul.f32 %v22785_v9, %v26083_v50 }
 0x4f3   : > { %21448 = vmatmul.mubr.msk.f32.gmra.mrb[46].mxu0 %vm515_vm2, %v25506_v22  ;;  %21574 = vmatmul.mubr.msk.f32.gmra.mrb[46].mxu1 %vm515_vm2, %v25561_v23  ;;  %v15749_v22 = vld [vmem:[#allocation3 + $0x97] sm:$0xff]  ;;  %v18923_v23 = vld [vmem:[%s25996_s7 + $0x20] sm:$0xf] }
 0x4f4   : > { %21452 = vmatprep.mubr.msk.f32.mxu0 %vm515_vm2, %v15753_v43  ;;  %21578 = vmatprep.mubr.msk.f32.mxu1 %vm515_vm2, %v25196_v54  ;;  %v19020_v54 = vld [vmem:[%s25996_s7 + $0x20] sm:$0xf]  ;;  %v15757_v24 = vmul.f32 %v22733_v52, %v15749_v22  ;;  %v15759_v52 = vmul.f32 %v22761_v0, %v15751_v58 }
 0x4f5   : > { %v17277_v0 = vld [vmem:[#allocation3 + $0x80] sm:$0xff] }
 0x4f7   : > { %21453 = vmatmul.mubr.msk.f32.vlgmr.msra.gmra.mrb[40].mxu0 %vm515_vm2, %v15754_v5  ;;  %21579 = vmatmul.mubr.msk.f32.vlgmr.msra.gmra.mrb[40].mxu1 %vm515_vm2, %v17128_v11 }
 0x4f8   : > { %21465 = vmatpush3.msk.msra.mxu0 %vm1110_vm1, %v18913_v51  ;;  %21591 = vmatpush3.msk.msra.mxu1 %vm1110_vm1, %v19010_v4 }
 0x4f9   : > { %21455 = vmatprep.mubr.msk.f32.mxu0 %vm515_vm2, %v15755_v55  ;;  %21581 = vmatprep.mubr.msk.f32.mxu1 %vm515_vm2, %v17129_v27 }
 0x4fa   : > { %21478 = vmatprep.subr.msk.mxu0 %vm1110_vm1, %v18923_v23  ;;  %21604 = vmatprep.subr.msk.mxu1 %vm1110_vm1, %v19020_v54 }
 0x4fb   : > { %21456 = vmatmul.mubr.msk.f32.gmra.mrb[42].mxu0 %vm515_vm2, %v15756_v36  ;;  %21582 = vmatmul.mubr.msk.f32.gmra.mrb[42].mxu1 %vm515_vm2, %v17130_v31 }
 0x4fc   : > { %21458 = vmatprep.mubr.msk.f32.mxu0 %vm515_vm2, %v15757_v24  ;;  %21584 = vmatprep.mubr.msk.f32.mxu1 %vm515_vm2, %v17131_v57 }
 0x4ff   : > { %21459 = vmatmul.mubr.msk.f32.gmra.mrb[44].mxu0 %vm515_vm2, %v15758_v41  ;;  %21585 = vmatmul.mubr.msk.f32.gmra.mrb[44].mxu1 %vm515_vm2, %v17132_v25 }
 0x500   : > { %21461 = vmatprep.mubr.msk.f32.mxu0 %vm515_vm2, %v15759_v52  ;;  %21587 = vmatprep.mubr.msk.f32.mxu1 %vm515_vm2, %v17133_v59 }
 0x503   : > { %21462 = vmatmul.mubr.msk.f32.gmra.mrb[46].mxu0 %vm515_vm2, %v15760_v16  ;;  %21588 = vmatmul.mubr.msk.f32.gmra.mrb[46].mxu1 %vm515_vm2, %v17134_v8 }
 0x504   : > { %21466 = vmatprep.mubr.msk.f32.mxu0 %vm515_vm2, %v15902_v56  ;;  %21592 = vmatprep.mubr.msk.f32.mxu1 %vm515_vm2, %v26072_v53  ;;  %v17280_v53 = vld [vmem:[#allocation3 + $0x98] sm:$0xff] }
 0x507   : > { %21467 = vmatmul.mubr.msk.f32.vlgmr.msra.gmra.mrb[40].mxu0 %vm515_vm2, %v17128_v11  ;;  %21593 = vmatmul.mubr.msk.f32.vlgmr.msra.gmra.mrb[40].mxu1 %vm515_vm2, %v17277_v0 }
 0x508   : > { %21479 = vmatpush3.msk.msra.mxu0 %vm1110_vm1, %v18923_v23  ;;  %21605 = vmatpush3.msk.msra.mxu1 %vm1110_vm1, %v19020_v54 }
 0x509   : > { %21469 = vmatprep.mubr.msk.f32.mxu0 %vm515_vm2, %v17129_v27  ;;  %21595 = vmatprep.mubr.msk.f32.mxu1 %vm515_vm2, %v17278_v2 }
 0x50b   : > { %21470 = vmatmul.mubr.msk.f32.gmra.mrb[42].mxu0 %vm515_vm2, %v17130_v31  ;;  %21596 = vmatmul.mubr.msk.f32.gmra.mrb[42].mxu1 %vm515_vm2, %v17279_v20 }
 0x50c   : > { %21472 = vmatprep.mubr.msk.f32.mxu0 %vm515_vm2, %v17131_v57  ;;  %21598 = vmatprep.mubr.msk.f32.mxu1 %vm515_vm2, %v17280_v53 }
 0x50f   : > { %21473 = vmatmul.mubr.msk.f32.gmra.mrb[44].mxu0 %vm515_vm2, %v17132_v25  ;;  %21599 = vmatmul.mubr.msk.f32.gmra.mrb[44].mxu1 %vm515_vm2, %v17281_v17 }
 0x510   : > { %21475 = vmatprep.mubr.msk.f32.mxu0 %vm515_vm2, %v17133_v59  ;;  %21601 = vmatprep.mubr.msk.f32.mxu1 %vm515_vm2, %v17282_v49 }
 0x513   : > { %21476 = vmatmul.mubr.msk.f32.gmra.mrb[46].mxu0 %vm515_vm2, %v17134_v8  ;;  %21602 = vmatmul.mubr.msk.f32.gmra.mrb[46].mxu1 %vm515_vm2, %v17283_v14 }
 0x514   : > { %21480 = vmatprep.mubr.msk.f32.mxu0 %vm515_vm2, %v16051_v32  ;;  %21606 = vmatprep.mubr.msk.f32.mxu1 %vm515_vm2, %v17433_v38 }
 0x517   : > { %21481 = vmatmul.mubr.msk.f32.vlgmr.msra.gmra.mrb[40].mxu0 %vm515_vm2, %v17277_v0  ;;  %21607 = vmatmul.mubr.msk.f32.vlgmr.msra.gmra.mrb[40].mxu1 %vm515_vm2, %v17434_v60 }
 0x518   : > { %21483 = vmatprep.mubr.msk.f32.mxu0 %vm515_vm2, %v17278_v2  ;;  %21609 = vmatprep.mubr.msk.f32.mxu1 %vm515_vm2, %v17435_v42 }
 0x51b   : > { %21484 = vmatmul.mubr.msk.f32.gmra.mrb[42].mxu0 %vm515_vm2, %v17279_v20  ;;  %21610 = vmatmul.mubr.msk.f32.gmra.mrb[42].mxu1 %vm515_vm2, %v17436_v19 }
 0x51c   : > { %21486 = vmatprep.mubr.msk.f32.mxu0 %vm515_vm2, %v17280_v53  ;;  %21612 = vmatprep.mubr.msk.f32.mxu1 %vm515_vm2, %v17437_v21 }
 0x51f   : > { %21487 = vmatmul.mubr.msk.f32.gmra.mrb[44].mxu0 %vm515_vm2, %v17281_v17  ;;  %21613 = vmatmul.mubr.msk.f32.gmra.mrb[44].mxu1 %vm515_vm2, %v17438_v29 }
 0x520   : > { %21489 = vmatprep.mubr.msk.f32.mxu0 %vm515_vm2, %v17282_v49  ;;  %21615 = vmatprep.mubr.msk.f32.mxu1 %vm515_vm2, %v17439_v44 }
 0x523   : > { %21490 = vmatmul.mubr.msk.f32.gmra.mrb[46].mxu0 %vm515_vm2, %v17283_v14  ;;  %21616 = vmatmul.mubr.msk.f32.gmra.mrb[46].mxu1 %vm515_vm2, %v17440_v61 }
 0x55a   : > { %v21230_v6 = vpop.f32.mrb[32].mxu0  ;;  %v21356_v9 = vpop.f32.mrb[32].mxu1 }
 0x55b   : > { %v21650_v63 = vadd.f32 %v21230_v6, %v25882_v62  ;;  %v21658_v7 = vadd.f32 %v21356_v9, %v25882_v62  ;;  %v13390_v51 = vpop.f32.mrb[33].mxu0  ;;  %v14771_v4 = vpop.f32.mrb[33].mxu1 }
 0x55c   : > { %v21651_v18 = vadd.f32 %v25882_v62, %v13390_v51  ;;  %v21659_v28 = vadd.f32 %v25882_v62, %v14771_v4 }
 0x55d   : > { %v13438_v37 = vmax.f32 %v21650_v63, 0.0  ;;  %v14819_v39 = vmax.f32 %v21658_v7, 0.0 }
 0x55e   : > { %v13437_v10 = vmax.f32 %v21651_v18, 0.0  ;;  %v14818_v48 = vmax.f32 %v21659_v28, 0.0  ;;  %v21233_v13 = vpop.f32.mrb[34].mxu0  ;;  %v21359_v40 = vpop.f32.mrb[34].mxu1 }
 0x55f   : > { %13446 = vst.msk [vmem:[%s25890_s13 + $0x8] sm:$0xff] %vm515_vm2, %v13438_v37  ;;  %18837 = vst.msk [vmem:[%s25890_s13 + $0x48] sm:$0xff] %vm515_vm2, %v14819_v39  ;;  %v21652_v43 = vadd.f32 %v21233_v13, %v25882_v62  ;;  %v21660_v15 = vadd.f32 %v21359_v40, %v25882_v62  ;;  %v13400_v45 = vpop.f32.mrb[35].mxu0  ;;  %v14781_v5 = vpop.f32.mrb[35].mxu1 }
 0x560   : > { %13445 = vst.msk [vmem:[%s25890_s13] sm:$0xff] %vm515_vm2, %v13437_v10  ;;  %18836 = vst.msk [vmem:[%s25890_s13 + $0x40] sm:$0xff] %vm515_vm2, %v14818_v48  ;;  %v21653_v11 = vadd.f32 %v25882_v62, %v13400_v45  ;;  %v21661_v26 = vadd.f32 %v25882_v62, %v14781_v5 }
 0x561   : > { %v13440_v55 = vmax.f32 %v21652_v43, 0.0  ;;  %v14821_v22 = vmax.f32 %v21660_v15, 0.0 }
 0x562   : > { %v13439_v23 = vmax.f32 %v21653_v11, 0.0  ;;  %v14820_v54 = vmax.f32 %v21661_v26, 0.0  ;;  %v21236_v27 = vpop.f32.mrb[36].mxu0  ;;  %v21362_v36 = vpop.f32.mrb[36].mxu1 }
 0x563   : > { %13448 = vst.msk [vmem:[%s25890_s13 + $0x18] sm:$0xff] %vm515_vm2, %v13440_v55  ;;  %18839 = vst.msk [vmem:[%s25890_s13 + $0x58] sm:$0xff] %vm515_vm2, %v14821_v22  ;;  %v21654_v31 = vadd.f32 %v21236_v27, %v25882_v62  ;;  %v21662_v24 = vadd.f32 %v21362_v36, %v25882_v62  ;;  %v13410_v34 = vpop.f32.mrb[37].mxu0  ;;  %v14791_v57 = vpop.f32.mrb[37].mxu1 }
 0x564   : > { %13447 = vst.msk [vmem:[%s25890_s13 + $0x10] sm:$0xff] %vm515_vm2, %v13439_v23  ;;  %18838 = vst.msk [vmem:[%s25890_s13 + $0x50] sm:$0xff] %vm515_vm2, %v14820_v54  ;;  %v21655_v58 = vadd.f32 %v25882_v62, %v13410_v34  ;;  %v21663_v41 = vadd.f32 %v25882_v62, %v14791_v57 }
 0x565   : > { %v13442_v25 = vmax.f32 %v21654_v31, 0.0  ;;  %v14823_v52 = vmax.f32 %v21662_v24, 0.0 }
 0x566   : > { %v13441_v12 = vmax.f32 %v21655_v58, 0.0  ;;  %v14822_v59 = vmax.f32 %v21663_v41, 0.0  ;;  %v21239_v8 = vpop.f32.mrb[38].mxu0  ;;  %v21365_v16 = vpop.f32.mrb[38].mxu1 }
 0x567   : > { %13450 = vst.msk [vmem:[%s25890_s13 + $0x28] sm:$0xff] %vm515_vm2, %v13442_v25  ;;  %18841 = vst.msk [vmem:[%s25890_s13 + $0x68] sm:$0xff] %vm515_vm2, %v14823_v52  ;;  %v21656_v56 = vadd.f32 %v21239_v8, %v25882_v62  ;;  %v21664_v0 = vadd.f32 %v21365_v16, %v25882_v62  ;;  %v13420_v2 = vpop.f32.mrb[39].mxu0  ;;  %v14801_v20 = vpop.f32.mrb[39].mxu1 }
 0x568   : > { %13449 = vst.msk [vmem:[%s25890_s13 + $0x20] sm:$0xff] %vm515_vm2, %v13441_v12  ;;  %18840 = vst.msk [vmem:[%s25890_s13 + $0x60] sm:$0xff] %vm515_vm2, %v14822_v59  ;;  %v21657_v53 = vadd.f32 %v25882_v62, %v13420_v2  ;;  %v21665_v17 = vadd.f32 %v25882_v62, %v14801_v20 }
 0x569   : > { %v13444_v49 = vmax.f32 %v21656_v56, 0.0  ;;  %v14825_v14 = vmax.f32 %v21664_v0, 0.0 }
 0x56a   : > { %v13443_v35 = vmax.f32 %v21657_v53, 0.0  ;;  %v14824_v38 = vmax.f32 %v21665_v17, 0.0 }
 0x56b   : > { %13452 = vst.msk [vmem:[%s25890_s13 + $0x38] sm:$0xff] %vm515_vm2, %v13444_v49  ;;  %18843 = vst.msk [vmem:[%s25890_s13 + $0x78] sm:$0xff] %vm515_vm2, %v14825_v14 }
 0x56c   : > { %13451 = vst.msk [vmem:[%s25890_s13 + $0x30] sm:$0xff] %vm515_vm2, %v13443_v35  ;;  %18842 = vst.msk [vmem:[%s25890_s13 + $0x70] sm:$0xff] %vm515_vm2, %v14824_v38 }
 0x5ea   : > { %v21482_v32 = vpop.f32.mrb[40].mxu0  ;;  %v21608_v3 = vpop.f32.mrb[40].mxu1 }
 0x5eb   : > { %v21666_v60 = vadd.f32 %v21482_v32, %v25882_v62  ;;  %v21674_v30 = vadd.f32 %v21608_v3, %v25882_v62  ;;  %v16153_v42 = vpop.f32.mrb[41].mxu0  ;;  %v17535_v33 = vpop.f32.mrb[41].mxu1 }
 0x5ec   : > { %v21667_v19 = vadd.f32 %v25882_v62, %v16153_v42  ;;  %v21675_v46 = vadd.f32 %v25882_v62, %v17535_v33 }
 0x5ed   : > { %v16201_v21 = vmax.f32 %v21666_v60, 0.0  ;;  %v17583_v47 = vmax.f32 %v21674_v30, 0.0 }
 0x5ee   : > { %v16200_v50 = vmax.f32 %v21667_v19, 0.0  ;;  %v17582_v29 = vmax.f32 %v21675_v46, 0.0  ;;  %v21485_v1 = vpop.f32.mrb[42].mxu0  ;;  %v21611_v44 = vpop.f32.mrb[42].mxu1 }
 0x5ef   : > { %18934 = vst.msk [vmem:[%s25890_s13 + $0x88] sm:$0xff] %vm515_vm2, %v16201_v21  ;;  %19031 = vst.msk [vmem:[%s25890_s13 + $0xc8] sm:$0xff] %vm515_vm2, %v17583_v47  ;;  %v21668_v61 = vadd.f32 %v21485_v1, %v25882_v62  ;;  %v21676_v6 = vadd.f32 %v21611_v44, %v25882_v62  ;;  %v16163_v9 = vpop.f32.mrb[43].mxu0  ;;  %v17545_v63 = vpop.f32.mrb[43].mxu1 }
 0x5f0   : > { %18933 = vst.msk [vmem:[%s25890_s13 + $0x80] sm:$0xff] %vm515_vm2, %v16200_v50  ;;  %19030 = vst.msk [vmem:[%s25890_s13 + $0xc0] sm:$0xff] %vm515_vm2, %v17582_v29  ;;  %v21669_v7 = vadd.f32 %v25882_v62, %v16163_v9  ;;  %v21677_v51 = vadd.f32 %v25882_v62, %v17545_v63 }
 0x5f1   : > { %v16203_v4 = vmax.f32 %v21668_v61, 0.0  ;;  %v17585_v18 = vmax.f32 %v21676_v6, 0.0 }
 0x5f2   : > { %v16202_v28 = vmax.f32 %v21669_v7, 0.0  ;;  %v17584_v37 = vmax.f32 %v21677_v51, 0.0  ;;  %v21488_v39 = vpop.f32.mrb[44].mxu0  ;;  %v21614_v10 = vpop.f32.mrb[44].mxu1 }
 0x5f3   : > { %18936 = vst.msk [vmem:[%s25890_s13 + $0x98] sm:$0xff] %vm515_vm2, %v16203_v4  ;;  %19033 = vst.msk [vmem:[%s25890_s13 + $0xd8] sm:$0xff] %vm515_vm2, %v17585_v18  ;;  %v21670_v48 = vadd.f32 %v21488_v39, %v25882_v62  ;;  %v21678_v13 = vadd.f32 %v21614_v10, %v25882_v62  ;;  %v16173_v40 = vpop.f32.mrb[45].mxu0  ;;  %v17555_v43 = vpop.f32.mrb[45].mxu1 }
 0x5f4   : > { %18935 = vst.msk [vmem:[%s25890_s13 + $0x90] sm:$0xff] %vm515_vm2, %v16202_v28  ;;  %19032 = vst.msk [vmem:[%s25890_s13 + $0xd0] sm:$0xff] %vm515_vm2, %v17584_v37  ;;  %v21671_v15 = vadd.f32 %v25882_v62, %v16173_v40  ;;  %v21679_v45 = vadd.f32 %v25882_v62, %v17555_v43 }
 0x5f5   : > { %v16205_v5 = vmax.f32 %v21670_v48, 0.0  ;;  %v17587_v11 = vmax.f32 %v21678_v13, 0.0 }
 0x5f6   : > { %v16204_v26 = vmax.f32 %v21671_v15, 0.0  ;;  %v17586_v55 = vmax.f32 %v21679_v45, 0.0  ;;  %v21491_v22 = vpop.f32.mrb[46].mxu0  ;;  %v21617_v23 = vpop.f32.mrb[46].mxu1 }
 0x5f7   : > { %18938 = vst.msk [vmem:[%s25890_s13 + $0xa8] sm:$0xff] %vm515_vm2, %v16205_v5  ;;  %19035 = vst.msk [vmem:[%s25890_s13 + $0xe8] sm:$0xff] %vm515_vm2, %v17587_v11  ;;  %v21672_v54 = vadd.f32 %v21491_v22, %v25882_v62  ;;  %v21680_v27 = vadd.f32 %v21617_v23, %v25882_v62  ;;  %v16183_v36 = vpop.f32.mrb[47].mxu0  ;;  %v17565_v31 = vpop.f32.mrb[47].mxu1 }
 0x5f8   : > { %18937 = vst.msk [vmem:[%s25890_s13 + $0xa0] sm:$0xff] %vm515_vm2, %v16204_v26  ;;  %19034 = vst.msk [vmem:[%s25890_s13 + $0xe0] sm:$0xff] %vm515_vm2, %v17586_v55  ;;  %v21673_v24 = vadd.f32 %v25882_v62, %v16183_v36  ;;  %v21681_v34 = vadd.f32 %v25882_v62, %v17565_v31 }
 0x5f9   : > { %v16207_v57 = vmax.f32 %v21672_v54, 0.0  ;;  %v17589_v58 = vmax.f32 %v21680_v27, 0.0 }
 0x5fa   : > { %v16206_v41 = vmax.f32 %v21673_v24, 0.0  ;;  %v17588_v25 = vmax.f32 %v21681_v34, 0.0 }
 0x5fb   : > { %18940 = vst.msk [vmem:[%s25890_s13 + $0xb8] sm:$0xff] %vm515_vm2, %v16207_v57  ;;  %19037 = vst.msk [vmem:[%s25890_s13 + $0xf8] sm:$0xff] %vm515_vm2, %v17589_v58 }
 0x5fc   : > { %18939 = vst.msk [vmem:[%s25890_s13 + $0xb0] sm:$0xff] %vm515_vm2, %v16206_v41  ;;  %19036 = vst.msk [vmem:[%s25890_s13 + $0xf0] sm:$0xff] %vm515_vm2, %v17588_v25 }
 0x5fd PF: > { %s19_s30 = sadd.s32 1, %s22498_s30  }
 0x5fe   : > { %p16_p4 = scmp.ge.s32.totalorder %s19_s30, 4  }
 0x600   :  { %18 = sbr.rel (!%p16_p4) target bundleno = 1 (0x1), region = 128 }

</bundles_post_ra>
